<compile_context>
chip_gen: v7x
topology: tpu7x:2x2x1
jax: 0.10.0
libtpu: 0.0.40
codegen_flags: <defaults>
</compile_context>

<pallas_src>
import functools

import jax
import jax.numpy as jnp
from jax.experimental import pallas as pl
from jax.experimental.pallas import tpu as pltpu

EPS = 1e-5
VMEM_LIMIT = 48 * 1024 * 1024  # below v7x's 64 MiB physical, above the 32 MiB default


def _round_up(x, m):
    return ((x + m - 1) // m) * m


def _pick_tile_h(H, W):
    """Largest divisor of H giving ~<=4096 rows per tile with (tile*W) % 8 == 0."""
    target = max(1, 4096 // max(W, 1))
    for th in range(min(H, target), 0, -1):
        if H % th == 0 and (th * W) % 8 == 0:
            return th
    return H


# --------------------------------------------------------------------------- #
# Pass 1: conv as 9 accumulated tap-matmuls (bf16 MXU) + per-tile channel stats
# --------------------------------------------------------------------------- #
def _conv_stats_kernel(x_ref, w_ref, y_ref, st_ref, *, th, w_out):
    # x_ref : (1, H+2, W+2, Cin)   bf16   (resident across the H-tile axis)
    # w_ref : (9, Cin, Cout_p)     bf16
    # y_ref : (1, th*W, Cout_p)    f32
    # st_ref: (1, 1, 2, Cout_p)    f32    [sum; sum of squares]
    i = pl.program_id(1)
    h0 = i * th
    cin = x_ref.shape[3]
    cout = w_ref.shape[2]

    acc = jnp.zeros((th * w_out, cout), jnp.float32)
    for kh in range(3):
        rows = x_ref[0, pl.ds(h0 + kh, th), :, :]          # (th, W+2, Cin) bf16
        for kw in range(3):
            slab = rows[:, kw:kw + w_out, :].reshape(th * w_out, cin)
            acc = acc + jnp.dot(slab, w_ref[3 * kh + kw],
                                preferred_element_type=jnp.float32)

    y_ref[0] = acc
    s = jnp.sum(acc, axis=0, keepdims=True)                # (1, Cout_p)
    ss = jnp.sum(acc * acc, axis=0, keepdims=True)         # (1, Cout_p)
    st_ref[0, 0] = jnp.concatenate([s, ss], axis=0)        # (2, Cout_p)


# --------------------------------------------------------------------------- #
# Pass 2: fused normalize (folded scale/shift) + ReLU, row-tiled
# --------------------------------------------------------------------------- #
def _bn_relu_kernel(y_ref, sc_ref, sh_ref, o_ref):
    y = y_ref[...]                                         # (tile_r, Cout_p) f32
    out = jnp.maximum(y * sc_ref[...] + sh_ref[...], 0.0)
    o_ref[...] = out.astype(o_ref.dtype)


# --------------------------------------------------------------------------- #
# One conv -> BN(train) -> ReLU stage
# --------------------------------------------------------------------------- #
def _stage(xpad_bf16, w9, gamma_p, beta_p, out_dtype):
    N, Hp, Wp, Cin = xpad_bf16.shape
    H, W = Hp - 2, Wp - 2
    Cout_p = w9.shape[-1]
    TH = _pick_tile_h(H, W)
    nH = H // TH
    R = N * H * W

    y, stats = pl.pallas_call(
        functools.partial(_conv_stats_kernel, th=TH, w_out=W),
        grid=(N, nH),
        in_specs=[
            pl.BlockSpec((1, Hp, Wp, Cin), lambda n, i: (n, 0, 0, 0)),
            pl.BlockSpec((9, Cin, Cout_p), lambda n, i: (0, 0, 0)),
        ],
        out_specs=(
            pl.BlockSpec((1, TH * W, Cout_p), lambda n, i: (n, i, 0)),
            pl.BlockSpec((1, 1, 2, Cout_p), lambda n, i: (n, i, 0, 0)),
        ),
        out_shape=(
            jax.ShapeDtypeStruct((N, H * W, Cout_p), jnp.float32),
            jax.ShapeDtypeStruct((N, nH, 2, Cout_p), jnp.float32),
        ),
        compiler_params=pltpu.CompilerParams(
            dimension_semantics=("parallel", "parallel"),
            vmem_limit_bytes=VMEM_LIMIT),
        cost_estimate=pl.CostEstimate(
            flops=2 * R * 9 * Cin * Cout_p,
            transcendentals=0,
            bytes_accessed=(xpad_bf16.size * 2 + w9.size * 2
                            + R * Cout_p * 4 + N * nH * 2 * Cout_p * 4)),
    )(xpad_bf16, w9)

    # Tiny per-channel reductions + folded scale/shift (pure scalar/vector glue).
    s = jnp.sum(stats[:, :, 0, :], axis=(0, 1))
    ss = jnp.sum(stats[:, :, 1, :], axis=(0, 1))
    mean = s / R
    var = ss / R - mean * mean                             # biased variance (train-mode BN)
    inv = jax.lax.rsqrt(var + EPS)
    scale = (gamma_p * inv).reshape(1, Cout_p).astype(jnp.float32)
    shift = (beta_p - mean * gamma_p * inv).reshape(1, Cout_p).astype(jnp.float32)

    y2 = y.reshape(R, Cout_p)
    tile_r = R if R <= 1024 else 1024
    out2d = pl.pallas_call(
        _bn_relu_kernel,
        grid=(pl.cdiv(R, tile_r),),
        in_specs=[
            pl.BlockSpec((tile_r, Cout_p), lambda i: (i, 0)),
            pl.BlockSpec((1, Cout_p), lambda i: (0, 0)),
            pl.BlockSpec((1, Cout_p), lambda i: (0, 0)),
        ],
        out_specs=pl.BlockSpec((tile_r, Cout_p), lambda i: (i, 0)),
        out_shape=jax.ShapeDtypeStruct((R, Cout_p), out_dtype),
        compiler_params=pltpu.CompilerParams(
            dimension_semantics=("parallel",),
            vmem_limit_bytes=VMEM_LIMIT),
        cost_estimate=pl.CostEstimate(
            flops=3 * R * Cout_p,
            transcendentals=0,
            bytes_accessed=R * Cout_p * (4 + jnp.dtype(out_dtype).itemsize)
                           + 2 * Cout_p * 4),
    )(y2, scale, shift)

    return out2d.reshape(N, H, W, Cout_p)


# --------------------------------------------------------------------------- #
# Weight / parameter repacking glue
# --------------------------------------------------------------------------- #
def _repack_weight(w_oihw, cin_pad, cout_pad):
    """(Cout, Cin, 3, 3) -> (9, Cin_pad, Cout_pad) bf16, tap-major (kh*3+kw)."""
    Cout, Cin, KH, KW = w_oihw.shape
    w9 = jnp.transpose(w_oihw, (2, 3, 1, 0)).reshape(KH * KW, Cin, Cout)
    w9 = jnp.pad(w9, ((0, 0), (0, cin_pad - Cin), (0, cout_pad - Cout)))
    return w9.astype(jnp.bfloat16)


def _pad_vec(v, n):
    return jnp.pad(v.astype(jnp.float32), (0, n - v.shape[0]))


def _spatial_pad(x_nhwc):
    return jnp.pad(x_nhwc, ((0, 0), (1, 1), (1, 1), (0, 0)))


@jax.jit
def unet_conv_block(x_nchw, w1, b1, g1, be1, w2, b2, g2, be2):
    """Forward pass equivalent to UNetConvBlock(in, out, 3, ReLU) in train mode."""
    # Conv biases b1/b2 are mathematically cancelled by the BN mean subtraction
    # (train mode), so they are intentionally not used.
    del b1, b2
    N, Cin, H, W = x_nchw.shape
    Cout1, Cout2 = w1.shape[0], w2.shape[0]
    C1p = _round_up(Cout1, 128)   # lane-dense channel padding
    C2p = _round_up(Cout2, 128)

    x = jnp.transpose(x_nchw, (0, 2, 3, 1)).astype(jnp.bfloat16)   # NHWC bf16
    xpad = _spatial_pad(x)

    h = _stage(xpad, _repack_weight(w1, Cin, C1p),
               _pad_vec(g1, C1p), _pad_vec(be1, C1p), jnp.bfloat16)
    hpad = _spatial_pad(h)                                         # padded channels are 0
    o = _stage(hpad, _repack_weight(w2, C1p, C2p),
               _pad_vec(g2, C2p), _pad_vec(be2, C2p), jnp.float32)

    return jnp.transpose(o[..., :Cout2], (0, 3, 1, 2))             # NCHW


# --------------------------------------------------------------------------- #
# Pure-JAX reference (matching bf16 conv-operand precision) for correctness check
# --------------------------------------------------------------------------- #
def reference(x_nchw, w1, b1, g1, be1, w2, b2, g2, be2):
    def conv(x, w, b):
        xq = x.astype(jnp.bfloat16).astype(jnp.float32)
        wq = w.astype(jnp.bfloat16).astype(jnp.float32)
        y = jax.lax.conv_general_dilated(
            xq, wq, window_strides=(1, 1), padding=((1, 1), (1, 1)),
            dimension_numbers=("NCHW", "OIHW", "NCHW"),
            preferred_element_type=jnp.float32)
        return y + b[None, :, None, None]

    def bn_relu(y, g, be):
        mean = jnp.mean(y, axis=(0, 2, 3), keepdims=True)
        var = jnp.mean((y - mean) ** 2, axis=(0, 2, 3), keepdims=True)
        yhat = (y - mean) * jax.lax.rsqrt(var + EPS)
        return jnp.maximum(yhat * g[None, :, None, None] + be[None, :, None, None], 0.0)

    h = bn_relu(conv(x_nchw, w1, b1), g1, be1)
    h = h.astype(jnp.bfloat16).astype(jnp.float32)   # kernel hands off bf16 between stages
    return bn_relu(conv(h, w2, b2), g2, be2)


# --------------------------------------------------------------------------- #
if __name__ == "__main__":
    N, Cin, Cout, H, W = 2, 4, 8, 16, 16

    key = jax.random.PRNGKey(0)
    kx, kw1, kb1, kw2, kb2 = jax.random.split(key, 5)

    x = jax.random.normal(kx, (N, Cin, H, W), dtype=jnp.float32)

    # Deterministic synthetic parameters (shapes mirror nn.Conv2d / nn.BatchNorm2d).
    w1 = 0.1 * jax.random.normal(kw1, (Cout, Cin, 3, 3), dtype=jnp.float32)
    b1 = 0.1 * jax.random.normal(kb1, (Cout,), dtype=jnp.float32)
    w2 = 0.1 * jax.random.normal(kw2, (Cout, Cout, 3, 3), dtype=jnp.float32)
    b2 = 0.1 * jax.random.normal(kb2, (Cout,), dtype=jnp.float32)
    g1 = jnp.ones((Cout,), jnp.float32)    # BatchNorm2d default weight
    be1 = jnp.zeros((Cout,), jnp.float32)  # BatchNorm2d default bias
    g2 = jnp.ones((Cout,), jnp.float32)
    be2 = jnp.zeros((Cout,), jnp.float32)

    out = unet_conv_block(x, w1, b1, g1, be1, w2, b2, g2, be2)
    out = jax.block_until_ready(out)

    ref = reference(x, w1, b1, g1, be1, w2, b2, g2, be2)
    assert out.shape == (N, Cout, H, W), out.shape
    err = float(jnp.max(jnp.abs(out - ref)))
    assert jnp.allclose(out, ref, atol=1e-2, rtol=1e-2), err

    print("KERNEL_OK")
</pallas_src>

<mosaic_0001>
module attributes {stable_mosaic.version = 11 : i64} {
  func.func @_conv_stats_kernel(%arg0: i32, %arg1: i32, %arg2: memref<1x18x18x4xbf16, #tpu.memory_space<vmem>>, %arg3: memref<9x4x128xbf16, #tpu.memory_space<vmem>>, %arg4: memref<1x256x128xf32, #tpu.memory_space<vmem>>, %arg5: memref<1x1x2x128xf32, #tpu.memory_space<vmem>>) attributes {dimension_semantics = [#tpu.dimension_semantics<parallel>, #tpu.dimension_semantics<parallel>], iteration_bounds = array<i64: 2, 1>, scalar_prefetch = 0 : i64, scratch_operands = 0 : i64, tpu.core_type = #tpu.core_type<tc>, window_params = [{transform_indices = @transform_0, window_bounds = array<i64: 1, 18, 18, 4>}, {pipeline_mode = #tpu.pipeline_mode<synchronous>, transform_indices = @transform_1, window_bounds = array<i64: 9, 4, 128>}, {transform_indices = @transform_2, window_bounds = array<i64: 1, 256, 128>}, {transform_indices = @transform_3, window_bounds = array<i64: 1, 1, 2, 128>}]} {
    %c16_i32 = arith.constant 16 : i32
    %0 = arith.muli %arg1, %c16_i32 : i32
    %cst = arith.constant 0.000000e+00 : f32
    %1 = vector.broadcast %cst : f32 to vector<256x128xf32>
    %c0_i32 = arith.constant 0 : i32
    %2 = arith.addi %0, %c0_i32 : i32
    %c0 = arith.constant 0 : index
    %3 = arith.index_cast %2 : i32 to index
    %c0_0 = arith.constant 0 : index
    %c0_1 = arith.constant 0 : index
    %4 = vector.load %arg2[%c0, %3, %c0_0, %c0_1] : memref<1x18x18x4xbf16, #tpu.memory_space<vmem>>, vector<1x16x18x4xbf16>
    %5 = vector.shape_cast %4 : vector<1x16x18x4xbf16> to vector<16x18x4xbf16>
    %6 = vector.extract_strided_slice %5 {offsets = [0, 0, 0], sizes = [16, 16, 4], strides = [1, 1, 1]} : vector<16x18x4xbf16> to vector<16x16x4xbf16>
    %7 = vector.shape_cast %6 : vector<16x16x4xbf16> to vector<256x4xbf16>
    %c0_2 = arith.constant 0 : index
    %c0_3 = arith.constant 0 : index
    %c0_4 = arith.constant 0 : index
    %8 = vector.load %arg3[%c0_2, %c0_3, %c0_4] : memref<9x4x128xbf16, #tpu.memory_space<vmem>>, vector<1x4x128xbf16>
    %9 = vector.shape_cast %8 : vector<1x4x128xbf16> to vector<4x128xbf16>
    %cst_5 = arith.constant dense<0.000000e+00> : vector<256x128xf32>
    %10 = tpu.matmul %7, %9, %cst_5 {dimension_numbers = #tpu.dot_dimension_numbers<[1], [0], [0], [1], [0, 0, 1, 1], [], []>} : vector<256x4xbf16>, vector<4x128xbf16>, vector<256x128xf32> -> vector<256x128xf32>
    %11 = arith.addf %1, %10 : vector<256x128xf32>
    %12 = vector.extract_strided_slice %5 {offsets = [0, 1, 0], sizes = [16, 16, 4], strides = [1, 1, 1]} : vector<16x18x4xbf16> to vector<16x16x4xbf16>
    %13 = vector.shape_cast %12 : vector<16x16x4xbf16> to vector<256x4xbf16>
    %c1 = arith.constant 1 : index
    %c0_6 = arith.constant 0 : index
    %c0_7 = arith.constant 0 : index
    %14 = vector.load %arg3[%c1, %c0_6, %c0_7] : memref<9x4x128xbf16, #tpu.memory_space<vmem>>, vector<1x4x128xbf16>
    %15 = vector.shape_cast %14 : vector<1x4x128xbf16> to vector<4x128xbf16>
    %cst_8 = arith.constant dense<0.000000e+00> : vector<256x128xf32>
    %16 = tpu.matmul %13, %15, %cst_8 {dimension_numbers = #tpu.dot_dimension_numbers<[1], [0], [0], [1], [0, 0, 1, 1], [], []>} : vector<256x4xbf16>, vector<4x128xbf16>, vector<256x128xf32> -> vector<256x128xf32>
    %17 = arith.addf %11, %16 : vector<256x128xf32>
    %18 = vector.extract_strided_slice %5 {offsets = [0, 2, 0], sizes = [16, 16, 4], strides = [1, 1, 1]} : vector<16x18x4xbf16> to vector<16x16x4xbf16>
    %19 = vector.shape_cast %18 : vector<16x16x4xbf16> to vector<256x4xbf16>
    %c2 = arith.constant 2 : index
    %c0_9 = arith.constant 0 : index
    %c0_10 = arith.constant 0 : index
    %20 = vector.load %arg3[%c2, %c0_9, %c0_10] : memref<9x4x128xbf16, #tpu.memory_space<vmem>>, vector<1x4x128xbf16>
    %21 = vector.shape_cast %20 : vector<1x4x128xbf16> to vector<4x128xbf16>
    %cst_11 = arith.constant dense<0.000000e+00> : vector<256x128xf32>
    %22 = tpu.matmul %19, %21, %cst_11 {dimension_numbers = #tpu.dot_dimension_numbers<[1], [0], [0], [1], [0, 0, 1, 1], [], []>} : vector<256x4xbf16>, vector<4x128xbf16>, vector<256x128xf32> -> vector<256x128xf32>
    %23 = arith.addf %17, %22 : vector<256x128xf32>
    %c1_i32 = arith.constant 1 : i32
    %24 = arith.addi %0, %c1_i32 : i32
    %c0_12 = arith.constant 0 : index
    %25 = arith.index_cast %24 : i32 to index
    %c0_13 = arith.constant 0 : index
    %c0_14 = arith.constant 0 : index
    %26 = vector.load %arg2[%c0_12, %25, %c0_13, %c0_14] : memref<1x18x18x4xbf16, #tpu.memory_space<vmem>>, vector<1x16x18x4xbf16>
    %27 = vector.shape_cast %26 : vector<1x16x18x4xbf16> to vector<16x18x4xbf16>
    %28 = vector.extract_strided_slice %27 {offsets = [0, 0, 0], sizes = [16, 16, 4], strides = [1, 1, 1]} : vector<16x18x4xbf16> to vector<16x16x4xbf16>
    %29 = vector.shape_cast %28 : vector<16x16x4xbf16> to vector<256x4xbf16>
    %c3 = arith.constant 3 : index
    %c0_15 = arith.constant 0 : index
    %c0_16 = arith.constant 0 : index
    %30 = vector.load %arg3[%c3, %c0_15, %c0_16] : memref<9x4x128xbf16, #tpu.memory_space<vmem>>, vector<1x4x128xbf16>
    %31 = vector.shape_cast %30 : vector<1x4x128xbf16> to vector<4x128xbf16>
    %cst_17 = arith.constant dense<0.000000e+00> : vector<256x128xf32>
    %32 = tpu.matmul %29, %31, %cst_17 {dimension_numbers = #tpu.dot_dimension_numbers<[1], [0], [0], [1], [0, 0, 1, 1], [], []>} : vector<256x4xbf16>, vector<4x128xbf16>, vector<256x128xf32> -> vector<256x128xf32>
    %33 = arith.addf %23, %32 : vector<256x128xf32>
    %34 = vector.extract_strided_slice %27 {offsets = [0, 1, 0], sizes = [16, 16, 4], strides = [1, 1, 1]} : vector<16x18x4xbf16> to vector<16x16x4xbf16>
    %35 = vector.shape_cast %34 : vector<16x16x4xbf16> to vector<256x4xbf16>
    %c4 = arith.constant 4 : index
    %c0_18 = arith.constant 0 : index
    %c0_19 = arith.constant 0 : index
    %36 = vector.load %arg3[%c4, %c0_18, %c0_19] : memref<9x4x128xbf16, #tpu.memory_space<vmem>>, vector<1x4x128xbf16>
    %37 = vector.shape_cast %36 : vector<1x4x128xbf16> to vector<4x128xbf16>
    %cst_20 = arith.constant dense<0.000000e+00> : vector<256x128xf32>
    %38 = tpu.matmul %35, %37, %cst_20 {dimension_numbers = #tpu.dot_dimension_numbers<[1], [0], [0], [1], [0, 0, 1, 1], [], []>} : vector<256x4xbf16>, vector<4x128xbf16>, vector<256x128xf32> -> vector<256x128xf32>
    %39 = arith.addf %33, %38 : vector<256x128xf32>
    %40 = vector.extract_strided_slice %27 {offsets = [0, 2, 0], sizes = [16, 16, 4], strides = [1, 1, 1]} : vector<16x18x4xbf16> to vector<16x16x4xbf16>
    %41 = vector.shape_cast %40 : vector<16x16x4xbf16> to vector<256x4xbf16>
    %c5 = arith.constant 5 : index
    %c0_21 = arith.constant 0 : index
    %c0_22 = arith.constant 0 : index
    %42 = vector.load %arg3[%c5, %c0_21, %c0_22] : memref<9x4x128xbf16, #tpu.memory_space<vmem>>, vector<1x4x128xbf16>
    %43 = vector.shape_cast %42 : vector<1x4x128xbf16> to vector<4x128xbf16>
    %cst_23 = arith.constant dense<0.000000e+00> : vector<256x128xf32>
    %44 = tpu.matmul %41, %43, %cst_23 {dimension_numbers = #tpu.dot_dimension_numbers<[1], [0], [0], [1], [0, 0, 1, 1], [], []>} : vector<256x4xbf16>, vector<4x128xbf16>, vector<256x128xf32> -> vector<256x128xf32>
    %45 = arith.addf %39, %44 : vector<256x128xf32>
    %c2_i32 = arith.constant 2 : i32
    %46 = arith.addi %0, %c2_i32 : i32
    %c0_24 = arith.constant 0 : index
    %47 = arith.index_cast %46 : i32 to index
    %c0_25 = arith.constant 0 : index
    %c0_26 = arith.constant 0 : index
    %48 = vector.load %arg2[%c0_24, %47, %c0_25, %c0_26] : memref<1x18x18x4xbf16, #tpu.memory_space<vmem>>, vector<1x16x18x4xbf16>
    %49 = vector.shape_cast %48 : vector<1x16x18x4xbf16> to vector<16x18x4xbf16>
    %50 = vector.extract_strided_slice %49 {offsets = [0, 0, 0], sizes = [16, 16, 4], strides = [1, 1, 1]} : vector<16x18x4xbf16> to vector<16x16x4xbf16>
    %51 = vector.shape_cast %50 : vector<16x16x4xbf16> to vector<256x4xbf16>
    %c6 = arith.constant 6 : index
    %c0_27 = arith.constant 0 : index
    %c0_28 = arith.constant 0 : index
    %52 = vector.load %arg3[%c6, %c0_27, %c0_28] : memref<9x4x128xbf16, #tpu.memory_space<vmem>>, vector<1x4x128xbf16>
    %53 = vector.shape_cast %52 : vector<1x4x128xbf16> to vector<4x128xbf16>
    %cst_29 = arith.constant dense<0.000000e+00> : vector<256x128xf32>
    %54 = tpu.matmul %51, %53, %cst_29 {dimension_numbers = #tpu.dot_dimension_numbers<[1], [0], [0], [1], [0, 0, 1, 1], [], []>} : vector<256x4xbf16>, vector<4x128xbf16>, vector<256x128xf32> -> vector<256x128xf32>
    %55 = arith.addf %45, %54 : vector<256x128xf32>
    %56 = vector.extract_strided_slice %49 {offsets = [0, 1, 0], sizes = [16, 16, 4], strides = [1, 1, 1]} : vector<16x18x4xbf16> to vector<16x16x4xbf16>
    %57 = vector.shape_cast %56 : vector<16x16x4xbf16> to vector<256x4xbf16>
    %c7 = arith.constant 7 : index
    %c0_30 = arith.constant 0 : index
    %c0_31 = arith.constant 0 : index
    %58 = vector.load %arg3[%c7, %c0_30, %c0_31] : memref<9x4x128xbf16, #tpu.memory_space<vmem>>, vector<1x4x128xbf16>
    %59 = vector.shape_cast %58 : vector<1x4x128xbf16> to vector<4x128xbf16>
    %cst_32 = arith.constant dense<0.000000e+00> : vector<256x128xf32>
    %60 = tpu.matmul %57, %59, %cst_32 {dimension_numbers = #tpu.dot_dimension_numbers<[1], [0], [0], [1], [0, 0, 1, 1], [], []>} : vector<256x4xbf16>, vector<4x128xbf16>, vector<256x128xf32> -> vector<256x128xf32>
    %61 = arith.addf %55, %60 : vector<256x128xf32>
    %62 = vector.extract_strided_slice %49 {offsets = [0, 2, 0], sizes = [16, 16, 4], strides = [1, 1, 1]} : vector<16x18x4xbf16> to vector<16x16x4xbf16>
    %63 = vector.shape_cast %62 : vector<16x16x4xbf16> to vector<256x4xbf16>
    %c8 = arith.constant 8 : index
    %c0_33 = arith.constant 0 : index
    %c0_34 = arith.constant 0 : index
    %64 = vector.load %arg3[%c8, %c0_33, %c0_34] : memref<9x4x128xbf16, #tpu.memory_space<vmem>>, vector<1x4x128xbf16>
    %65 = vector.shape_cast %64 : vector<1x4x128xbf16> to vector<4x128xbf16>
    %cst_35 = arith.constant dense<0.000000e+00> : vector<256x128xf32>
    %66 = tpu.matmul %63, %65, %cst_35 {dimension_numbers = #tpu.dot_dimension_numbers<[1], [0], [0], [1], [0, 0, 1, 1], [], []>} : vector<256x4xbf16>, vector<4x128xbf16>, vector<256x128xf32> -> vector<256x128xf32>
    %67 = arith.addf %61, %66 : vector<256x128xf32>
    %c0_36 = arith.constant 0 : index
    %c0_37 = arith.constant 0 : index
    %c0_38 = arith.constant 0 : index
    %68 = vector.load %arg4[%c0_36, %c0_37, %c0_38] : memref<1x256x128xf32, #tpu.memory_space<vmem>>, vector<1x256x128xf32>
    %69 = vector.shape_cast %68 : vector<1x256x128xf32> to vector<256x128xf32>
    %70 = vector.shape_cast %67 : vector<256x128xf32> to vector<1x256x128xf32>
    tpu.vector_store %arg4[%c0_36, %c0_37, %c0_38], %70 {strides = array<i32>} : memref<1x256x128xf32, #tpu.memory_space<vmem>>, vector<1x256x128xf32>,
    %cst_39 = arith.constant dense<0.000000e+00> : vector<128xf32>
    %71 = vector.multi_reduction <add>, %67, %cst_39 [0] : vector<256x128xf32> to vector<128xf32>
    %72 = vector.shape_cast %71 : vector<128xf32> to vector<1x128xf32>
    %73 = arith.mulf %67, %67 : vector<256x128xf32>
    %cst_40 = arith.constant dense<0.000000e+00> : vector<128xf32>
    %74 = vector.multi_reduction <add>, %73, %cst_40 [0] : vector<256x128xf32> to vector<128xf32>
    %75 = vector.shape_cast %74 : vector<128xf32> to vector<1x128xf32>
    %76 = tpu.concatenate %72, %75 in 0 : vector<1x128xf32>, vector<1x128xf32> -> vector<2x128xf32>
    %c0_41 = arith.constant 0 : index
    %c0_42 = arith.constant 0 : index
    %c0_43 = arith.constant 0 : index
    %c0_44 = arith.constant 0 : index
    %77 = vector.load %arg5[%c0_41, %c0_42, %c0_43, %c0_44] : memref<1x1x2x128xf32, #tpu.memory_space<vmem>>, vector<1x1x2x128xf32>
    %78 = vector.shape_cast %77 : vector<1x1x2x128xf32> to vector<2x128xf32>
    %79 = vector.shape_cast %76 : vector<2x128xf32> to vector<1x1x2x128xf32>
    tpu.vector_store %arg5[%c0_41, %c0_42, %c0_43, %c0_44], %79 {strides = array<i32>} : memref<1x1x2x128xf32, #tpu.memory_space<vmem>>, vector<1x1x2x128xf32>,
    return
  }
  func.func @transform_0(%arg0: i32, %arg1: i32) -> (i32, i32, i32, i32) {
    %c0_i32 = arith.constant 0 : i32
    %c0_i32_0 = arith.constant 0 : i32
    %c0_i32_1 = arith.constant 0 : i32
    %c0_i32_2 = arith.constant 0 : i32
    return %arg0, %c0_i32, %c0_i32_0, %c0_i32_1 : i32, i32, i32, i32
  }
  func.func @transform_1(%arg0: i32, %arg1: i32) -> (i32, i32, i32) {
    %c0_i32 = arith.constant 0 : i32
    %c0_i32_0 = arith.constant 0 : i32
    %c0_i32_1 = arith.constant 0 : i32
    %c0_i32_2 = arith.constant 0 : i32
    return %c0_i32, %c0_i32_0, %c0_i32_1 : i32, i32, i32
  }
  func.func @transform_2(%arg0: i32, %arg1: i32) -> (i32, i32, i32) {
    %c0_i32 = arith.constant 0 : i32
    %c0_i32_0 = arith.constant 0 : i32
    return %arg0, %arg1, %c0_i32 : i32, i32, i32
  }
  func.func @transform_3(%arg0: i32, %arg1: i32) -> (i32, i32, i32, i32) {
    %c0_i32 = arith.constant 0 : i32
    %c0_i32_0 = arith.constant 0 : i32
    %c0_i32_1 = arith.constant 0 : i32
    return %arg0, %arg1, %c0_i32, %c0_i32_0 : i32, i32, i32, i32
  }
}

module attributes {stable_mosaic.version = 11 : i64} {
  func.func @_bn_relu_kernel(%arg0: i32, %arg1: memref<512x128xf32, #tpu.memory_space<vmem>>, %arg2: memref<1x128xf32, #tpu.memory_space<vmem>>, %arg3: memref<1x128xf32, #tpu.memory_space<vmem>>, %arg4: memref<512x128xbf16, #tpu.memory_space<vmem>>) attributes {dimension_semantics = [#tpu.dimension_semantics<parallel>], iteration_bounds = array<i64: 1>, scalar_prefetch = 0 : i64, scratch_operands = 0 : i64, tpu.core_type = #tpu.core_type<tc>, window_params = [{transform_indices = @transform_0, window_bounds = array<i64: 512, 128>}, {pipeline_mode = #tpu.pipeline_mode<synchronous>, transform_indices = @transform_1, window_bounds = array<i64: 1, 128>}, {pipeline_mode = #tpu.pipeline_mode<synchronous>, transform_indices = @transform_2, window_bounds = array<i64: 1, 128>}, {transform_indices = @transform_3, window_bounds = array<i64: 512, 128>}]} {
    %c0 = arith.constant 0 : index
    %c0_0 = arith.constant 0 : index
    %0 = vector.load %arg1[%c0, %c0_0] : memref<512x128xf32, #tpu.memory_space<vmem>>, vector<512x128xf32>
    %c0_1 = arith.constant 0 : index
    %c0_2 = arith.constant 0 : index
    %1 = vector.load %arg2[%c0_1, %c0_2] : memref<1x128xf32, #tpu.memory_space<vmem>>, vector<1x128xf32>
    %2 = vector.broadcast %1 : vector<1x128xf32> to vector<512x128xf32>
    %3 = arith.mulf %0, %2 : vector<512x128xf32>
    %c0_3 = arith.constant 0 : index
    %c0_4 = arith.constant 0 : index
    %4 = vector.load %arg3[%c0_3, %c0_4] : memref<1x128xf32, #tpu.memory_space<vmem>>, vector<1x128xf32>
    %5 = vector.broadcast %4 : vector<1x128xf32> to vector<512x128xf32>
    %6 = arith.addf %3, %5 : vector<512x128xf32>
    %cst = arith.constant 0.000000e+00 : f32
    %7 = vector.broadcast %cst : f32 to vector<512x128xf32>
    %8 = arith.maximumf %6, %7 : vector<512x128xf32>
    %9 = arith.truncf %8 : vector<512x128xf32> to vector<512x128xbf16>
    %c0_5 = arith.constant 0 : index
    %c0_6 = arith.constant 0 : index
    %10 = vector.load %arg4[%c0_5, %c0_6] : memref<512x128xbf16, #tpu.memory_space<vmem>>, vector<512x128xbf16>
    tpu.vector_store %arg4[%c0_5, %c0_6], %9 {strides = array<i32>} : memref<512x128xbf16, #tpu.memory_space<vmem>>, vector<512x128xbf16>,
    return
  }
  func.func @transform_0(%arg0: i32) -> (i32, i32) {
    %c0_i32 = arith.constant 0 : i32
    %c0_i32_0 = arith.constant 0 : i32
    return %arg0, %c0_i32 : i32, i32
  }
  func.func @transform_1(%arg0: i32) -> (i32, i32) {
    %c0_i32 = arith.constant 0 : i32
    %c0_i32_0 = arith.constant 0 : i32
    %c0_i32_1 = arith.constant 0 : i32
    return %c0_i32, %c0_i32_0 : i32, i32
  }
  func.func @transform_2(%arg0: i32) -> (i32, i32) {
    %c0_i32 = arith.constant 0 : i32
    %c0_i32_0 = arith.constant 0 : i32
    %c0_i32_1 = arith.constant 0 : i32
    return %c0_i32, %c0_i32_0 : i32, i32
  }
  func.func @transform_3(%arg0: i32) -> (i32, i32) {
    %c0_i32 = arith.constant 0 : i32
    %c0_i32_0 = arith.constant 0 : i32
    return %arg0, %c0_i32 : i32, i32
  }
}

module attributes {stable_mosaic.version = 11 : i64} {
  func.func @_bn_relu_kernel(%arg0: i32, %arg1: memref<512x128xf32, #tpu.memory_space<vmem>>, %arg2: memref<1x128xf32, #tpu.memory_space<vmem>>, %arg3: memref<1x128xf32, #tpu.memory_space<vmem>>, %arg4: memref<512x128xf32, #tpu.memory_space<vmem>>) attributes {dimension_semantics = [#tpu.dimension_semantics<parallel>], iteration_bounds = array<i64: 1>, scalar_prefetch = 0 : i64, scratch_operands = 0 : i64, tpu.core_type = #tpu.core_type<tc>, window_params = [{transform_indices = @transform_0, window_bounds = array<i64: 512, 128>}, {pipeline_mode = #tpu.pipeline_mode<synchronous>, transform_indices = @transform_1, window_bounds = array<i64: 1, 128>}, {pipeline_mode = #tpu.pipeline_mode<synchronous>, transform_indices = @transform_2, window_bounds = array<i64: 1, 128>}, {transform_indices = @transform_3, window_bounds = array<i64: 512, 128>}]} {
    %c0 = arith.constant 0 : index
    %c0_0 = arith.constant 0 : index
    %0 = vector.load %arg1[%c0, %c0_0] : memref<512x128xf32, #tpu.memory_space<vmem>>, vector<512x128xf32>
    %c0_1 = arith.constant 0 : index
    %c0_2 = arith.constant 0 : index
    %1 = vector.load %arg2[%c0_1, %c0_2] : memref<1x128xf32, #tpu.memory_space<vmem>>, vector<1x128xf32>
    %2 = vector.broadcast %1 : vector<1x128xf32> to vector<512x128xf32>
    %3 = arith.mulf %0, %2 : vector<512x128xf32>
    %c0_3 = arith.constant 0 : index
    %c0_4 = arith.constant 0 : index
    %4 = vector.load %arg3[%c0_3, %c0_4] : memref<1x128xf32, #tpu.memory_space<vmem>>, vector<1x128xf32>
    %5 = vector.broadcast %4 : vector<1x128xf32> to vector<512x128xf32>
    %6 = arith.addf %3, %5 : vector<512x128xf32>
    %cst = arith.constant 0.000000e+00 : f32
    %7 = vector.broadcast %cst : f32 to vector<512x128xf32>
    %8 = arith.maximumf %6, %7 : vector<512x128xf32>
    %c0_5 = arith.constant 0 : index
    %c0_6 = arith.constant 0 : index
    %9 = vector.load %arg4[%c0_5, %c0_6] : memref<512x128xf32, #tpu.memory_space<vmem>>, vector<512x128xf32>
    tpu.vector_store %arg4[%c0_5, %c0_6], %8 {strides = array<i32>} : memref<512x128xf32, #tpu.memory_space<vmem>>, vector<512x128xf32>,
    return
  }
  func.func @transform_0(%arg0: i32) -> (i32, i32) {
    %c0_i32 = arith.constant 0 : i32
    %c0_i32_0 = arith.constant 0 : i32
    return %arg0, %c0_i32 : i32, i32
  }
  func.func @transform_1(%arg0: i32) -> (i32, i32) {
    %c0_i32 = arith.constant 0 : i32
    %c0_i32_0 = arith.constant 0 : i32
    %c0_i32_1 = arith.constant 0 : i32
    return %c0_i32, %c0_i32_0 : i32, i32
  }
  func.func @transform_2(%arg0: i32) -> (i32, i32) {
    %c0_i32 = arith.constant 0 : i32
    %c0_i32_0 = arith.constant 0 : i32
    %c0_i32_1 = arith.constant 0 : i32
    return %c0_i32, %c0_i32_0 : i32, i32
  }
  func.func @transform_3(%arg0: i32) -> (i32, i32) {
    %c0_i32 = arith.constant 0 : i32
    %c0_i32_0 = arith.constant 0 : i32
    return %arg0, %c0_i32 : i32, i32
  }
}

module attributes {stable_mosaic.version = 11 : i64} {
  func.func @_conv_stats_kernel(%arg0: i32, %arg1: i32, %arg2: memref<1x18x18x128xbf16, #tpu.memory_space<vmem>>, %arg3: memref<9x128x128xbf16, #tpu.memory_space<vmem>>, %arg4: memref<1x256x128xf32, #tpu.memory_space<vmem>>, %arg5: memref<1x1x2x128xf32, #tpu.memory_space<vmem>>) attributes {dimension_semantics = [#tpu.dimension_semantics<parallel>, #tpu.dimension_semantics<parallel>], iteration_bounds = array<i64: 2, 1>, scalar_prefetch = 0 : i64, scratch_operands = 0 : i64, tpu.core_type = #tpu.core_type<tc>, window_params = [{transform_indices = @transform_0, window_bounds = array<i64: 1, 18, 18, 128>}, {pipeline_mode = #tpu.pipeline_mode<synchronous>, transform_indices = @transform_1, window_bounds = array<i64: 9, 128, 128>}, {transform_indices = @transform_2, window_bounds = array<i64: 1, 256, 128>}, {transform_indices = @transform_3, window_bounds = array<i64: 1, 1, 2, 128>}]} {
    %c16_i32 = arith.constant 16 : i32
    %0 = arith.muli %arg1, %c16_i32 : i32
    %cst = arith.constant 0.000000e+00 : f32
    %1 = vector.broadcast %cst : f32 to vector<256x128xf32>
    %c0_i32 = arith.constant 0 : i32
    %2 = arith.addi %0, %c0_i32 : i32
    %c0 = arith.constant 0 : index
    %3 = arith.index_cast %2 : i32 to index
    %c0_0 = arith.constant 0 : index
    %c0_1 = arith.constant 0 : index
    %4 = vector.load %arg2[%c0, %3, %c0_0, %c0_1] : memref<1x18x18x128xbf16, #tpu.memory_space<vmem>>, vector<1x16x18x128xbf16>
    %5 = vector.shape_cast %4 : vector<1x16x18x128xbf16> to vector<16x18x128xbf16>
    %6 = vector.extract_strided_slice %5 {offsets = [0, 0, 0], sizes = [16, 16, 128], strides = [1, 1, 1]} : vector<16x18x128xbf16> to vector<16x16x128xbf16>
    %7 = vector.shape_cast %6 : vector<16x16x128xbf16> to vector<256x128xbf16>
    %c0_2 = arith.constant 0 : index
    %c0_3 = arith.constant 0 : index
    %c0_4 = arith.constant 0 : index
    %8 = vector.load %arg3[%c0_2, %c0_3, %c0_4] : memref<9x128x128xbf16, #tpu.memory_space<vmem>>, vector<1x128x128xbf16>
    %9 = vector.shape_cast %8 : vector<1x128x128xbf16> to vector<128x128xbf16>
    %cst_5 = arith.constant dense<0.000000e+00> : vector<256x128xf32>
    %10 = tpu.matmul %7, %9, %cst_5 {dimension_numbers = #tpu.dot_dimension_numbers<[1], [0], [0], [1], [0, 0, 1, 1], [], []>} : vector<256x128xbf16>, vector<128x128xbf16>, vector<256x128xf32> -> vector<256x128xf32>
    %11 = arith.addf %1, %10 : vector<256x128xf32>
    %12 = vector.extract_strided_slice %5 {offsets = [0, 1, 0], sizes = [16, 16, 128], strides = [1, 1, 1]} : vector<16x18x128xbf16> to vector<16x16x128xbf16>
    %13 = vector.shape_cast %12 : vector<16x16x128xbf16> to vector<256x128xbf16>
    %c1 = arith.constant 1 : index
    %c0_6 = arith.constant 0 : index
    %c0_7 = arith.constant 0 : index
    %14 = vector.load %arg3[%c1, %c0_6, %c0_7] : memref<9x128x128xbf16, #tpu.memory_space<vmem>>, vector<1x128x128xbf16>
    %15 = vector.shape_cast %14 : vector<1x128x128xbf16> to vector<128x128xbf16>
    %cst_8 = arith.constant dense<0.000000e+00> : vector<256x128xf32>
    %16 = tpu.matmul %13, %15, %cst_8 {dimension_numbers = #tpu.dot_dimension_numbers<[1], [0], [0], [1], [0, 0, 1, 1], [], []>} : vector<256x128xbf16>, vector<128x128xbf16>, vector<256x128xf32> -> vector<256x128xf32>
    %17 = arith.addf %11, %16 : vector<256x128xf32>
    %18 = vector.extract_strided_slice %5 {offsets = [0, 2, 0], sizes = [16, 16, 128], strides = [1, 1, 1]} : vector<16x18x128xbf16> to vector<16x16x128xbf16>
    %19 = vector.shape_cast %18 : vector<16x16x128xbf16> to vector<256x128xbf16>
    %c2 = arith.constant 2 : index
    %c0_9 = arith.constant 0 : index
    %c0_10 = arith.constant 0 : index
    %20 = vector.load %arg3[%c2, %c0_9, %c0_10] : memref<9x128x128xbf16, #tpu.memory_space<vmem>>, vector<1x128x128xbf16>
    %21 = vector.shape_cast %20 : vector<1x128x128xbf16> to vector<128x128xbf16>
    %cst_11 = arith.constant dense<0.000000e+00> : vector<256x128xf32>
    %22 = tpu.matmul %19, %21, %cst_11 {dimension_numbers = #tpu.dot_dimension_numbers<[1], [0], [0], [1], [0, 0, 1, 1], [], []>} : vector<256x128xbf16>, vector<128x128xbf16>, vector<256x128xf32> -> vector<256x128xf32>
    %23 = arith.addf %17, %22 : vector<256x128xf32>
    %c1_i32 = arith.constant 1 : i32
    %24 = arith.addi %0, %c1_i32 : i32
    %c0_12 = arith.constant 0 : index
    %25 = arith.index_cast %24 : i32 to index
    %c0_13 = arith.constant 0 : index
    %c0_14 = arith.constant 0 : index
    %26 = vector.load %arg2[%c0_12, %25, %c0_13, %c0_14] : memref<1x18x18x128xbf16, #tpu.memory_space<vmem>>, vector<1x16x18x128xbf16>
    %27 = vector.shape_cast %26 : vector<1x16x18x128xbf16> to vector<16x18x128xbf16>
    %28 = vector.extract_strided_slice %27 {offsets = [0, 0, 0], sizes = [16, 16, 128], strides = [1, 1, 1]} : vector<16x18x128xbf16> to vector<16x16x128xbf16>
    %29 = vector.shape_cast %28 : vector<16x16x128xbf16> to vector<256x128xbf16>
    %c3 = arith.constant 3 : index
    %c0_15 = arith.constant 0 : index
    %c0_16 = arith.constant 0 : index
    %30 = vector.load %arg3[%c3, %c0_15, %c0_16] : memref<9x128x128xbf16, #tpu.memory_space<vmem>>, vector<1x128x128xbf16>
    %31 = vector.shape_cast %30 : vector<1x128x128xbf16> to vector<128x128xbf16>
    %cst_17 = arith.constant dense<0.000000e+00> : vector<256x128xf32>
    %32 = tpu.matmul %29, %31, %cst_17 {dimension_numbers = #tpu.dot_dimension_numbers<[1], [0], [0], [1], [0, 0, 1, 1], [], []>} : vector<256x128xbf16>, vector<128x128xbf16>, vector<256x128xf32> -> vector<256x128xf32>
    %33 = arith.addf %23, %32 : vector<256x128xf32>
    %34 = vector.extract_strided_slice %27 {offsets = [0, 1, 0], sizes = [16, 16, 128], strides = [1, 1, 1]} : vector<16x18x128xbf16> to vector<16x16x128xbf16>
    %35 = vector.shape_cast %34 : vector<16x16x128xbf16> to vector<256x128xbf16>
    %c4 = arith.constant 4 : index
    %c0_18 = arith.constant 0 : index
    %c0_19 = arith.constant 0 : index
    %36 = vector.load %arg3[%c4, %c0_18, %c0_19] : memref<9x128x128xbf16, #tpu.memory_space<vmem>>, vector<1x128x128xbf16>
    %37 = vector.shape_cast %36 : vector<1x128x128xbf16> to vector<128x128xbf16>
    %cst_20 = arith.constant dense<0.000000e+00> : vector<256x128xf32>
    %38 = tpu.matmul %35, %37, %cst_20 {dimension_numbers = #tpu.dot_dimension_numbers<[1], [0], [0], [1], [0, 0, 1, 1], [], []>} : vector<256x128xbf16>, vector<128x128xbf16>, vector<256x128xf32> -> vector<256x128xf32>
    %39 = arith.addf %33, %38 : vector<256x128xf32>
    %40 = vector.extract_strided_slice %27 {offsets = [0, 2, 0], sizes = [16, 16, 128], strides = [1, 1, 1]} : vector<16x18x128xbf16> to vector<16x16x128xbf16>
    %41 = vector.shape_cast %40 : vector<16x16x128xbf16> to vector<256x128xbf16>
    %c5 = arith.constant 5 : index
    %c0_21 = arith.constant 0 : index
    %c0_22 = arith.constant 0 : index
    %42 = vector.load %arg3[%c5, %c0_21, %c0_22] : memref<9x128x128xbf16, #tpu.memory_space<vmem>>, vector<1x128x128xbf16>
    %43 = vector.shape_cast %42 : vector<1x128x128xbf16> to vector<128x128xbf16>
    %cst_23 = arith.constant dense<0.000000e+00> : vector<256x128xf32>
    %44 = tpu.matmul %41, %43, %cst_23 {dimension_numbers = #tpu.dot_dimension_numbers<[1], [0], [0], [1], [0, 0, 1, 1], [], []>} : vector<256x128xbf16>, vector<128x128xbf16>, vector<256x128xf32> -> vector<256x128xf32>
    %45 = arith.addf %39, %44 : vector<256x128xf32>
    %c2_i32 = arith.constant 2 : i32
    %46 = arith.addi %0, %c2_i32 : i32
    %c0_24 = arith.constant 0 : index
    %47 = arith.index_cast %46 : i32 to index
    %c0_25 = arith.constant 0 : index
    %c0_26 = arith.constant 0 : index
    %48 = vector.load %arg2[%c0_24, %47, %c0_25, %c0_26] : memref<1x18x18x128xbf16, #tpu.memory_space<vmem>>, vector<1x16x18x128xbf16>
    %49 = vector.shape_cast %48 : vector<1x16x18x128xbf16> to vector<16x18x128xbf16>
    %50 = vector.extract_strided_slice %49 {offsets = [0, 0, 0], sizes = [16, 16, 128], strides = [1, 1, 1]} : vector<16x18x128xbf16> to vector<16x16x128xbf16>
    %51 = vector.shape_cast %50 : vector<16x16x128xbf16> to vector<256x128xbf16>
    %c6 = arith.constant 6 : index
    %c0_27 = arith.constant 0 : index
    %c0_28 = arith.constant 0 : index
    %52 = vector.load %arg3[%c6, %c0_27, %c0_28] : memref<9x128x128xbf16, #tpu.memory_space<vmem>>, vector<1x128x128xbf16>
    %53 = vector.shape_cast %52 : vector<1x128x128xbf16> to vector<128x128xbf16>
    %cst_29 = arith.constant dense<0.000000e+00> : vector<256x128xf32>
    %54 = tpu.matmul %51, %53, %cst_29 {dimension_numbers = #tpu.dot_dimension_numbers<[1], [0], [0], [1], [0, 0, 1, 1], [], []>} : vector<256x128xbf16>, vector<128x128xbf16>, vector<256x128xf32> -> vector<256x128xf32>
    %55 = arith.addf %45, %54 : vector<256x128xf32>
    %56 = vector.extract_strided_slice %49 {offsets = [0, 1, 0], sizes = [16, 16, 128], strides = [1, 1, 1]} : vector<16x18x128xbf16> to vector<16x16x128xbf16>
    %57 = vector.shape_cast %56 : vector<16x16x128xbf16> to vector<256x128xbf16>
    %c7 = arith.constant 7 : index
    %c0_30 = arith.constant 0 : index
    %c0_31 = arith.constant 0 : index
    %58 = vector.load %arg3[%c7, %c0_30, %c0_31] : memref<9x128x128xbf16, #tpu.memory_space<vmem>>, vector<1x128x128xbf16>
    %59 = vector.shape_cast %58 : vector<1x128x128xbf16> to vector<128x128xbf16>
    %cst_32 = arith.constant dense<0.000000e+00> : vector<256x128xf32>
    %60 = tpu.matmul %57, %59, %cst_32 {dimension_numbers = #tpu.dot_dimension_numbers<[1], [0], [0], [1], [0, 0, 1, 1], [], []>} : vector<256x128xbf16>, vector<128x128xbf16>, vector<256x128xf32> -> vector<256x128xf32>
    %61 = arith.addf %55, %60 : vector<256x128xf32>
    %62 = vector.extract_strided_slice %49 {offsets = [0, 2, 0], sizes = [16, 16, 128], strides = [1, 1, 1]} : vector<16x18x128xbf16> to vector<16x16x128xbf16>
    %63 = vector.shape_cast %62 : vector<16x16x128xbf16> to vector<256x128xbf16>
    %c8 = arith.constant 8 : index
    %c0_33 = arith.constant 0 : index
    %c0_34 = arith.constant 0 : index
    %64 = vector.load %arg3[%c8, %c0_33, %c0_34] : memref<9x128x128xbf16, #tpu.memory_space<vmem>>, vector<1x128x128xbf16>
    %65 = vector.shape_cast %64 : vector<1x128x128xbf16> to vector<128x128xbf16>
    %cst_35 = arith.constant dense<0.000000e+00> : vector<256x128xf32>
    %66 = tpu.matmul %63, %65, %cst_35 {dimension_numbers = #tpu.dot_dimension_numbers<[1], [0], [0], [1], [0, 0, 1, 1], [], []>} : vector<256x128xbf16>, vector<128x128xbf16>, vector<256x128xf32> -> vector<256x128xf32>
    %67 = arith.addf %61, %66 : vector<256x128xf32>
    %c0_36 = arith.constant 0 : index
    %c0_37 = arith.constant 0 : index
    %c0_38 = arith.constant 0 : index
    %68 = vector.load %arg4[%c0_36, %c0_37, %c0_38] : memref<1x256x128xf32, #tpu.memory_space<vmem>>, vector<1x256x128xf32>
    %69 = vector.shape_cast %68 : vector<1x256x128xf32> to vector<256x128xf32>
    %70 = vector.shape_cast %67 : vector<256x128xf32> to vector<1x256x128xf32>
    tpu.vector_store %arg4[%c0_36, %c0_37, %c0_38], %70 {strides = array<i32>} : memref<1x256x128xf32, #tpu.memory_space<vmem>>, vector<1x256x128xf32>,
    %cst_39 = arith.constant dense<0.000000e+00> : vector<128xf32>
    %71 = vector.multi_reduction <add>, %67, %cst_39 [0] : vector<256x128xf32> to vector<128xf32>
    %72 = vector.shape_cast %71 : vector<128xf32> to vector<1x128xf32>
    %73 = arith.mulf %67, %67 : vector<256x128xf32>
    %cst_40 = arith.constant dense<0.000000e+00> : vector<128xf32>
    %74 = vector.multi_reduction <add>, %73, %cst_40 [0] : vector<256x128xf32> to vector<128xf32>
    %75 = vector.shape_cast %74 : vector<128xf32> to vector<1x128xf32>
    %76 = tpu.concatenate %72, %75 in 0 : vector<1x128xf32>, vector<1x128xf32> -> vector<2x128xf32>
    %c0_41 = arith.constant 0 : index
    %c0_42 = arith.constant 0 : index
    %c0_43 = arith.constant 0 : index
    %c0_44 = arith.constant 0 : index
    %77 = vector.load %arg5[%c0_41, %c0_42, %c0_43, %c0_44] : memref<1x1x2x128xf32, #tpu.memory_space<vmem>>, vector<1x1x2x128xf32>
    %78 = vector.shape_cast %77 : vector<1x1x2x128xf32> to vector<2x128xf32>
    %79 = vector.shape_cast %76 : vector<2x128xf32> to vector<1x1x2x128xf32>
    tpu.vector_store %arg5[%c0_41, %c0_42, %c0_43, %c0_44], %79 {strides = array<i32>} : memref<1x1x2x128xf32, #tpu.memory_space<vmem>>, vector<1x1x2x128xf32>,
    return
  }
  func.func @transform_0(%arg0: i32, %arg1: i32) -> (i32, i32, i32, i32) {
    %c0_i32 = arith.constant 0 : i32
    %c0_i32_0 = arith.constant 0 : i32
    %c0_i32_1 = arith.constant 0 : i32
    %c0_i32_2 = arith.constant 0 : i32
    return %arg0, %c0_i32, %c0_i32_0, %c0_i32_1 : i32, i32, i32, i32
  }
  func.func @transform_1(%arg0: i32, %arg1: i32) -> (i32, i32, i32) {
    %c0_i32 = arith.constant 0 : i32
    %c0_i32_0 = arith.constant 0 : i32
    %c0_i32_1 = arith.constant 0 : i32
    %c0_i32_2 = arith.constant 0 : i32
    return %c0_i32, %c0_i32_0, %c0_i32_1 : i32, i32, i32
  }
  func.func @transform_2(%arg0: i32, %arg1: i32) -> (i32, i32, i32) {
    %c0_i32 = arith.constant 0 : i32
    %c0_i32_0 = arith.constant 0 : i32
    return %arg0, %arg1, %c0_i32 : i32, i32, i32
  }
  func.func @transform_3(%arg0: i32, %arg1: i32) -> (i32, i32, i32, i32) {
    %c0_i32 = arith.constant 0 : i32
    %c0_i32_0 = arith.constant 0 : i32
    %c0_i32_1 = arith.constant 0 : i32
    return %arg0, %arg1, %c0_i32, %c0_i32_0 : i32, i32, i32, i32
  }
}

</mosaic_0001>

<bundles_post_ra>
// kernel: unet_conv_block.5
= control target key start
LH: loop header
LB: loop body
LE: loop exit
PB: predicated region body
PF: predicated region fallthrough
CT: control target
= control target key end

     0   :  { %s1375_s0 = inlined_call_operand.vmem [shape: f32[512,128], index: 0, kind: input, shape index: {}]   ;;  %s1376_s1 = inlined_call_operand.vmem [shape: f32[1,128], index: 1, kind: input, shape index: {}]   ;;  %s1377_s2 = inlined_call_operand.vmem [shape: f32[1,128], index: 2, kind: input, shape index: {}]   ;;  %s1378_s3 = inlined_call_operand.vmem [shape: bf16[512,128], index: 3, kind: output, shape index: {}]  }
   0x1   :  { %v14_v0 = vld [vmem:[%s1375_s0] sm:$0xff]  ;;  %v15_v1 = vld [vmem:[%s1375_s0 + $0x8] sm:$0xff]  ;;  %v16_v6 = vld [vmem:[%s1375_s0 + $0x10] sm:$0xff] }
   0x2   :  { %v958_v2 = vld [vmem:[%s1376_s1] ss:$0 sm:$0xff]  ;;  %v17_v7 = vld [vmem:[%s1375_s0 + $0x18] sm:$0xff]  ;;  %v19_v11 = vld [vmem:[%s1375_s0 + $0x28] sm:$0xff] }
   0x3   :  { %v85_v3 = vmul.f32 %v958_v2, %v14_v0  ;;  %v86_v4 = vmul.f32 %v958_v2, %v15_v1  ;;  %v965_v5 = vld [vmem:[%s1377_s2] ss:$0 sm:$0xff]  ;;  %v87_v8 = vmul.f32 %v958_v2, %v16_v6  ;;  %v88_v9 = vmul.f32 %v958_v2, %v17_v7  ;;  %v20_v12 = vld [vmem:[%s1375_s0 + $0x30] sm:$0xff]  ;;  %v21_v17 = vld [vmem:[%s1375_s0 + $0x38] sm:$0xff] }
   0x4   :  { %v18_v10 = vld [vmem:[%s1375_s0 + $0x20] sm:$0xff]  ;;  %v90_v16 = vmul.f32 %v958_v2, %v19_v11  ;;  %v91_v20 = vmul.f32 %v958_v2, %v20_v12  ;;  %v92_v21 = vmul.f32 %v958_v2, %v21_v17  ;;  %v23_v27 = vld [vmem:[%s1375_s0 + $0x48] sm:$0xff]  ;;  %v24_v32 = vld [vmem:[%s1375_s0 + $0x50] sm:$0xff] }
   0x5   :  { %v156_v13 = vadd.f32 %v965_v5, %v85_v3  ;;  %v157_v14 = vadd.f32 %v965_v5, %v86_v4  ;;  %v89_v15 = vmul.f32 %v958_v2, %v18_v10  ;;  %v158_v18 = vadd.f32 %v965_v5, %v87_v8  ;;  %v22_v22 = vld [vmem:[%s1375_s0 + $0x40] sm:$0xff]  ;;  %v25_v33 = vld [vmem:[%s1375_s0 + $0x58] sm:$0xff]  ;;  %v27_v39 = vld [vmem:[%s1375_s0 + $0x68] sm:$0xff] }
   0x6   :  { %v159_v19 = vadd.f32 %v965_v5, %v88_v9  ;;  %v161_v26 = vadd.f32 %v965_v5, %v90_v16  ;;  %v162_v30 = vadd.f32 %v965_v5, %v91_v20  ;;  %v163_v31 = vadd.f32 %v965_v5, %v92_v21  ;;  %v26_v38 = vld [vmem:[%s1375_s0 + $0x60] sm:$0xff]  ;;  %v28_v44 = vld [vmem:[%s1375_s0 + $0x70] sm:$0xff]  ;;  %v29_v49 = vld [vmem:[%s1375_s0 + $0x78] sm:$0xff] }
   0x7   :  { %v220_v23 = vmax.f32 %v156_v13, 0.0  ;;  %v221_v24 = vmax.f32 %v157_v14, 0.0  ;;  %v160_v25 = vadd.f32 %v965_v5, %v89_v15  ;;  %v222_v28 = vmax.f32 %v158_v18, 0.0  ;;  %v30_v54 = vld [vmem:[%s1375_s0 + $0x80] sm:$0xff]  ;;  %v31_v63 = vld [vmem:[%s1375_s0 + $0x88] sm:$0xff]  ;;  %v32_v6 = vld [vmem:[%s1375_s0 + $0x90] sm:$0xff] }
   0x8   :  { %v223_v29 = vmax.f32 %v159_v19, 0.0  ;;  %v225_v36 = vmax.f32 %v161_v26, 0.0  ;;  %v93_v37 = vmul.f32 %v958_v2, %v22_v22  ;;  %v226_v41 = vmax.f32 %v162_v30, 0.0  ;;  %v33_v7 = vld [vmem:[%s1375_s0 + $0x98] sm:$0xff]  ;;  %v34_v12 = vld [vmem:[%s1375_s0 + $0xa0] sm:$0xff]  ;;  %v35_v13 = vld [vmem:[%s1375_s0 + $0xa8] sm:$0xff] }
   0x9   :  { %v741_v34 = vpack.c.bf16 %v221_v24, %v220_v23  ;;  %v224_v35 = vmax.f32 %v160_v25, 0.0  ;;  %v227_v42 = vmax.f32 %v163_v31, 0.0  ;;  %v94_v43 = vmul.f32 %v958_v2, %v23_v27  ;;  %v36_v18 = vld [vmem:[%s1375_s0 + $0xb0] sm:$0xff]  ;;  %v37_v23 = vld [vmem:[%s1375_s0 + $0xb8] sm:$0xff] }
   0xa   :  { %v746_v40 = vpack.c.bf16 %v223_v29, %v222_v28  ;;  %v164_v46 = vadd.f32 %v965_v5, %v93_v37  ;;  %v95_v47 = vmul.f32 %v958_v2, %v24_v32  ;;  %v96_v48 = vmul.f32 %v958_v2, %v25_v33  ;;  %v38_v28 = vld [vmem:[%s1375_s0 + $0xc0] sm:$0xff]  ;;  %v39_v37 = vld [vmem:[%s1375_s0 + $0xc8] sm:$0xff] }
   0xb   :  { %742 = vst [vmem:[%s1378_s3] sm:$0xff] %v741_v34   ;;  %v751_v45 = vpack.c.bf16 %v225_v36, %v224_v35  ;;  %v756_v50 = vpack.c.bf16 %v227_v42, %v226_v41  ;;  %v165_v51 = vadd.f32 %v965_v5, %v94_v43  ;;  %v97_v52 = vmul.f32 %v958_v2, %v26_v38  ;;  %v40_v42 = vld [vmem:[%s1375_s0 + $0xd0] sm:$0xff]  ;;  %v41_v43 = vld [vmem:[%s1375_s0 + $0xd8] sm:$0xff] }
   0xc   :  { %898 = vst [vmem:[%s1378_s3 + $0x8] sm:$0xff] %v746_v40   ;;  %v98_v53 = vmul.f32 %v958_v2, %v27_v39  ;;  %v228_v55 = vmax.f32 %v164_v46, 0.0  ;;  %v166_v56 = vadd.f32 %v965_v5, %v95_v47  ;;  %v167_v57 = vadd.f32 %v965_v5, %v96_v48  ;;  %v42_v48 = vld [vmem:[%s1375_s0 + $0xe0] sm:$0xff] }
   0xd   :  { %899 = vst [vmem:[%s1378_s3 + $0x10] sm:$0xff] %v751_v45   ;;  %v99_v58 = vmul.f32 %v958_v2, %v28_v44  ;;  %900 = vst [vmem:[%s1378_s3 + $0x18] sm:$0xff] %v756_v50   ;;  %v229_v59 = vmax.f32 %v165_v51, 0.0  ;;  %v168_v60 = vadd.f32 %v965_v5, %v97_v52  ;;  %v100_v62 = vmul.f32 %v958_v2, %v29_v49  ;;  %v43_v49 = vld [vmem:[%s1375_s0 + $0xe8] sm:$0xff] }
   0xe   :  { %v169_v61 = vadd.f32 %v965_v5, %v98_v53  ;;  %v230_v0 = vmax.f32 %v166_v56, 0.0  ;;  %v231_v1 = vmax.f32 %v167_v57, 0.0  ;;  %v101_v4 = vmul.f32 %v958_v2, %v30_v54  ;;  %v44_v54 = vld [vmem:[%s1375_s0 + $0xf0] sm:$0xff] }
   0xf   :  { %v170_v3 = vadd.f32 %v965_v5, %v99_v58  ;;  %v761_v8 = vpack.c.bf16 %v229_v59, %v228_v55  ;;  %v232_v9 = vmax.f32 %v168_v60, 0.0  ;;  %v171_v11 = vadd.f32 %v965_v5, %v100_v62  ;;  %v45_v59 = vld [vmem:[%s1375_s0 + $0xf8] sm:$0xff] }
  0x10   :  { %v233_v10 = vmax.f32 %v169_v61, 0.0  ;;  %v766_v14 = vpack.c.bf16 %v231_v1, %v230_v0  ;;  %v102_v16 = vmul.f32 %v958_v2, %v31_v63  ;;  %v172_v17 = vadd.f32 %v965_v5, %v101_v4  ;;  %v46_v0 = vld [vmem:[%s1375_s0 + $0x100] sm:$0xff] }
  0x11   :  { %v234_v15 = vmax.f32 %v170_v3, 0.0  ;;  %901 = vst [vmem:[%s1378_s3 + $0x20] sm:$0xff] %v761_v8   ;;  %v235_v20 = vmax.f32 %v171_v11, 0.0  ;;  %v103_v21 = vmul.f32 %v958_v2, %v32_v6  ;;  %v104_v22 = vmul.f32 %v958_v2, %v33_v7  ;;  %v47_v11 = vld [vmem:[%s1375_s0 + $0x108] sm:$0xff] }
  0x12   :  { %v771_v19 = vpack.c.bf16 %v233_v10, %v232_v9  ;;  %902 = vst [vmem:[%s1378_s3 + $0x28] sm:$0xff] %v766_v14   ;;  %v173_v24 = vadd.f32 %v965_v5, %v102_v16  ;;  %v236_v25 = vmax.f32 %v172_v17, 0.0  ;;  %v105_v26 = vmul.f32 %v958_v2, %v34_v12  ;;  %v48_v16 = vld [vmem:[%s1375_s0 + $0x110] sm:$0xff]  ;;  %v49_v17 = vld [vmem:[%s1375_s0 + $0x118] sm:$0xff] }
  0x13   :  { %v106_v27 = vmul.f32 %v958_v2, %v35_v13  ;;  %v776_v29 = vpack.c.bf16 %v235_v20, %v234_v15  ;;  %v174_v30 = vadd.f32 %v965_v5, %v103_v21  ;;  %v175_v31 = vadd.f32 %v965_v5, %v104_v22  ;;  %v50_v22 = vld [vmem:[%s1375_s0 + $0x120] sm:$0xff] }
  0x14   :  { %903 = vst [vmem:[%s1378_s3 + $0x30] sm:$0xff] %v771_v19   ;;  %v107_v32 = vmul.f32 %v958_v2, %v36_v18  ;;  %v237_v33 = vmax.f32 %v173_v24, 0.0  ;;  %v176_v34 = vadd.f32 %v965_v5, %v105_v26  ;;  %v108_v36 = vmul.f32 %v958_v2, %v37_v23  ;;  %v51_v23 = vld [vmem:[%s1375_s0 + $0x128] sm:$0xff] }
  0x15   :  { %v177_v35 = vadd.f32 %v965_v5, %v106_v27  ;;  %904 = vst [vmem:[%s1378_s3 + $0x38] sm:$0xff] %v776_v29   ;;  %v238_v38 = vmax.f32 %v174_v30, 0.0  ;;  %v239_v39 = vmax.f32 %v175_v31, 0.0  ;;  %v109_v41 = vmul.f32 %v958_v2, %v38_v28  ;;  %v52_v28 = vld [vmem:[%s1375_s0 + $0x130] sm:$0xff] }
  0x16   :  { %v178_v40 = vadd.f32 %v965_v5, %v107_v32  ;;  %v781_v44 = vpack.c.bf16 %v237_v33, %v236_v25  ;;  %v240_v45 = vmax.f32 %v176_v34, 0.0  ;;  %v179_v47 = vadd.f32 %v965_v5, %v108_v36  ;;  %v53_v33 = vld [vmem:[%s1375_s0 + $0x138] sm:$0xff] }
  0x17   :  { %v241_v46 = vmax.f32 %v177_v35, 0.0  ;;  %v786_v50 = vpack.c.bf16 %v239_v39, %v238_v38  ;;  %v110_v52 = vmul.f32 %v958_v2, %v39_v37  ;;  %v180_v53 = vadd.f32 %v965_v5, %v109_v41  ;;  %v54_v38 = vld [vmem:[%s1375_s0 + $0x140] sm:$0xff] }
  0x18   :  { %v242_v51 = vmax.f32 %v178_v40, 0.0  ;;  %905 = vst [vmem:[%s1378_s3 + $0x40] sm:$0xff] %v781_v44   ;;  %v243_v56 = vmax.f32 %v179_v47, 0.0  ;;  %v111_v57 = vmul.f32 %v958_v2, %v40_v42  ;;  %v112_v58 = vmul.f32 %v958_v2, %v41_v43  ;;  %v55_v47 = vld [vmem:[%s1375_s0 + $0x148] sm:$0xff] }
  0x19   :  { %v791_v55 = vpack.c.bf16 %v241_v46, %v240_v45  ;;  %906 = vst [vmem:[%s1378_s3 + $0x48] sm:$0xff] %v786_v50   ;;  %v181_v60 = vadd.f32 %v965_v5, %v110_v52  ;;  %v244_v61 = vmax.f32 %v180_v53, 0.0  ;;  %v113_v62 = vmul.f32 %v958_v2, %v42_v48  ;;  %v56_v52 = vld [vmem:[%s1375_s0 + $0x150] sm:$0xff]  ;;  %v57_v53 = vld [vmem:[%s1375_s0 + $0x158] sm:$0xff] }
  0x1a   :  { %v114_v63 = vmul.f32 %v958_v2, %v43_v49  ;;  %v796_v1 = vpack.c.bf16 %v243_v56, %v242_v51  ;;  %v182_v3 = vadd.f32 %v965_v5, %v111_v57  ;;  %v183_v4 = vadd.f32 %v965_v5, %v112_v58  ;;  %v58_v58 = vld [vmem:[%s1375_s0 + $0x160] sm:$0xff] }
  0x1b   :  { %907 = vst [vmem:[%s1378_s3 + $0x50] sm:$0xff] %v791_v55   ;;  %v115_v6 = vmul.f32 %v958_v2, %v44_v54  ;;  %v245_v7 = vmax.f32 %v181_v60, 0.0  ;;  %v184_v8 = vadd.f32 %v965_v5, %v113_v62  ;;  %v116_v10 = vmul.f32 %v958_v2, %v45_v59  ;;  %v59_v59 = vld [vmem:[%s1375_s0 + $0x168] sm:$0xff] }
  0x1c   :  { %v185_v9 = vadd.f32 %v965_v5, %v114_v63  ;;  %908 = vst [vmem:[%s1378_s3 + $0x58] sm:$0xff] %v796_v1   ;;  %v246_v12 = vmax.f32 %v182_v3, 0.0  ;;  %v247_v13 = vmax.f32 %v183_v4, 0.0  ;;  %v117_v15 = vmul.f32 %v958_v2, %v46_v0  ;;  %v60_v0 = vld [vmem:[%s1375_s0 + $0x170] sm:$0xff] }
  0x1d   :  { %v186_v14 = vadd.f32 %v965_v5, %v115_v6  ;;  %v801_v18 = vpack.c.bf16 %v245_v7, %v244_v61  ;;  %v248_v19 = vmax.f32 %v184_v8, 0.0  ;;  %v187_v21 = vadd.f32 %v965_v5, %v116_v10  ;;  %v61_v7 = vld [vmem:[%s1375_s0 + $0x178] sm:$0xff] }
  0x1e   :  { %v249_v20 = vmax.f32 %v185_v9, 0.0  ;;  %v806_v24 = vpack.c.bf16 %v247_v13, %v246_v12  ;;  %v118_v26 = vmul.f32 %v958_v2, %v47_v11  ;;  %v188_v27 = vadd.f32 %v965_v5, %v117_v15  ;;  %v62_v12 = vld [vmem:[%s1375_s0 + $0x180] sm:$0xff] }
  0x1f   :  { %v250_v25 = vmax.f32 %v186_v14, 0.0  ;;  %909 = vst [vmem:[%s1378_s3 + $0x60] sm:$0xff] %v801_v18   ;;  %v251_v30 = vmax.f32 %v187_v21, 0.0  ;;  %v119_v31 = vmul.f32 %v958_v2, %v48_v16  ;;  %v120_v32 = vmul.f32 %v958_v2, %v49_v17  ;;  %v63_v21 = vld [vmem:[%s1375_s0 + $0x188] sm:$0xff] }
  0x20   :  { %v811_v29 = vpack.c.bf16 %v249_v20, %v248_v19  ;;  %910 = vst [vmem:[%s1378_s3 + $0x68] sm:$0xff] %v806_v24   ;;  %v189_v34 = vadd.f32 %v965_v5, %v118_v26  ;;  %v252_v35 = vmax.f32 %v188_v27, 0.0  ;;  %v121_v36 = vmul.f32 %v958_v2, %v50_v22  ;;  %v64_v26 = vld [vmem:[%s1375_s0 + $0x190] sm:$0xff]  ;;  %v65_v27 = vld [vmem:[%s1375_s0 + $0x198] sm:$0xff] }
  0x21   :  { %v122_v37 = vmul.f32 %v958_v2, %v51_v23  ;;  %v816_v39 = vpack.c.bf16 %v251_v30, %v250_v25  ;;  %v190_v40 = vadd.f32 %v965_v5, %v119_v31  ;;  %v191_v41 = vadd.f32 %v965_v5, %v120_v32  ;;  %v66_v32 = vld [vmem:[%s1375_s0 + $0x1a0] sm:$0xff] }
  0x22   :  { %911 = vst [vmem:[%s1378_s3 + $0x70] sm:$0xff] %v811_v29   ;;  %v123_v42 = vmul.f32 %v958_v2, %v52_v28  ;;  %v253_v43 = vmax.f32 %v189_v34, 0.0  ;;  %v192_v44 = vadd.f32 %v965_v5, %v121_v36  ;;  %v124_v46 = vmul.f32 %v958_v2, %v53_v33  ;;  %v67_v33 = vld [vmem:[%s1375_s0 + $0x1a8] sm:$0xff] }
  0x23   :  { %v193_v45 = vadd.f32 %v965_v5, %v122_v37  ;;  %912 = vst [vmem:[%s1378_s3 + $0x78] sm:$0xff] %v816_v39   ;;  %v254_v48 = vmax.f32 %v190_v40, 0.0  ;;  %v255_v49 = vmax.f32 %v191_v41, 0.0  ;;  %v125_v51 = vmul.f32 %v958_v2, %v54_v38  ;;  %v68_v38 = vld [vmem:[%s1375_s0 + $0x1b0] sm:$0xff] }
  0x24   :  { %v194_v50 = vadd.f32 %v965_v5, %v123_v42  ;;  %v821_v54 = vpack.c.bf16 %v253_v43, %v252_v35  ;;  %v256_v55 = vmax.f32 %v192_v44, 0.0  ;;  %v195_v57 = vadd.f32 %v965_v5, %v124_v46  ;;  %v69_v43 = vld [vmem:[%s1375_s0 + $0x1b8] sm:$0xff] }
  0x25   :  { %v257_v56 = vmax.f32 %v193_v45, 0.0  ;;  %v826_v60 = vpack.c.bf16 %v255_v49, %v254_v48  ;;  %v126_v62 = vmul.f32 %v958_v2, %v55_v47  ;;  %v196_v63 = vadd.f32 %v965_v5, %v125_v51  ;;  %v70_v48 = vld [vmem:[%s1375_s0 + $0x1c0] sm:$0xff] }
  0x26   :  { %v258_v61 = vmax.f32 %v194_v50, 0.0  ;;  %913 = vst [vmem:[%s1378_s3 + $0x80] sm:$0xff] %v821_v54   ;;  %v259_v3 = vmax.f32 %v195_v57, 0.0  ;;  %v127_v4 = vmul.f32 %v958_v2, %v56_v52  ;;  %v128_v6 = vmul.f32 %v958_v2, %v57_v53  ;;  %v71_v57 = vld [vmem:[%s1375_s0 + $0x1c8] sm:$0xff] }
  0x27   :  { %v831_v1 = vpack.c.bf16 %v257_v56, %v256_v55  ;;  %914 = vst [vmem:[%s1378_s3 + $0x88] sm:$0xff] %v826_v60   ;;  %v197_v8 = vadd.f32 %v965_v5, %v126_v62  ;;  %v260_v9 = vmax.f32 %v196_v63, 0.0  ;;  %v129_v10 = vmul.f32 %v958_v2, %v58_v58  ;;  %v72_v62 = vld [vmem:[%s1375_s0 + $0x1d0] sm:$0xff]  ;;  %v73_v63 = vld [vmem:[%s1375_s0 + $0x1d8] sm:$0xff] }
  0x28   :  { %v130_v11 = vmul.f32 %v958_v2, %v59_v59  ;;  %v836_v13 = vpack.c.bf16 %v259_v3, %v258_v61  ;;  %v198_v14 = vadd.f32 %v965_v5, %v127_v4  ;;  %v199_v15 = vadd.f32 %v965_v5, %v128_v6  ;;  %v74_v6 = vld [vmem:[%s1375_s0 + $0x1e0] sm:$0xff] }
  0x29   :  { %915 = vst [vmem:[%s1378_s3 + $0x90] sm:$0xff] %v831_v1   ;;  %v131_v16 = vmul.f32 %v958_v2, %v60_v0  ;;  %v261_v17 = vmax.f32 %v197_v8, 0.0  ;;  %v200_v18 = vadd.f32 %v965_v5, %v129_v10  ;;  %v132_v20 = vmul.f32 %v958_v2, %v61_v7  ;;  %v75_v7 = vld [vmem:[%s1375_s0 + $0x1e8] sm:$0xff] }
  0x2a   :  { %v201_v19 = vadd.f32 %v965_v5, %v130_v11  ;;  %916 = vst [vmem:[%s1378_s3 + $0x98] sm:$0xff] %v836_v13   ;;  %v262_v22 = vmax.f32 %v198_v14, 0.0  ;;  %v263_v23 = vmax.f32 %v199_v15, 0.0  ;;  %v133_v25 = vmul.f32 %v958_v2, %v62_v12  ;;  %v76_v12 = vld [vmem:[%s1375_s0 + $0x1f0] sm:$0xff] }
  0x2b   :  { %v202_v24 = vadd.f32 %v965_v5, %v131_v16  ;;  %v841_v28 = vpack.c.bf16 %v261_v17, %v260_v9  ;;  %v264_v29 = vmax.f32 %v200_v18, 0.0  ;;  %v203_v31 = vadd.f32 %v965_v5, %v132_v20  ;;  %v77_v17 = vld [vmem:[%s1375_s0 + $0x1f8] sm:$0xff] }
  0x2c   :  { %v265_v30 = vmax.f32 %v201_v19, 0.0  ;;  %v846_v34 = vpack.c.bf16 %v263_v23, %v262_v22  ;;  %v134_v36 = vmul.f32 %v958_v2, %v63_v21  ;;  %v204_v37 = vadd.f32 %v965_v5, %v133_v25 }
  0x2d   :  { %v266_v35 = vmax.f32 %v202_v24, 0.0  ;;  %917 = vst [vmem:[%s1378_s3 + $0xa0] sm:$0xff] %v841_v28   ;;  %v267_v40 = vmax.f32 %v203_v31, 0.0  ;;  %v135_v41 = vmul.f32 %v958_v2, %v64_v26  ;;  %v136_v42 = vmul.f32 %v958_v2, %v65_v27 }
  0x2e   :  { %v851_v39 = vpack.c.bf16 %v265_v30, %v264_v29  ;;  %918 = vst [vmem:[%s1378_s3 + $0xa8] sm:$0xff] %v846_v34   ;;  %v205_v44 = vadd.f32 %v965_v5, %v134_v36  ;;  %v268_v45 = vmax.f32 %v204_v37, 0.0  ;;  %v137_v46 = vmul.f32 %v958_v2, %v66_v32 }
  0x2f   :  { %v138_v47 = vmul.f32 %v958_v2, %v67_v33  ;;  %v856_v49 = vpack.c.bf16 %v267_v40, %v266_v35  ;;  %v206_v50 = vadd.f32 %v965_v5, %v135_v41  ;;  %v207_v51 = vadd.f32 %v965_v5, %v136_v42 }
  0x30   :  { %919 = vst [vmem:[%s1378_s3 + $0xb0] sm:$0xff] %v851_v39   ;;  %v139_v52 = vmul.f32 %v958_v2, %v68_v38  ;;  %v269_v53 = vmax.f32 %v205_v44, 0.0  ;;  %v208_v54 = vadd.f32 %v965_v5, %v137_v46  ;;  %v140_v56 = vmul.f32 %v958_v2, %v69_v43 }
  0x31   :  { %v209_v55 = vadd.f32 %v965_v5, %v138_v47  ;;  %920 = vst [vmem:[%s1378_s3 + $0xb8] sm:$0xff] %v856_v49   ;;  %v270_v58 = vmax.f32 %v206_v50, 0.0  ;;  %v271_v59 = vmax.f32 %v207_v51, 0.0  ;;  %v141_v61 = vmul.f32 %v958_v2, %v70_v48 }
  0x32   :  { %v210_v60 = vadd.f32 %v965_v5, %v139_v52  ;;  %v861_v0 = vpack.c.bf16 %v269_v53, %v268_v45  ;;  %v272_v1 = vmax.f32 %v208_v54, 0.0  ;;  %v211_v4 = vadd.f32 %v965_v5, %v140_v56 }
  0x33   :  { %v273_v3 = vmax.f32 %v209_v55, 0.0  ;;  %v866_v8 = vpack.c.bf16 %v271_v59, %v270_v58  ;;  %v142_v10 = vmul.f32 %v958_v2, %v71_v57  ;;  %v212_v11 = vadd.f32 %v965_v5, %v141_v61 }
  0x34   :  { %v274_v9 = vmax.f32 %v210_v60, 0.0  ;;  %921 = vst [vmem:[%s1378_s3 + $0xc0] sm:$0xff] %v861_v0   ;;  %v275_v14 = vmax.f32 %v211_v4, 0.0  ;;  %v143_v15 = vmul.f32 %v958_v2, %v72_v62  ;;  %v144_v16 = vmul.f32 %v958_v2, %v73_v63 }
  0x35   :  { %v871_v13 = vpack.c.bf16 %v273_v3, %v272_v1  ;;  %922 = vst [vmem:[%s1378_s3 + $0xc8] sm:$0xff] %v866_v8   ;;  %v213_v18 = vadd.f32 %v965_v5, %v142_v10  ;;  %v276_v19 = vmax.f32 %v212_v11, 0.0  ;;  %v145_v20 = vmul.f32 %v958_v2, %v74_v6 }
  0x36   :  { %v146_v21 = vmul.f32 %v958_v2, %v75_v7  ;;  %v876_v22 = vpack.c.bf16 %v275_v14, %v274_v9  ;;  %v214_v23 = vadd.f32 %v965_v5, %v143_v15  ;;  %v215_v24 = vadd.f32 %v965_v5, %v144_v16 }
  0x37   :  { %923 = vst [vmem:[%s1378_s3 + $0xd0] sm:$0xff] %v871_v13   ;;  %v147_v25 = vmul.f32 %v958_v2, %v76_v12  ;;  %v277_v26 = vmax.f32 %v213_v18, 0.0  ;;  %v216_v27 = vadd.f32 %v965_v5, %v145_v20  ;;  %v148_v29 = vmul.f32 %v958_v2, %v77_v17 }
  0x38   :  { %v217_v28 = vadd.f32 %v965_v5, %v146_v21  ;;  %924 = vst [vmem:[%s1378_s3 + $0xd8] sm:$0xff] %v876_v22   ;;  %v278_v30 = vmax.f32 %v214_v23, 0.0  ;;  %v279_v31 = vmax.f32 %v215_v24, 0.0 }
  0x39   :  { %v218_v32 = vadd.f32 %v965_v5, %v147_v25  ;;  %v881_v33 = vpack.c.bf16 %v277_v26, %v276_v19  ;;  %v280_v34 = vmax.f32 %v216_v27, 0.0  ;;  %v219_v36 = vadd.f32 %v965_v5, %v148_v29 }
  0x3a   :  { %v281_v35 = vmax.f32 %v217_v28, 0.0  ;;  %v886_v37 = vpack.c.bf16 %v279_v31, %v278_v30 }
  0x3b   :  { %v282_v38 = vmax.f32 %v218_v32, 0.0  ;;  %925 = vst [vmem:[%s1378_s3 + $0xe0] sm:$0xff] %v881_v33   ;;  %v283_v39 = vmax.f32 %v219_v36, 0.0 }
  0x3c   :  { %v891_v2 = vpack.c.bf16 %v281_v35, %v280_v34  ;;  %926 = vst [vmem:[%s1378_s3 + $0xe8] sm:$0xff] %v886_v37  }
  0x3d   :  { %v896_v40 = vpack.c.bf16 %v283_v39, %v282_v38 }
  0x3e   :  { %927 = vst [vmem:[%s1378_s3 + $0xf0] sm:$0xff] %v891_v2  }
  0x3f   :  { %928 = vst [vmem:[%s1378_s3 + $0xf8] sm:$0xff] %v896_v40  }

// kernel: unet_conv_block.7
= control target key start
LH: loop header
LB: loop body
LE: loop exit
PB: predicated region body
PF: predicated region fallthrough
CT: control target
= control target key end

     0   :  { %s896_s0 = inlined_call_operand.vmem [shape: f32[512,128], index: 0, kind: input, shape index: {}]   ;;  %s897_s1 = inlined_call_operand.vmem [shape: f32[1,128], index: 1, kind: input, shape index: {}]   ;;  %s898_s2 = inlined_call_operand.vmem [shape: f32[1,128], index: 2, kind: input, shape index: {}]   ;;  %s899_s3 = inlined_call_operand.vmem [shape: f32[512,128], index: 3, kind: output, shape index: {}]  }
   0x1   :  { %v14_v0 = vld [vmem:[%s896_s0] sm:$0xff]  ;;  %v15_v4 = vld [vmem:[%s896_s0 + $0x8] sm:$0xff]  ;;  %v16_v5 = vld [vmem:[%s896_s0 + $0x10] sm:$0xff] }
   0x2   :  { %v380_v1 = vld [vmem:[%s897_s1] ss:$0 sm:$0xff]  ;;  %v17_v6 = vld [vmem:[%s896_s0 + $0x18] sm:$0xff]  ;;  %v19_v11 = vld [vmem:[%s896_s0 + $0x28] sm:$0xff] }
   0x3   :  { %v385_v2 = vld [vmem:[%s898_s2] ss:$0 sm:$0xff]  ;;  %v85_v3 = vmul.f32 %v380_v1, %v14_v0  ;;  %v86_v7 = vmul.f32 %v380_v1, %v15_v4  ;;  %v87_v8 = vmul.f32 %v380_v1, %v16_v5  ;;  %v88_v9 = vmul.f32 %v380_v1, %v17_v6  ;;  %v20_v12 = vld [vmem:[%s896_s0 + $0x30] sm:$0xff]  ;;  %v21_v17 = vld [vmem:[%s896_s0 + $0x38] sm:$0xff] }
   0x4   :  { %v18_v10 = vld [vmem:[%s896_s0 + $0x20] sm:$0xff]  ;;  %v90_v15 = vmul.f32 %v380_v1, %v19_v11  ;;  %v91_v16 = vmul.f32 %v380_v1, %v20_v12  ;;  %v92_v21 = vmul.f32 %v380_v1, %v21_v17  ;;  %v23_v27 = vld [vmem:[%s896_s0 + $0x48] sm:$0xff]  ;;  %v24_v28 = vld [vmem:[%s896_s0 + $0x50] sm:$0xff] }
   0x5   :  { %v156_v13 = vadd.f32 %v385_v2, %v85_v3  ;;  %v89_v14 = vmul.f32 %v380_v1, %v18_v10  ;;  %v157_v18 = vadd.f32 %v385_v2, %v86_v7  ;;  %v158_v19 = vadd.f32 %v385_v2, %v87_v8  ;;  %v22_v22 = vld [vmem:[%s896_s0 + $0x40] sm:$0xff]  ;;  %v25_v29 = vld [vmem:[%s896_s0 + $0x58] sm:$0xff]  ;;  %v27_v35 = vld [vmem:[%s896_s0 + $0x68] sm:$0xff] }
   0x6   :  { %v159_v20 = vadd.f32 %v385_v2, %v88_v9  ;;  %v161_v25 = vadd.f32 %v385_v2, %v90_v15  ;;  %v162_v26 = vadd.f32 %v385_v2, %v91_v16  ;;  %v163_v33 = vadd.f32 %v385_v2, %v92_v21  ;;  %v26_v34 = vld [vmem:[%s896_s0 + $0x60] sm:$0xff]  ;;  %v28_v36 = vld [vmem:[%s896_s0 + $0x70] sm:$0xff]  ;;  %v29_v41 = vld [vmem:[%s896_s0 + $0x78] sm:$0xff] }
   0x7   :  { %v220_v23 = vmax.f32 %v156_v13, 0.0  ;;  %v160_v24 = vadd.f32 %v385_v2, %v89_v14  ;;  %v221_v30 = vmax.f32 %v157_v18, 0.0  ;;  %v222_v31 = vmax.f32 %v158_v19, 0.0  ;;  %v30_v54 = vld [vmem:[%s896_s0 + $0x80] sm:$0xff]  ;;  %v31_v59 = vld [vmem:[%s896_s0 + $0x88] sm:$0xff]  ;;  %v32_v60 = vld [vmem:[%s896_s0 + $0x90] sm:$0xff] }
   0x8   :  { %v223_v32 = vmax.f32 %v159_v20, 0.0  ;;  %v225_v38 = vmax.f32 %v161_v25, 0.0  ;;  %v226_v39 = vmax.f32 %v162_v26, 0.0  ;;  %v93_v40 = vmul.f32 %v380_v1, %v22_v22  ;;  %v33_v61 = vld [vmem:[%s896_s0 + $0x98] sm:$0xff]  ;;  %v34_v4 = vld [vmem:[%s896_s0 + $0xa0] sm:$0xff]  ;;  %v35_v5 = vld [vmem:[%s896_s0 + $0xa8] sm:$0xff] }
   0x9   :  { %284 = vst [vmem:[%s899_s3] sm:$0xff] %v220_v23  ;;  %v224_v37 = vmax.f32 %v160_v24, 0.0  ;;  %285 = vst [vmem:[%s899_s3 + $0x8] sm:$0xff] %v221_v30  ;;  %v227_v42 = vmax.f32 %v163_v33, 0.0  ;;  %v94_v43 = vmul.f32 %v380_v1, %v23_v27  ;;  %v95_v44 = vmul.f32 %v380_v1, %v24_v28  ;;  %v36_v6 = vld [vmem:[%s896_s0 + $0xb0] sm:$0xff]  ;;  %v37_v11 = vld [vmem:[%s896_s0 + $0xb8] sm:$0xff] }
   0xa   :  { %286 = vst [vmem:[%s899_s3 + $0x10] sm:$0xff] %v222_v31  ;;  %287 = vst [vmem:[%s899_s3 + $0x18] sm:$0xff] %v223_v32  ;;  %v96_v45 = vmul.f32 %v380_v1, %v25_v29  ;;  %v164_v46 = vadd.f32 %v385_v2, %v93_v40  ;;  %v97_v47 = vmul.f32 %v380_v1, %v26_v34  ;;  %v38_v24 = vld [vmem:[%s896_s0 + $0xc0] sm:$0xff]  ;;  %v39_v29 = vld [vmem:[%s896_s0 + $0xc8] sm:$0xff] }
   0xb   :  { %288 = vst [vmem:[%s899_s3 + $0x20] sm:$0xff] %v224_v37  ;;  %289 = vst [vmem:[%s899_s3 + $0x28] sm:$0xff] %v225_v38  ;;  %v98_v48 = vmul.f32 %v380_v1, %v27_v35  ;;  %v99_v49 = vmul.f32 %v380_v1, %v28_v36  ;;  %v165_v50 = vadd.f32 %v385_v2, %v94_v43  ;;  %v40_v30 = vld [vmem:[%s896_s0 + $0xd0] sm:$0xff]  ;;  %v41_v31 = vld [vmem:[%s896_s0 + $0xd8] sm:$0xff] }
   0xc   :  { %290 = vst [vmem:[%s899_s3 + $0x30] sm:$0xff] %v226_v39  ;;  %291 = vst [vmem:[%s899_s3 + $0x38] sm:$0xff] %v227_v42  ;;  %v166_v51 = vadd.f32 %v385_v2, %v95_v44  ;;  %v167_v52 = vadd.f32 %v385_v2, %v96_v45  ;;  %v100_v53 = vmul.f32 %v380_v1, %v29_v41  ;;  %v228_v55 = vmax.f32 %v164_v46, 0.0  ;;  %v42_v36 = vld [vmem:[%s896_s0 + $0xe0] sm:$0xff]  ;;  %v43_v37 = vld [vmem:[%s896_s0 + $0xe8] sm:$0xff] }
   0xd   :  { %v168_v56 = vadd.f32 %v385_v2, %v97_v47  ;;  %v169_v57 = vadd.f32 %v385_v2, %v98_v48  ;;  %v170_v58 = vadd.f32 %v385_v2, %v99_v49  ;;  %v229_v62 = vmax.f32 %v165_v50, 0.0  ;;  %v44_v38 = vld [vmem:[%s896_s0 + $0xf0] sm:$0xff]  ;;  %v45_v43 = vld [vmem:[%s896_s0 + $0xf8] sm:$0xff] }
   0xe   :  { %v230_v63 = vmax.f32 %v166_v51, 0.0  ;;  %v231_v0 = vmax.f32 %v167_v52, 0.0  ;;  %v171_v3 = vadd.f32 %v385_v2, %v100_v53  ;;  %292 = vst [vmem:[%s899_s3 + $0x40] sm:$0xff] %v228_v55  ;;  %v101_v10 = vmul.f32 %v380_v1, %v30_v54 }
   0xf   :  { %v232_v7 = vmax.f32 %v168_v56, 0.0  ;;  %v233_v8 = vmax.f32 %v169_v57, 0.0  ;;  %v234_v9 = vmax.f32 %v170_v58, 0.0  ;;  %293 = vst [vmem:[%s899_s3 + $0x48] sm:$0xff] %v229_v62  ;;  %v102_v13 = vmul.f32 %v380_v1, %v31_v59  ;;  %v46_v56 = vld [vmem:[%s896_s0 + $0x100] sm:$0xff]  ;;  %v48_v62 = vld [vmem:[%s896_s0 + $0x110] sm:$0xff] }
  0x10   :  { %294 = vst [vmem:[%s899_s3 + $0x50] sm:$0xff] %v230_v63  ;;  %295 = vst [vmem:[%s899_s3 + $0x58] sm:$0xff] %v231_v0  ;;  %v235_v12 = vmax.f32 %v171_v3, 0.0  ;;  %v103_v14 = vmul.f32 %v380_v1, %v32_v60  ;;  %v104_v15 = vmul.f32 %v380_v1, %v33_v61  ;;  %v172_v16 = vadd.f32 %v385_v2, %v101_v10  ;;  %v47_v61 = vld [vmem:[%s896_s0 + $0x108] sm:$0xff]  ;;  %v49_v63 = vld [vmem:[%s896_s0 + $0x118] sm:$0xff] }
  0x11   :  { %296 = vst [vmem:[%s899_s3 + $0x60] sm:$0xff] %v232_v7  ;;  %297 = vst [vmem:[%s899_s3 + $0x68] sm:$0xff] %v233_v8  ;;  %v105_v17 = vmul.f32 %v380_v1, %v34_v4  ;;  %v106_v18 = vmul.f32 %v380_v1, %v35_v5  ;;  %v107_v19 = vmul.f32 %v380_v1, %v36_v6  ;;  %v50_v6 = vld [vmem:[%s896_s0 + $0x120] sm:$0xff]  ;;  %v51_v7 = vld [vmem:[%s896_s0 + $0x128] sm:$0xff] }
  0x12   :  { %298 = vst [vmem:[%s899_s3 + $0x70] sm:$0xff] %v234_v9  ;;  %299 = vst [vmem:[%s899_s3 + $0x78] sm:$0xff] %v235_v12  ;;  %v173_v20 = vadd.f32 %v385_v2, %v102_v13  ;;  %v174_v21 = vadd.f32 %v385_v2, %v103_v14  ;;  %v175_v22 = vadd.f32 %v385_v2, %v104_v15  ;;  %v236_v25 = vmax.f32 %v172_v16, 0.0  ;;  %v52_v8 = vld [vmem:[%s896_s0 + $0x130] sm:$0xff]  ;;  %v53_v13 = vld [vmem:[%s896_s0 + $0x138] sm:$0xff] }
  0x13   :  { %v108_v23 = vmul.f32 %v380_v1, %v37_v11  ;;  %v176_v26 = vadd.f32 %v385_v2, %v105_v17  ;;  %v177_v27 = vadd.f32 %v385_v2, %v106_v18  ;;  %v178_v28 = vadd.f32 %v385_v2, %v107_v19 }
  0x14   :  { %v237_v32 = vmax.f32 %v173_v20, 0.0  ;;  %v238_v33 = vmax.f32 %v174_v21, 0.0  ;;  %v239_v34 = vmax.f32 %v175_v22, 0.0  ;;  %300 = vst [vmem:[%s899_s3 + $0x80] sm:$0xff] %v236_v25  ;;  %v109_v42 = vmul.f32 %v380_v1, %v38_v24 }
  0x15   :  { %v179_v35 = vadd.f32 %v385_v2, %v108_v23  ;;  %v240_v39 = vmax.f32 %v176_v26, 0.0  ;;  %v241_v40 = vmax.f32 %v177_v27, 0.0  ;;  %v242_v41 = vmax.f32 %v178_v28, 0.0  ;;  %v54_v26 = vld [vmem:[%s896_s0 + $0x140] sm:$0xff] }
  0x16   :  { %301 = vst [vmem:[%s899_s3 + $0x88] sm:$0xff] %v237_v32  ;;  %302 = vst [vmem:[%s899_s3 + $0x90] sm:$0xff] %v238_v33  ;;  %v110_v45 = vmul.f32 %v380_v1, %v39_v29  ;;  %v111_v46 = vmul.f32 %v380_v1, %v40_v30  ;;  %v112_v47 = vmul.f32 %v380_v1, %v41_v31  ;;  %v55_v31 = vld [vmem:[%s896_s0 + $0x148] sm:$0xff]  ;;  %v56_v32 = vld [vmem:[%s896_s0 + $0x150] sm:$0xff] }
  0x17   :  { %303 = vst [vmem:[%s899_s3 + $0x98] sm:$0xff] %v239_v34  ;;  %v243_v44 = vmax.f32 %v179_v35, 0.0  ;;  %304 = vst [vmem:[%s899_s3 + $0xa0] sm:$0xff] %v240_v39  ;;  %v180_v48 = vadd.f32 %v385_v2, %v109_v42  ;;  %v113_v49 = vmul.f32 %v380_v1, %v42_v36  ;;  %v114_v50 = vmul.f32 %v380_v1, %v43_v37  ;;  %v57_v33 = vld [vmem:[%s896_s0 + $0x158] sm:$0xff]  ;;  %v59_v39 = vld [vmem:[%s896_s0 + $0x168] sm:$0xff] }
  0x18   :  { %305 = vst [vmem:[%s899_s3 + $0xa8] sm:$0xff] %v241_v40  ;;  %306 = vst [vmem:[%s899_s3 + $0xb0] sm:$0xff] %v242_v41  ;;  %v115_v51 = vmul.f32 %v380_v1, %v44_v38  ;;  %v181_v52 = vadd.f32 %v385_v2, %v110_v45  ;;  %v182_v53 = vadd.f32 %v385_v2, %v111_v46  ;;  %v58_v38 = vld [vmem:[%s896_s0 + $0x160] sm:$0xff]  ;;  %v60_v40 = vld [vmem:[%s896_s0 + $0x170] sm:$0xff] }
  0x19   :  { %307 = vst [vmem:[%s899_s3 + $0xb8] sm:$0xff] %v243_v44  ;;  %v183_v54 = vadd.f32 %v385_v2, %v112_v47  ;;  %v116_v55 = vmul.f32 %v380_v1, %v45_v43  ;;  %v244_v57 = vmax.f32 %v180_v48, 0.0  ;;  %v184_v58 = vadd.f32 %v385_v2, %v113_v49  ;;  %v61_v45 = vld [vmem:[%s896_s0 + $0x178] sm:$0xff] }
  0x1a   :  { %v185_v59 = vadd.f32 %v385_v2, %v114_v50  ;;  %v186_v60 = vadd.f32 %v385_v2, %v115_v51  ;;  %v245_v0 = vmax.f32 %v181_v52, 0.0  ;;  %v246_v3 = vmax.f32 %v182_v53, 0.0 }
  0x1b   :  { %v247_v4 = vmax.f32 %v183_v54, 0.0  ;;  %v187_v5 = vadd.f32 %v385_v2, %v116_v55  ;;  %308 = vst [vmem:[%s899_s3 + $0xc0] sm:$0xff] %v244_v57  ;;  %v248_v9 = vmax.f32 %v184_v58, 0.0  ;;  %v117_v12 = vmul.f32 %v380_v1, %v46_v56  ;;  %v62_v58 = vld [vmem:[%s896_s0 + $0x180] sm:$0xff] }
  0x1c   :  { %v249_v10 = vmax.f32 %v185_v59, 0.0  ;;  %v250_v11 = vmax.f32 %v186_v60, 0.0  ;;  %309 = vst [vmem:[%s899_s3 + $0xc8] sm:$0xff] %v245_v0  ;;  %310 = vst [vmem:[%s899_s3 + $0xd0] sm:$0xff] %v246_v3  ;;  %v118_v15 = vmul.f32 %v380_v1, %v47_v61  ;;  %v119_v16 = vmul.f32 %v380_v1, %v48_v62  ;;  %v64_v0 = vld [vmem:[%s896_s0 + $0x190] sm:$0xff]  ;;  %v65_v3 = vld [vmem:[%s896_s0 + $0x198] sm:$0xff] }
  0x1d   :  { %311 = vst [vmem:[%s899_s3 + $0xd8] sm:$0xff] %v247_v4  ;;  %v251_v14 = vmax.f32 %v187_v5, 0.0  ;;  %v120_v17 = vmul.f32 %v380_v1, %v49_v63  ;;  %312 = vst [vmem:[%s899_s3 + $0xe0] sm:$0xff] %v248_v9  ;;  %v188_v18 = vadd.f32 %v385_v2, %v117_v12  ;;  %v121_v19 = vmul.f32 %v380_v1, %v50_v6  ;;  %v63_v63 = vld [vmem:[%s896_s0 + $0x188] sm:$0xff] }
  0x1e   :  { %313 = vst [vmem:[%s899_s3 + $0xe8] sm:$0xff] %v249_v10  ;;  %314 = vst [vmem:[%s899_s3 + $0xf0] sm:$0xff] %v250_v11  ;;  %v122_v20 = vmul.f32 %v380_v1, %v51_v7  ;;  %v123_v21 = vmul.f32 %v380_v1, %v52_v8  ;;  %v189_v22 = vadd.f32 %v385_v2, %v118_v15  ;;  %v66_v8 = vld [vmem:[%s896_s0 + $0x1a0] sm:$0xff]  ;;  %v67_v9 = vld [vmem:[%s896_s0 + $0x1a8] sm:$0xff] }
  0x1f   :  { %315 = vst [vmem:[%s899_s3 + $0xf8] sm:$0xff] %v251_v14  ;;  %v190_v23 = vadd.f32 %v385_v2, %v119_v16  ;;  %v191_v24 = vadd.f32 %v385_v2, %v120_v17  ;;  %v124_v25 = vmul.f32 %v380_v1, %v53_v13  ;;  %v252_v27 = vmax.f32 %v188_v18, 0.0  ;;  %v68_v10 = vld [vmem:[%s896_s0 + $0x1b0] sm:$0xff]  ;;  %v69_v15 = vld [vmem:[%s896_s0 + $0x1b8] sm:$0xff] }
  0x20   :  { %v192_v28 = vadd.f32 %v385_v2, %v121_v19  ;;  %v193_v29 = vadd.f32 %v385_v2, %v122_v20  ;;  %v194_v30 = vadd.f32 %v385_v2, %v123_v21  ;;  %v253_v34 = vmax.f32 %v189_v22, 0.0 }
  0x21   :  { %v254_v35 = vmax.f32 %v190_v23, 0.0  ;;  %v255_v36 = vmax.f32 %v191_v24, 0.0  ;;  %v195_v37 = vadd.f32 %v385_v2, %v124_v25  ;;  %316 = vst [vmem:[%s899_s3 + $0x100] sm:$0xff] %v252_v27  ;;  %v125_v44 = vmul.f32 %v380_v1, %v54_v26 }
  0x22   :  { %v256_v41 = vmax.f32 %v192_v28, 0.0  ;;  %v257_v42 = vmax.f32 %v193_v29, 0.0  ;;  %v258_v43 = vmax.f32 %v194_v30, 0.0  ;;  %317 = vst [vmem:[%s899_s3 + $0x108] sm:$0xff] %v253_v34  ;;  %v126_v47 = vmul.f32 %v380_v1, %v55_v31  ;;  %v70_v28 = vld [vmem:[%s896_s0 + $0x1c0] sm:$0xff]  ;;  %v72_v34 = vld [vmem:[%s896_s0 + $0x1d0] sm:$0xff] }
  0x23   :  { %318 = vst [vmem:[%s899_s3 + $0x110] sm:$0xff] %v254_v35  ;;  %319 = vst [vmem:[%s899_s3 + $0x118] sm:$0xff] %v255_v36  ;;  %v259_v46 = vmax.f32 %v195_v37, 0.0  ;;  %v127_v48 = vmul.f32 %v380_v1, %v56_v32  ;;  %v128_v49 = vmul.f32 %v380_v1, %v57_v33  ;;  %v196_v50 = vadd.f32 %v385_v2, %v125_v44  ;;  %v71_v33 = vld [vmem:[%s896_s0 + $0x1c8] sm:$0xff]  ;;  %v73_v35 = vld [vmem:[%s896_s0 + $0x1d8] sm:$0xff] }
  0x24   :  { %320 = vst [vmem:[%s899_s3 + $0x120] sm:$0xff] %v256_v41  ;;  %321 = vst [vmem:[%s899_s3 + $0x128] sm:$0xff] %v257_v42  ;;  %v129_v51 = vmul.f32 %v380_v1, %v58_v38  ;;  %v130_v52 = vmul.f32 %v380_v1, %v59_v39  ;;  %v131_v53 = vmul.f32 %v380_v1, %v60_v40  ;;  %v74_v40 = vld [vmem:[%s896_s0 + $0x1e0] sm:$0xff]  ;;  %v75_v41 = vld [vmem:[%s896_s0 + $0x1e8] sm:$0xff] }
  0x25   :  { %322 = vst [vmem:[%s899_s3 + $0x130] sm:$0xff] %v258_v43  ;;  %323 = vst [vmem:[%s899_s3 + $0x138] sm:$0xff] %v259_v46  ;;  %v197_v54 = vadd.f32 %v385_v2, %v126_v47  ;;  %v198_v55 = vadd.f32 %v385_v2, %v127_v48  ;;  %v199_v56 = vadd.f32 %v385_v2, %v128_v49  ;;  %v260_v59 = vmax.f32 %v196_v50, 0.0  ;;  %v76_v42 = vld [vmem:[%s896_s0 + $0x1f0] sm:$0xff]  ;;  %v77_v47 = vld [vmem:[%s896_s0 + $0x1f8] sm:$0xff] }
  0x26   :  { %v132_v57 = vmul.f32 %v380_v1, %v61_v45  ;;  %v200_v60 = vadd.f32 %v385_v2, %v129_v51  ;;  %v201_v61 = vadd.f32 %v385_v2, %v130_v52  ;;  %v202_v62 = vadd.f32 %v385_v2, %v131_v53 }
  0x27   :  { %v261_v4 = vmax.f32 %v197_v54, 0.0  ;;  %v262_v5 = vmax.f32 %v198_v55, 0.0  ;;  %v263_v6 = vmax.f32 %v199_v56, 0.0  ;;  %324 = vst [vmem:[%s899_s3 + $0x140] sm:$0xff] %v260_v59  ;;  %v133_v14 = vmul.f32 %v380_v1, %v62_v58 }
  0x28   :  { %v203_v7 = vadd.f32 %v385_v2, %v132_v57  ;;  %v264_v11 = vmax.f32 %v200_v60, 0.0  ;;  %v265_v12 = vmax.f32 %v201_v61, 0.0  ;;  %v266_v13 = vmax.f32 %v202_v62, 0.0 }
  0x29   :  { %325 = vst [vmem:[%s899_s3 + $0x148] sm:$0xff] %v261_v4  ;;  %326 = vst [vmem:[%s899_s3 + $0x150] sm:$0xff] %v262_v5  ;;  %v134_v17 = vmul.f32 %v380_v1, %v63_v63  ;;  %v135_v18 = vmul.f32 %v380_v1, %v64_v0  ;;  %v136_v19 = vmul.f32 %v380_v1, %v65_v3 }
  0x2a   :  { %327 = vst [vmem:[%s899_s3 + $0x158] sm:$0xff] %v263_v6  ;;  %v267_v16 = vmax.f32 %v203_v7, 0.0  ;;  %328 = vst [vmem:[%s899_s3 + $0x160] sm:$0xff] %v264_v11  ;;  %v204_v20 = vadd.f32 %v385_v2, %v133_v14  ;;  %v137_v21 = vmul.f32 %v380_v1, %v66_v8  ;;  %v138_v22 = vmul.f32 %v380_v1, %v67_v9 }
  0x2b   :  { %329 = vst [vmem:[%s899_s3 + $0x168] sm:$0xff] %v265_v12  ;;  %330 = vst [vmem:[%s899_s3 + $0x170] sm:$0xff] %v266_v13  ;;  %v139_v23 = vmul.f32 %v380_v1, %v68_v10  ;;  %v205_v24 = vadd.f32 %v385_v2, %v134_v17  ;;  %v206_v25 = vadd.f32 %v385_v2, %v135_v18 }
  0x2c   :  { %331 = vst [vmem:[%s899_s3 + $0x178] sm:$0xff] %v267_v16  ;;  %v207_v26 = vadd.f32 %v385_v2, %v136_v19  ;;  %v140_v27 = vmul.f32 %v380_v1, %v69_v15  ;;  %v268_v29 = vmax.f32 %v204_v20, 0.0  ;;  %v208_v30 = vadd.f32 %v385_v2, %v137_v21 }
  0x2d   :  { %v209_v31 = vadd.f32 %v385_v2, %v138_v22  ;;  %v210_v32 = vadd.f32 %v385_v2, %v139_v23  ;;  %v269_v36 = vmax.f32 %v205_v24, 0.0  ;;  %v270_v37 = vmax.f32 %v206_v25, 0.0 }
  0x2e   :  { %v271_v38 = vmax.f32 %v207_v26, 0.0  ;;  %v211_v39 = vadd.f32 %v385_v2, %v140_v27  ;;  %332 = vst [vmem:[%s899_s3 + $0x180] sm:$0xff] %v268_v29  ;;  %v272_v43 = vmax.f32 %v208_v30, 0.0  ;;  %v141_v46 = vmul.f32 %v380_v1, %v70_v28 }
  0x2f   :  { %v273_v44 = vmax.f32 %v209_v31, 0.0  ;;  %v274_v45 = vmax.f32 %v210_v32, 0.0  ;;  %333 = vst [vmem:[%s899_s3 + $0x188] sm:$0xff] %v269_v36  ;;  %334 = vst [vmem:[%s899_s3 + $0x190] sm:$0xff] %v270_v37  ;;  %v142_v49 = vmul.f32 %v380_v1, %v71_v33  ;;  %v143_v50 = vmul.f32 %v380_v1, %v72_v34 }
  0x30   :  { %335 = vst [vmem:[%s899_s3 + $0x198] sm:$0xff] %v271_v38  ;;  %v275_v48 = vmax.f32 %v211_v39, 0.0  ;;  %v144_v51 = vmul.f32 %v380_v1, %v73_v35  ;;  %336 = vst [vmem:[%s899_s3 + $0x1a0] sm:$0xff] %v272_v43  ;;  %v212_v52 = vadd.f32 %v385_v2, %v141_v46  ;;  %v145_v53 = vmul.f32 %v380_v1, %v74_v40 }
  0x31   :  { %337 = vst [vmem:[%s899_s3 + $0x1a8] sm:$0xff] %v273_v44  ;;  %338 = vst [vmem:[%s899_s3 + $0x1b0] sm:$0xff] %v274_v45  ;;  %v146_v54 = vmul.f32 %v380_v1, %v75_v41  ;;  %v147_v55 = vmul.f32 %v380_v1, %v76_v42  ;;  %v213_v56 = vadd.f32 %v385_v2, %v142_v49 }
  0x32   :  { %339 = vst [vmem:[%s899_s3 + $0x1b8] sm:$0xff] %v275_v48  ;;  %v214_v57 = vadd.f32 %v385_v2, %v143_v50  ;;  %v215_v58 = vadd.f32 %v385_v2, %v144_v51  ;;  %v148_v59 = vmul.f32 %v380_v1, %v77_v47  ;;  %v276_v60 = vmax.f32 %v212_v52, 0.0 }
  0x33   :  { %v216_v61 = vadd.f32 %v385_v2, %v145_v53  ;;  %v217_v62 = vadd.f32 %v385_v2, %v146_v54  ;;  %v218_v63 = vadd.f32 %v385_v2, %v147_v55  ;;  %v277_v0 = vmax.f32 %v213_v56, 0.0 }
  0x34   :  { %v278_v3 = vmax.f32 %v214_v57, 0.0  ;;  %v279_v4 = vmax.f32 %v215_v58, 0.0  ;;  %v219_v5 = vadd.f32 %v385_v2, %v148_v59  ;;  %340 = vst [vmem:[%s899_s3 + $0x1c0] sm:$0xff] %v276_v60 }
  0x35   :  { %v280_v6 = vmax.f32 %v216_v61, 0.0  ;;  %v281_v7 = vmax.f32 %v217_v62, 0.0  ;;  %v282_v8 = vmax.f32 %v218_v63, 0.0  ;;  %341 = vst [vmem:[%s899_s3 + $0x1c8] sm:$0xff] %v277_v0 }
  0x36   :  { %342 = vst [vmem:[%s899_s3 + $0x1d0] sm:$0xff] %v278_v3  ;;  %343 = vst [vmem:[%s899_s3 + $0x1d8] sm:$0xff] %v279_v4  ;;  %v283_v1 = vmax.f32 %v219_v5, 0.0 }
  0x37   :  { %344 = vst [vmem:[%s899_s3 + $0x1e0] sm:$0xff] %v280_v6  ;;  %345 = vst [vmem:[%s899_s3 + $0x1e8] sm:$0xff] %v281_v7 }
  0x38   :  { %346 = vst [vmem:[%s899_s3 + $0x1f0] sm:$0xff] %v282_v8  ;;  %347 = vst [vmem:[%s899_s3 + $0x1f8] sm:$0xff] %v283_v1 }

// kernel: unet_conv_block.4
= control target key start
LH: loop header
LB: loop body
LE: loop exit
PB: predicated region body
PF: predicated region fallthrough
CT: control target
= control target key end

     0   :  { %s6272_s12 = smov 0   ;;  %s6274_s13 = smov 0   ;;  %s8314_s0 = inlined_call_operand.vmem [shape: bf16[2,18,18,4], index: 0, kind: input, shape index: {}]   ;;  %s8315_s1 = inlined_call_operand.vmem [shape: bf16[9,4,128], index: 1, kind: input, shape index: {}]   ;;  %s8316_s2 = inlined_call_operand.vmem [shape: f32[2,256,128], index: 2, kind: output, shape index: {0}]   ;;  %s8317_s3 = inlined_call_operand.vmem [shape: f32[2,1,2,128], index: 3, kind: output, shape index: {1}]  }
   0x1   :  { %s6276_s14 = smov 0  }
   0x2 LB: > { %s26_s15 = sadd.s32 1, %s6246_s13  ;;  %p4868_p0 = scmp.ge.s32.totalorder %s6250_s14, 1  ;;  %s6250_s14 = sphi %s6276_s14, %s14_s14   ;;  %s6246_s13 = sphi %s6274_s13, %s8431_s13   ;;  %s6242_s12 = sphi %s6272_s12, %s8430_s12  }
   0x3   : > { %p28_p1 = scmp.ge.s32.totalorder %s26_s15, 2  ;;  %p156_p2 = scmp.lt.s32.totalorder %s6250_s14, 3 }
   0x5   : > { %s8433_s15 = smov (%p28_p1, %s26_s15), 0  ;;  %p157_p3 = pnand %p4868_p0, %p156_p2 }
   0x7   : > { %160 = sbr.rel (%p157_p3) target bundleno = 609 (0x261), region = 28 }
   0xe   : > { %v4873_v0 = vld [vmem:[%s8315_s1 + $0x2] sm:$0x3]  ;;  %vm753_vm0 = vcmask 1041408   ;;  %v5068_v1 = vld [vmem:[%s8315_s1 + $0x8] sm:$0x3]  ;;  %p191_p4 = scmp.lt.s32.totalorder %s6242_s12, 1 }
   0xf   : > { %6033 = vmatprep.subr.msk.bf16.mxu1 %vm753_vm0, %v4873_v0  ;;  %6037 = vmatprep.subr.msk.bf16.mxu0 %vm753_vm0, %v5068_v1  ;;  %v755_v2 = vsel %vm753_vm0, %v4873_v0, 0  ;;  %v6300_v3 = vsel %vm753_vm0, %v5068_v1, 0  ;;  %v266_v4 = vld [vmem:[%s8315_s1] sm:$0x3]  ;;  %v5117_v5 = vld [vmem:[%s8315_s1 + $0xa] sm:$0x3] }
  0x10   : > { %8340 = vst [vmem:[#allocation2_spill] sm:$0xff] %v6300_v3  ;;  %5470 = vmatpush3.bf16.msra.mxu1 %v755_v2  ;;  %5606 = vmatpush3.bf16.msra.mxu0 %v6300_v3  ;;  %s8435_s12 = smov (!%p191_p4, %s6242_s12), 1  ;;  %vm267_vm1 = vsmask.f32 3328  ;;  %vm268_vm2 = vsmask.f32 7440 }
  0x11   : > { %6034 = vmatprep.subr.msk.bf16.mxu1 %vm753_vm0, %v266_v4  ;;  %6039 = vmatprep.subr.msk.bf16.mxu0 %vm753_vm0, %v5117_v5  ;;  %s6043_s24 = smul.u32 216, %s8435_s12  ;;  %vm704_vm3 = vcmask 31744   ;;  %v6332_v17 = vsel %vm753_vm0, %v266_v4, 0  ;;  %vm6343_vm4 = vmor %vm267_vm1, %vm268_vm2  ;;  %v6348_v36 = vsel %vm753_vm0, %v5117_v5, 0  ;;  %v6358_v50 = vld [vmem:[%s8315_s1 + $0xc] sm:$0x3] }
  0x12   : > { %v6375_v1 = vsel %vm753_vm0, %v6358_v50, 0  ;;  %vm1226_vm5 = vcmask 1042432   ;;  %vm1227_vm6 = vcmask 1046532   ;;  %s5315_s19 = sshll.u32 %s8435_s12, 8  ;;  %s4872_s23 = sshll.u32 %s8435_s12, 1  ;;  %vm4729_vm8 = vcmask 1040384  }
  0x13   : > { %s6317_s27 = scalar_lea.vmem %s8314_s0, %s6043_s24  ;;  %vm6609_vm7 = vmor %vm1226_vm5, %vm1227_vm6  ;;  %s8262_s22 = scalar_lea.vmem %s8316_s2, %s5315_s19 }
  0x14   : > { %v218_v6 = vld [vmem:[%s6317_s27] sm:$0xf]  ;;  %v219_v7 = vld [vmem:[%s6317_s27 + $0x4] sm:$0xf]  ;;  %v220_v8 = vld [vmem:[%s6317_s27 + $0x8] sm:$0x1]  ;;  %s212_s26 = scalar_lea.vmem %s8317_s3, %s4872_s23 }
  0x15   : > { %v271_v9 = vshrl.u32 %v218_v6, 16  ;;  %v274_v10 = vshll.u32 %v218_v6, 16  ;;  %v280_v11 = vshll.u32 %v219_v7, 16  ;;  %v284_v12 = vshrl.u32 %v219_v7, 16  ;;  %v6323_v13 = vld [vmem:[%s6317_s27 + $0xc] sm:$0xf] }
  0x16   : > { %v290_v14 = vshll.u32 %v220_v8, 16  ;;  %v6326_v15 = vld [vmem:[%s6317_s27 + $0x10] sm:$0xf]  ;;  %v6329_v16 = vld [vmem:[%s6317_s27 + $0x14] sm:$0x1]  ;;  %v2014_v23 = vshrl.u32 %v6323_v13, 16 }
  0x17   : > { %v273_v18 = vrot.slane %v271_v9, 4  ;;  %v276_v19 = vrot.slane %v274_v10, 5  ;;  %v282_v20 = vrot.slane %v280_v11, 5  ;;  %v286_v21 = vrot.slane %v284_v12, 4  ;;  %v221_v30 = vld [vmem:[%s6317_s27 + $0xc] sm:$0xf] }
  0x18   : > { %v292_v22 = vrot.slane %v290_v14, 5  ;;  %v2017_v24 = vshll.u32 %v6323_v13, 16  ;;  %v2023_v25 = vshll.u32 %v6326_v15, 16  ;;  %v2027_v28 = vshrl.u32 %v6326_v15, 16  ;;  %v222_v31 = vld [vmem:[%s6317_s27 + $0x10] sm:$0xf] }
  0x19   : > { %v277_v26 = vor.u32 %v276_v19, %v273_v18  ;;  %v287_v27 = vor.u32 %v286_v21, %v282_v20  ;;  %v2033_v29 = vshll.u32 %v6329_v16, 16  ;;  %v2016_v33 = vrot.slane %v2014_v23, 4  ;;  %v223_v42 = vld [vmem:[%s6317_s27 + $0x14] sm:$0x1]  ;;  %v6361_v55 = vld [vmem:[%s6317_s27 + $0x18] sm:$0xf] }
  0x1a   : > { %v2019_v34 = vrot.slane %v2017_v24, 5  ;;  %v2025_v35 = vrot.slane %v2023_v25, 5  ;;  %v2029_v39 = vrot.slane %v2027_v28, 4  ;;  %v295_v43 = vshrl.u32 %v221_v30, 16  ;;  %v6364_v60 = vld [vmem:[%s6317_s27 + $0x1c] sm:$0xf] }
  0x1b   : > { %v278_v37 = vrot.slane %v277_v26, 4  ;;  %v288_v38 = vrot.slane %v287_v27, 4  ;;  %v2035_v40 = vrot.slane %v2033_v29, 5  ;;  %v298_v44 = vshll.u32 %v221_v30, 16  ;;  %v6371_v0 = vld [vmem:[%s6317_s27 + $0x20] sm:$0x1] }
  0x1c   : > { %v2020_v41 = vor.u32 %v2019_v34, %v2016_v33  ;;  %v304_v45 = vshll.u32 %v222_v31, 16  ;;  %v2030_v48 = vor.u32 %v2029_v39, %v2025_v35  ;;  %v308_v49 = vshrl.u32 %v222_v31, 16  ;;  %v224_v11 = vld [vmem:[%s6317_s27 + $0x18] sm:$0xf]  ;;  %v226_v25 = vld [vmem:[%s6317_s27 + $0x20] sm:$0x1] }
  0x1d   : > { %v283_v46 = vsel %vm6343_vm4, %v278_v37, %v282_v20  ;;  %v293_v47 = vsel %vm6343_vm4, %v288_v38, %v292_v22  ;;  %v297_v53 = vrot.slane %v295_v43, 4  ;;  %v300_v54 = vrot.slane %v298_v44, 5  ;;  %v225_v20 = vld [vmem:[%s6317_s27 + $0x1c] sm:$0xf]  ;;  %v6395_v30 = vld [vmem:[%s6317_s27 + $0x24] sm:$0xf] }
  0x1e   : > { %v4874_v51 = vcombine.low %v283_v46, %v293_v47  ;;  %v2021_v52 = vrot.slane %v2020_v41, 4  ;;  %v2031_v56 = vrot.slane %v2030_v48, 4  ;;  %v306_v57 = vrot.slane %v304_v45, 5  ;;  %v4954_v41 = vld [vmem:[%s8315_s1 + $0x4] sm:$0x3] }
  0x1f   : > { %v310_v58 = vrot.slane %v308_v49, 4  ;;  %v314_v59 = vshll.u32 %v223_v42, 16  ;;  %v2712_v62 = vrot.slane %v6329_v16, 5  ;;  %v301_v63 = vor.u32 %v300_v54, %v297_v53  ;;  %v6402_v45 = vld [vmem:[%s6317_s27 + $0x28] sm:$0xf] }
  0x20   : > { %5471 = vmatprep.mubr.msk.bf16.mxu1 %vm704_vm3, %v4874_v51  ;;  %v2026_v61 = vsel %vm6343_vm4, %v2021_v52, %v2025_v35  ;;  %v2036_v2 = vsel %vm6343_vm4, %v2031_v56, %v2035_v40  ;;  %v2038_v6 = vshrl.u32 %v6361_v55, 16  ;;  %v2041_v9 = vshll.u32 %v6361_v55, 16  ;;  %v6407_v52 = vld [vmem:[%s6317_s27 + $0x2c] sm:$0x1]  ;;  %v7191_v3 = vld [vmem:[%s6317_s27 + $0xb8] sm:$0xf] }
  0x21   : > { %v311_v4 = vor.u32 %v310_v58, %v306_v57  ;;  %v316_v5 = vrot.slane %v314_v59, 5  ;;  %v5069_v7 = vcombine.low %v2026_v61, %v2036_v2  ;;  %v302_v8 = vrot.slane %v301_v63, 4  ;;  %v227_v58 = vld [vmem:[%s6317_s27 + $0x24] sm:$0xf] }
  0x22   : > { %v2047_v10 = vshll.u32 %v6364_v60, 16  ;;  %v2040_v14 = vrot.slane %v2038_v6, 4  ;;  %v2051_v18 = vshrl.u32 %v6364_v60, 16  ;;  %v2057_v19 = vshll.u32 %v6371_v0, 16 }
  0x23   : > { %v312_v12 = vrot.slane %v311_v4, 4  ;;  %5607 = vmatprep.mubr.msk.bf16.mxu0 %vm704_vm3, %v5069_v7  ;;  %v307_v21 = vsel %vm6343_vm4, %v302_v8, %v306_v57  ;;  %v2043_v22 = vrot.slane %v2041_v9, 5  ;;  %v2716_v24 = vrot.slane %v6364_v60, 5  ;;  %v228_v7 = vld [vmem:[%s6317_s27 + $0x28] sm:$0xf] }
  0x24   : > { %v2049_v23 = vrot.slane %v2047_v10, 5  ;;  %v2053_v27 = vrot.slane %v2051_v18, 4  ;;  %v2059_v28 = vrot.slane %v2057_v19, 5  ;;  %v2719_v29 = vrot.slane %v6371_v0, 5  ;;  %v229_v19 = vld [vmem:[%s6317_s27 + $0x2c] sm:$0x1] }
  0x25   : > { %v317_v26 = vsel %vm6343_vm4, %v312_v12, %v316_v5  ;;  %v2044_v33 = vor.u32 %v2043_v22, %v2040_v14  ;;  %v319_v34 = vshrl.u32 %v224_v11, 16  ;;  %v322_v35 = vshll.u32 %v224_v11, 16 }
  0x26   : > { %v4875_v31 = vcombine.low %v307_v21, %v317_v26  ;;  %v2054_v37 = vor.u32 %v2053_v27, %v2049_v23  ;;  %v328_v38 = vshll.u32 %v225_v20, 16  ;;  %v332_v39 = vshrl.u32 %v225_v20, 16  ;;  %v6425_v21 = vld [vmem:[%s6317_s27 + $0x30] sm:$0xf] }
  0x27   : > { %v338_v40 = vshll.u32 %v226_v25, 16  ;;  %v2045_v42 = vrot.slane %v2044_v33, 4  ;;  %v321_v43 = vrot.slane %v319_v34, 4  ;;  %v324_v44 = vrot.slane %v322_v35, 5  ;;  %v6431_v34 = vld [vmem:[%s6317_s27 + $0x34] sm:$0xf] }
  0x28   : > { %5472 = vmatmul.mubr.msk.bf16.vlgmr.msra.gmra.mrb[0].mxu1 %vm704_vm3, %v4875_v31  ;;  %v2062_v46 = vshrl.u32 %v6395_v30, 16  ;;  %v2055_v47 = vrot.slane %v2054_v37, 4  ;;  %v330_v48 = vrot.slane %v328_v38, 5  ;;  %v334_v49 = vrot.slane %v332_v39, 4 }
  0x29   : > { %5504 = vmatpush3.bf16.msra.mxu1 %v6332_v17  ;;  %v340_v51 = vrot.slane %v338_v40, 5  ;;  %v2050_v53 = vsel %vm6343_vm4, %v2045_v42, %v2049_v23  ;;  %v325_v54 = vor.u32 %v324_v44, %v321_v43  ;;  %v2065_v57 = vshll.u32 %v6395_v30, 16  ;;  %v6440_v42 = vld [vmem:[%s6317_s27 + $0x38] sm:$0x1]  ;;  %v6444_v44 = vld [vmem:[%s6317_s27 + $0x30] sm:$0xf] }
  0x2a   : > { %v2064_v56 = vrot.slane %v2062_v46, 4  ;;  %6035 = vmatprep.subr.msk.bf16.mxu1 %vm753_vm0, %v4954_v41  ;;  %v2060_v17 = vsel %vm6343_vm4, %v2055_v47, %v2059_v28  ;;  %v335_v59 = vor.u32 %v334_v49, %v330_v48  ;;  %v2071_v61 = vshll.u32 %v6402_v45, 16 }
  0x2b   : > { %v2075_v63 = vshrl.u32 %v6402_v45, 16  ;;  %v5070_v2 = vcombine.low %v2050_v53, %v2060_v17  ;;  %v326_v4 = vrot.slane %v325_v54, 4  ;;  %v2067_v5 = vrot.slane %v2065_v57, 5 }
  0x2c   : > { %v2081_v6 = vshll.u32 %v6407_v52, 16  ;;  %v336_v8 = vrot.slane %v335_v59, 4  ;;  %v2073_v9 = vrot.slane %v2071_v61, 5  ;;  %v343_v11 = vshrl.u32 %v227_v58, 16 }
  0x2d   : > { %v2077_v10 = vrot.slane %v2075_v63, 4  ;;  %5608 = vmatmul.mubr.msk.bf16.vlgmr.msra.gmra.mrb[0].mxu0 %vm704_vm3, %v5070_v2  ;;  %v331_v12 = vsel %vm6343_vm4, %v326_v4, %v330_v48  ;;  %v2068_v14 = vor.u32 %v2067_v5, %v2064_v56  ;;  %v346_v20 = vshll.u32 %v227_v58, 16  ;;  %v6450_v56 = vld [vmem:[%s6317_s27 + $0x34] sm:$0xf]  ;;  %v232_v4 = vld [vmem:[%s6317_s27 + $0x38] sm:$0x1] }
  0x2e   : > { %v2083_v18 = vrot.slane %v2081_v6, 5  ;;  %5640 = vmatpush3.bf16.msra.mxu0 %v6348_v36  ;;  %v341_v22 = vsel %vm6343_vm4, %v336_v8, %v340_v51  ;;  %v345_v25 = vrot.slane %v343_v11, 4  ;;  %v352_v26 = vshll.u32 %v228_v7, 16 }
  0x2f   : > { %v2078_v23 = vor.u32 %v2077_v10, %v2073_v9  ;;  %v4876_v27 = vcombine.low %v331_v12, %v341_v22  ;;  %v2069_v28 = vrot.slane %v2068_v14, 4  ;;  %v348_v31 = vrot.slane %v346_v20, 5  ;;  %6040 = vmatprep.subr.msk.bf16.mxu0 %vm753_vm0, %v6358_v50  ;;  %v6462_v10 = vld [vmem:[%s6317_s27 + $0x3c] sm:$0xf] }
  0x30   : > { %v356_v33 = vshrl.u32 %v228_v7, 16  ;;  %v354_v37 = vrot.slane %v352_v26, 5  ;;  %v362_v36 = vshll.u32 %v229_v19, 16  ;;  %v2086_v38 = vshrl.u32 %v6425_v21, 16  ;;  %v6468_v19 = vld [vmem:[%s6317_s27 + $0x40] sm:$0xf] }
  0x31   : > { %v2079_v35 = vrot.slane %v2078_v23, 4  ;;  %5475 = vmatprep.mubr.msk.bf16.mxu1 %vm704_vm3, %v4876_v27  ;;  %v2074_v39 = vsel %vm6343_vm4, %v2069_v28, %v2073_v9  ;;  %v349_v40 = vor.u32 %v348_v31, %v345_v25  ;;  %v2089_v43 = vshll.u32 %v6425_v21, 16  ;;  %v6473_v31 = vld [vmem:[%s6317_s27 + $0x44] sm:$0x1] }
  0x32   : > { %v358_v41 = vrot.slane %v356_v33, 4  ;;  %v364_v46 = vrot.slane %v362_v36, 5  ;;  %v2088_v47 = vrot.slane %v2086_v38, 4  ;;  %v2095_v48 = vshll.u32 %v6431_v34, 16 }
  0x33   : > { %v2084_v50 = vsel %vm6343_vm4, %v2079_v35, %v2083_v18  ;;  %v350_v51 = vrot.slane %v349_v40, 4  ;;  %v2091_v54 = vrot.slane %v2089_v43, 5  ;;  %v2099_v58 = vshrl.u32 %v6431_v34, 16 }
  0x34   : > { %v5071_v49 = vcombine.low %v2074_v39, %v2084_v50  ;;  %v359_v53 = vor.u32 %v358_v41, %v354_v37  ;;  %v2097_v57 = vrot.slane %v2095_v48, 5  ;;  %v2105_v17 = vshll.u32 %v6440_v42, 16  ;;  %v6481_v50 = vld [vmem:[%s6317_s27 + $0x3c] sm:$0xf] }
  0x35   : > { %v367_v59 = vshrl.u32 %v6444_v44, 16  ;;  %v355_v61 = vsel %vm6343_vm4, %v350_v51, %v354_v37  ;;  %v2092_v2 = vor.u32 %v2091_v54, %v2088_v47  ;;  %v370_v5 = vshll.u32 %v6444_v44, 16  ;;  %v6487_v51 = vld [vmem:[%s6317_s27 + $0x40] sm:$0xf] }
  0x36   : > { %5611 = vmatprep.mubr.msk.bf16.mxu0 %vm704_vm3, %v5071_v49  ;;  %v360_v63 = vrot.slane %v359_v53, 4  ;;  %v2101_v6 = vrot.slane %v2099_v58, 4  ;;  %v2107_v7 = vrot.slane %v2105_v17, 5  ;;  %v376_v9 = vshll.u32 %v6450_v56, 16 }
  0x37   : > { %v369_v8 = vrot.slane %v367_v59, 4  ;;  %v2093_v12 = vrot.slane %v2092_v2, 4  ;;  %v372_v14 = vrot.slane %v370_v5, 5  ;;  %v380_v18 = vshrl.u32 %v6450_v56, 16 }
  0x38   : > { %v365_v11 = vsel %vm6343_vm4, %v360_v63, %v364_v46  ;;  %v2102_v22 = vor.u32 %v2101_v6, %v2097_v57  ;;  %v378_v23 = vrot.slane %v376_v9, 5  ;;  %v386_v25 = vshll.u32 %v232_v4, 16 }
  0x39   : > { %v4877_v20 = vcombine.low %v355_v61, %v365_v11  ;;  %v2098_v26 = vsel %vm6343_vm4, %v2093_v12, %v2097_v57  ;;  %v373_v27 = vor.u32 %v372_v14, %v369_v8  ;;  %v382_v28 = vrot.slane %v380_v18, 4  ;;  %v235_v61 = vld [vmem:[%s6317_s27 + $0x44] sm:$0x1]  ;;  %v6500_v8 = vld [vmem:[%s6317_s27 + $0x48] sm:$0xf] }
  0x3a   : > { %v2110_v33 = vshrl.u32 %v6462_v10, 16  ;;  %v2103_v35 = vrot.slane %v2102_v22, 4  ;;  %v388_v37 = vrot.slane %v386_v25, 5  ;;  %v2113_v36 = vshll.u32 %v6462_v10, 16  ;;  %v6503_v18 = vld [vmem:[%s6317_s27 + $0x4c] sm:$0xf] }
  0x3b   : > { %5476 = vmatmul.mubr.msk.bf16.gmra.mrb[4].mxu1 %vm704_vm3, %v4877_v20  ;;  %v2119_v38 = vshll.u32 %v6468_v19, 16  ;;  %v374_v39 = vrot.slane %v373_v27, 4  ;;  %v383_v40 = vor.u32 %v382_v28, %v378_v23  ;;  %v2123_v43 = vshrl.u32 %v6468_v19, 16  ;;  %v6509_v28 = vld [vmem:[%s6317_s27 + $0x50] sm:$0x1] }
  0x3c   : > { %v2112_v41 = vrot.slane %v2110_v33, 4  ;;  %v2108_v46 = vsel %vm6343_vm4, %v2103_v35, %v2107_v7  ;;  %v2115_v47 = vrot.slane %v2113_v36, 5  ;;  %v2129_v49 = vshll.u32 %v6473_v31, 16 }
  0x3d   : > { %v2121_v48 = vrot.slane %v2119_v38, 5  ;;  %v5072_v53 = vcombine.low %v2098_v26, %v2108_v46  ;;  %v379_v54 = vsel %vm6343_vm4, %v374_v39, %v378_v23  ;;  %v384_v57 = vrot.slane %v383_v40, 4  ;;  %v6517_v40 = vld [vmem:[%s6317_s27 + $0x48] sm:$0xf] }
  0x3e   : > { %v2125_v58 = vrot.slane %v2123_v43, 4  ;;  %v2116_v17 = vor.u32 %v2115_v47, %v2112_v41  ;;  %v2131_v59 = vrot.slane %v2129_v49, 5  ;;  %v391_v63 = vshrl.u32 %v6481_v50, 16 }
  0x3f   : > { %v394_v2 = vshll.u32 %v6481_v50, 16  ;;  %5612 = vmatmul.mubr.msk.bf16.gmra.mrb[4].mxu0 %vm704_vm3, %v5072_v53  ;;  %v389_v4 = vsel %vm6343_vm4, %v384_v57, %v388_v37  ;;  %v400_v6 = vshll.u32 %v6487_v51, 16  ;;  %v404_v7 = vshrl.u32 %v6487_v51, 16 }
  0x40   : > { %v2126_v5 = vor.u32 %v2125_v58, %v2121_v48  ;;  %v4878_v9 = vcombine.low %v379_v54, %v389_v4  ;;  %v2117_v11 = vrot.slane %v2116_v17, 4  ;;  %v393_v12 = vrot.slane %v391_v63, 4 }
  0x41   : > { %v396_v14 = vrot.slane %v394_v2, 5  ;;  %v402_v22 = vrot.slane %v400_v6, 5  ;;  %v406_v23 = vrot.slane %v404_v7, 4  ;;  %v410_v25 = vshll.u32 %v235_v61, 16  ;;  %v6534_v7 = vld [vmem:[%s6317_s27 + $0x54] sm:$0xf] }
  0x42   : > { %v2127_v20 = vrot.slane %v2126_v5, 4  ;;  %5479 = vmatprep.mubr.msk.bf16.mxu1 %vm704_vm3, %v4878_v9  ;;  %v2122_v26 = vsel %vm6343_vm4, %v2117_v11, %v2121_v48  ;;  %v2134_v33 = vshrl.u32 %v6500_v8, 16  ;;  %v2137_v35 = vshll.u32 %v6500_v8, 16  ;;  %v6520_v48 = vld [vmem:[%s6317_s27 + $0x4c] sm:$0xf] }
  0x43   : > { %v397_v27 = vor.u32 %v396_v14, %v393_v12  ;;  %v407_v36 = vor.u32 %v406_v23, %v402_v22  ;;  %v412_v38 = vrot.slane %v410_v25, 5  ;;  %v2143_v39 = vshll.u32 %v6503_v18, 16 }
  0x44   : > { %v2132_v37 = vsel %vm6343_vm4, %v2127_v20, %v2131_v59  ;;  %v2136_v46 = vrot.slane %v2134_v33, 4  ;;  %v2139_v47 = vrot.slane %v2137_v35, 5  ;;  %v2147_v54 = vshrl.u32 %v6503_v18, 16  ;;  %v238_v59 = vld [vmem:[%s6317_s27 + $0x50] sm:$0x1] }
  0x45   : > { %v5073_v41 = vcombine.low %v2122_v26, %v2132_v37  ;;  %v398_v43 = vrot.slane %v397_v27, 4  ;;  %v408_v49 = vrot.slane %v407_v36, 4  ;;  %v2145_v53 = vrot.slane %v2143_v39, 5  ;;  %v6537_v20 = vld [vmem:[%s6317_s27 + $0x58] sm:$0xf] }
  0x46   : > { %v2153_v57 = vshll.u32 %v6509_v28, 16  ;;  %v2140_v17 = vor.u32 %v2139_v47, %v2136_v46  ;;  %v415_v61 = vshrl.u32 %v6517_v40, 16  ;;  %v418_v63 = vshll.u32 %v6517_v40, 16  ;;  %v6544_v35 = vld [vmem:[%s6317_s27 + $0x5c] sm:$0x1] }
  0x47   : > { %5615 = vmatprep.mubr.msk.bf16.mxu0 %vm704_vm3, %v5073_v41  ;;  %v403_v58 = vsel %vm6343_vm4, %v398_v43, %v402_v22  ;;  %v413_v2 = vsel %vm6343_vm4, %v408_v49, %v412_v38  ;;  %v2149_v4 = vrot.slane %v2147_v54, 4  ;;  %v424_v6 = vshll.u32 %v6520_v48, 16 }
  0x48   : > { %v2155_v5 = vrot.slane %v2153_v57, 5  ;;  %v4879_v9 = vcombine.low %v403_v58, %v413_v2  ;;  %v2141_v11 = vrot.slane %v2140_v17, 4  ;;  %v417_v12 = vrot.slane %v415_v61, 4  ;;  %v6557_v61 = vld [vmem:[%s6317_s27 + $0x58] sm:$0xf] }
  0x49   : > { %v420_v14 = vrot.slane %v418_v63, 5  ;;  %v2150_v22 = vor.u32 %v2149_v4, %v2145_v53  ;;  %v426_v23 = vrot.slane %v424_v6, 5  ;;  %v428_v25 = vshrl.u32 %v6520_v48, 16 }
  0x4a   : > { %v434_v26 = vshll.u32 %v238_v59, 16  ;;  %5480 = vmatmul.mubr.msk.bf16.gmra.mrb[8].mxu1 %vm704_vm3, %v4879_v9  ;;  %v2146_v27 = vsel %vm6343_vm4, %v2141_v11, %v2145_v53  ;;  %v2158_v37 = vshrl.u32 %v6534_v7, 16  ;;  %v2161_v36 = vshll.u32 %v6534_v7, 16  ;;  %v6551_v53 = vld [vmem:[%s6317_s27 + $0x54] sm:$0xf] }
  0x4b   : > { %v421_v33 = vor.u32 %v420_v14, %v417_v12  ;;  %v2151_v38 = vrot.slane %v2150_v22, 4  ;;  %v430_v39 = vrot.slane %v428_v25, 4  ;;  %v2167_v43 = vshll.u32 %v6537_v20, 16  ;;  %v241_v9 = vld [vmem:[%s6317_s27 + $0x5c] sm:$0x1] }
  0x4c   : > { %v436_v41 = vrot.slane %v434_v26, 5  ;;  %v2160_v47 = vrot.slane %v2158_v37, 4  ;;  %v2163_v49 = vrot.slane %v2161_v36, 5  ;;  %v2171_v54 = vshrl.u32 %v6537_v20, 16 }
  0x4d   : > { %v422_v46 = vrot.slane %v421_v33, 4  ;;  %v2156_v57 = vsel %vm6343_vm4, %v2151_v38, %v2155_v5  ;;  %v431_v58 = vor.u32 %v430_v39, %v426_v23  ;;  %v2169_v17 = vrot.slane %v2167_v43, 5  ;;  %v6573_v39 = vld [vmem:[%s6317_s27 + $0x64] sm:$0xf] }
  0x4e   : > { %v2177_v59 = vshll.u32 %v6544_v35, 16  ;;  %v5074_v63 = vcombine.low %v2146_v27, %v2156_v57  ;;  %v2164_v4 = vor.u32 %v2163_v49, %v2160_v47  ;;  %v2173_v6 = vrot.slane %v2171_v54, 4 }
  0x4f   : > { %v427_v2 = vsel %vm6343_vm4, %v422_v46, %v426_v23  ;;  %v432_v11 = vrot.slane %v431_v58, 4  ;;  %v439_v14 = vshrl.u32 %v6551_v53, 16  ;;  %v442_v5 = vshll.u32 %v6551_v53, 16  ;;  %v6568_v23 = vld [vmem:[%s6317_s27 + $0x60] sm:$0xf] }
  0x50   : > { %v2179_v12 = vrot.slane %v2177_v59, 5  ;;  %5616 = vmatmul.mubr.msk.bf16.gmra.mrb[8].mxu0 %vm704_vm3, %v5074_v63  ;;  %v2165_v22 = vrot.slane %v2164_v4, 4  ;;  %v2174_v25 = vor.u32 %v2173_v6, %v2169_v17  ;;  %v448_v26 = vshll.u32 %v6557_v61, 16  ;;  %v6578_v59 = vld [vmem:[%s6317_s27 + $0x68] sm:$0x1] }
  0x51   : > { %v452_v27 = vshrl.u32 %v6557_v61, 16  ;;  %v437_v33 = vsel %vm6343_vm4, %v432_v11, %v436_v41  ;;  %v441_v37 = vrot.slane %v439_v14, 4  ;;  %v444_v36 = vrot.slane %v442_v5, 5  ;;  %v6588_v6 = vld [vmem:[%s6317_s27 + $0x60] sm:$0xf] }
  0x52   : > { %v458_v38 = vshll.u32 %v241_v9, 16  ;;  %v4880_v43 = vcombine.low %v427_v2, %v437_v33  ;;  %v2170_v46 = vsel %vm6343_vm4, %v2165_v22, %v2169_v17  ;;  %v2175_v47 = vrot.slane %v2174_v25, 4  ;;  %v6591_v22 = vld [vmem:[%s6317_s27 + $0x64] sm:$0xf] }
  0x53   : > { %v450_v49 = vrot.slane %v448_v26, 5  ;;  %v445_v54 = vor.u32 %v444_v36, %v441_v37  ;;  %v454_v57 = vrot.slane %v452_v27, 4  ;;  %v2182_v41 = vshrl.u32 %v6568_v23, 16 }
  0x54   : > { %v460_v58 = vrot.slane %v458_v38, 5  ;;  %5483 = vmatprep.mubr.msk.bf16.mxu1 %vm704_vm3, %v4880_v43  ;;  %v2180_v63 = vsel %vm6343_vm4, %v2175_v47, %v2179_v12  ;;  %v2185_v2 = vshll.u32 %v6568_v23, 16  ;;  %v2191_v4 = vshll.u32 %v6573_v39, 16 }
  0x55   : > { %v2195_v17 = vshrl.u32 %v6573_v39, 16  ;;  %v5075_v9 = vcombine.low %v2170_v46, %v2180_v63  ;;  %v446_v11 = vrot.slane %v445_v54, 4  ;;  %v455_v14 = vor.u32 %v454_v57, %v450_v49  ;;  %v244_v54 = vld [vmem:[%s6317_s27 + $0x68] sm:$0x1] }
  0x56   : > { %v2184_v5 = vrot.slane %v2182_v41, 4  ;;  %v2187_v25 = vrot.slane %v2185_v2, 5  ;;  %v2193_v26 = vrot.slane %v2191_v4, 5  ;;  %v2201_v12 = vshll.u32 %v6578_v59, 16 }
  0x57   : > { %v2197_v27 = vrot.slane %v2195_v17, 4  ;;  %5619 = vmatprep.mubr.msk.bf16.mxu0 %vm704_vm3, %v5075_v9  ;;  %v451_v33 = vsel %vm6343_vm4, %v446_v11, %v450_v49  ;;  %v456_v37 = vrot.slane %v455_v14, 4  ;;  %v463_v36 = vshrl.u32 %v6588_v6, 16  ;;  %v6605_v49 = vld [vmem:[%s6317_s27 + $0x6c] sm:$0xf] }
  0x58   : > { %v466_v38 = vshll.u32 %v6588_v6, 16  ;;  %v2188_v43 = vor.u32 %v2187_v25, %v2184_v5  ;;  %v2203_v47 = vrot.slane %v2201_v12, 5  ;;  %v472_v57 = vshll.u32 %v6591_v22, 16 }
  0x59   : > { %v2198_v46 = vor.u32 %v2197_v27, %v2193_v26  ;;  %v461_v41 = vsel %vm6343_vm4, %v456_v37, %v460_v58  ;;  %v465_v63 = vrot.slane %v463_v36, 4  ;;  %v476_v4 = vshrl.u32 %v6591_v22, 16 }
  0x5a   : > { %v468_v2 = vrot.slane %v466_v38, 5  ;;  %v4881_v17 = vcombine.low %v451_v33, %v461_v41  ;;  %v2189_v9 = vrot.slane %v2188_v43, 4  ;;  %v474_v14 = vrot.slane %v472_v57, 5  ;;  %v6621_v38 = vld [vmem:[%s6317_s27 + $0x70] sm:$0xf] }
  0x5b   : > { %v2199_v11 = vrot.slane %v2198_v46, 4  ;;  %v478_v25 = vrot.slane %v476_v4, 4  ;;  %v482_v27 = vshll.u32 %v244_v54, 16  ;;  %v5101_v58 = vrot.slane %v6323_v13, 9  ;;  %v247_v13 = vld [vmem:[%s6317_s27 + $0x74] sm:$0x1] }
  0x5c   : > { %v469_v5 = vor.u32 %v468_v2, %v465_v63  ;;  %5484 = vmatmul.mubr.msk.bf16.gmra.mrb[12].mxu1 %vm704_vm3, %v4881_v17  ;;  %v2194_v33 = vsel %vm6343_vm4, %v2189_v9, %v2193_v26  ;;  %v2709_v36 = vrot.slane %v6326_v15, 5  ;;  %v487_v43 = vshrl.u32 %v6605_v49, 16 }
  0x5d   : > { %v2204_v37 = vsel %vm6343_vm4, %v2199_v11, %v2203_v47  ;;  %v479_v57 = vor.u32 %v478_v25, %v474_v14  ;;  %v484_v41 = vrot.slane %v482_v27, 5  ;;  %v490_v47 = vshll.u32 %v6605_v49, 16 }
  0x5e   : > { %v5076_v46 = vcombine.low %v2194_v33, %v2204_v37  ;;  %v470_v54 = vrot.slane %v469_v5, 4  ;;  %v2710_v63 = vsel %vm6609_vm7, %v5101_v58, %v2709_v36  ;;  %v2711_v2 = vrot.slane %v2709_v36, 4  ;;  %v6639_v58 = vld [vmem:[%s6317_s27 + $0x78] sm:$0xf] }
  0x5f   : > { %v489_v26 = vrot.slane %v487_v43, 4  ;;  %v480_v4 = vrot.slane %v479_v57, 4  ;;  %v496_v17 = vshll.u32 %v6621_v38, 16  ;;  %v500_v9 = vshrl.u32 %v6621_v38, 16  ;;  %v6644_v43 = vld [vmem:[%s6317_s27 + $0x7c] sm:$0xf] }
  0x60   : > { %5620 = vmatmul.mubr.msk.bf16.gmra.mrb[12].mxu0 %vm704_vm3, %v5076_v46  ;;  %v475_v15 = vsel %vm6343_vm4, %v470_v54, %v474_v14  ;;  %v2713_v11 = vsel %vm6609_vm7, %v2711_v2, %v2712_v62  ;;  %v492_v5 = vrot.slane %v490_v47, 5  ;;  %v506_v25 = vshll.u32 %v247_v13, 16  ;;  %v250_v46 = vld [vmem:[%s6317_s27 + $0x80] sm:$0x1] }
  0x61   : > { %v5102_v27 = vrot.slane %v6361_v55, 9  ;;  %v485_v33 = vsel %vm6343_vm4, %v480_v4, %v484_v41  ;;  %v5118_v14 = vcombine.low %v2710_v63, %v2713_v11  ;;  %v498_v37 = vrot.slane %v496_v17, 5 }
  0x62   : > { %v502_v36 = vrot.slane %v500_v9, 4  ;;  %v4882_v54 = vcombine.low %v475_v15, %v485_v33  ;;  %v493_v16 = vor.u32 %v492_v5, %v489_v26  ;;  %v508_v57 = vrot.slane %v506_v25, 5  ;;  %v6669_v33 = vld [vmem:[%s6317_s27 + $0x88] sm:$0xf] }
  0x63   : > { %v2717_v62 = vsel %vm6609_vm7, %v5102_v27, %v2716_v24  ;;  %5641 = vmatprep.mubr.msk.bf16.mxu0 %vm704_vm3, %v5118_v14  ;;  %v2718_v41 = vrot.slane %v2716_v24, 4  ;;  %v511_v13 = vshrl.u32 %v6639_v58, 16  ;;  %v514_v63 = vshll.u32 %v6639_v58, 16  ;;  %v6666_v27 = vld [vmem:[%s6317_s27 + $0x84] sm:$0xf] }
  0x64   : > { %v503_v55 = vor.u32 %v502_v36, %v498_v37  ;;  %5487 = vmatprep.mubr.msk.bf16.mxu1 %vm704_vm3, %v4882_v54  ;;  %v494_v2 = vrot.slane %v493_v16, 4  ;;  %v520_v26 = vshll.u32 %v6644_v43, 16  ;;  %v524_v47 = vshrl.u32 %v6644_v43, 16 }
  0x65   : > { %v530_v15 = vshll.u32 %v250_v46, 16  ;;  %v2720_v60 = vsel %vm6609_vm7, %v2718_v41, %v2719_v29  ;;  %v513_v24 = vrot.slane %v511_v13, 4  ;;  %v516_v17 = vrot.slane %v514_v63, 5  ;;  %v6677_v46 = vld [vmem:[%s8315_s1 + $0xe] sm:$0x3] }
  0x66   : > { %v504_v4 = vrot.slane %v503_v55, 4  ;;  %v499_v9 = vsel %vm6343_vm4, %v494_v2, %v498_v37  ;;  %v5119_v11 = vcombine.low %v2717_v62, %v2720_v60  ;;  %v522_v5 = vrot.slane %v520_v26, 5  ;;  %v253_v55 = vld [vmem:[%s6317_s27 + $0x8c] sm:$0x1] }
  0x67   : > { %v526_v25 = vrot.slane %v524_v47, 4  ;;  %v517_v0 = vor.u32 %v516_v17, %v513_v24  ;;  %v532_v36 = vrot.slane %v530_v15, 5  ;;  %v5103_v29 = vrot.slane %v6395_v30, 9 }
  0x68   : > { %v509_v14 = vsel %vm6343_vm4, %v504_v4, %v508_v57  ;;  %5642 = vmatmul.mubr.msk.bf16.vlgmr.msra.gmra.mrb[0].mxu0 %vm704_vm3, %v5119_v11  ;;  %v2723_v16 = vrot.slane %v6402_v45, 5  ;;  %v2726_v62 = vrot.slane %v6407_v52, 5  ;;  %v535_v41 = vshrl.u32 %v6666_v27, 16  ;;  %v6703_v11 = vld [vmem:[%s6317_s27 + $0x94] sm:$0xf] }
  0x69   : > { %v4883_v37 = vcombine.low %v499_v9, %v509_v14  ;;  %v527_v54 = vor.u32 %v526_v25, %v522_v5  ;;  %5674 = vmatpush3.bf16.msra.mxu0 %v6375_v1  ;;  %v518_v57 = vrot.slane %v517_v0, 4  ;;  %v538_v30 = vshll.u32 %v6666_v27, 16  ;;  %v6700_v9 = vld [vmem:[%s6317_s27 + $0x90] sm:$0xf] }
  0x6a   : > { %v544_v13 = vshll.u32 %v6669_v33, 16  ;;  %v2724_v45 = vsel %vm6609_vm7, %v5103_v29, %v2723_v16  ;;  %v2725_v2 = vrot.slane %v2723_v16, 4  ;;  %v548_v52 = vshrl.u32 %v6669_v33, 16  ;;  %6041 = vmatprep.subr.msk.bf16.mxu0 %vm753_vm0, %v6677_v46 }
  0x6b   : > { %5488 = vmatmul.mubr.msk.bf16.gmra.mrb[16].mxu1 %vm704_vm3, %v4883_v37  ;;  %v528_v63 = vrot.slane %v527_v54, 4  ;;  %v523_v1 = vsel %vm6343_vm4, %v518_v57, %v522_v5  ;;  %v537_v26 = vrot.slane %v535_v41, 4  ;;  %v540_v47 = vrot.slane %v538_v30, 5 }
  0x6c   : > { %v546_v15 = vrot.slane %v544_v13, 5  ;;  %v2727_v60 = vsel %vm6609_vm7, %v2725_v2, %v2726_v62  ;;  %v550_v24 = vrot.slane %v548_v52, 4  ;;  %v554_v17 = vshll.u32 %v253_v55, 16  ;;  %v6711_v62 = vld [vmem:[%s6317_s27 + $0x98] sm:$0x1] }
  0x6d   : > { %v533_v4 = vsel %vm6343_vm4, %v528_v63, %v532_v36  ;;  %v5120_v14 = vcombine.low %v2724_v45, %v2727_v60  ;;  %v541_v0 = vor.u32 %v540_v47, %v537_v26  ;;  %v5104_v5 = vrot.slane %v6425_v21, 9  ;;  %v6730_v60 = vld [vmem:[%s6317_s27 + $0xa0] sm:$0xf] }
  0x6e   : > { %v4884_v25 = vcombine.low %v523_v1, %v533_v4  ;;  %v551_v29 = vor.u32 %v550_v24, %v546_v15  ;;  %v556_v37 = vrot.slane %v554_v17, 5  ;;  %v2730_v54 = vrot.slane %v6431_v34, 5  ;;  %v6727_v4 = vld [vmem:[%s6317_s27 + $0x9c] sm:$0xf] }
  0x6f   : > { %v2733_v36 = vrot.slane %v6440_v42, 5  ;;  %5645 = vmatprep.mubr.msk.bf16.mxu0 %vm704_vm3, %v5120_v14  ;;  %v542_v16 = vrot.slane %v541_v0, 4  ;;  %v559_v57 = vshrl.u32 %v6700_v9, 16  ;;  %v562_v55 = vshll.u32 %v6700_v9, 16 }
  0x70   : > { %5491 = vmatprep.mubr.msk.bf16.mxu1 %vm704_vm3, %v4884_v25  ;;  %v568_v21 = vshll.u32 %v6703_v11, 16  ;;  %v552_v41 = vrot.slane %v551_v29, 4  ;;  %v2731_v34 = vsel %vm6609_vm7, %v5104_v5, %v2730_v54  ;;  %v2732_v42 = vrot.slane %v2730_v54, 4  ;;  %v259_v54 = vld [vmem:[%s6317_s27 + $0xa4] sm:$0x1] }
  0x71   : > { %v572_v30 = vshrl.u32 %v6703_v11, 16  ;;  %v547_v13 = vsel %vm6343_vm4, %v542_v16, %v546_v15  ;;  %v561_v63 = vrot.slane %v559_v57, 4  ;;  %v564_v45 = vrot.slane %v562_v55, 5 }
  0x72   : > { %v570_v2 = vrot.slane %v568_v21, 5  ;;  %v557_v52 = vsel %vm6343_vm4, %v552_v41, %v556_v37  ;;  %v2734_v1 = vsel %vm6609_vm7, %v2732_v42, %v2733_v36  ;;  %v578_v47 = vshll.u32 %v6711_v62, 16 }
  0x73   : > { %v574_v26 = vrot.slane %v572_v30, 4  ;;  %v4885_v24 = vcombine.low %v547_v13, %v557_v52  ;;  %v5121_v17 = vcombine.low %v2731_v34, %v2734_v1  ;;  %v565_v15 = vor.u32 %v564_v45, %v561_v63  ;;  %v6751_v52 = vld [vmem:[%s6317_s27 + $0xa8] sm:$0xf]  ;;  %v6754_v1 = vld [vmem:[%s6317_s27 + $0xac] sm:$0xf] }
  0x74   : > { %v5105_v25 = vrot.slane %v6462_v10, 9  ;;  %v580_v0 = vrot.slane %v578_v47, 5  ;;  %v2737_v5 = vrot.slane %v6468_v19, 5  ;;  %v2740_v29 = vrot.slane %v6473_v31, 5  ;;  %8345 = vst [vmem:[#allocation3_spill] sm:$0xff] %v6751_v52 }
  0x75   : > { %v575_v14 = vor.u32 %v574_v26, %v570_v2  ;;  %5492 = vmatmul.mubr.msk.bf16.gmra.mrb[20].mxu1 %vm704_vm3, %v4885_v24  ;;  %5646 = vmatmul.mubr.msk.bf16.gmra.mrb[4].mxu0 %vm704_vm3, %v5121_v17  ;;  %v566_v37 = vrot.slane %v565_v15, 4  ;;  %v583_v36 = vshrl.u32 %v6727_v4, 16  ;;  %v586_v16 = vshll.u32 %v6727_v4, 16 }
  0x76   : > { %v592_v10 = vshll.u32 %v6730_v60, 16  ;;  %v2738_v19 = vsel %vm6609_vm7, %v5105_v25, %v2737_v5  ;;  %v2739_v55 = vrot.slane %v2737_v5, 4  ;;  %v596_v31 = vshrl.u32 %v6730_v60, 16  ;;  %v6762_v5 = vld [vmem:[%s6317_s27 + $0xb0] sm:$0x1] }
  0x77   : > { %v576_v57 = vrot.slane %v575_v14, 4  ;;  %v571_v21 = vsel %vm6343_vm4, %v566_v37, %v570_v2  ;;  %v585_v41 = vrot.slane %v583_v36, 4  ;;  %v588_v34 = vrot.slane %v586_v16, 5  ;;  %8346 = vst [vmem:[#allocation4_spill] sm:$0xff] %v6762_v5 }
  0x78   : > { %v594_v42 = vrot.slane %v592_v10, 5  ;;  %v2741_v13 = vsel %vm6609_vm7, %v2739_v55, %v2740_v29  ;;  %v598_v63 = vrot.slane %v596_v31, 4  ;;  %v602_v45 = vshll.u32 %v259_v54, 16 }
  0x79   : > { %v581_v30 = vsel %vm6343_vm4, %v576_v57, %v580_v0  ;;  %v5122_v47 = vcombine.low %v2738_v19, %v2741_v13  ;;  %v589_v24 = vor.u32 %v588_v34, %v585_v41  ;;  %v5106_v2 = vrot.slane %v6500_v8, 9  ;;  %v6778_v34 = vld [vmem:[%s6317_s27 + $0xb4] sm:$0xf] }
  0x7a   : > { %v4886_v26 = vcombine.low %v571_v21, %v581_v30  ;;  %v599_v17 = vor.u32 %v598_v63, %v594_v42  ;;  %v604_v15 = vrot.slane %v602_v45, 5  ;;  %v2744_v25 = vrot.slane %v6503_v18, 5  ;;  %8347 = vst [vmem:[#allocation5_spill] sm:$0xff] %v6778_v34  ;;  %v6781_v30 = vld [vmem:[%s6317_s27 + $0xb8] sm:$0xf] }
  0x7b   : > { %v2747_v14 = vrot.slane %v6509_v28, 5  ;;  %5649 = vmatprep.mubr.msk.bf16.mxu0 %vm704_vm3, %v5122_v47  ;;  %v590_v0 = vrot.slane %v589_v24, 4  ;;  %v607_v29 = vshrl.u32 %v6751_v52, 16  ;;  %v610_v37 = vshll.u32 %v6751_v52, 16  ;;  %8348 = vst [vmem:[#allocation6_spill] sm:$0xff] %v6781_v30 }
  0x7c   : > { %5495 = vmatprep.mubr.msk.bf16.mxu1 %vm704_vm3, %v4886_v26  ;;  %v616_v8 = vshll.u32 %v6754_v1, 16  ;;  %v600_v54 = vrot.slane %v599_v17, 4  ;;  %v2745_v18 = vsel %vm6609_vm7, %v5106_v2, %v2744_v25  ;;  %v2746_v28 = vrot.slane %v2744_v25, 4 }
  0x7d   : > { %v620_v36 = vshrl.u32 %v6754_v1, 16  ;;  %v595_v16 = vsel %vm6343_vm4, %v590_v0, %v594_v42  ;;  %v609_v10 = vrot.slane %v607_v29, 4  ;;  %v612_v57 = vrot.slane %v610_v37, 5 }
  0x7e   : > { %v618_v19 = vrot.slane %v616_v8, 5  ;;  %v605_v55 = vsel %vm6343_vm4, %v600_v54, %v604_v15  ;;  %v2748_v31 = vsel %vm6609_vm7, %v2746_v28, %v2747_v14  ;;  %v626_v41 = vshll.u32 %v6762_v5, 16  ;;  %v6789_v15 = vld [vmem:[%s6317_s27 + $0xbc] sm:$0x1]  ;;  %v5011_v28 = vld [vmem:[%s6317_s27 + $0x6c] sm:$0xf] }
  0x7f   : > { %v622_v21 = vrot.slane %v620_v36, 4  ;;  %v4887_v13 = vcombine.low %v595_v16, %v605_v55  ;;  %v5123_v63 = vcombine.low %v2745_v18, %v2748_v31  ;;  %v613_v42 = vor.u32 %v612_v57, %v609_v10  ;;  %8349 = vst [vmem:[#allocation7_spill] sm:$0xff] %v6789_v15  ;;  %v5012_v55 = vld [vmem:[%s6317_s27 + $0x70] sm:$0xf]  ;;  %v5013_v31 = vld [vmem:[%s6317_s27 + $0x74] sm:$0x1] }
  0x80   : > { %v5107_v45 = vrot.slane %v6534_v7, 9  ;;  %v628_v47 = vrot.slane %v626_v41, 5  ;;  %v2751_v24 = vrot.slane %v6537_v20, 5  ;;  %v2754_v2 = vrot.slane %v6544_v35, 5  ;;  %v6141_v5 = vld [vmem:[%s6317_s27 + $0x64] sm:$0xf] }
  0x81   : > { %v623_v26 = vor.u32 %v622_v21, %v618_v19  ;;  %5496 = vmatmul.mubr.msk.bf16.gmra.mrb[24].mxu1 %vm704_vm3, %v4887_v13  ;;  %5650 = vmatmul.mubr.msk.bf16.gmra.mrb[8].mxu0 %vm704_vm3, %v5123_v63  ;;  %v614_v17 = vrot.slane %v613_v42, 4  ;;  %v631_v25 = vshrl.u32 %v6778_v34, 16  ;;  %v634_v14 = vshll.u32 %v6778_v34, 16 }
  0x82   : > { %v640_v7 = vshll.u32 %v6781_v30, 16  ;;  %v2752_v20 = vsel %vm6609_vm7, %v5107_v45, %v2751_v24  ;;  %v2753_v35 = vrot.slane %v2751_v24, 4  ;;  %v644_v29 = vshrl.u32 %v6781_v30, 16 }
  0x83   : > { %v624_v0 = vrot.slane %v623_v26, 4  ;;  %v619_v37 = vsel %vm6343_vm4, %v614_v17, %v618_v19  ;;  %v633_v8 = vrot.slane %v631_v25, 4  ;;  %v636_v54 = vrot.slane %v634_v14, 5 }
  0x84   : > { %v642_v18 = vrot.slane %v640_v7, 5  ;;  %v2755_v16 = vsel %vm6609_vm7, %v2753_v35, %v2754_v2  ;;  %v646_v10 = vrot.slane %v644_v29, 4  ;;  %v650_v57 = vshll.u32 %v6789_v15, 16  ;;  %v6823_v35 = vld [vmem:[%s6317_s27] sm:$0xf] }
  0x85   : > { %v629_v36 = vsel %vm6343_vm4, %v624_v0, %v628_v47  ;;  %v5124_v41 = vcombine.low %v2752_v20, %v2755_v16  ;;  %v637_v13 = vor.u32 %v636_v54, %v633_v8  ;;  %v5108_v19 = vrot.slane %v6568_v23, 9  ;;  %v6826_v29 = vld [vmem:[%s6317_s27 + $0x4] sm:$0xf]  ;;  %v5014_v8 = vld [vmem:[%s6317_s27 + $0x78] sm:$0xf] }
  0x86   : > { %v4888_v21 = vcombine.low %v619_v37, %v629_v36  ;;  %v647_v63 = vor.u32 %v646_v10, %v642_v18  ;;  %v652_v42 = vrot.slane %v650_v57, 5  ;;  %v2758_v45 = vrot.slane %v6573_v39, 5  ;;  %v5015_v54 = vld [vmem:[%s6317_s27 + $0x7c] sm:$0xf]  ;;  %v5016_v16 = vld [vmem:[%s6317_s27 + $0x80] sm:$0x1] }
  0x87   : > { %v2761_v26 = vrot.slane %v6578_v59, 5  ;;  %5653 = vmatprep.mubr.msk.bf16.mxu0 %vm704_vm3, %v5124_v41  ;;  %v638_v47 = vrot.slane %v637_v13, 4  ;;  %v5109_v24 = vrot.slane %v5011_v28, 9  ;;  %v2765_v2 = vrot.slane %v5012_v55, 5  ;;  %v5017_v10 = vld [vmem:[%s6317_s27 + $0x84] sm:$0xf] }
  0x88   : > { %5499 = vmatprep.mubr.msk.bf16.mxu1 %vm704_vm3, %v4888_v21  ;;  %v2768_v17 = vrot.slane %v5013_v31, 5  ;;  %v648_v25 = vrot.slane %v647_v63, 4  ;;  %v2759_v23 = vsel %vm6609_vm7, %v5108_v19, %v2758_v45  ;;  %v2760_v39 = vrot.slane %v2758_v45, 4  ;;  %v5018_v55 = vld [vmem:[%s6317_s27 + $0x88] sm:$0xf] }
  0x89   : > { %v643_v59 = vsel %vm6343_vm4, %v638_v47, %v642_v18  ;;  %v2766_v14 = vsel %vm6609_vm7, %v5109_v24, %v2765_v2  ;;  %v2767_v7 = vrot.slane %v2765_v2, 4  ;;  %v4906_v37 = vcombine.low %v6823_v35, %v6826_v29  ;;  %v5019_v41 = vld [vmem:[%s6317_s27 + $0x8c] sm:$0x1]  ;;  %v5021_v13 = vld [vmem:[%s6317_s27 + $0x94] sm:$0xf] }
  0x8a   : > { %v653_v0 = vsel %vm6343_vm4, %v648_v25, %v652_v42  ;;  %v2762_v20 = vsel %vm6609_vm7, %v2760_v39, %v2761_v26  ;;  %v5110_v31 = vrot.slane %v5014_v8, 9  ;;  %v2772_v21 = vrot.slane %v5015_v54, 5  ;;  %v5020_v42 = vld [vmem:[%s6317_s27 + $0x90] sm:$0xf]  ;;  %v5022_v45 = vld [vmem:[%s6317_s27 + $0x98] sm:$0x1] }
  0x8b   : > { %v4889_v18 = vcombine.low %v643_v59, %v653_v0  ;;  %v5125_v28 = vcombine.low %v2759_v23, %v2762_v20  ;;  %v2769_v36 = vsel %vm6609_vm7, %v2767_v7, %v2768_v17  ;;  %v2775_v19 = vrot.slane %v5016_v16, 5  ;;  %v5023_v2 = vld [vmem:[%s6317_s27 + $0x9c] sm:$0xf]  ;;  %v5024_v17 = vld [vmem:[%s6317_s27 + $0xa0] sm:$0xf] }
  0x8c   : > { %v5126_v57 = vcombine.low %v2766_v14, %v2769_v36  ;;  %v5111_v63 = vrot.slane %v5017_v10, 9  ;;  %v2773_v26 = vsel %vm6609_vm7, %v5110_v31, %v2772_v21  ;;  %v2774_v47 = vrot.slane %v2772_v21, 4  ;;  %v6850_v25 = vld [vmem:[%s6317_s27 + $0xc] sm:$0xf]  ;;  %v6853_v23 = vld [vmem:[%s6317_s27 + $0x10] sm:$0xf] }
  0x8d   : > { %5500 = vmatmul.mubr.msk.bf16.gmra.mrb[28].mxu1 %vm704_vm3, %v4889_v18  ;;  %5654 = vmatmul.mubr.msk.bf16.gmra.mrb[12].mxu0 %vm704_vm3, %v5125_v28  ;;  %v2779_v24 = vrot.slane %v5018_v55, 5  ;;  %v4907_v39 = vcombine.low %v6850_v25, %v6853_v23  ;;  %v6120_v59 = vld [vmem:[%s8315_s1 + $0x4] sm:$0x3]  ;;  %v2782_v7 = vrot.slane %v5019_v41, 5  ;;  %v2786_v0 = vrot.slane %v5021_v13, 5 }
  0x8e   : > { %5505 = vmatprep.mubr.msk.bf16.mxu1 %vm704_vm3, %v4906_v37  ;;  %5657 = vmatprep.mubr.msk.bf16.mxu0 %vm704_vm3, %v5126_v57  ;;  %v1440_v14 = vsel %vm753_vm0, %v6120_v59, 0  ;;  %v5025_v20 = vld [vmem:[%s6317_s27 + $0xa4] sm:$0x1]  ;;  %v2776_v37 = vsel %vm6609_vm7, %v2774_v47, %v2775_v19  ;;  %v6865_v8 = vld [vmem:[%s6317_s27 + $0x18] sm:$0xf]  ;;  %v5112_v10 = vrot.slane %v5020_v42, 9 }
  0x8f   : > { %v6868_v54 = vld [vmem:[%s6317_s27 + $0x1c] sm:$0xf]  ;;  %v2780_v28 = vsel %vm6609_vm7, %v5111_v63, %v2779_v24  ;;  %v2781_v36 = vrot.slane %v2779_v24, 4  ;;  %v5127_v16 = vcombine.low %v2773_v26, %v2776_v37  ;;  %v2788_v57 = vrot.slane %v2786_v0, 4  ;;  %v5027_v19 = vld [vmem:[%s6317_s27 + $0xac] sm:$0xf] }
  0x90   : > { %v4908_v18 = vcombine.low %v6865_v8, %v6868_v54  ;;  %v2789_v55 = vrot.slane %v5022_v45, 5  ;;  %v5113_v21 = vrot.slane %v5023_v2, 9  ;;  %v2793_v41 = vrot.slane %v5024_v17, 5  ;;  %v5030_v59 = vld [vmem:[%s6317_s27 + $0xb8] sm:$0xf] }
  0x91   : > { %v2783_v31 = vsel %vm6609_vm7, %v2781_v36, %v2782_v7  ;;  %v2796_v13 = vrot.slane %v5025_v20, 5  ;;  %v6881_v63 = vld [vmem:[%s8315_s1 + $0x6] sm:$0x3]  ;;  %v2787_v45 = vsel %vm6609_vm7, %v5112_v10, %v2786_v0  ;;  %v2800_v24 = vrot.slane %v5027_v19, 5  ;;  %v5028_v7 = vld [vmem:[%s6317_s27 + $0xb0] sm:$0x1] }
  0x92   : > { %v5128_v47 = vcombine.low %v2780_v28, %v2783_v31  ;;  %v2795_v42 = vrot.slane %v2793_v41, 4  ;;  %v2790_v26 = vsel %vm6609_vm7, %v2788_v57, %v2789_v55  ;;  %v2794_v2 = vsel %vm6609_vm7, %v5113_v21, %v2793_v41  ;;  %v5029_v0 = vld [vmem:[%s6317_s27 + $0xb4] sm:$0xf]  ;;  %v5031_v20 = vld [vmem:[%s6317_s27 + $0xbc] sm:$0x1] }
  0x93   : > { %v6902_v37 = vld [vmem:[%s6317_s27 + $0x24] sm:$0xf]  ;;  %v5129_v36 = vcombine.low %v2787_v45, %v2790_v26  ;;  %v2802_v55 = vrot.slane %v2800_v24, 4  ;;  %v2803_v31 = vrot.slane %v5028_v7, 5  ;;  %v5115_v21 = vrot.slane %v5029_v0, 9 }
  0x94   : > { %v2797_v17 = vsel %vm6609_vm7, %v2795_v42, %v2796_v13  ;;  %v2810_v13 = vrot.slane %v5031_v20, 5  ;;  %v5033_v19 = vld [vmem:[%s6317_s27 + $0xc4] sm:$0xf]  ;;  %v5032_v45 = vld [vmem:[%s6317_s27 + $0xc0] sm:$0xf] }
  0x95   : > { %5506 = vmatmul.mubr.msk.bf16.vlgmr.msra.gmra.mrb[0].mxu1 %vm704_vm3, %v4907_v39  ;;  %5658 = vmatmul.mubr.msk.bf16.gmra.mrb[16].mxu0 %vm704_vm3, %v5127_v16  ;;  %v5026_v39 = vld [vmem:[%s6317_s27 + $0xa8] sm:$0xf]  ;;  %v4910_v16 = vcombine.low %v6444_v44, %v6450_v56  ;;  %v5130_v10 = vcombine.low %v2794_v2, %v2797_v17  ;;  %v2804_v56 = vsel %vm6609_vm7, %v2802_v55, %v2803_v31  ;;  %v5116_v7 = vrot.slane %v5032_v45, 9 }
  0x96   : > { %5538 = vmatpush3.bf16.msra.mxu1 %v1440_v14  ;;  %5509 = vmatprep.mubr.msk.bf16.mxu1 %vm704_vm3, %v4908_v18  ;;  %v2807_v14 = vrot.slane %v5030_v59, 5  ;;  %v6905_v18 = vld [vmem:[%s6317_s27 + $0x28] sm:$0xf]  ;;  %v5114_v57 = vrot.slane %v5026_v39, 9  ;;  %v4911_v2 = vcombine.low %v6481_v50, %v6487_v51  ;;  %v4916_v55 = vcombine.low %v6639_v58, %v6644_v43  ;;  %v6988_v58 = vld [vmem:[%s6317_s27 + $0x40] sm:$0xf] }
  0x97   : > { %5661 = vmatprep.mubr.msk.bf16.mxu0 %vm704_vm3, %v5128_v47  ;;  %6036 = vmatprep.subr.msk.bf16.mxu1 %vm753_vm0, %v6881_v63  ;;  %v4909_v28 = vcombine.low %v6902_v37, %v6905_v18  ;;  %v2814_v47 = vrot.slane %v5033_v19, 5  ;;  %v5034_v26 = vld [vmem:[%s6317_s27 + $0xc8] sm:$0x1]  ;;  %v3974_v31 = vsel %vm753_vm0, %v6677_v46, 0  ;;  %v4917_v45 = vcombine.low %v6666_v27, %v6669_v33 }
  0x98   : > { %v2809_v41 = vrot.slane %v2807_v14, 4  ;;  %v2801_v44 = vsel %vm6609_vm7, %v5114_v57, %v2800_v24  ;;  %v2808_v59 = vsel %vm6609_vm7, %v5115_v21, %v2807_v14  ;;  %v4912_v24 = vcombine.low %v6517_v40, %v6520_v48  ;;  %v6939_v40 = vld [vmem:[%s6317_s27 + $0x18] sm:$0xf]  ;;  %v6942_v48 = vld [vmem:[%s6317_s27 + $0x1c] sm:$0xf] }
  0x99   : > { %v5131_v17 = vcombine.low %v2801_v44, %v2804_v56  ;;  %v2816_v0 = vrot.slane %v2814_v47, 4  ;;  %v2817_v20 = vrot.slane %v5034_v26, 5  ;;  %v2815_v50 = vsel %vm6609_vm7, %v5116_v7, %v2814_v47  ;;  %v6992_v46 = vld [vmem:[%s6317_s27 + $0x48] sm:$0xf]  ;;  %v7005_v47 = vld [vmem:[%s6317_s27 + $0x14] sm:$0x1] }
  0x9a   : > { %v2811_v42 = vsel %vm6609_vm7, %v2809_v41, %v2810_v13  ;;  %v4913_v14 = vcombine.low %v6551_v53, %v6557_v61  ;;  %v6958_v53 = vld [vmem:[%s6317_s27 + $0x28] sm:$0xf]  ;;  %v6961_v61 = vld [vmem:[%s6317_s27 + $0x30] sm:$0xf]  ;;  %v6995_v13 = vld [vmem:[%s6317_s27 + $0x4c] sm:$0xf] }
  0x9b   : > { %v5132_v39 = vcombine.low %v2808_v59, %v2811_v42  ;;  %v2818_v51 = vsel %vm6609_vm7, %v2816_v0, %v2817_v20  ;;  %v6979_v41 = vld [vmem:[%s8315_s1 + $0x10] sm:$0x3]  ;;  %v7000_v19 = vld [vmem:[%s6317_s27 + $0x8] sm:$0x1]  ;;  %v1238_v56 = vrot.slane %v6853_v23, 5  ;;  %v1241_v59 = vrot.slane %v7005_v47, 5 }
  0x9c   : > { %v1234_v44 = vrot.slane %v7000_v19, 5  ;;  %v4918_v23 = vcombine.low %v6700_v9, %v6703_v11  ;;  %v7023_v7 = vld [vmem:[%s6317_s27 + $0x58] sm:$0xf]  ;;  %v1245_v9 = vrot.slane %v6868_v54, 5  ;;  %v7092_v33 = vld [vmem:[%s6317_s27 + $0x88] sm:$0xf] }
  0x9d   : > { %5510 = vmatmul.mubr.msk.bf16.gmra.mrb[4].mxu1 %vm704_vm3, %v4909_v28  ;;  %5662 = vmatmul.mubr.msk.bf16.gmra.mrb[20].mxu0 %vm704_vm3, %v5129_v36  ;;  %v5133_v28 = vcombine.low %v2815_v50, %v2818_v51  ;;  %v4914_v36 = vcombine.low %v6588_v6, %v6591_v22  ;;  %v6964_v6 = vld [vmem:[%s6317_s27 + $0x34] sm:$0xf]  ;;  %v4915_v22 = vcombine.low %v6605_v49, %v6621_v38  ;;  %v6985_v49 = vld [vmem:[%s6317_s27 + $0x3c] sm:$0xf]  ;;  %v7030_v50 = vld [vmem:[%s6317_s27 + $0x60] sm:$0xf] }
  0x9e   : > { %5513 = vmatprep.mubr.msk.bf16.mxu1 %vm704_vm3, %v4910_v16  ;;  %5665 = vmatprep.mubr.msk.bf16.mxu0 %vm704_vm3, %v5130_v10  ;;  %v5199_v16 = vcombine.low %v6939_v40, %v6942_v48  ;;  %v6955_v10 = vld [vmem:[%s6317_s27 + $0x24] sm:$0xf]  ;;  %v5201_v21 = vcombine.low %v6961_v61, %v6964_v6  ;;  %v5202_v26 = vcombine.low %v6985_v49, %v6988_v58  ;;  %v4940_v27 = vrot.slane %v6865_v8, 9  ;;  %v7116_v0 = vld [vmem:[%s6317_s27 + $0x94] sm:$0xf] }
  0x9f   : > { %v5200_v57 = vcombine.low %v6955_v10, %v6958_v53  ;;  %8350 = vst [vmem:[#allocation8_spill] sm:$0xff] %v7030_v50  ;;  %v4921_v51 = vcombine.low %v6778_v34, %v6781_v30  ;;  %v7124_v19 = vsel %vm753_vm0, %v6881_v63, 0  ;;  %v7142_v8 = vld [vmem:[%s6317_s27 + $0x9c] sm:$0xf]  ;;  %v7154_v54 = vld [vmem:[%s6317_s27 + $0xa8] sm:$0xf] }
  0xa0   : > { %v6132_v42 = vld [vmem:[%s6317_s27 + $0x40] sm:$0xf]  ;;  %v7223_v34 = vld [vmem:[%s6317_s27 + $0xc4] sm:$0xf] }
  0xa5   : > { %5514 = vmatmul.mubr.msk.bf16.gmra.mrb[8].mxu1 %vm704_vm3, %v4911_v2  ;;  %5666 = vmatmul.mubr.msk.bf16.gmra.mrb[24].mxu0 %vm704_vm3, %v5131_v17  ;;  %v7106_v17 = vld [vmem:[%s6317_s27 + $0x90] sm:$0xf]  ;;  %v7159_v2 = vld [vmem:[%s6317_s27 + $0xac] sm:$0xf] }
  0xa6   : > { %5517 = vmatprep.mubr.msk.bf16.mxu1 %vm704_vm3, %v4912_v24  ;;  %5669 = vmatprep.mubr.msk.bf16.mxu0 %vm704_vm3, %v5132_v39  ;;  %v5203_v24 = vcombine.low %v6992_v46, %v6995_v13  ;;  %v7020_v39 = vld [vmem:[%s6317_s27 + $0x54] sm:$0xf]  ;;  %8356 = vst [vmem:[#allocation14_spill] sm:$0xff] %v7106_v17 }
  0xa7   : > { %v5204_v47 = vcombine.low %v7020_v39, %v7023_v7 }
  0xad   : > { %5518 = vmatmul.mubr.msk.bf16.gmra.mrb[12].mxu1 %vm704_vm3, %v4913_v14  ;;  %5670 = vmatmul.mubr.msk.bf16.gmra.mrb[28].mxu0 %vm704_vm3, %v5133_v28  ;;  %v1266_v28 = vrot.slane %v6132_v42, 5  ;;  %v6133_v42 = vld [vmem:[%s6317_s27 + $0x4c] sm:$0xf] }
  0xae   : > { %5521 = vmatprep.mubr.msk.bf16.mxu1 %vm704_vm3, %v4914_v36  ;;  %5675 = vmatprep.mubr.msk.bf16.mxu0 %vm704_vm3, %v5199_v16  ;;  %v7037_v36 = vld [vmem:[%s6317_s27 + $0x64] sm:$0xf] }
  0xb5   : > { %5522 = vmatmul.mubr.msk.bf16.gmra.mrb[16].mxu1 %vm704_vm3, %v4915_v22  ;;  %5676 = vmatmul.mubr.msk.bf16.vlgmr.msra.gmra.mrb[0].mxu0 %vm704_vm3, %v5200_v57  ;;  %v7071_v22 = vld [vmem:[%s6317_s27 + $0x7c] sm:$0xf]  ;;  %v1240_v57 = vrot.slane %v1238_v56, 4 }
  0xb6   : > { %5708 = vmatpush3.bf16.msra.mxu0 %v3974_v31  ;;  %5525 = vmatprep.mubr.msk.bf16.mxu1 %vm704_vm3, %v4916_v55  ;;  %v1231_v55 = vrot.slane %v6826_v29, 5  ;;  %v7063_v31 = vld [vmem:[%s6317_s27 + $0x70] sm:$0xf]  ;;  %8354 = vst [vmem:[#allocation12_spill] sm:$0xff] %v7071_v22  ;;  %v4939_v29 = vrot.slane %v6850_v25, 9 }
  0xb7   : > { %5679 = vmatprep.mubr.msk.bf16.mxu0 %vm704_vm3, %v5201_v21  ;;  %6042 = vmatprep.subr.msk.bf16.mxu0 %vm753_vm0, %v6979_v41  ;;  %v4919_v21 = vcombine.low %v6727_v4, %v6730_v60  ;;  %8352 = vst [vmem:[#allocation10_spill] sm:$0xff] %v7063_v31  ;;  %v7066_v4 = vld [vmem:[%s6317_s27 + $0x78] sm:$0xf]  ;;  %v7084_v25 = vld [vmem:[%s6317_s27 + $0x84] sm:$0xf]  ;;  %v7102_v16 = vsel %vm6609_vm7, %v1240_v57, %v1241_v59  ;;  %v1252_v59 = vrot.slane %v6905_v18, 5 }
  0xb8   : > { %8353 = vst [vmem:[#allocation11_spill] sm:$0xff] %v7066_v4  ;;  %v1233_v14 = vrot.slane %v1231_v55, 4  ;;  %8355 = vst [vmem:[#allocation13_spill] sm:$0xff] %v7084_v25  ;;  %v7098_v20 = vsel %vm6609_vm7, %v4939_v29, %v1238_v56  ;;  %v1247_v56 = vrot.slane %v1245_v9, 4  ;;  %v6131_v18 = vld [vmem:[%s6317_s27 + $0x38] sm:$0x1] }
  0xbd   : > { %5526 = vmatmul.mubr.msk.bf16.gmra.mrb[20].mxu1 %vm704_vm3, %v4917_v45  ;;  %5680 = vmatmul.mubr.msk.bf16.gmra.mrb[4].mxu0 %vm704_vm3, %v5202_v26  ;;  %v7054_v26 = vld [vmem:[%s6317_s27 + $0x6c] sm:$0xf]  ;;  %v4938_v45 = vrot.slane %v6823_v35, 9 }
  0xbe   : > { %5529 = vmatprep.mubr.msk.bf16.mxu1 %vm704_vm3, %v4918_v23  ;;  %5683 = vmatprep.mubr.msk.bf16.mxu0 %vm704_vm3, %v5203_v24  ;;  %8351 = vst [vmem:[#allocation9_spill] sm:$0xff] %v7054_v26  ;;  %v4920_v23 = vcombine.low %v6751_v52, %v6754_v1  ;;  %v5205_v24 = vcombine.low %v7030_v50, %v7037_v36  ;;  %v8359_v52 = vshll.u32 %v6939_v40, 16 }
  0xbf   : > { %v5206_v35 = vcombine.low %v7054_v26, %v7063_v31  ;;  %v1232_v60 = vsel %vm6609_vm7, %v4938_v45, %v1231_v55  ;;  %v1235_v55 = vsel %vm6609_vm7, %v1233_v14, %v1234_v44  ;;  %v6127_v45 = vld [vmem:[%s6317_s27 + $0x20] sm:$0x1]  ;;  %v6128_v14 = vld [vmem:[%s6317_s27 + $0x34] sm:$0xf]  ;;  %v1287_v31 = vrot.slane %v6141_v5, 5 }
  0xc0   : > { %v1248_v29 = vrot.slane %v6127_v45, 5  ;;  %v1259_v57 = vrot.slane %v6128_v14, 5  ;;  %v4955_v63 = vcombine.low %v1232_v60, %v1235_v55  ;;  %v4941_v14 = vrot.slane %v6902_v37, 9  ;;  %v6129_v55 = vld [vmem:[%s6317_s27 + $0x2c] sm:$0x1] }
  0xc1   : > { %v1254_v60 = vrot.slane %v1252_v59, 4  ;;  %v1262_v37 = vrot.slane %v6131_v18, 5  ;;  %v6136_v45 = vld [vmem:[%s6317_s27 + $0x58] sm:$0xf]  ;;  %v6139_v26 = vld [vmem:[%s6317_s27 + $0x54] sm:$0xf] }
  0xc2   : > { %v1261_v44 = vrot.slane %v1259_v57, 4  ;;  %v7171_v18 = vsel %vm6609_vm7, %v4941_v14, %v1252_v59  ;;  %v7188_v14 = vld [vmem:[%s6317_s27 + $0xb4] sm:$0xf]  ;;  %v4945_v30 = vrot.slane %v6139_v26, 9  ;;  %v8360_v5 = vshrl.u32 %v6942_v48, 16 }
  0xc5   : > { %5530 = vmatmul.mubr.msk.bf16.gmra.mrb[24].mxu1 %vm704_vm3, %v4919_v21  ;;  %5684 = vmatmul.mubr.msk.bf16.gmra.mrb[8].mxu0 %vm704_vm3, %v5204_v47  ;;  %v7145_v21 = vld [vmem:[%s6317_s27 + $0xa0] sm:$0xf]  ;;  %v1255_v47 = vrot.slane %v6129_v55, 5 }
  0xc6   : > { %5533 = vmatprep.mubr.msk.bf16.mxu1 %vm704_vm3, %v4920_v23  ;;  %5687 = vmatprep.mubr.msk.bf16.mxu0 %vm704_vm3, %v5205_v24  ;;  %v7136_v24 = vsel %vm6609_vm7, %v4940_v27, %v1245_v9  ;;  %v7149_v23 = vsel %vm6609_vm7, %v1247_v56, %v1248_v29  ;;  %v6130_v27 = vld [vmem:[%s6317_s27 + $0x30] sm:$0xf]  ;;  %v6135_v56 = vld [vmem:[%s6317_s27 + $0x44] sm:$0x1] }
  0xc7   : > { %v4942_v9 = vrot.slane %v6130_v27, 9  ;;  %v7179_v27 = vsel %vm6609_vm7, %v1254_v60, %v1255_v47  ;;  %v6134_v47 = vld [vmem:[%s6317_s27 + $0x3c] sm:$0xf]  ;;  %v1269_v59 = vrot.slane %v6135_v56, 5  ;;  %v7215_v56 = vld [vmem:[%s6317_s27 + $0xc0] sm:$0xf] }
  0xc8   : > { %v4943_v60 = vrot.slane %v6134_v47, 9  ;;  %v6137_v47 = vld [vmem:[%s6317_s27 + $0x48] sm:$0xf] }
  0xc9   : > { %v7183_v29 = vsel %vm6609_vm7, %v4942_v9, %v1259_v57  ;;  %v7201_v57 = vsel %vm6609_vm7, %v1261_v44, %v1262_v37  ;;  %v1268_v9 = vrot.slane %v1266_v28, 4  ;;  %v4944_v15 = vrot.slane %v6137_v47, 9 }
  0xca   : > { %v7227_v37 = vsel %vm6609_vm7, %v4943_v60, %v1266_v28  ;;  %v3497_v28 = vrot.slane %v8359_v52, 5  ;;  %v8362_v52 = vcombine.low %v7084_v25, %v7092_v33 }
  0xcb   : > { %v7231_v47 = vsel %vm6609_vm7, %v1268_v9, %v1269_v59  ;;  %v7247_v59 = vld [vmem:[%s6317_s27 + $0xcc] sm:$0xf]  ;;  %v3507_v9 = vrot.slane %v8360_v5, 4 }
  0xcd   : > { %5534 = vmatmul.mubr.msk.bf16.gmra.mrb[28].mxu1 %vm704_vm3, %v4921_v51  ;;  %5688 = vmatmul.mubr.msk.bf16.gmra.mrb[12].mxu0 %vm704_vm3, %v5206_v35  ;;  %v1273_v51 = vrot.slane %v6133_v42, 5  ;;  %v8357_v35 = vcombine.low %v7066_v4, %v7071_v22  ;;  %v3501_v42 = vshll.u32 %v6942_v48, 16  ;;  %v6138_v4 = vld [vmem:[%s6317_s27 + $0x50] sm:$0x1]  ;;  %v6140_v22 = vld [vmem:[%s6317_s27 + $0x5c] sm:$0x1] }
  0xce   : > { %5539 = vmatprep.mubr.msk.bf16.mxu1 %vm704_vm3, %v4955_v63  ;;  %v1276_v44 = vrot.slane %v6138_v4, 5  ;;  %v1283_v55 = vrot.slane %v6140_v22, 5  ;;  %v8358_v4 = vshrl.u32 %v6939_v40, 16  ;;  %v7268_v48 = vld [vmem:[%s6317_s27 + $0xd0] sm:$0xf] }
  0xcf   : > { %5691 = vmatprep.mubr.msk.bf16.mxu0 %vm704_vm3, %v8357_v35  ;;  %v1280_v35 = vrot.slane %v6136_v45, 5  ;;  %v1275_v45 = vrot.slane %v1273_v51, 4  ;;  %v7242_v60 = vsel %vm6609_vm7, %v4944_v15, %v1273_v51  ;;  %v7249_v22 = vrot.slane %v3501_v42, 5  ;;  %v7271_v51 = vld [vmem:[%s6317_s27 + $0x20] sm:$0x1] }
  0xd0   : > { %v3494_v50 = vrot.slane %v8358_v4, 4  ;;  %v8361_v4 = vcombine.low %v7098_v20, %v7102_v16  ;;  %8363 = vst [vmem:[#allocation15_spill] sm:$0xff] %v7271_v51  ;;  %v1294_v20 = vrot.slane %v6621_v38, 5  ;;  %v3525_v16 = vshll.u32 %v6958_v53, 16  ;;  %v6146_v15 = vld [vmem:[%s6317_s27 + $0x74] sm:$0x1] }
  0xd1   : > { %v1282_v63 = vrot.slane %v1280_v35, 4  ;;  %v7265_v40 = vsel %vm6609_vm7, %v1275_v45, %v1276_v44  ;;  %v8364_v42 = vcombine.low %v7136_v24, %v7149_v23  ;;  %v7282_v5 = vsel %vm6609_vm7, %v4945_v30, %v1280_v35  ;;  %v6142_v44 = vld [vmem:[%s6317_s27 + $0x60] sm:$0xf]  ;;  %v6143_v24 = vld [vmem:[%s6317_s27 + $0x68] sm:$0x1] }
  0xd2   : > { %v4946_v45 = vrot.slane %v6142_v44, 9  ;;  %v8366_v38 = vshll.u32 %v6955_v10, 16  ;;  %v1289_v23 = vrot.slane %v1287_v31, 4  ;;  %v1290_v35 = vrot.slane %v6143_v24, 5  ;;  %v7309_v24 = vld [vmem:[%s6317_s27 + $0x2c] sm:$0x1] }
  0xd3   : > { %v7295_v30 = vsel %vm6609_vm7, %v1282_v63, %v1283_v55  ;;  %v1296_v63 = vrot.slane %v1294_v20, 4 }
  0xd4   : > { %v3521_v26 = vrot.slane %v8366_v38, 5  ;;  %v3511_v38 = vshll.u32 %v7271_v51, 16  ;;  %v1301_v51 = vrot.slane %v6644_v43, 5 }
  0xd5   : > { %5540 = vmatmul.mubr.msk.bf16.vlgmr.msra.gmra.mrb[0].mxu1 %vm704_vm3, %v8361_v4  ;;  %5692 = vmatmul.mubr.msk.bf16.gmra.mrb[16].mxu0 %vm704_vm3, %v8362_v52  ;;  %v8365_v4 = vshrl.u32 %v6955_v10, 16  ;;  %v6144_v10 = vld [vmem:[%s8315_s1 + $0x8] sm:$0x3] }
  0xd6   : > { %5572 = vmatpush3.bf16.msra.mxu1 %v7124_v19  ;;  %5543 = vmatprep.mubr.msk.bf16.mxu1 %vm704_vm3, %v8364_v42  ;;  %v8367_v19 = vcombine.low %v7106_v17, %v7116_v0  ;;  %v3498_v42 = vor.u32 %v3497_v28, %v3494_v50  ;;  %v1297_v17 = vrot.slane %v6146_v15, 5  ;;  %v7311_v50 = vrot.slane %v3525_v16, 5 }
  0xd7   : > { %v3518_v52 = vrot.slane %v8365_v4, 4  ;;  %6038 = vmatprep.subr.msk.bf16.mxu1 %vm753_vm0, %v6144_v10  ;;  %v3508_v4 = vor.u32 %v3507_v9, %v7249_v22  ;;  %v8368_v28 = vshrl.u32 %v6958_v53, 16  ;;  %v4961_v10 = vcombine.low %v7242_v60, %v7265_v40  ;;  %v6152_v9 = vld [vmem:[%s6317_s27 + $0x90] sm:$0xf] }
  0xd8   : > { %5695 = vmatprep.mubr.msk.bf16.mxu0 %vm704_vm3, %v8367_v19  ;;  %v6145_v19 = vld [vmem:[%s6317_s27 + $0x6c] sm:$0xf]  ;;  %v7326_v15 = vsel %vm6609_vm7, %v1289_v23, %v1290_v35  ;;  %v7328_v53 = vrot.slane %v3498_v42, 4  ;;  %v3549_v16 = vshll.u32 %v6964_v6, 16  ;;  %v7333_v40 = vrot.slane %v3511_v38, 5 }
  0xd9   : > { %v4947_v55 = vrot.slane %v6145_v19, 9  ;;  %v3531_v25 = vrot.slane %v8368_v28, 4  ;;  %v3522_v44 = vor.u32 %v3521_v26, %v3518_v52  ;;  %v7322_v19 = vsel %vm6609_vm7, %v4946_v45, %v1287_v31  ;;  %v6147_v38 = vld [vmem:[%s6317_s27 + $0x78] sm:$0xf] }
  0xda   : > { %v7331_v60 = vrot.slane %v3508_v4, 4  ;;  %v3535_v31 = vshll.u32 %v7309_v24, 16  ;;  %v8369_v26 = vcombine.low %v7171_v18, %v7179_v27  ;;  %v8370_v45 = vcombine.low %v7142_v8, %v7145_v21 }
  0xdb   : > { %v7337_v43 = vsel %vm6609_vm7, %v4947_v55, %v1294_v20  ;;  %v7350_v52 = vsel %vm6609_vm7, %v1296_v63, %v1297_v17  ;;  %v3532_v20 = vor.u32 %v3531_v25, %v7311_v50  ;;  %v8371_v23 = vshrl.u32 %v6961_v61, 16  ;;  %v6148_v63 = vld [vmem:[%s6317_s27 + $0x80] sm:$0x1] }
  0xdc   : > { %v8372_v42 = vshll.u32 %v6961_v61, 16  ;;  %v8373_v27 = vcombine.low %v7183_v29, %v7201_v57  ;;  %v8374_v18 = vcombine.low %v7154_v54, %v7159_v2  ;;  %v3523_v17 = vrot.slane %v3522_v44, 4  ;;  %v7445_v61 = vld [vmem:[%s6317_s27 + $0x50] sm:$0x1] }
  0xdd   : > { %5544 = vmatmul.mubr.msk.bf16.gmra.mrb[4].mxu1 %vm704_vm3, %v8369_v26  ;;  %5696 = vmatmul.mubr.msk.bf16.gmra.mrb[20].mxu0 %vm704_vm3, %v8370_v45  ;;  %v3542_v35 = vrot.slane %v8371_v23, 4  ;;  %v4948_v55 = vrot.slane %v6147_v38, 9  ;;  %v1303_v25 = vrot.slane %v1301_v51, 4  ;;  %v1304_v28 = vrot.slane %v6148_v63, 5  ;;  %v7368_v26 = vld [vmem:[%s6317_s27 + $0x38] sm:$0x1] }
  0xde   : > { %v3545_v4 = vrot.slane %v8372_v42, 5  ;;  %5547 = vmatprep.mubr.msk.bf16.mxu1 %vm704_vm3, %v8373_v27  ;;  %5699 = vmatprep.mubr.msk.bf16.mxu0 %vm704_vm3, %v8374_v18  ;;  %8375 = vst [vmem:[#allocation16_spill] sm:$0xff] %v7368_v26  ;;  %v3504_v29 = vsel %vm6343_vm4, %v7328_v53, %v7249_v22  ;;  %v7376_v57 = vrot.slane %v3549_v16, 5  ;;  %v8376_v44 = vshrl.u32 %v6964_v6, 16 }
  0xdf   : > { %v3514_v23 = vsel %vm6343_vm4, %v7331_v60, %v7333_v40  ;;  %v7388_v27 = vsel %vm753_vm0, %v6979_v41, 0  ;;  %v3573_v22 = vshll.u32 %v6988_v58, 16  ;;  %v3533_v53 = vrot.slane %v3532_v20, 4 }
  0xe0   : > { %v3555_v45 = vrot.slane %v8376_v44, 4  ;;  %v3537_v16 = vrot.slane %v3535_v31, 5  ;;  %v3546_v6 = vor.u32 %v3545_v4, %v3542_v35  ;;  %v3559_v18 = vshll.u32 %v7368_v26, 16  ;;  %v6149_v31 = vld [vmem:[%s6317_s27 + $0x88] sm:$0xf] }
  0xe1   : > { %v3528_v60 = vsel %vm6343_vm4, %v3523_v17, %v7311_v50  ;;  %v7397_v40 = vsel %vm6609_vm7, %v4948_v55, %v1301_v51  ;;  %v7401_v41 = vsel %vm6609_vm7, %v1303_v25, %v1304_v28  ;;  %v3597_v38 = vshll.u32 %v6995_v13, 16  ;;  %v6150_v44 = vld [vmem:[%s6317_s27 + $0x84] sm:$0xf] }
  0xe2   : > { %v3556_v20 = vor.u32 %v3555_v45, %v7376_v57  ;;  %v1308_v35 = vrot.slane %v6149_v31, 5  ;;  %v8377_v4 = vshrl.u32 %v6985_v49, 16  ;;  %v8378_v50 = vshll.u32 %v6985_v49, 16  ;;  %v7412_v55 = vld [vmem:[%s6317_s27 + $0x44] sm:$0x1] }
  0xe3   : > { %v4949_v51 = vrot.slane %v6150_v44, 9  ;;  %v7414_v42 = vrot.slane %v3573_v22, 5  ;;  %v8379_v25 = vshrl.u32 %v6988_v58, 16  ;;  %v1315_v45 = vrot.slane %v6703_v11, 5 }
  0xe4   : > { %v3566_v63 = vrot.slane %v8377_v4, 4  ;;  %v3569_v17 = vrot.slane %v8378_v50, 5  ;;  %v8380_v31 = vcombine.low %v7227_v37, %v7231_v47  ;;  %v8381_v49 = vcombine.low %v7188_v14, %v7191_v3  ;;  %v6151_v50 = vld [vmem:[%s6317_s27 + $0x8c] sm:$0x1] }
  0xe5   : > { %v3579_v28 = vrot.slane %v8379_v25, 4  ;;  %v3538_v22 = vsel %vm6343_vm4, %v3533_v53, %v3537_v16  ;;  %v3547_v4 = vrot.slane %v3546_v6, 4  ;;  %v3561_v58 = vrot.slane %v3559_v18, 5 }
  0xe6   : > { %5548 = vmatmul.mubr.msk.bf16.gmra.mrb[8].mxu1 %vm704_vm3, %v8380_v31  ;;  %5700 = vmatmul.mubr.msk.bf16.gmra.mrb[24].mxu0 %vm704_vm3, %v8381_v49  ;;  %v1311_v44 = vrot.slane %v6151_v50, 5  ;;  %v8382_v11 = vcombine.low %v7215_v56, %v7223_v34  ;;  %v8383_v37 = vshrl.u32 %v6992_v46, 16  ;;  %v8384_v25 = vshll.u32 %v6992_v46, 16 }
  0xe7   : > { %5551 = vmatprep.mubr.msk.bf16.mxu1 %vm704_vm3, %v4961_v10  ;;  %v7439_v49 = vrot.slane %v3597_v38, 5  ;;  %v8385_v53 = vshrl.u32 %v6995_v13, 16  ;;  %v3557_v6 = vrot.slane %v3556_v20, 4  ;;  %v1310_v18 = vrot.slane %v1308_v35, 4 }
  0xe8   : > { %5703 = vmatprep.mubr.msk.bf16.mxu0 %vm704_vm3, %v8382_v11  ;;  %v3590_v47 = vrot.slane %v8383_v37, 4  ;;  %v3593_v31 = vrot.slane %v8384_v25, 5  ;;  %v3570_v50 = vor.u32 %v3569_v17, %v3566_v63  ;;  %v3583_v10 = vshll.u32 %v7412_v55, 16 }
  0xe9   : > { %v3603_v16 = vrot.slane %v8385_v53, 4  ;;  %v3580_v11 = vor.u32 %v3579_v28, %v7414_v42  ;;  %v4950_v26 = vrot.slane %v6152_v9, 9  ;;  %v1317_v37 = vrot.slane %v1315_v45, 4 }
  0xea   : > { %v1318_v46 = vrot.slane %v6711_v62, 5  ;;  %v5232_v25 = vcombine.low %v3504_v29, %v3514_v23  ;;  %v5233_v38 = vcombine.low %v3528_v60, %v3538_v22  ;;  %v4965_v13 = vcombine.low %v7397_v40, %v7401_v41 }
  0xeb   : > { %v3621_v20 = vshll.u32 %v7023_v7, 16  ;;  %v7455_v63 = vsel %vm6609_vm7, %v4949_v51, %v1308_v35  ;;  %v3594_v17 = vor.u32 %v3593_v31, %v3590_v47  ;;  %v3604_v28 = vor.u32 %v3603_v16, %v7439_v49 }
  0xec   : > { %v3607_v9 = vshll.u32 %v7445_v61, 16  ;;  %v3552_v62 = vsel %vm6343_vm4, %v3547_v4, %v7376_v57  ;;  %v3562_v29 = vsel %vm6343_vm4, %v3557_v6, %v3561_v58  ;;  %v7466_v23 = vsel %vm6609_vm7, %v1310_v18, %v1311_v44  ;;  %v7485_v4 = vld [vmem:[%s6317_s27 + $0x5c] sm:$0x1]  ;;  %v6153_v18 = vld [vmem:[%s6317_s27 + $0xa0] sm:$0xf] }
  0xed   : > { %v3571_v60 = vrot.slane %v3570_v50, 4  ;;  %v3581_v40 = vrot.slane %v3580_v11, 4  ;;  %v3585_v41 = vrot.slane %v3583_v10, 5  ;;  %v7470_v35 = vsel %vm6609_vm7, %v4950_v26, %v1315_v45 }
  0xee   : > { %v7474_v51 = vsel %vm6609_vm7, %v1317_v37, %v1318_v46  ;;  %v8386_v57 = vcombine.low %v7282_v5, %v7295_v30  ;;  %v8387_v22 = vcombine.low %v7247_v59, %v7268_v48  ;;  %v8388_v58 = vshrl.u32 %v7020_v39, 16  ;;  %v6154_v37 = vld [vmem:[%s6317_s27 + $0x9c] sm:$0xf] }
  0xef   : > { %v8389_v45 = vshll.u32 %v7020_v39, 16  ;;  %v7491_v47 = vrot.slane %v3621_v20, 5  ;;  %v8390_v5 = vshrl.u32 %v7023_v7, 16  ;;  %v8391_v31 = vcombine.low %v7322_v19, %v7326_v15  ;;  %v6155_v20 = vld [vmem:[%s6317_s27 + $0xa4] sm:$0x1] }
  0xf0   : > { %5552 = vmatmul.mubr.msk.bf16.gmra.mrb[12].mxu1 %vm704_vm3, %v8386_v57  ;;  %5704 = vmatmul.mubr.msk.bf16.gmra.mrb[28].mxu0 %vm704_vm3, %v8387_v22  ;;  %v3614_v26 = vrot.slane %v8388_v58, 4  ;;  %v3595_v53 = vrot.slane %v3594_v17, 4  ;;  %v3605_v16 = vrot.slane %v3604_v28, 4  ;;  %v3609_v6 = vrot.slane %v3607_v9, 5  ;;  %v8393_v57 = vld [vmem:[#allocation8_spill] sm:$0xff] }
  0xf1   : > { %v3617_v44 = vrot.slane %v8389_v45, 5  ;;  %v3627_v30 = vrot.slane %v8390_v5, 4  ;;  %5555 = vmatprep.mubr.msk.bf16.mxu1 %vm704_vm3, %v8391_v31  ;;  %5709 = vmatprep.mubr.msk.bf16.mxu0 %vm704_vm3, %v5232_v25  ;;  %v1322_v39 = vrot.slane %v6153_v18, 5  ;;  %v5234_v50 = vcombine.low %v3552_v62, %v3562_v29 }
  0xf2   : > { %v4966_v10 = vcombine.low %v7455_v63, %v7466_v23  ;;  %v3576_v7 = vsel %vm6343_vm4, %v3571_v60, %v7414_v42  ;;  %v3645_v19 = vshll.u32 %v7037_v36, 16  ;;  %v3586_v15 = vsel %vm6343_vm4, %v3581_v40, %v3585_v41  ;;  %v8392_v40 = vld [vmem:[#allocation3_spill] sm:$0xff] }
  0xf3   : > { %v4967_v11 = vcombine.low %v7470_v35, %v7474_v51  ;;  %v4951_v46 = vrot.slane %v6154_v37, 9  ;;  %v3631_v25 = vshll.u32 %v7485_v4, 16  ;;  %v1325_v17 = vrot.slane %v6155_v20, 5 }
  0xf4   : > { %v3618_v28 = vor.u32 %v3617_v44, %v3614_v26  ;;  %v3628_v9 = vor.u32 %v3627_v30, %v7491_v47  ;;  %v1329_v42 = vrot.slane %v6754_v1, 5  ;;  %v3600_v62 = vsel %vm6343_vm4, %v3595_v53, %v7439_v49  ;;  %v7535_v53 = vld [vmem:[%s6317_s27 + $0x68] sm:$0x1] }
  0xf5   : > { %v3610_v29 = vsel %vm6343_vm4, %v3605_v16, %v3609_v6  ;;  %v1324_v60 = vrot.slane %v1322_v39, 4  ;;  %v4952_v41 = vrot.slane %v8392_v40, 9  ;;  %v8394_v22 = vshrl.u32 %v8393_v57, 16  ;;  %v8397_v16 = vld [vmem:[#allocation10_spill] sm:$0xff] }
  0xf6   : > { %v8395_v45 = vshll.u32 %v8393_v57, 16  ;;  %v7526_v44 = vrot.slane %v3645_v19, 5  ;;  %v8396_v1 = vshrl.u32 %v7037_v36, 16  ;;  %v5235_v30 = vcombine.low %v3576_v7, %v3586_v15  ;;  %v8399_v7 = vld [vmem:[#allocation4_spill] sm:$0xff] }
  0xf7   : > { %v3638_v58 = vrot.slane %v8394_v22, 4  ;;  %v7532_v49 = vsel %vm6609_vm7, %v4951_v46, %v1322_v39  ;;  %v3633_v31 = vrot.slane %v3631_v25, 5  ;;  %v3669_v6 = vshll.u32 %v8397_v16, 16 }
  0xf8   : > { %v3641_v26 = vrot.slane %v8395_v45, 5  ;;  %v3651_v5 = vrot.slane %v8396_v1, 4  ;;  %v8398_v18 = vcombine.low %v7337_v43, %v7350_v52  ;;  %5710 = vmatmul.mubr.msk.bf16.vlgmr.msra.gmra.mrb[0].mxu0 %vm704_vm3, %v5233_v38  ;;  %v3619_v19 = vrot.slane %v3618_v28, 4  ;;  %v8400_v52 = vld [vmem:[#allocation12_spill] sm:$0xff]  ;;  %v8407_v1 = vld [vmem:[#allocation11_spill] sm:$0xff] }
  0xf9   : > { %v3629_v36 = vrot.slane %v3628_v9, 4  ;;  %v1331_v37 = vrot.slane %v1329_v42, 4  ;;  %v1332_v15 = vrot.slane %v8399_v7, 5  ;;  %5742 = vmatpush3.bf16.msra.mxu0 %v7388_v27  ;;  %v5236_v39 = vcombine.low %v3600_v62, %v3610_v29  ;;  %5713 = vmatprep.mubr.msk.bf16.mxu0 %vm704_vm3, %v5234_v50  ;;  %v8402_v9 = vld [vmem:[#allocation9_spill] sm:$0xff] }
  0xfa   : > { %5556 = vmatmul.mubr.msk.bf16.gmra.mrb[16].mxu1 %vm704_vm3, %v8398_v18  ;;  %v7548_v46 = vsel %vm6609_vm7, %v1324_v60, %v1325_v17  ;;  %v7552_v43 = vsel %vm6609_vm7, %v4952_v41, %v1329_v42  ;;  %v3693_v38 = vshll.u32 %v8400_v52, 16  ;;  %v3642_v25 = vor.u32 %v3641_v26, %v3638_v58  ;;  %v8406_v58 = vld [vmem:[#allocation5_spill] sm:$0xff]  ;;  %v7578_v26 = vld [vmem:[%s6317_s27 + $0x74] sm:$0x1] }
  0xfb   : > { %5559 = vmatprep.mubr.msk.bf16.mxu1 %vm704_vm3, %v4965_v13  ;;  %v3652_v20 = vor.u32 %v3651_v5, %v7526_v44  ;;  %v3655_v27 = vshll.u32 %v7535_v53, 16  ;;  %v8401_v13 = vld [vmem:[#allocation6_spill] sm:$0xff]  ;;  %v8403_v62 = vshrl.u32 %v8402_v9, 16  ;;  %v8404_v29 = vshll.u32 %v8402_v9, 16 }
  0xfc   : > { %v1336_v28 = vrot.slane %v8401_v13, 5  ;;  %v7563_v42 = vrot.slane %v3669_v6, 5  ;;  %v8405_v40 = vshrl.u32 %v8397_v16, 16  ;;  %v3624_v50 = vsel %vm6343_vm4, %v3619_v19, %v7491_v47  ;;  %v7590_v9 = vld [vmem:[%s6317_s27 + $0x80] sm:$0x1] }
  0xfd   : > { %v3662_v17 = vrot.slane %v8403_v62, 4  ;;  %v3665_v60 = vrot.slane %v8404_v29, 5  ;;  %v3634_v57 = vsel %vm6343_vm4, %v3629_v36, %v3633_v31  ;;  %v7574_v22 = vsel %vm6609_vm7, %v1331_v37, %v1332_v15  ;;  %v8411_v37 = vld [vmem:[#allocation7_spill] sm:$0xff] }
  0xfe   : > { %v3675_v41 = vrot.slane %v8405_v40, 4  ;;  %v4953_v45 = vrot.slane %v8406_v58, 9  ;;  %v8408_v5 = vshrl.u32 %v8407_v1, 16  ;;  %v8409_v16 = vshll.u32 %v8407_v1, 16 }
  0xff   : > { %v7584_v7 = vrot.slane %v3693_v38, 5  ;;  %v8410_v47 = vshrl.u32 %v8400_v52, 16  ;;  %v3643_v31 = vrot.slane %v3642_v25, 4  ;;  %v3653_v36 = vrot.slane %v3652_v20, 4 }
 0x100   : > { %v3686_v6 = vrot.slane %v8408_v5, 4  ;;  %v3689_v18 = vrot.slane %v8409_v16, 5  ;;  %v3657_v13 = vrot.slane %v3655_v27, 5  ;;  %v1339_v15 = vrot.slane %v8411_v37, 5  ;;  %5714 = vmatmul.mubr.msk.bf16.gmra.mrb[4].mxu0 %vm704_vm3, %v5235_v30  ;;  %v8412_v27 = vld [vmem:[#allocation13_spill] sm:$0xff] }
 0x101   : > { %v3699_v19 = vrot.slane %v8410_v47, 4  ;;  %v1338_v62 = vrot.slane %v1336_v28, 4  ;;  %v3666_v29 = vor.u32 %v3665_v60, %v3662_v17  ;;  %v3676_v40 = vor.u32 %v3675_v41, %v7563_v42  ;;  %5717 = vmatprep.mubr.msk.bf16.mxu0 %vm704_vm3, %v5236_v39  ;;  %v7635_v16 = vld [vmem:[%s6317_s27 + $0x8c] sm:$0x1] }
 0x102   : > { %v3679_v58 = vshll.u32 %v7578_v26, 16  ;;  %v3807_v1 = vshll.u32 %v7188_v14, 16  ;;  %5560 = vmatmul.mubr.msk.bf16.gmra.mrb[20].mxu1 %vm704_vm3, %v4966_v10  ;;  %v4968_v52 = vcombine.low %v7532_v49, %v7548_v46  ;;  %v4969_v38 = vcombine.low %v7552_v43, %v7574_v22 }
 0x103   : > { %v3717_v25 = vshll.u32 %v7092_v33, 16  ;;  %5563 = vmatprep.mubr.msk.bf16.mxu1 %vm704_vm3, %v4967_v11  ;;  %v5237_v63 = vcombine.low %v3624_v50, %v3634_v57  ;;  %v3690_v23 = vor.u32 %v3689_v18, %v3686_v6  ;;  %v3700_v10 = vor.u32 %v3699_v19, %v7584_v7  ;;  %v8416_v18 = vld [vmem:[#allocation14_spill] sm:$0xff] }
 0x104   : > { %v3703_v30 = vshll.u32 %v7590_v9, 16  ;;  %v3648_v49 = vsel %vm6343_vm4, %v3643_v31, %v7526_v44  ;;  %v3658_v46 = vsel %vm6343_vm4, %v3653_v36, %v3657_v13  ;;  %v7619_v35 = vsel %vm6609_vm7, %v4953_v45, %v1336_v28 }
 0x105   : > { %v3741_v51 = vshll.u32 %v7116_v0, 16  ;;  %v7624_v11 = vsel %vm6609_vm7, %v1338_v62, %v1339_v15  ;;  %v3667_v39 = vrot.slane %v3666_v29, 4  ;;  %v3677_v43 = vrot.slane %v3676_v40, 4  ;;  %v7652_v40 = vld [vmem:[%s6317_s27 + $0x98] sm:$0x1] }
 0x106   : > { %v3681_v20 = vrot.slane %v3679_v58, 5  ;;  %v8413_v17 = vshrl.u32 %v8412_v27, 16  ;;  %v8414_v60 = vshll.u32 %v8412_v27, 16  ;;  %v7630_v50 = vrot.slane %v3717_v25, 5  ;;  %v6156_v25 = vld [vmem:[%s6317_s27 + $0xc] sm:$0xf] }
 0x107   : > { %v8415_v28 = vshrl.u32 %v7092_v33, 16  ;;  %v5238_v22 = vcombine.low %v3648_v49, %v3658_v46  ;;  %v3691_v45 = vrot.slane %v3690_v23, 4  ;;  %v3701_v5 = vrot.slane %v3700_v10, 4 }
 0x108   : > { %v3710_v44 = vrot.slane %v8413_v17, 4  ;;  %v3713_v41 = vrot.slane %v8414_v60, 5  ;;  %v3705_v6 = vrot.slane %v3703_v30, 5  ;;  %v8417_v47 = vshrl.u32 %v8416_v18, 16  ;;  %5718 = vmatmul.mubr.msk.bf16.gmra.mrb[8].mxu0 %vm704_vm3, %v5237_v63 }
 0x109   : > { %v3723_v57 = vrot.slane %v8415_v28, 4  ;;  %v8418_v31 = vshll.u32 %v8416_v18, 16  ;;  %v7641_v13 = vrot.slane %v3741_v51, 5  ;;  %v8419_v37 = vshrl.u32 %v7116_v0, 16  ;;  %v6157_v0 = vld [vmem:[%s6317_s27 + $0x10] sm:$0xf]  ;;  %5721 = vmatprep.mubr.msk.bf16.mxu0 %vm704_vm3, %v5238_v22 }
 0x10a   : > { %v3734_v19 = vrot.slane %v8417_v47, 4  ;;  %v3817_v15 = vshrl.u32 %v7191_v3, 16  ;;  %v3672_v62 = vsel %vm6343_vm4, %v3667_v39, %v7563_v42  ;;  %v3682_v29 = vsel %vm6343_vm4, %v3677_v43, %v3681_v20  ;;  %5564 = vmatmul.mubr.msk.bf16.gmra.mrb[24].mxu1 %vm704_vm3, %v4968_v52  ;;  %v7682_v22 = vld [vmem:[%s6317_s27 + $0xa4] sm:$0x1] }
 0x10b   : > { %v3737_v36 = vrot.slane %v8418_v31, 5  ;;  %v3747_v33 = vrot.slane %v8419_v37, 4  ;;  %v3765_v58 = vshll.u32 %v7145_v21, 16  ;;  %v5036_v23 = vcombine.low %v6156_v25, %v6157_v0  ;;  %5567 = vmatprep.mubr.msk.bf16.mxu1 %vm704_vm3, %v4969_v38 }
 0x10c   : > { %v3714_v10 = vor.u32 %v3713_v41, %v3710_v44  ;;  %v3724_v30 = vor.u32 %v3723_v57, %v7630_v50  ;;  %v3727_v49 = vshll.u32 %v7635_v16, 16  ;;  %v4970_v42 = vcombine.low %v7619_v35, %v7624_v11 }
 0x10d   : > { %v3696_v52 = vsel %vm6343_vm4, %v3691_v45, %v7584_v7  ;;  %v3706_v63 = vsel %vm6343_vm4, %v3701_v5, %v3705_v6  ;;  %v3789_v46 = vshll.u32 %v7159_v2, 16  ;;  %v5239_v51 = vcombine.low %v3672_v62, %v3682_v29 }
 0x10e   : > { %v3738_v39 = vor.u32 %v3737_v36, %v3734_v19  ;;  %v3748_v43 = vor.u32 %v3747_v33, %v7641_v13  ;;  %v3751_v38 = vshll.u32 %v7652_v40, 16  ;;  %v8420_v20 = vshrl.u32 %v7142_v8, 16  ;;  %v7694_v33 = vld [vmem:[%s6317_s27 + $0xb0] sm:$0x1] }
 0x10f   : > { %v8421_v35 = vshll.u32 %v7142_v8, 16  ;;  %v7677_v17 = vrot.slane %v3765_v58, 5  ;;  %v8422_v7 = vshrl.u32 %v7145_v21, 16  ;;  %v5240_v60 = vcombine.low %v3696_v52, %v3706_v63 }
 0x110   : > { %v3758_v27 = vrot.slane %v8420_v20, 4  ;;  %v3715_v41 = vrot.slane %v3714_v10, 4  ;;  %v3725_v28 = vrot.slane %v3724_v30, 4  ;;  %v3729_v57 = vrot.slane %v3727_v49, 5  ;;  %5722 = vmatmul.mubr.msk.bf16.gmra.mrb[12].mxu0 %vm704_vm3, %v5239_v51  ;;  %v6158_v10 = vld [vmem:[%s6317_s27 + $0x18] sm:$0xf] }
 0x111   : > { %v3761_v11 = vrot.slane %v8421_v35, 5  ;;  %v3771_v44 = vrot.slane %v8422_v7, 4  ;;  %v8423_v45 = vshrl.u32 %v7154_v54, 16  ;;  %v8424_v6 = vshll.u32 %v7154_v54, 16  ;;  %5725 = vmatprep.mubr.msk.bf16.mxu0 %vm704_vm3, %v5240_v60  ;;  %v6159_v30 = vld [vmem:[%s6317_s27 + $0x1c] sm:$0xf] }
 0x112   : > { %v7688_v8 = vrot.slane %v3789_v46, 5  ;;  %v8425_v47 = vshrl.u32 %v7159_v2, 16  ;;  %v3828_v21 = vshrl.u32 %v7215_v56, 16  ;;  %v3739_v31 = vrot.slane %v3738_v39, 4  ;;  %5568 = vmatmul.mubr.msk.bf16.gmra.mrb[28].mxu1 %vm704_vm3, %v4970_v42  ;;  %v6160_v46 = vld [vmem:[%s6317_s27 + $0x24] sm:$0xf] }
 0x113   : > { %v3782_v5 = vrot.slane %v8423_v45, 4  ;;  %v3785_v18 = vrot.slane %v8424_v6, 5  ;;  %v3749_v36 = vrot.slane %v3748_v43, 4  ;;  %v3753_v37 = vrot.slane %v3751_v38, 5  ;;  %5573 = vmatprep.mubr.msk.bf16.mxu1 %vm704_vm3, %v5036_v23 }
 0x114   : > { %v3795_v19 = vrot.slane %v8425_v47, 4  ;;  %v3831_v62 = vshll.u32 %v7215_v56, 16  ;;  %v3762_v29 = vor.u32 %v3761_v11, %v3758_v27  ;;  %v3772_v54 = vor.u32 %v3771_v44, %v7677_v17  ;;  %v7723_v11 = vld [vmem:[%s6317_s27 + $0xbc] sm:$0x1] }
 0x115   : > { %v3775_v58 = vshll.u32 %v7682_v22, 16  ;;  %v3841_v2 = vshrl.u32 %v7223_v34, 16  ;;  %v3720_v25 = vsel %vm6343_vm4, %v3715_v41, %v7630_v50  ;;  %v3730_v56 = vsel %vm6343_vm4, %v3725_v28, %v3729_v57  ;;  %v6161_v50 = vld [vmem:[%s6317_s27 + $0x28] sm:$0xf] }
 0x116   : > { %v3813_v0 = vshll.u32 %v7191_v3, 16  ;;  %v5037_v49 = vcombine.low %v6158_v10, %v6159_v30  ;;  %v3786_v42 = vor.u32 %v3785_v18, %v3782_v5  ;;  %v3796_v52 = vor.u32 %v3795_v19, %v7688_v8 }
 0x117   : > { %v3799_v63 = vshll.u32 %v7694_v33, 16  ;;  %v5038_v51 = vcombine.low %v6160_v46, %v6161_v50  ;;  %v3744_v39 = vsel %vm6343_vm4, %v3739_v31, %v7641_v13  ;;  %v3754_v23 = vsel %vm6343_vm4, %v3749_v36, %v3753_v37  ;;  %v7741_v31 = vld [vmem:[%s6317_s27 + $0xc8] sm:$0x1]  ;;  %v8427_v37 = vld [vmem:[#allocation2_spill] sm:$0xff] }
 0x118   : > { %v3837_v43 = vshll.u32 %v7223_v34, 16  ;;  %v5241_v38 = vcombine.low %v3720_v25, %v3730_v56  ;;  %v3763_v20 = vrot.slane %v3762_v29, 4  ;;  %v3773_v27 = vrot.slane %v3772_v54, 4  ;;  %v6162_v25 = vld [vmem:[%s6317_s27 + $0x30] sm:$0xf] }
 0x119   : > { %v3777_v35 = vrot.slane %v3775_v58, 5  ;;  %v8426_v7 = vshrl.u32 %v7188_v14, 16  ;;  %v3809_v60 = vrot.slane %v3807_v1, 5  ;;  %v7729_v41 = vrot.slane %v3813_v0, 5  ;;  %v6163_v56 = vld [vmem:[%s6317_s27 + $0x34] sm:$0xf] }
 0x11a   : > { %v3819_v13 = vrot.slane %v3817_v15, 4  ;;  %v5242_v28 = vcombine.low %v3744_v39, %v3754_v23  ;;  %v3787_v34 = vrot.slane %v3786_v42, 4  ;;  %v3797_v57 = vrot.slane %v3796_v52, 4  ;;  %5574 = vmatmul.mubr.msk.bf16.vlgmr.msra.gmra.mrb[0].mxu1 %vm704_vm3, %v5037_v49  ;;  %5726 = vmatmul.mubr.msk.bf16.gmra.mrb[16].mxu0 %vm704_vm3, %v5241_v38  ;;  %v6164_v52 = vld [vmem:[%s6317_s27 + $0x3c] sm:$0xf] }
 0x11b   : > { %v3806_v44 = vrot.slane %v8426_v7, 4  ;;  %v3801_v45 = vrot.slane %v3799_v63, 5  ;;  %v3830_v5 = vrot.slane %v3828_v21, 4  ;;  %v3833_v6 = vrot.slane %v3831_v62, 5  ;;  %5776 = vmatpush3.bf16.msra.mxu1 %v8427_v37  ;;  %5577 = vmatprep.mubr.msk.bf16.mxu1 %vm704_vm3, %v5038_v51  ;;  %v6165_v63 = vld [vmem:[%s6317_s27 + $0x40] sm:$0xf] }
 0x11c   : > { %v7733_v18 = vrot.slane %v3837_v43, 5  ;;  %v3843_v47 = vrot.slane %v3841_v2, 4  ;;  %v3852_v19 = vshrl.u32 %v7247_v59, 16  ;;  %v3768_v14 = vsel %vm6343_vm4, %v3763_v20, %v7677_v17  ;;  %5729 = vmatprep.mubr.msk.bf16.mxu0 %vm704_vm3, %v5242_v28  ;;  %v7768_v20 = vld [vmem:[%s6317_s27 + $0xd4] sm:$0x1] }
 0x11d   : > { %v3823_v1 = vshll.u32 %v7723_v11, 16  ;;  %v3855_v3 = vshll.u32 %v7247_v59, 16  ;;  %v3778_v15 = vsel %vm6343_vm4, %v3773_v27, %v3777_v35  ;;  %v3810_v21 = vor.u32 %v3809_v60, %v3806_v44  ;;  %v6166_v44 = vld [vmem:[%s6317_s27 + $0x1c] sm:$0xf] }
 0x11e   : > { %v3820_v36 = vor.u32 %v3819_v13, %v7729_v41  ;;  %v3865_v17 = vshrl.u32 %v7268_v48, 16  ;;  %v3792_v59 = vsel %vm6343_vm4, %v3787_v34, %v7688_v8  ;;  %v3861_v62 = vshll.u32 %v7268_v48, 16  ;;  %v7779_v13 = vld [vmem:[%s6317_s27 + $0x78] sm:$0xf] }
 0x11f   : > { %v3802_v29 = vsel %vm6343_vm4, %v3797_v57, %v3801_v45  ;;  %v3834_v54 = vor.u32 %v3833_v6, %v3830_v5  ;;  %v3844_v58 = vor.u32 %v3843_v47, %v7733_v18  ;;  %v3847_v2 = vshll.u32 %v7741_v31, 16  ;;  %v7788_v45 = vld [vmem:[%s6317_s27 + $0x7c] sm:$0xf] }
 0x120   : > { %v5039_v0 = vcombine.low %v6162_v25, %v6163_v56  ;;  %v5243_v10 = vcombine.low %v3768_v14, %v3778_v15  ;;  %v3825_v8 = vrot.slane %v3823_v1, 5  ;;  %v3811_v30 = vrot.slane %v3810_v21, 4  ;;  %v6170_v14 = vld [vmem:[%s6317_s27 + $0x4c] sm:$0xf]  ;;  %v6171_v15 = vld [vmem:[%s6317_s27 + $0x54] sm:$0xf] }
 0x121   : > { %v3821_v49 = vrot.slane %v3820_v36, 4  ;;  %v3854_v48 = vrot.slane %v3852_v19, 4  ;;  %v3857_v42 = vrot.slane %v3855_v3, 5  ;;  %v5040_v46 = vcombine.low %v6164_v52, %v6165_v63  ;;  %v6169_v19 = vld [vmem:[%s6317_s27 + $0x48] sm:$0xf] }
 0x122   : > { %v5244_v50 = vcombine.low %v3792_v59, %v3802_v29  ;;  %v7765_v51 = vrot.slane %v3861_v62, 5  ;;  %v3867_v39 = vrot.slane %v3865_v17, 4  ;;  %v3835_v23 = vrot.slane %v3834_v54, 4  ;;  %5578 = vmatmul.mubr.msk.bf16.gmra.mrb[4].mxu1 %vm704_vm3, %v5039_v0  ;;  %5730 = vmatmul.mubr.msk.bf16.gmra.mrb[20].mxu0 %vm704_vm3, %v5243_v10  ;;  %v6172_v21 = vld [vmem:[%s6317_s27 + $0x58] sm:$0xf] }
 0x123   : > { %v3845_v43 = vrot.slane %v3844_v58, 4  ;;  %v3849_v38 = vrot.slane %v3847_v2, 5  ;;  %v3816_v27 = vsel %vm6343_vm4, %v3811_v30, %v7729_v41  ;;  %v3826_v35 = vsel %vm6343_vm4, %v3821_v49, %v3825_v8  ;;  %5581 = vmatprep.mubr.msk.bf16.mxu1 %vm704_vm3, %v5040_v46  ;;  %v6173_v17 = vld [vmem:[%s6317_s27 + $0x28] sm:$0xf]  ;;  %v6174_v62 = vld [vmem:[%s6317_s27 + $0x18] sm:$0xf] }
 0x124   : > { %v3858_v7 = vor.u32 %v3857_v42, %v3854_v48  ;;  %v4187_v60 = vrot.slane %v6166_v44, 5  ;;  %v2230_v28 = vshrl.u32 %v7779_v13, 16  ;;  %5733 = vmatprep.mubr.msk.bf16.mxu0 %vm704_vm3, %v5244_v50  ;;  %v3868_v41 = vor.u32 %v3867_v39, %v7765_v51  ;;  %v8428_v58 = vld [vmem:[#allocation15_spill] sm:$0xff]  ;;  %v6175_v0 = vld [vmem:[%s6317_s27 + $0x34] sm:$0xf] }
 0x125   : > { %v3871_v34 = vshll.u32 %v7768_v20, 16  ;;  %v2233_v57 = vshll.u32 %v7779_v13, 16  ;;  %v2239_v5 = vshll.u32 %v7788_v45, 16  ;;  %v3840_v6 = vsel %vm6343_vm4, %v3835_v23, %v7733_v18  ;;  %v6176_v42 = vld [vmem:[%s6317_s27 + $0x24] sm:$0xf] }
 0x126   : > { %v3850_v47 = vsel %vm6343_vm4, %v3845_v43, %v3849_v38  ;;  %v5041_v1 = vcombine.low %v6169_v19, %v6170_v14  ;;  %v5245_v3 = vcombine.low %v3816_v27, %v3826_v35  ;;  %v5042_v36 = vcombine.low %v6171_v15, %v6172_v21  ;;  %v6177_v43 = vld [vmem:[%s6317_s27 + $0x30] sm:$0xf]  ;;  %v7853_v15 = vld [vmem:[%s6317_s27 + $0x84] sm:$0xf]  ;;  %v7856_v21 = vld [vmem:[%s6317_s27 + $0x88] sm:$0xf] }
 0x127   : > { %v4194_v37 = vrot.slane %v6173_v17, 5  ;;  %v3859_v59 = vrot.slane %v3858_v7, 4  ;;  %v5264_v29 = vrot.slane %v6174_v62, 9  ;;  %v4189_v54 = vrot.slane %v4187_v60, 4  ;;  %v6178_v7 = vld [vmem:[%s6317_s27 + $0x40] sm:$0xf] }
 0x128   : > { %v4190_v18 = vrot.slane %v8428_v58, 5  ;;  %v5246_v2 = vcombine.low %v3840_v6, %v3850_v47  ;;  %v3869_v25 = vrot.slane %v3868_v41, 4  ;;  %v3873_v56 = vrot.slane %v3871_v34, 5  ;;  %v6180_v34 = vld [vmem:[%s6317_s27 + $0x60] sm:$0xf] }
 0x129   : > { %v4201_v10 = vrot.slane %v6175_v0, 5  ;;  %v7804_v8 = vrot.slane %v2230_v28, 4  ;;  %v7806_v30 = vrot.slane %v2233_v57, 5  ;;  %v2243_v49 = vshrl.u32 %v7788_v45, 16  ;;  %v7832_v28 = vld [vmem:[%s6317_s27 + $0x80] sm:$0x1] }
 0x12a   : > { %v7809_v48 = vrot.slane %v2239_v5, 5  ;;  %v5265_v52 = vrot.slane %v6176_v42, 9  ;;  %v4196_v63 = vrot.slane %v4194_v37, 4  ;;  %v4197_v46 = vrot.slane %v7309_v24, 5  ;;  %5582 = vmatmul.mubr.msk.bf16.gmra.mrb[8].mxu1 %vm704_vm3, %v5041_v1  ;;  %5734 = vmatmul.mubr.msk.bf16.gmra.mrb[24].mxu0 %vm704_vm3, %v5245_v3  ;;  %v6181_v57 = vld [vmem:[%s6317_s27 + $0x64] sm:$0xf] }
 0x12b   : > { %v3864_v50 = vsel %vm6343_vm4, %v3859_v59, %v7765_v51  ;;  %v4188_v39 = vsel %vm6609_vm7, %v5264_v29, %v4187_v60  ;;  %v4191_v23 = vsel %vm6609_vm7, %v4189_v54, %v4190_v18  ;;  %v5266_v24 = vrot.slane %v6177_v43, 9  ;;  %5585 = vmatprep.mubr.msk.bf16.mxu1 %vm704_vm3, %v5042_v36  ;;  %5737 = vmatprep.mubr.msk.bf16.mxu0 %vm704_vm3, %v5246_v2  ;;  %v8429_v51 = vld [vmem:[#allocation16_spill] sm:$0xff]  ;;  %v6182_v6 = vld [vmem:[%s6317_s27 + $0x6c] sm:$0xf]  ;;  %v6186_v62 = vld [vmem:[%s6317_s27 + $0x3c] sm:$0xf] }
 0x12c   : > { %v3874_v38 = vsel %vm6343_vm4, %v3869_v25, %v3873_v56  ;;  %v4203_v27 = vrot.slane %v4201_v10, 4  ;;  %v4204_v35 = vrot.slane %v8429_v51, 5  ;;  %v4208_v44 = vrot.slane %v6178_v7, 5  ;;  %v7839_v47 = vld [vmem:[%s6317_s27 + $0x70] sm:$0xf] }
 0x12d   : > { %v7829_v60 = vrot.slane %v2243_v49, 4  ;;  %v2249_v41 = vshll.u32 %v7832_v28, 16  ;;  %v5043_v5 = vcombine.low %v6180_v34, %v6181_v57  ;;  %v5044_v19 = vcombine.low %v6182_v6, %v7839_v47  ;;  %v7870_v58 = vld [vmem:[%s6317_s27 + $0x94] sm:$0xf]  ;;  %v7873_v18 = vld [vmem:[%s6317_s27 + $0x90] sm:$0xf] }
 0x12e   : > { %v5045_v14 = vcombine.low %v7779_v13, %v7788_v45  ;;  %v7846_v1 = vsel %vm6609_vm7, %v5265_v52, %v4194_v37  ;;  %v7850_v3 = vsel %vm6609_vm7, %v4196_v63, %v4197_v46  ;;  %v5046_v36 = vcombine.low %v7853_v15, %v7856_v21  ;;  %v7882_v63 = vld [vmem:[%s6317_s27 + $0x9c] sm:$0xf]  ;;  %v7885_v46 = vld [vmem:[%s6317_s27 + $0xa0] sm:$0xf]  ;;  %v6193_v43 = vld [vmem:[%s6317_s27 + $0x58] sm:$0xf] }
 0x12f   : > { %v5247_v17 = vcombine.low %v3864_v50, %v3874_v38  ;;  %v5281_v59 = vcombine.low %v4188_v39, %v4191_v23  ;;  %v7862_v37 = vsel %vm6609_vm7, %v5266_v24, %v4201_v10  ;;  %v5267_v29 = vrot.slane %v6186_v62, 9  ;;  %v6189_v10 = vld [vmem:[%s6317_s27 + $0x4c] sm:$0xf]  ;;  %v6192_v39 = vld [vmem:[%s6317_s27 + $0x48] sm:$0xf] }
 0x130   : > { %v7867_v54 = vsel %vm6609_vm7, %v4203_v27, %v4204_v35  ;;  %v5047_v2 = vcombine.low %v7873_v18, %v7870_v58  ;;  %v4210_v25 = vrot.slane %v4208_v44, 4  ;;  %v4211_v56 = vrot.slane %v7412_v55, 5  ;;  %v6194_v24 = vld [vmem:[%s6317_s27 + $0x64] sm:$0xf]  ;;  %v6195_v7 = vld [vmem:[%s6317_s27 + $0x70] sm:$0xf] }
 0x131   : > { %v5282_v0 = vcombine.low %v7846_v1, %v7850_v3  ;;  %v4215_v49 = vrot.slane %v6189_v10, 5  ;;  %v2206_v42 = vshrl.u32 %v6182_v6, 16  ;;  %v2209_v52 = vshll.u32 %v6182_v6, 16  ;;  %v6197_v62 = vld [vmem:[%s6317_s27 + $0x60] sm:$0xf] }
 0x132   : > { %v5048_v50 = vcombine.low %v7882_v63, %v7885_v46  ;;  %v5268_v23 = vrot.slane %v6192_v39, 9  ;;  %v4222_v55 = vrot.slane %v6193_v43, 5  ;;  %v4229_v38 = vrot.slane %v6194_v24, 5  ;;  %5586 = vmatmul.mubr.msk.bf16.gmra.mrb[12].mxu1 %vm704_vm3, %v5043_v5  ;;  %5738 = vmatmul.mubr.msk.bf16.gmra.mrb[28].mxu0 %vm704_vm3, %v5247_v17  ;;  %v6196_v5 = vld [vmem:[%s6317_s27 + $0x54] sm:$0xf] }
 0x133   : > { %v5283_v27 = vcombine.low %v7862_v37, %v7867_v54  ;;  %v7898_v51 = vsel %vm6609_vm7, %v5267_v29, %v4208_v44  ;;  %v4218_v35 = vrot.slane %v7445_v61, 5  ;;  %v4236_v34 = vrot.slane %v6195_v7, 5  ;;  %5589 = vmatprep.mubr.msk.bf16.mxu1 %vm704_vm3, %v5044_v19  ;;  %5743 = vmatprep.mubr.msk.bf16.mxu0 %vm704_vm3, %v5281_v59  ;;  %v6200_v10 = vld [vmem:[%s6317_s27 + $0x6c] sm:$0xf]  ;;  %v7985_v45 = vld [vmem:[%s6317_s27 + $0xc4] sm:$0xf] }
 0x134   : > { %v7906_v57 = vsel %vm6609_vm7, %v4210_v25, %v4211_v56  ;;  %v5269_v6 = vrot.slane %v6196_v5, 9  ;;  %v2215_v44 = vshll.u32 %v7839_v47, 16  ;;  %v2219_v1 = vshrl.u32 %v7839_v47, 16  ;;  %v7915_v25 = vld [vmem:[%s6317_s27 + $0xac] sm:$0xf] }
 0x135   : > { %v4217_v61 = vrot.slane %v4215_v49, 4  ;;  %v4225_v3 = vrot.slane %v7485_v4, 5  ;;  %v2208_v17 = vrot.slane %v2206_v42, 4  ;;  %v2211_v19 = vrot.slane %v2209_v52, 5  ;;  %v7918_v56 = vld [vmem:[%s6317_s27 + $0xa8] sm:$0xf] }
 0x136   : > { %v4224_v37 = vrot.slane %v4222_v55, 4  ;;  %v5270_v59 = vrot.slane %v6197_v62, 9  ;;  %v4231_v29 = vrot.slane %v4229_v38, 4  ;;  %v4232_v54 = vrot.slane %v7535_v53, 5  ;;  %v7942_v62 = vld [vmem:[%s6317_s27 + $0xb4] sm:$0xf] }
 0x137   : > { %v5049_v47 = vcombine.low %v7918_v56, %v7915_v25  ;;  %v5271_v39 = vrot.slane %v6200_v10, 9  ;;  %v4238_v4 = vrot.slane %v4236_v34, 4  ;;  %v4239_v42 = vrot.slane %v7578_v26, 5  ;;  %v7939_v26 = vld [vmem:[%s6317_s27 + $0xb8] sm:$0xf] }
 0x138   : > { %v5284_v52 = vcombine.low %v7898_v51, %v7906_v57  ;;  %v7928_v43 = vsel %vm6609_vm7, %v5268_v23, %v4215_v49  ;;  %v7930_v53 = vrot.slane %v2215_v44, 5  ;;  %v2221_v24 = vrot.slane %v2219_v1, 4  ;;  %v6203_v57 = vld [vmem:[%s6317_s27 + $0x7c] sm:$0xf]  ;;  %v6204_v1 = vld [vmem:[%s6317_s27 + $0x74] sm:$0x1] }
 0x139   : > { %v4219_v7 = vsel %vm6609_vm7, %v4217_v61, %v4218_v35  ;;  %v7936_v5 = vsel %vm6609_vm7, %v5269_v6, %v4222_v55  ;;  %v5050_v49 = vcombine.low %v7942_v62, %v7939_v26  ;;  %v2212_v23 = vor.u32 %v2211_v19, %v2208_v17 }
 0x13a   : > { %v7948_v51 = vsel %vm6609_vm7, %v4224_v37, %v4225_v3  ;;  %v7952_v35 = vsel %vm6609_vm7, %v5270_v59, %v4229_v38  ;;  %v7956_v55 = vsel %vm6609_vm7, %v4231_v29, %v4232_v54  ;;  %v4243_v6 = vrot.slane %v6203_v57, 5  ;;  %5590 = vmatmul.mubr.msk.bf16.gmra.mrb[16].mxu1 %vm704_vm3, %v5045_v14  ;;  %5744 = vmatmul.mubr.msk.bf16.vlgmr.msra.gmra.mrb[0].mxu0 %vm704_vm3, %v5282_v0  ;;  %v6205_v3 = vld [vmem:[%s6317_s27 + $0x78] sm:$0xf]  ;;  %v7988_v14 = vld [vmem:[%s6317_s27 + $0xc0] sm:$0xf] }
 0x13b   : > { %v7966_v44 = vsel %vm6609_vm7, %v5271_v39, %v4236_v34  ;;  %v7970_v38 = vsel %vm6609_vm7, %v4238_v4, %v4239_v42  ;;  %v2225_v61 = vshll.u32 %v6204_v1, 16  ;;  %v5272_v17 = vrot.slane %v6205_v3, 9  ;;  %5593 = vmatprep.mubr.msk.bf16.mxu1 %vm704_vm3, %v5046_v36  ;;  %5747 = vmatprep.mubr.msk.bf16.mxu0 %vm704_vm3, %v5283_v27  ;;  %v6208_v4 = vld [vmem:[%s6317_s27 + $0x84] sm:$0xf]  ;;  %v6209_v57 = vld [vmem:[%s6317_s27 + $0x88] sm:$0xf] }
 0x13c   : > { %v7976_v19 = vrot.slane %v2249_v41, 5  ;;  %v5285_v13 = vcombine.low %v7928_v43, %v4219_v7  ;;  %v5051_v0 = vcombine.low %v7988_v14, %v7985_v45  ;;  %v2222_v28 = vor.u32 %v2221_v24, %v7930_v53  ;;  %v6210_v1 = vld [vmem:[%s6317_s27 + $0x94] sm:$0xf] }
 0x13d   : > { %v5286_v41 = vcombine.low %v7936_v5, %v7948_v51  ;;  %v7995_v34 = vrot.slane %v2212_v23, 4  ;;  %v2236_v36 = vor.u32 %v7806_v30, %v7804_v8  ;;  %v2246_v27 = vor.u32 %v7829_v60, %v7809_v48 }
 0x13e   : > { %v5287_v37 = vcombine.low %v7952_v35, %v7956_v55  ;;  %v5288_v59 = vcombine.low %v7966_v44, %v7970_v38  ;;  %v4245_v29 = vrot.slane %v4243_v6, 4  ;;  %v4246_v54 = vrot.slane %v7590_v9, 5 }
 0x13f   : > { %v8006_v10 = vrot.slane %v2225_v61, 5  ;;  %v8010_v39 = vsel %vm6609_vm7, %v5272_v17, %v4243_v6  ;;  %v2254_v8 = vshrl.u32 %v7853_v15, 16  ;;  %v2257_v30 = vshll.u32 %v7853_v15, 16 }
 0x140   : > { %v8014_v60 = vrot.slane %v2222_v28, 4  ;;  %v5273_v42 = vrot.slane %v6208_v4, 9  ;;  %v2263_v43 = vshll.u32 %v7856_v21, 16  ;;  %v2267_v24 = vshrl.u32 %v7856_v21, 16 }
 0x141   : > { %v2218_v9 = vsel %vm6343_vm4, %v7995_v34, %v7930_v53  ;;  %v8023_v7 = vrot.slane %v2236_v36, 4  ;;  %v8025_v23 = vrot.slane %v2246_v27, 4  ;;  %v4250_v6 = vrot.slane %v6209_v57, 5 }
 0x142   : > { %v8030_v15 = vsel %vm6609_vm7, %v4245_v29, %v4246_v54  ;;  %v4257_v61 = vrot.slane %v6210_v1, 5  ;;  %v2278_v3 = vshrl.u32 %v7873_v18, 16  ;;  %v2281_v21 = vshll.u32 %v7873_v18, 16  ;;  %5594 = vmatmul.mubr.msk.bf16.gmra.mrb[20].mxu1 %vm704_vm3, %v5047_v2  ;;  %5748 = vmatmul.mubr.msk.bf16.gmra.mrb[4].mxu0 %vm704_vm3, %v5284_v52  ;;  %v6211_v54 = vld [vmem:[%s6317_s27 + $0x8c] sm:$0x1] }
 0x143   : > { %v2256_v17 = vrot.slane %v2254_v8, 4  ;;  %v2259_v28 = vrot.slane %v2257_v30, 5  ;;  %v2287_v36 = vshll.u32 %v7870_v58, 16  ;;  %v2291_v27 = vshrl.u32 %v7870_v58, 16  ;;  %5597 = vmatprep.mubr.msk.bf16.mxu1 %vm704_vm3, %v5048_v50  ;;  %5751 = vmatprep.mubr.msk.bf16.mxu0 %vm704_vm3, %v5285_v13  ;;  %v6212_v30 = vld [vmem:[%s6317_s27 + $0x90] sm:$0xf] }
 0x144   : > { %v2228_v18 = vsel %vm6343_vm4, %v8014_v60, %v8006_v10  ;;  %v4253_v2 = vrot.slane %v7635_v16, 5  ;;  %v8052_v52 = vrot.slane %v2263_v43, 5  ;;  %v2269_v29 = vrot.slane %v2267_v24, 4 }
 0x145   : > { %v5289_v58 = vcombine.low %v8010_v39, %v8030_v15  ;;  %v2242_v50 = vsel %vm6343_vm4, %v8023_v7, %v7809_v48  ;;  %v4252_v13 = vrot.slane %v4250_v6, 4  ;;  %v2273_v8 = vshll.u32 %v6211_v54, 16 }
 0x146   : > { %v5274_v4 = vrot.slane %v6212_v30, 9  ;;  %v4259_v10 = vrot.slane %v4257_v61, 4  ;;  %v2280_v60 = vrot.slane %v2278_v3, 4  ;;  %v2283_v16 = vrot.slane %v2281_v21, 5  ;;  %v6213_v3 = vld [vmem:[%s6317_s27 + $0xa0] sm:$0xf] }
 0x147   : > { %v2260_v43 = vor.u32 %v2259_v28, %v2256_v17  ;;  %v4260_v24 = vrot.slane %v7652_v40, 5  ;;  %v8063_v57 = vrot.slane %v2287_v36, 5  ;;  %v2293_v1 = vrot.slane %v2291_v27, 4 }
 0x148   : > { %v2252_v48 = vsel %vm6343_vm4, %v8025_v23, %v7976_v19  ;;  %v8071_v7 = vsel %vm6609_vm7, %v5273_v42, %v4250_v6  ;;  %v2270_v54 = vor.u32 %v2269_v29, %v8052_v52  ;;  %v4264_v21 = vrot.slane %v6213_v3, 5 }
 0x149   : > { %v8077_v40 = vsel %vm6609_vm7, %v4252_v13, %v4253_v2  ;;  %v2275_v17 = vrot.slane %v2273_v8, 5  ;;  %v2302_v28 = vshrl.u32 %v7882_v63, 16  ;;  %v2305_v36 = vshll.u32 %v7882_v63, 16  ;;  %v6214_v2 = vld [vmem:[%s6317_s27 + $0x98] sm:$0x1] }
 0x14a   : > { %v8083_v19 = vsel %vm6609_vm7, %v5274_v4, %v4257_v61  ;;  %v2284_v42 = vor.u32 %v2283_v16, %v2280_v60  ;;  %v2311_v23 = vshll.u32 %v7885_v46, 16  ;;  %v2315_v6 = vshrl.u32 %v7885_v46, 16  ;;  %5598 = vmatmul.mubr.msk.bf16.gmra.mrb[24].mxu1 %vm704_vm3, %v5049_v47  ;;  %5752 = vmatmul.mubr.msk.bf16.gmra.mrb[8].mxu0 %vm704_vm3, %v5286_v41  ;;  %v6215_v47 = vld [vmem:[%s6317_s27 + $0x9c] sm:$0xf]  ;;  %v6216_v60 = vld [vmem:[%s6317_s27 + $0xac] sm:$0xf] }
 0x14b   : > { %v2261_v63 = vrot.slane %v2260_v43, 4  ;;  %v8097_v61 = vsel %vm6609_vm7, %v4259_v10, %v4260_v24  ;;  %v2294_v27 = vor.u32 %v2293_v1, %v8063_v57  ;;  %v2297_v29 = vshll.u32 %v6214_v2, 16  ;;  %5601 = vmatprep.mubr.msk.bf16.mxu1 %vm704_vm3, %v5050_v49  ;;  %5755 = vmatprep.mubr.msk.bf16.mxu0 %vm704_vm3, %v5287_v37  ;;  %v6217_v43 = vld [vmem:[%s6317_s27 + $0xa4] sm:$0x1] }
 0x14c   : > { %v2271_v46 = vrot.slane %v2270_v54, 4  ;;  %v5275_v5 = vrot.slane %v6215_v47, 9  ;;  %v4266_v51 = vrot.slane %v4264_v21, 4  ;;  %v4267_v41 = vrot.slane %v7682_v22, 5 }
 0x14d   : > { %v5077_v13 = vcombine.low %v2218_v9, %v2228_v18  ;;  %v8116_v8 = vcombine.low %v2242_v50, %v2252_v48  ;;  %v2304_v49 = vrot.slane %v2302_v28, 4  ;;  %v2307_v35 = vrot.slane %v2305_v36, 5 }
 0x14e   : > { %v5290_v55 = vcombine.low %v8071_v7, %v8077_v40  ;;  %v2285_v37 = vrot.slane %v2284_v42, 4  ;;  %v8120_v30 = vrot.slane %v2311_v23, 5  ;;  %v2317_v4 = vrot.slane %v2315_v6, 4 }
 0x14f   : > { %v2266_v22 = vsel %vm6343_vm4, %v2261_v63, %v8052_v52  ;;  %v5291_v53 = vcombine.low %v8083_v19, %v8097_v61  ;;  %v2295_v34 = vrot.slane %v2294_v27, 4  ;;  %v2299_v9 = vrot.slane %v2297_v29, 5 }
 0x150   : > { %v2276_v18 = vsel %vm6343_vm4, %v2271_v46, %v2275_v17  ;;  %v8131_v50 = vsel %vm6609_vm7, %v5275_v5, %v4264_v21  ;;  %v8135_v10 = vsel %vm6609_vm7, %v4266_v51, %v4267_v41  ;;  %v4271_v16 = vrot.slane %v6216_v60, 5  ;;  %v6223_v60 = vld [vmem:[%s6317_s27 + $0xc4] sm:$0xf] }
 0x151   : > { %v2308_v52 = vor.u32 %v2307_v35, %v2304_v49  ;;  %v2321_v24 = vshll.u32 %v6217_v43, 16  ;;  %v2326_v1 = vshrl.u32 %v7918_v56, 16  ;;  %v2329_v48 = vshll.u32 %v7918_v56, 16  ;;  %v6220_v35 = vld [vmem:[%s6317_s27 + $0xb4] sm:$0xf] }
 0x152   : > { %v2290_v54 = vsel %vm6343_vm4, %v2285_v37, %v8063_v57  ;;  %v2318_v3 = vor.u32 %v2317_v4, %v8120_v30  ;;  %v2335_v21 = vshll.u32 %v7915_v25, 16  ;;  %v2339_v17 = vshrl.u32 %v7915_v25, 16  ;;  %5602 = vmatmul.mubr.msk.bf16.gmra.mrb[28].mxu1 %vm704_vm3, %v5051_v0  ;;  %5756 = vmatmul.mubr.msk.bf16.gmra.mrb[12].mxu0 %vm704_vm3, %v5288_v59  ;;  %v6218_v57 = vld [vmem:[%s6317_s27 + $0xa8] sm:$0xf] }
 0x153   : > { %v2300_v56 = vsel %vm6343_vm4, %v2295_v34, %v2299_v9  ;;  %v5276_v28 = vrot.slane %v6218_v57, 9  ;;  %v2350_v36 = vshrl.u32 %v7942_v62, 16  ;;  %v2353_v42 = vshll.u32 %v7942_v62, 16  ;;  %5623 = vmatprep.mubr.msk.bf16.mxu1 %vm704_vm3, %v5077_v13  ;;  %5759 = vmatprep.mubr.msk.bf16.mxu0 %vm704_vm3, %v5289_v58  ;;  %v6219_v13 = vld [vmem:[%s6317_s27 + $0xb0] sm:$0x1] }
 0x154   : > { %v4273_v25 = vrot.slane %v4271_v16, 4  ;;  %v4274_v44 = vrot.slane %v7694_v33, 5  ;;  %v2359_v38 = vshll.u32 %v7939_v26, 16  ;;  %v2363_v0 = vshrl.u32 %v7939_v26, 16  ;;  %v6221_v34 = vld [vmem:[%s6317_s27 + $0xb8] sm:$0xf] }
 0x155   : > { %v5079_v59 = vcombine.low %v2266_v22, %v2276_v18  ;;  %v2309_v23 = vrot.slane %v2308_v52, 4  ;;  %v2328_v6 = vrot.slane %v2326_v1, 4  ;;  %v2331_v63 = vrot.slane %v2329_v48, 5  ;;  %v6222_v18 = vld [vmem:[%s6317_s27 + $0xbc] sm:$0x1] }
 0x156   : > { %v2319_v62 = vrot.slane %v2318_v3, 4  ;;  %v2323_v27 = vrot.slane %v2321_v24, 5  ;;  %v8168_v2 = vrot.slane %v2335_v21, 5  ;;  %v2341_v39 = vrot.slane %v2339_v17, 4  ;;  %v6224_v17 = vld [vmem:[%s6317_s27 + $0xc0] sm:$0xf] }
 0x157   : > { %v5080_v15 = vcombine.low %v2290_v54, %v2300_v56  ;;  %v5292_v33 = vcombine.low %v8131_v50, %v8135_v10  ;;  %v2352_v58 = vrot.slane %v2350_v36, 4  ;;  %v2355_v29 = vrot.slane %v2353_v42, 5 }
 0x158   : > { %v4272_v26 = vsel %vm6609_vm7, %v5276_v28, %v4271_v16  ;;  %v4275_v46 = vsel %vm6609_vm7, %v4273_v25, %v4274_v44  ;;  %v8176_v47 = vrot.slane %v2359_v38, 5  ;;  %v2365_v5 = vrot.slane %v2363_v0, 4 }
 0x159   : > { %v2314_v51 = vsel %vm6343_vm4, %v2309_v23, %v8120_v30  ;;  %v2332_v41 = vor.u32 %v2331_v63, %v2328_v6  ;;  %v2345_v49 = vshll.u32 %v6219_v13, 16  ;;  %v5277_v37 = vrot.slane %v6220_v35, 9 }
 0x15a   : > { %v2324_v4 = vsel %vm6343_vm4, %v2319_v62, %v2323_v27  ;;  %v2342_v22 = vor.u32 %v2341_v39, %v8168_v2  ;;  %v4278_v9 = vrot.slane %v6221_v34, 5  ;;  %v2369_v50 = vshll.u32 %v6222_v18, 16  ;;  %5624 = vmatmul.mubr.msk.bf16.vlgmr.msra.gmra.mrb[16].mxu1 %vm704_vm3, %v8116_v8  ;;  %5760 = vmatmul.mubr.msk.bf16.gmra.mrb[16].mxu0 %vm704_vm3, %v5290_v55  ;;  %v6226_v27 = vld [vmem:[%s6317_s27 + $0xd0] sm:$0xf] }
 0x15b   : > { %v5293_v30 = vcombine.low %v4272_v26, %v4275_v46  ;;  %v2356_v10 = vor.u32 %v2355_v29, %v2352_v58  ;;  %v4285_v16 = vrot.slane %v6223_v60, 5  ;;  %v2374_v52 = vshrl.u32 %v7988_v14, 16  ;;  %5627 = vmatprep.mubr.msk.bf16.mxu1 %vm704_vm3, %v5079_v59  ;;  %5763 = vmatprep.mubr.msk.bf16.mxu0 %vm704_vm3, %v5291_v53  ;;  %v6225_v59 = vld [vmem:[%s6317_s27 + $0xc8] sm:$0x1]  ;;  %v6227_v26 = vld [vmem:[%s6317_s27 + $0xcc] sm:$0xf] }
 0x15c   : > { %v2366_v8 = vor.u32 %v2365_v5, %v8176_v47  ;;  %v2377_v7 = vshll.u32 %v7988_v14, 16  ;;  %v2383_v40 = vshll.u32 %v7985_v45, 16  ;;  %v2387_v55 = vshrl.u32 %v7985_v45, 16 }
 0x15d   : > { %v5081_v43 = vcombine.low %v2314_v51, %v2324_v4  ;;  %v2333_v24 = vrot.slane %v2332_v41, 4  ;;  %v2347_v1 = vrot.slane %v2345_v49, 5  ;;  %v4281_v48 = vrot.slane %v7723_v11, 5 }
 0x15e   : > { %v2343_v54 = vrot.slane %v2342_v22, 4  ;;  %v4280_v3 = vrot.slane %v4278_v9, 4  ;;  %v2371_v21 = vrot.slane %v2369_v50, 5  ;;  %v5278_v19 = vrot.slane %v6224_v17, 9 }
 0x15f   : > { %v2357_v61 = vrot.slane %v2356_v10, 4  ;;  %v4287_v53 = vrot.slane %v4285_v16, 4  ;;  %v4288_v56 = vrot.slane %v7741_v31, 5  ;;  %v2376_v14 = vrot.slane %v2374_v52, 4 }
 0x160   : > { %v2367_v57 = vrot.slane %v2366_v8, 4  ;;  %v2379_v28 = vrot.slane %v2377_v7, 5  ;;  %v2385_v36 = vrot.slane %v2383_v40, 5  ;;  %v2389_v45 = vrot.slane %v2387_v55, 4 }
 0x161   : > { %v2338_v42 = vsel %vm6343_vm4, %v2333_v24, %v8168_v2  ;;  %v2348_v11 = vsel %vm6343_vm4, %v2343_v54, %v2347_v1  ;;  %v4279_v25 = vsel %vm6609_vm7, %v5277_v37, %v4278_v9  ;;  %v4282_v44 = vsel %vm6609_vm7, %v4280_v3, %v4281_v48 }
 0x162   : > { %5628 = vmatmul.mubr.msk.bf16.gmra.mrb[20].mxu1 %vm704_vm3, %v5080_v15  ;;  %5764 = vmatmul.mubr.msk.bf16.gmra.mrb[20].mxu0 %vm704_vm3, %v5292_v33  ;;  %v2362_v31 = vsel %vm6343_vm4, %v2357_v61, %v8176_v47  ;;  %v4286_v38 = vsel %vm6609_vm7, %v5278_v19, %v4285_v16  ;;  %v4289_v0 = vsel %vm6609_vm7, %v4287_v53, %v4288_v56  ;;  %v2393_v23 = vshll.u32 %v6225_v59, 16 }
 0x163   : > { %5631 = vmatprep.mubr.msk.bf16.mxu1 %vm704_vm3, %v5081_v43  ;;  %5767 = vmatprep.mubr.msk.bf16.mxu0 %vm704_vm3, %v5293_v30  ;;  %v2372_v6 = vsel %vm6343_vm4, %v2367_v57, %v2371_v21  ;;  %v2380_v63 = vor.u32 %v2379_v28, %v2376_v14  ;;  %v2390_v62 = vor.u32 %v2389_v45, %v2385_v36  ;;  %v4292_v2 = vrot.slane %v6226_v27, 5 }
 0x164   : > { %v5082_v39 = vcombine.low %v2338_v42, %v2348_v11  ;;  %v5294_v15 = vcombine.low %v4279_v25, %v4282_v44  ;;  %v5083_v33 = vcombine.low %v2362_v31, %v2372_v6  ;;  %v5295_v58 = vcombine.low %v4286_v38, %v4289_v0 }
 0x165   : > { %v2395_v29 = vrot.slane %v2393_v23, 5  ;;  %v5279_v46 = vrot.slane %v6227_v26, 9  ;;  %v2381_v47 = vrot.slane %v2380_v63, 4  ;;  %v2391_v5 = vrot.slane %v2390_v62, 4 }
 0x166   : > { %v4294_v51 = vrot.slane %v4292_v2, 4  ;;  %v4295_v41 = vrot.slane %v7768_v20, 5 }
 0x167   : > { %v4293_v13 = vsel %vm6609_vm7, %v5279_v46, %v4292_v2  ;;  %v2386_v49 = vsel %vm6343_vm4, %v2381_v47, %v2385_v36  ;;  %v2396_v35 = vsel %vm6343_vm4, %v2391_v5, %v2395_v29 }
 0x168   : > { %v4296_v20 = vsel %vm6609_vm7, %v4294_v51, %v4295_v41  ;;  %v5084_v37 = vcombine.low %v2386_v49, %v2396_v35 }
 0x169   : > { %v5296_v4 = vcombine.low %v4293_v13, %v4296_v20 }
 0x16a   : > { %5632 = vmatmul.mubr.msk.bf16.gmra.mrb[24].mxu1 %vm704_vm3, %v5082_v39  ;;  %5768 = vmatmul.mubr.msk.bf16.gmra.mrb[24].mxu0 %vm704_vm3, %v5294_v15 }
 0x16b   : > { %5635 = vmatprep.mubr.msk.bf16.mxu1 %vm704_vm3, %v5083_v33  ;;  %5771 = vmatprep.mubr.msk.bf16.mxu0 %vm704_vm3, %v5295_v58 }
 0x172   : > { %5636 = vmatmul.mubr.msk.bf16.gmra.mrb[28].mxu1 %vm704_vm3, %v5084_v37  ;;  %5772 = vmatmul.mubr.msk.bf16.gmra.mrb[28].mxu0 %vm704_vm3, %v5296_v4 }
 0x1ed   : > { %v5575_v22 = vpop.f32.mrb[0].mxu1 }
 0x1ee   : > { %v1854_v34 = vpop.f32.mrb[1].mxu1 }
 0x1ef   : > { %v5576_v9 = vpop.f32.mrb[2].mxu1 }
 0x1f0   : > { %v1857_v18 = vpop.f32.mrb[3].mxu1 }
 0x1f5   : > { %v5579_v50 = vpop.f32.mrb[4].mxu1 }
 0x1f6   : > { %v1870_v30 = vpop.f32.mrb[5].mxu1 }
 0x1f7   : > { %v5580_v10 = vpop.f32.mrb[6].mxu1 }
 0x1f8   : > { %v1873_v60 = vpop.f32.mrb[7].mxu1 }
 0x1fd   : > { %v5583_v32 = vpop.f32.mrb[8].mxu1 }
 0x1fe   : > { %v1886_v16 = vpop.f32.mrb[9].mxu1 }
 0x1ff   : > { %v5584_v52 = vpop.f32.mrb[10].mxu1 }
 0x200   : > { %v8248_v12 = vpop.f32.mrb[11].mxu1 }
 0x205   : > { %v8250_v8 = vpop.f32.mrb[12].mxu1 }
 0x206   : > { %v8252_v7 = vpop.f32.mrb[13].mxu1 }
 0x207   : > { %v8254_v40 = vpop.f32.mrb[14].mxu1 }
 0x208   : > { %v8256_v55 = vpop.f32.mrb[15].mxu1 }
 0x20d   : > { %v5745_v43 = vpop.f32.mrb[0].mxu0 }
 0x20e   : > { %v5777_v24 = vadd.f32 %v5745_v43, %v5575_v22  ;;  %v4432_v1 = vpop.f32.mrb[1].mxu0 }
 0x20f   : > { %v5778_v48 = vadd.f32 %v4432_v1, %v1854_v34  ;;  %v5746_v54 = vpop.f32.mrb[2].mxu0 }
 0x210   : > { %4593 = vst [vmem:[%s8262_s22 + $0x10] sm:$0xff] %v5777_v24  ;;  %v5779_v3 = vadd.f32 %v5746_v54, %v5576_v9  ;;  %v4435_v21 = vpop.f32.mrb[3].mxu0  ;;  %v4662_v56 = vmul.f32 %v5777_v24, %v5777_v24 }
 0x211   : > { %4591 = vst [vmem:[%s8262_s22] sm:$0xff] %v5778_v48  ;;  %v5780_v17 = vadd.f32 %v4435_v21, %v1857_v18  ;;  %v4660_v19 = vmul.f32 %v5778_v48, %v5778_v48 }
 0x212   : > { %4594 = vst [vmem:[%s8262_s22 + $0x18] sm:$0xff] %v5779_v3  ;;  %v4663_v42 = vmul.f32 %v5779_v3, %v5779_v3 }
 0x213   : > { %4592 = vst [vmem:[%s8262_s22 + $0x8] sm:$0xff] %v5780_v17  ;;  %v4623_v61 = vadd.f32 %v5780_v17, %v5778_v48  ;;  %v4661_v53 = vmul.f32 %v5780_v17, %v5780_v17 }
 0x215   : > { %v4624_v14 = vadd.f32 %v5777_v24, %v4623_v61  ;;  %v4692_v57 = vadd.f32 %v4661_v53, %v4660_v19  ;;  %v5749_v28 = vpop.f32.mrb[4].mxu0 }
 0x216   : > { %v5781_v36 = vadd.f32 %v5749_v28, %v5579_v50  ;;  %v4448_v45 = vpop.f32.mrb[5].mxu0 }
 0x217   : > { %v4693_v11 = vadd.f32 %v4692_v57, %v4662_v56  ;;  %v5782_v25 = vadd.f32 %v4448_v45, %v1870_v30  ;;  %v4625_v44 = vadd.f32 %v5779_v3, %v4624_v14  ;;  %v5750_v31 = vpop.f32.mrb[6].mxu0 }
 0x218   : > { %4597 = vst [vmem:[%s8262_s22 + $0x30] sm:$0xff] %v5781_v36  ;;  %v5783_v38 = vadd.f32 %v5750_v31, %v5580_v10  ;;  %v4451_v0 = vpop.f32.mrb[7].mxu0  ;;  %v4666_v39 = vmul.f32 %v5781_v36, %v5781_v36 }
 0x219   : > { %4595 = vst [vmem:[%s8262_s22 + $0x20] sm:$0xff] %v5782_v25  ;;  %v4626_v59 = vadd.f32 %v5782_v25, %v4625_v44  ;;  %v4664_v23 = vmul.f32 %v5782_v25, %v5782_v25  ;;  %v4694_v6 = vadd.f32 %v4693_v11, %v4663_v42  ;;  %v5784_v63 = vadd.f32 %v4451_v0, %v1873_v60 }
 0x21a   : > { %4598 = vst [vmem:[%s8262_s22 + $0x38] sm:$0xff] %v5783_v38  ;;  %v4667_v46 = vmul.f32 %v5783_v38, %v5783_v38 }
 0x21b   : > { %v4695_v62 = vadd.f32 %v4694_v6, %v4664_v23  ;;  %4596 = vst [vmem:[%s8262_s22 + $0x28] sm:$0xff] %v5784_v63  ;;  %v4627_v27 = vadd.f32 %v5784_v63, %v4626_v59  ;;  %v4665_v2 = vmul.f32 %v5784_v63, %v5784_v63 }
 0x21d   : > { %v4628_v15 = vadd.f32 %v5781_v36, %v4627_v27  ;;  %v4696_v33 = vadd.f32 %v4695_v62, %v4665_v2  ;;  %v5753_v58 = vpop.f32.mrb[8].mxu0 }
 0x21e   : > { %v5785_v29 = vadd.f32 %v5753_v58, %v5583_v32  ;;  %v4464_v26 = vpop.f32.mrb[9].mxu0 }
 0x21f   : > { %v4697_v47 = vadd.f32 %v4696_v33, %v4666_v39  ;;  %v5786_v5 = vadd.f32 %v4464_v26, %v1886_v16  ;;  %v4629_v51 = vadd.f32 %v5783_v38, %v4628_v15  ;;  %v5754_v41 = vpop.f32.mrb[10].mxu0 }
 0x220   : > { %4601 = vst [vmem:[%s8262_s22 + $0x50] sm:$0xff] %v5785_v29  ;;  %v5787_v13 = vadd.f32 %v5754_v41, %v5584_v52  ;;  %v4467_v49 = vpop.f32.mrb[11].mxu0  ;;  %v4670_v18 = vmul.f32 %v5785_v29, %v5785_v29 }
 0x221   : > { %4599 = vst [vmem:[%s8262_s22 + $0x40] sm:$0xff] %v5786_v5  ;;  %v4630_v35 = vadd.f32 %v5786_v5, %v4629_v51  ;;  %v4668_v20 = vmul.f32 %v5786_v5, %v5786_v5  ;;  %v4698_v37 = vadd.f32 %v4697_v47, %v4667_v46  ;;  %v5788_v4 = vadd.f32 %v4467_v49, %v8248_v12 }
 0x222   : > { %4602 = vst [vmem:[%s8262_s22 + $0x58] sm:$0xff] %v5787_v13  ;;  %v4671_v16 = vmul.f32 %v5787_v13, %v5787_v13 }
 0x223   : > { %v4699_v22 = vadd.f32 %v4698_v37, %v4668_v20  ;;  %4600 = vst [vmem:[%s8262_s22 + $0x48] sm:$0xff] %v5788_v4  ;;  %v4631_v34 = vadd.f32 %v5788_v4, %v4630_v35  ;;  %v4669_v9 = vmul.f32 %v5788_v4, %v5788_v4 }
 0x225   : > { %v4632_v50 = vadd.f32 %v5785_v29, %v4631_v34  ;;  %v4700_v30 = vadd.f32 %v4699_v22, %v4669_v9  ;;  %v5757_v10 = vpop.f32.mrb[12].mxu0 }
 0x226   : > { %v5789_v60 = vadd.f32 %v5757_v10, %v8250_v8  ;;  %v4480_v32 = vpop.f32.mrb[13].mxu0 }
 0x227   : > { %v4701_v52 = vadd.f32 %v4700_v30, %v4670_v18  ;;  %v5790_v12 = vadd.f32 %v4480_v32, %v8252_v7  ;;  %v4633_v43 = vadd.f32 %v5787_v13, %v4632_v50  ;;  %v5758_v24 = vpop.f32.mrb[14].mxu0 }
 0x228   : > { %4605 = vst [vmem:[%s8262_s22 + $0x70] sm:$0xff] %v5789_v60  ;;  %v5791_v1 = vadd.f32 %v5758_v24, %v8254_v40  ;;  %v4483_v48 = vpop.f32.mrb[15].mxu0  ;;  %v4674_v53 = vmul.f32 %v5789_v60, %v5789_v60 }
 0x229   : > { %4603 = vst [vmem:[%s8262_s22 + $0x60] sm:$0xff] %v5790_v12  ;;  %v4634_v54 = vadd.f32 %v5790_v12, %v4633_v43  ;;  %v4672_v3 = vmul.f32 %v5790_v12, %v5790_v12  ;;  %v4702_v21 = vadd.f32 %v4701_v52, %v4671_v16  ;;  %v5792_v17 = vadd.f32 %v4483_v48, %v8256_v55 }
 0x22a   : > { %4606 = vst [vmem:[%s8262_s22 + $0x78] sm:$0xff] %v5791_v1  ;;  %v4675_v45 = vmul.f32 %v5791_v1, %v5791_v1 }
 0x22b   : > { %v4703_v8 = vadd.f32 %v4702_v21, %v4672_v3  ;;  %4604 = vst [vmem:[%s8262_s22 + $0x68] sm:$0xff] %v5792_v17  ;;  %v4635_v19 = vadd.f32 %v5792_v17, %v4634_v54  ;;  %v4673_v61 = vmul.f32 %v5792_v17, %v5792_v17 }
 0x22d   : > { %v4636_v7 = vadd.f32 %v5789_v60, %v4635_v19  ;;  %v4704_v56 = vadd.f32 %v4703_v8, %v4673_v61  ;;  %v5625_v14 = vpop.f32.mrb[16].mxu1  ;;  %v5761_v57 = vpop.f32.mrb[16].mxu0 }
 0x22e   : > { %v5793_v40 = vadd.f32 %v5761_v57, %v5625_v14  ;;  %v2596_v28 = vpop.f32.mrb[17].mxu1  ;;  %v4496_v36 = vpop.f32.mrb[17].mxu0 }
 0x22f   : > { %v4705_v42 = vadd.f32 %v4704_v56, %v4674_v53  ;;  %v5794_v55 = vadd.f32 %v4496_v36, %v2596_v28  ;;  %v4637_v11 = vadd.f32 %v5791_v1, %v4636_v7  ;;  %v5626_v25 = vpop.f32.mrb[18].mxu1  ;;  %v5762_v44 = vpop.f32.mrb[18].mxu0 }
 0x230   : > { %4609 = vst [vmem:[%s8262_s22 + $0x90] sm:$0xff] %v5793_v40  ;;  %v5795_v31 = vadd.f32 %v5762_v44, %v5626_v25  ;;  %v2599_v38 = vpop.f32.mrb[19].mxu1  ;;  %v4499_v0 = vpop.f32.mrb[19].mxu0  ;;  %v4678_v39 = vmul.f32 %v5793_v40, %v5793_v40 }
 0x231   : > { %4607 = vst [vmem:[%s8262_s22 + $0x80] sm:$0xff] %v5794_v55  ;;  %v4638_v59 = vadd.f32 %v5794_v55, %v4637_v11  ;;  %v4676_v23 = vmul.f32 %v5794_v55, %v5794_v55  ;;  %v4706_v6 = vadd.f32 %v4705_v42, %v4675_v45  ;;  %v5796_v63 = vadd.f32 %v4499_v0, %v2599_v38 }
 0x232   : > { %4610 = vst [vmem:[%s8262_s22 + $0x98] sm:$0xff] %v5795_v31  ;;  %v4679_v5 = vmul.f32 %v5795_v31, %v5795_v31 }
 0x233   : > { %v4707_v62 = vadd.f32 %v4706_v6, %v4676_v23  ;;  %4608 = vst [vmem:[%s8262_s22 + $0x88] sm:$0xff] %v5796_v63  ;;  %v4639_v27 = vadd.f32 %v5796_v63, %v4638_v59  ;;  %v4677_v2 = vmul.f32 %v5796_v63, %v5796_v63 }
 0x235   : > { %v4640_v15 = vadd.f32 %v5793_v40, %v4639_v27  ;;  %v4708_v33 = vadd.f32 %v4707_v62, %v4677_v2  ;;  %v5629_v58 = vpop.f32.mrb[20].mxu1  ;;  %v5765_v29 = vpop.f32.mrb[20].mxu0 }
 0x236   : > { %v5797_v26 = vadd.f32 %v5765_v29, %v5629_v58  ;;  %v2612_v46 = vpop.f32.mrb[21].mxu1  ;;  %v4512_v47 = vpop.f32.mrb[21].mxu0 }
 0x237   : > { %v4709_v51 = vadd.f32 %v4708_v33, %v4678_v39  ;;  %v5798_v41 = vadd.f32 %v4512_v47, %v2612_v46  ;;  %v4641_v13 = vadd.f32 %v5795_v31, %v4640_v15  ;;  %v5630_v49 = vpop.f32.mrb[22].mxu1  ;;  %v5766_v35 = vpop.f32.mrb[22].mxu0 }
 0x238   : > { %4613 = vst [vmem:[%s8262_s22 + $0xb0] sm:$0xff] %v5797_v26  ;;  %v5799_v20 = vadd.f32 %v5766_v35, %v5630_v49  ;;  %v2615_v37 = vpop.f32.mrb[23].mxu1  ;;  %v4515_v4 = vpop.f32.mrb[23].mxu0  ;;  %v4682_v60 = vmul.f32 %v5797_v26, %v5797_v26 }
 0x239   : > { %4611 = vst [vmem:[%s8262_s22 + $0xa0] sm:$0xff] %v5798_v41  ;;  %v4642_v22 = vadd.f32 %v5798_v41, %v4641_v13  ;;  %v4680_v34 = vmul.f32 %v5798_v41, %v5798_v41  ;;  %v4710_v9 = vadd.f32 %v4709_v51, %v4679_v5  ;;  %v5800_v18 = vadd.f32 %v4515_v4, %v2615_v37 }
 0x23a   : > { %4614 = vst [vmem:[%s8262_s22 + $0xb8] sm:$0xff] %v5799_v20  ;;  %v4683_v48 = vmul.f32 %v5799_v20, %v5799_v20 }
 0x23b   : > { %v4711_v50 = vadd.f32 %v4710_v9, %v4680_v34  ;;  %4612 = vst [vmem:[%s8262_s22 + $0xa8] sm:$0xff] %v5800_v18  ;;  %v4643_v30 = vadd.f32 %v5800_v18, %v4642_v22  ;;  %v4681_v10 = vmul.f32 %v5800_v18, %v5800_v18 }
 0x23d   : > { %v4644_v32 = vadd.f32 %v5797_v26, %v4643_v30  ;;  %v4712_v16 = vadd.f32 %v4711_v50, %v4681_v10  ;;  %v5633_v52 = vpop.f32.mrb[24].mxu1  ;;  %v5769_v12 = vpop.f32.mrb[24].mxu0 }
 0x23e   : > { %v5801_v43 = vadd.f32 %v5769_v12, %v5633_v52  ;;  %v2628_v24 = vpop.f32.mrb[25].mxu1  ;;  %v4528_v1 = vpop.f32.mrb[25].mxu0 }
 0x23f   : > { %v4713_v54 = vadd.f32 %v4712_v16, %v4682_v60  ;;  %v5802_v3 = vadd.f32 %v4528_v1, %v2628_v24  ;;  %v4645_v21 = vadd.f32 %v5799_v20, %v4644_v32  ;;  %v5634_v17 = vpop.f32.mrb[26].mxu1  ;;  %v5770_v8 = vpop.f32.mrb[26].mxu0 }
 0x240   : > { %4617 = vst [vmem:[%s8262_s22 + $0xd0] sm:$0xff] %v5801_v43  ;;  %v5803_v19 = vadd.f32 %v5770_v8, %v5634_v17  ;;  %v2631_v61 = vpop.f32.mrb[27].mxu1  ;;  %v4531_v53 = vpop.f32.mrb[27].mxu0  ;;  %v4686_v45 = vmul.f32 %v5801_v43, %v5801_v43 }
 0x241   : > { %4615 = vst [vmem:[%s8262_s22 + $0xc0] sm:$0xff] %v5802_v3  ;;  %v4646_v7 = vadd.f32 %v5802_v3, %v4645_v21  ;;  %v4684_v56 = vmul.f32 %v5802_v3, %v5802_v3  ;;  %v4714_v14 = vadd.f32 %v4713_v54, %v4683_v48  ;;  %v5804_v57 = vadd.f32 %v4531_v53, %v2631_v61 }
 0x242   : > { %4618 = vst [vmem:[%s8262_s22 + $0xd8] sm:$0xff] %v5803_v19  ;;  %v4687_v0 = vmul.f32 %v5803_v19, %v5803_v19 }
 0x243   : > { %v4715_v40 = vadd.f32 %v4714_v14, %v4684_v56  ;;  %4616 = vst [vmem:[%s8262_s22 + $0xc8] sm:$0xff] %v5804_v57  ;;  %v4647_v28 = vadd.f32 %v5804_v57, %v4646_v7  ;;  %v4685_v36 = vmul.f32 %v5804_v57, %v5804_v57 }
 0x245   : > { %v4648_v42 = vadd.f32 %v5801_v43, %v4647_v28  ;;  %v4716_v55 = vadd.f32 %v4715_v40, %v4685_v36  ;;  %v5637_v11 = vpop.f32.mrb[28].mxu1  ;;  %v5773_v25 = vpop.f32.mrb[28].mxu0 }
 0x246   : > { %v5805_v44 = vadd.f32 %v5773_v25, %v5637_v11  ;;  %v2644_v31 = vpop.f32.mrb[29].mxu1  ;;  %v4544_v38 = vpop.f32.mrb[29].mxu0 }
 0x247   : > { %v4717_v59 = vadd.f32 %v4716_v55, %v4686_v45  ;;  %v5806_v23 = vadd.f32 %v4544_v38, %v2644_v31  ;;  %v4649_v6 = vadd.f32 %v5803_v19, %v4648_v42  ;;  %v5638_v63 = vpop.f32.mrb[30].mxu1  ;;  %v5774_v62 = vpop.f32.mrb[30].mxu0 }
 0x248   : > { %4621 = vst [vmem:[%s8262_s22 + $0xf0] sm:$0xff] %v5805_v44  ;;  %v5807_v27 = vadd.f32 %v5774_v62, %v5638_v63  ;;  %v2647_v2 = vpop.f32.mrb[31].mxu1  ;;  %v4547_v39 = vpop.f32.mrb[31].mxu0  ;;  %v4690_v5 = vmul.f32 %v5805_v44, %v5805_v44 }
 0x249   : > { %4619 = vst [vmem:[%s8262_s22 + $0xe0] sm:$0xff] %v5806_v23  ;;  %v4650_v15 = vadd.f32 %v5806_v23, %v4649_v6  ;;  %v4688_v33 = vmul.f32 %v5806_v23, %v5806_v23  ;;  %v4718_v58 = vadd.f32 %v4717_v59, %v4687_v0  ;;  %v5808_v29 = vadd.f32 %v4547_v39, %v2647_v2 }
 0x24a   : > { %4622 = vst [vmem:[%s8262_s22 + $0xf8] sm:$0xff] %v5807_v27  ;;  %v4691_v13 = vmul.f32 %v5807_v27, %v5807_v27 }
 0x24b   : > { %v4719_v26 = vadd.f32 %v4718_v58, %v4688_v33  ;;  %4620 = vst [vmem:[%s8262_s22 + $0xe8] sm:$0xff] %v5808_v29  ;;  %v4651_v46 = vadd.f32 %v5808_v29, %v4650_v15  ;;  %v4689_v47 = vmul.f32 %v5808_v29, %v5808_v29 }
 0x24d   : > { %v4652_v51 = vadd.f32 %v5805_v44, %v4651_v46  ;;  %v4720_v41 = vadd.f32 %v4719_v26, %v4689_v47 }
 0x24f   : > { %v4653_v49 = vadd.f32 %v5807_v27, %v4652_v51  ;;  %v4721_v35 = vadd.f32 %v4720_v41, %v4690_v5 }
 0x251   : > { %v4654_v20 = vrot.slane %v4653_v49, 4  ;;  %v4722_v37 = vadd.f32 %v4721_v35, %v4691_v13 }
 0x253   : > { %v4655_v4 = vadd.f32 %v4654_v20, %v4653_v49  ;;  %v4723_v22 = vrot.slane %v4722_v37, 4 }
 0x255   : > { %v4656_v34 = vrot.slane %v4655_v4, 2  ;;  %v4724_v9 = vadd.f32 %v4723_v22, %v4722_v37 }
 0x257   : > { %v4657_v18 = vadd.f32 %v4656_v34, %v4655_v4  ;;  %v4725_v50 = vrot.slane %v4724_v9, 2 }
 0x259   : > { %v4658_v30 = vrot.slane %v4657_v18, 1  ;;  %v4726_v10 = vadd.f32 %v4725_v50, %v4724_v9 }
 0x25b   : > { %v4727_v60 = vrot.slane %v4726_v10, 1  ;;  %v4659_v32 = vadd.f32 %v4658_v30, %v4657_v18 }
 0x25d   : > { %v4728_v16 = vadd.f32 %v4727_v60, %v4726_v10 }
 0x25f   : > { %v4730_v52 = vsel %vm4729_vm8, %v4659_v32, %v4728_v16 }
 0x260   : > { %4731 = vst [vmem:[%s212_s26] sm:$0x3] %v4730_v52 }
 0x261 PF: > { %s14_s14 = sadd.s32 1, %s6250_s14   ;;  %s8430_s12 = smov %s6246_s13 }
 0x262   : > { %p11_p5 = scmp.ge.s32.totalorder %s14_s14, 4   ;;  %s8431_s13 = smov %s8433_s15 }
 0x264   :  { %13 = sbr.rel (!%p11_p5) target bundleno = 2 (0x2), region = 81 }

// kernel: unet_conv_block.6
= control target key start
LH: loop header
LB: loop body
LE: loop exit
PB: predicated region body
PF: predicated region fallthrough
CT: control target
= control target key end

     0   :  { %s6851_s12 = smov 0   ;;  %s6853_s13 = smov 0   ;;  %s8892_s0 = inlined_call_operand.vmem [shape: bf16[2,18,18,128], index: 0, kind: input, shape index: {}]   ;;  %s8893_s1 = inlined_call_operand.vmem [shape: bf16[9,128,128], index: 1, kind: input, shape index: {}]   ;;  %s8894_s2 = inlined_call_operand.vmem [shape: f32[2,256,128], index: 2, kind: output, shape index: {0}]   ;;  %s8895_s3 = inlined_call_operand.vmem [shape: f32[2,1,2,128], index: 3, kind: output, shape index: {1}]  }
   0x1   :  { %s6855_s14 = smov 0  }
   0x2 LB: > { %s26_s15 = sadd.s32 1, %s6825_s13  ;;  %p5118_p0 = scmp.ge.s32.totalorder %s6829_s14, 1  ;;  %s6829_s14 = sphi %s6855_s14, %s14_s14   ;;  %s6825_s13 = sphi %s6853_s13, %s8981_s13   ;;  %s6821_s12 = sphi %s6851_s12, %s8980_s12  }
   0x3   : > { %p28_p1 = scmp.ge.s32.totalorder %s26_s15, 2  ;;  %p156_p2 = scmp.lt.s32.totalorder %s6829_s14, 3 }
   0x5   : > { %s8983_s15 = smov (%p28_p1, %s26_s15), 0  ;;  %p157_p3 = pnand %p5118_p0, %p156_p2 }
   0x7   : > { %160 = sbr.rel (%p157_p3) target bundleno = 608 (0x260), region = 28 }
   0xe   : > { %v6559_v0 = vld [vmem:[%s8893_s1 + $0x40] sm:$0xff]   ;;  %p191_p4 = scmp.lt.s32.totalorder %s6821_s12, 1  ;;  %v6561_v2 = vld [vmem:[%s8893_s1 + $0x48] sm:$0xff]   ;;  %v6563_v4 = vld [vmem:[%s8893_s1 + $0x50] sm:$0xff]   ;;  %vm282_vm0 = vsmask.f32 3328 }
   0xf   : > { %v6560_v1 = vld [vmem:[%s8893_s1 + $0x100] sm:$0xff]   ;;  %5830 = vmatprep.subr.bf16.mxu1 %v6559_v0  ;;  %v6562_v3 = vld [vmem:[%s8893_s1 + $0x108] sm:$0xff]   ;;  %v6564_v5 = vld [vmem:[%s8893_s1 + $0x110] sm:$0xff]   ;;  %vm283_vm1 = vsmask.f32 7440  ;;  %vm1280_vm3 = vcmask 1042432  }
  0x10   : > { %6022 = vmatprep.subr.bf16.mxu0 %v6560_v1  ;;  %5831 = vmatpush3.bf16.msra.mxu1 %v6559_v0  ;;  %s8985_s12 = smov (!%p191_p4, %s6821_s12), 1  ;;  %v6565_v6 = vld [vmem:[%s8893_s1 + $0x58] sm:$0xff]   ;;  %v6567_v8 = vld [vmem:[%s8893_s1 + $0x60] sm:$0xff]   ;;  %v6569_v10 = vld [vmem:[%s8893_s1 + $0x68] sm:$0xff]   ;;  %vm1281_vm4 = vcmask 1046532   ;;  %vm4979_vm6 = vcmask 1040384  }
  0x11   : > { %6023 = vmatpush3.bf16.msra.mxu0 %v6560_v1  ;;  %5832 = vmatprep.subr.bf16.mxu1 %v6561_v2  ;;  %v6566_v7 = vld [vmem:[%s8893_s1 + $0x118] sm:$0xff]   ;;  %s6534_s5 = smul.u32 216, %s8985_s12  ;;  %v6568_v9 = vld [vmem:[%s8893_s1 + $0x120] sm:$0xff]   ;;  %v6570_v11 = vld [vmem:[%s8893_s1 + $0x128] sm:$0xff]   ;;  %s5122_s28 = sshll.u32 %s8985_s12, 1 }
  0x12   : > { %6024 = vmatprep.subr.bf16.mxu0 %v6562_v3  ;;  %v6571_v25 = vld [vmem:[%s8893_s1 + $0x70] sm:$0xff]   ;;  %v6573_v36 = vld [vmem:[%s8893_s1 + $0x78] sm:$0xff]   ;;  %vm6941_vm2 = vmor %vm282_vm0, %vm283_vm1  ;;  %s212_s4 = scalar_lea.vmem %s8895_s3, %s5122_s28 }
  0x13   : > { %s6905_s16 = scalar_lea.vmem %s8892_s0, %s6534_s5  ;;  %v6572_v30 = vld [vmem:[%s8893_s1 + $0x130] sm:$0xff]   ;;  %v6574_v51 = vld [vmem:[%s8893_s1 + $0x138] sm:$0xff]   ;;  %vm7217_vm5 = vmor %vm1280_vm3, %vm1281_vm4 }
  0x14   : > { %5833 = vmatpush3.bf16.msra.mxu1 %v6561_v2  ;;  %v218_v12 = vld [vmem:[%s6905_s16] sm:$0xf]  ;;  %v219_v13 = vld [vmem:[%s6905_s16 + $0x4] sm:$0xf]  ;;  %v220_v14 = vld [vmem:[%s6905_s16 + $0x8] sm:$0x1] }
  0x15   : > { %6025 = vmatpush3.bf16.msra.mxu0 %v6562_v3  ;;  %5834 = vmatprep.subr.bf16.mxu1 %v6563_v4  ;;  %v286_v15 = vshrl.u32 %v218_v12, 16  ;;  %v289_v16 = vshll.u32 %v218_v12, 16  ;;  %v295_v17 = vshll.u32 %v219_v13, 16  ;;  %v299_v18 = vshrl.u32 %v219_v13, 16  ;;  %v6917_v20 = vld [vmem:[%s6905_s16 + $0xc] sm:$0xf] }
  0x16   : > { %6026 = vmatprep.subr.bf16.mxu0 %v6564_v5  ;;  %v305_v19 = vshll.u32 %v220_v14, 16  ;;  %v6920_v23 = vld [vmem:[%s6905_s16 + $0x10] sm:$0xf]  ;;  %v6923_v24 = vld [vmem:[%s6905_s16 + $0x14] sm:$0x1]  ;;  %v2124_v29 = vshrl.u32 %v6917_v20, 16 }
  0x17   : > { %v288_v21 = vrot.slane %v286_v15, 4  ;;  %v291_v22 = vrot.slane %v289_v16, 5  ;;  %v297_v26 = vrot.slane %v295_v17, 5  ;;  %v301_v27 = vrot.slane %v299_v18, 4  ;;  %v221_v35 = vld [vmem:[%s6905_s16 + $0xc] sm:$0xf] }
  0x18   : > { %5835 = vmatpush3.bf16.msra.mxu1 %v6563_v4  ;;  %v307_v28 = vrot.slane %v305_v19, 5  ;;  %v2127_v32 = vshll.u32 %v6917_v20, 16  ;;  %v2133_v33 = vshll.u32 %v6920_v23, 16  ;;  %v2137_v34 = vshrl.u32 %v6920_v23, 16  ;;  %v222_v42 = vld [vmem:[%s6905_s16 + $0x10] sm:$0xf] }
  0x19   : > { %6027 = vmatpush3.bf16.msra.mxu0 %v6564_v5  ;;  %5836 = vmatprep.subr.bf16.mxu1 %v6565_v6  ;;  %v292_v31 = vor.u32 %v291_v22, %v288_v21  ;;  %v302_v38 = vor.u32 %v301_v27, %v297_v26  ;;  %v2126_v39 = vrot.slane %v2124_v29, 4  ;;  %v2143_v40 = vshll.u32 %v6923_v24, 16  ;;  %v223_v55 = vld [vmem:[%s6905_s16 + $0x14] sm:$0x1]  ;;  %v6955_v57 = vld [vmem:[%s6905_s16 + $0x18] sm:$0xf] }
  0x1a   : > { %6028 = vmatprep.subr.bf16.mxu0 %v6566_v7  ;;  %v2850_v41 = vrot.slane %v6923_v24, 5  ;;  %v2129_v44 = vrot.slane %v2127_v32, 5  ;;  %v2135_v45 = vrot.slane %v2133_v33, 5  ;;  %v2139_v46 = vrot.slane %v2137_v34, 4  ;;  %v6960_v62 = vld [vmem:[%s6905_s16 + $0x1c] sm:$0xf] }
  0x1b   : > { %v293_v43 = vrot.slane %v292_v31, 4  ;;  %v303_v47 = vrot.slane %v302_v38, 4  ;;  %v2145_v48 = vrot.slane %v2143_v40, 5  ;;  %v310_v49 = vshrl.u32 %v221_v35, 16  ;;  %v6575_v3 = vld [vmem:[%s8893_s1] sm:$0xff]  }
  0x1c   : > { %5837 = vmatpush3.bf16.msra.mxu1 %v6565_v6  ;;  %v313_v50 = vshll.u32 %v221_v35, 16  ;;  %v2130_v53 = vor.u32 %v2129_v44, %v2126_v39  ;;  %v2140_v54 = vor.u32 %v2139_v46, %v2135_v45  ;;  %v319_v56 = vshll.u32 %v222_v42, 16  ;;  %v6968_v4 = vld [vmem:[%s8893_s1 + $0x140] sm:$0xff]   ;;  %v224_v17 = vld [vmem:[%s6905_s16 + $0x18] sm:$0xf] }
  0x1d   : > { %6029 = vmatpush3.bf16.msra.mxu0 %v6566_v7  ;;  %5838 = vmatprep.subr.bf16.mxu1 %v6567_v8  ;;  %v298_v52 = vsel %vm6941_vm2, %v293_v43, %v297_v26  ;;  %v308_v58 = vsel %vm6941_vm2, %v303_v47, %v307_v28  ;;  %v312_v59 = vrot.slane %v310_v49, 4  ;;  %v323_v61 = vshrl.u32 %v222_v42, 16  ;;  %v226_v33 = vld [vmem:[%s6905_s16 + $0x20] sm:$0x1]  ;;  %v6992_v40 = vld [vmem:[%s6905_s16 + $0x24] sm:$0xf] }
  0x1e   : > { %6030 = vmatprep.subr.bf16.mxu0 %v6568_v9  ;;  %v315_v60 = vrot.slane %v313_v50, 5  ;;  %v5139_v63 = vcombine.low %v298_v52, %v308_v58  ;;  %v2131_v0 = vrot.slane %v2130_v53, 4  ;;  %v2141_v1 = vrot.slane %v2140_v54, 4  ;;  %v6995_v46 = vld [vmem:[%s6905_s16 + $0x28] sm:$0xf] }
  0x1f   : > { %v321_v2 = vrot.slane %v319_v56, 5  ;;  %v325_v6 = vrot.slane %v323_v61, 4  ;;  %v329_v7 = vshll.u32 %v223_v55, 16  ;;  %v2151_v12 = vshll.u32 %v6955_v57, 16  ;;  %v6578_v47 = vld [vmem:[%s8893_s1 + $0x8] sm:$0xff]  }
  0x20   : > { %5839 = vmatpush3.bf16.msra.mxu1 %v6567_v8  ;;  %v316_v5 = vor.u32 %v315_v60, %v312_v59  ;;  %v6971_v8 = vld [vmem:[%s6905_s16 + $0x20] sm:$0x1]  ;;  %5846 = vmatprep.mubr.bf16.mxu1 %v5139_v63  ;;  %v2157_v21 = vshll.u32 %v6960_v62, 16  ;;  %v2161_v22 = vshrl.u32 %v6960_v62, 16  ;;  %v334_v34 = vshrl.u32 %v224_v17, 16 }
  0x21   : > { %6031 = vmatpush3.bf16.msra.mxu0 %v6568_v9  ;;  %5840 = vmatprep.subr.bf16.mxu1 %v6569_v10  ;;  %v2136_v9 = vsel %vm6941_vm2, %v2131_v0, %v2135_v45  ;;  %v326_v15 = vor.u32 %v325_v6, %v321_v2  ;;  %v331_v16 = vrot.slane %v329_v7, 5  ;;  %v2153_v19 = vrot.slane %v2151_v12, 5  ;;  %v7001_v52 = vld [vmem:[%s6905_s16 + $0x2c] sm:$0x1]  ;;  %v227_v53 = vld [vmem:[%s6905_s16 + $0x24] sm:$0xf] }
  0x22   : > { %6032 = vmatprep.subr.bf16.mxu0 %v6570_v11  ;;  %v317_v14 = vrot.slane %v316_v5, 4  ;;  %v2167_v28 = vshll.u32 %v6971_v8, 16  ;;  %v2857_v29 = vrot.slane %v6971_v8, 5  ;;  %v2159_v31 = vrot.slane %v2157_v21, 5  ;;  %v228_v6 = vld [vmem:[%s6905_s16 + $0x28] sm:$0xf] }
  0x23   : > { %v327_v27 = vrot.slane %v326_v15, 4  ;;  %v2163_v32 = vrot.slane %v2161_v22, 4  ;;  %v337_v38 = vshll.u32 %v224_v17, 16  ;;  %v336_v45 = vrot.slane %v334_v34, 4 }
  0x24   : > { %5841 = vmatpush3.bf16.msra.mxu1 %v6569_v10  ;;  %v2146_v10 = vsel %vm6941_vm2, %v2141_v1, %v2145_v48  ;;  %v322_v26 = vsel %vm6941_vm2, %v317_v14, %v321_v2  ;;  %v2172_v56 = vshrl.u32 %v6992_v40, 16  ;;  %v2175_v58 = vshll.u32 %v6992_v40, 16 }
  0x25   : > { %6033 = vmatpush3.bf16.msra.mxu0 %v6570_v11  ;;  %5842 = vmatprep.subr.bf16.mxu1 %v6571_v25  ;;  %v2148_v11 = vshrl.u32 %v6955_v57, 16  ;;  %v5347_v13 = vcombine.low %v2136_v9, %v2146_v10  ;;  %v332_v35 = vsel %vm6941_vm2, %v327_v27, %v331_v16  ;;  %v2164_v44 = vor.u32 %v2163_v32, %v2159_v31  ;;  %v6577_v9 = vld [vmem:[%s8893_s1 + $0x148] sm:$0xff]   ;;  %v6579_v32 = vld [vmem:[%s8893_s1 + $0x150] sm:$0xff]  }
  0x26   : > { %6034 = vmatprep.subr.bf16.mxu0 %v6572_v30  ;;  %v5140_v42 = vcombine.low %v322_v26, %v332_v35  ;;  %v339_v48 = vrot.slane %v337_v38, 5  ;;  %v2181_v63 = vshll.u32 %v6995_v46, 16  ;;  %v2174_v1 = vrot.slane %v2172_v56, 4  ;;  %v7027_v26 = vld [vmem:[%s6905_s16 + $0x34] sm:$0xf]  ;;  %v6587_v56 = vld [vmem:[%s8893_s1 + $0x20] sm:$0xff]  }
  0x27   : > { %v2150_v18 = vrot.slane %v2148_v11, 4  ;;  %6038 = vmatprep.mubr.bf16.mxu0 %v5347_v13  ;;  %v2165_v55 = vrot.slane %v2164_v44, 4  ;;  %v2177_v2 = vrot.slane %v2175_v58, 5  ;;  %v2185_v5 = vshrl.u32 %v6995_v46, 16  ;;  %v229_v13 = vld [vmem:[%s6905_s16 + $0x2c] sm:$0x1] }
  0x28   : > { %5843 = vmatpush3.bf16.msra.mxu1 %v6571_v25  ;;  %v225_v25 = vld [vmem:[%s6905_s16 + $0x1c] sm:$0xf]  ;;  %v340_v59 = vor.u32 %v339_v48, %v336_v45  ;;  %v2183_v12 = vrot.slane %v2181_v63, 5  ;;  %v2191_v16 = vshll.u32 %v7001_v52, 16  ;;  %v358_v17 = vshrl.u32 %v227_v53, 16 }
  0x29   : > { %6035 = vmatpush3.bf16.msra.mxu0 %v6572_v30  ;;  %5844 = vmatprep.subr.bf16.mxu1 %v6573_v36  ;;  %v2154_v30 = vor.u32 %v2153_v19, %v2150_v18  ;;  %v343_v39 = vshll.u32 %v225_v25, 16  ;;  %v347_v50 = vshrl.u32 %v225_v25, 16  ;;  %v2178_v14 = vor.u32 %v2177_v2, %v2174_v1  ;;  %v7022_v18 = vld [vmem:[%s6905_s16 + $0x30] sm:$0xf]  ;;  %v6580_v63 = vld [vmem:[%s8893_s1 + $0x158] sm:$0xff]  }
  0x2a   : > { %6036 = vmatprep.subr.bf16.mxu0 %v6574_v51  ;;  %v341_v10 = vrot.slane %v340_v59, 4  ;;  %v2187_v15 = vrot.slane %v2185_v5, 4  ;;  %v361_v22 = vshll.u32 %v227_v53, 16  ;;  %v367_v25 = vshll.u32 %v228_v6, 16 }
  0x2b   : > { %v2155_v43 = vrot.slane %v2154_v30, 4  ;;  %v345_v49 = vrot.slane %v343_v39, 5  ;;  %v349_v60 = vrot.slane %v347_v50, 4  ;;  %v2179_v27 = vrot.slane %v2178_v14, 4 }
  0x2c   : > { %5845 = vmatpush3.bf16.msra.mxu1 %v6573_v36  ;;  %v2169_v36 = vrot.slane %v2167_v28, 5  ;;  %v2188_v28 = vor.u32 %v2187_v15, %v2183_v12  ;;  %v2193_v30 = vrot.slane %v2191_v16, 5  ;;  %v363_v34 = vrot.slane %v361_v22, 5 }
  0x2d   : > { %6037 = vmatpush3.bf16.msra.mxu0 %v6574_v51  ;;  %5878 = vmatprep.subr.bf16.mxu1 %v6575_v3  ;;  %v353_v51 = vshll.u32 %v226_v33, 16  ;;  %v2160_v54 = vsel %vm6941_vm2, %v2155_v43, %v2159_v31  ;;  %v350_v11 = vor.u32 %v349_v60, %v345_v49  ;;  %v346_v19 = vsel %vm6941_vm2, %v341_v10, %v345_v49 }
  0x2e   : > { %6070 = vmatprep.subr.bf16.mxu0 %v6968_v4  ;;  %v2170_v0 = vsel %vm6941_vm2, %v2165_v55, %v2169_v36  ;;  %v360_v31 = vrot.slane %v358_v17, 4  ;;  %v369_v35 = vrot.slane %v367_v25, 5  ;;  %v371_v36 = vshrl.u32 %v228_v6, 16  ;;  %v230_v55 = vld [vmem:[%s6905_s16 + $0x30] sm:$0xf] }
  0x2f   : > { %5847 = vmatmul.mubr.bf16.vlgmr.msra.gmra.mrb[0].mxu1 %v5140_v42  ;;  %v355_v61 = vrot.slane %v353_v51, 5  ;;  %v5348_v7 = vcombine.low %v2160_v54, %v2170_v0  ;;  %v351_v21 = vrot.slane %v350_v11, 4  ;;  %v2184_v39 = vsel %vm6941_vm2, %v2179_v27, %v2183_v12  ;;  %v231_v0 = vld [vmem:[%s6905_s16 + $0x34] sm:$0xf]  ;;  %v7062_v12 = vld [vmem:[%s6905_s16 + $0x3c] sm:$0xf] }
  0x30   : > { %5879 = vmatpush3.bf16.msra.mxu1 %v6575_v3  ;;  %v6581_v3 = vld [vmem:[%s8893_s1 + $0x10] sm:$0xff]   ;;  %v2189_v42 = vrot.slane %v2188_v28, 4  ;;  %v377_v43 = vshll.u32 %v229_v13, 16  ;;  %v364_v44 = vor.u32 %v363_v34, %v360_v31  ;;  %v373_v45 = vrot.slane %v371_v36, 4  ;;  %v6582_v13 = vld [vmem:[%s8893_s1 + $0x160] sm:$0xff]   ;;  %v6589_v28 = vld [vmem:[%s8893_s1 + $0x28] sm:$0xff]  }
  0x31   : > { %5880 = vmatprep.subr.bf16.mxu1 %v6578_v47  ;;  %6039 = vmatmul.mubr.bf16.vlgmr.msra.gmra.mrb[0].mxu0 %v5348_v7  ;;  %v356_v33 = vsel %vm6941_vm2, %v351_v21, %v355_v61  ;;  %v2196_v48 = vshrl.u32 %v7022_v18, 16  ;;  %v2199_v49 = vshll.u32 %v7022_v18, 16  ;;  %v2205_v53 = vshll.u32 %v7027_v26, 16  ;;  %v7076_v34 = vld [vmem:[%s6905_s16 + $0x44] sm:$0x1] }
  0x32   : > { %6071 = vmatpush3.bf16.msra.mxu0 %v6968_v4  ;;  %v6584_v4 = vld [vmem:[%s8893_s1 + $0x18] sm:$0xff]   ;;  %v5141_v38 = vcombine.low %v346_v19, %v356_v33  ;;  %v2194_v50 = vsel %vm6941_vm2, %v2189_v42, %v2193_v30  ;;  %v379_v51 = vrot.slane %v377_v43, 5  ;;  %v2209_v54 = vshrl.u32 %v7027_v26, 16  ;;  %v7068_v19 = vld [vmem:[%s6905_s16 + $0x40] sm:$0xf]  ;;  %v6583_v42 = vld [vmem:[%s8893_s1 + $0x168] sm:$0xff]  }
  0x33   : > { %6072 = vmatprep.subr.bf16.mxu0 %v6577_v9  ;;  %v5349_v58 = vcombine.low %v2184_v39, %v2194_v50  ;;  %v365_v59 = vrot.slane %v364_v44, 4  ;;  %v374_v60 = vor.u32 %v373_v45, %v369_v35  ;;  %v2198_v61 = vrot.slane %v2196_v48, 4  ;;  %v233_v39 = vld [vmem:[%s6905_s16 + $0x3c] sm:$0xf]  ;;  %v6591_v43 = vld [vmem:[%s8893_s1 + $0x30] sm:$0xff]  }
  0x34   : > { %5881 = vmatpush3.bf16.msra.mxu1 %v6578_v47  ;;  %v7041_v47 = vld [vmem:[%s6905_s16 + $0x38] sm:$0x1]  ;;  %5850 = vmatprep.mubr.bf16.mxu1 %v5141_v38  ;;  %v2201_v1 = vrot.slane %v2199_v49, 5  ;;  %v2207_v2 = vrot.slane %v2205_v53, 5  ;;  %v2211_v5 = vrot.slane %v2209_v54, 4  ;;  %v382_v10 = vshrl.u32 %v230_v55, 16 }
  0x35   : > { %5882 = vmatprep.subr.bf16.mxu1 %v6581_v3  ;;  %v2215_v6 = vshll.u32 %v7041_v47, 16  ;;  %6042 = vmatprep.mubr.bf16.mxu0 %v5349_v58  ;;  %v370_v7 = vsel %vm6941_vm2, %v365_v59, %v369_v35  ;;  %v385_v11 = vshll.u32 %v230_v55, 16  ;;  %v391_v17 = vshll.u32 %v231_v0, 16  ;;  %v234_v50 = vld [vmem:[%s6905_s16 + $0x40] sm:$0xf] }
  0x36   : > { %6073 = vmatpush3.bf16.msra.mxu0 %v6577_v9  ;;  %v375_v9 = vrot.slane %v374_v60, 4  ;;  %v2202_v14 = vor.u32 %v2201_v1, %v2198_v61  ;;  %v2212_v15 = vor.u32 %v2211_v5, %v2207_v2  ;;  %v384_v22 = vrot.slane %v382_v10, 4  ;;  %v235_v1 = vld [vmem:[%s6905_s16 + $0x44] sm:$0x1] }
  0x37   : > { %6074 = vmatprep.subr.bf16.mxu0 %v6579_v32  ;;  %v2217_v16 = vrot.slane %v2215_v6, 5  ;;  %v387_v25 = vrot.slane %v385_v11, 5  ;;  %v395_v27 = vshrl.u32 %v231_v0, 16  ;;  %v2220_v38 = vshrl.u32 %v7062_v12, 16 }
  0x38   : > { %5883 = vmatpush3.bf16.msra.mxu1 %v6581_v3  ;;  %v232_v3 = vld [vmem:[%s6905_s16 + $0x38] sm:$0x1]  ;;  %v380_v21 = vsel %vm6941_vm2, %v375_v9, %v379_v51  ;;  %v2203_v31 = vrot.slane %v2202_v14, 4  ;;  %v2213_v33 = vrot.slane %v2212_v15, 4  ;;  %v2223_v48 = vshll.u32 %v7062_v12, 16 }
  0x39   : > { %5884 = vmatprep.subr.bf16.mxu1 %v6584_v4  ;;  %v5142_v30 = vcombine.low %v370_v7, %v380_v21  ;;  %v388_v35 = vor.u32 %v387_v25, %v384_v22  ;;  %v397_v36 = vrot.slane %v395_v27, 4  ;;  %v2229_v49 = vshll.u32 %v7068_v19, 16  ;;  %v7099_v9 = vld [vmem:[%s6905_s16 + $0x48] sm:$0xf]  ;;  %v7110_v27 = vld [vmem:[%s6905_s16 + $0x4c] sm:$0xf] }
  0x3a   : > { %6075 = vmatpush3.bf16.msra.mxu0 %v6579_v32  ;;  %v393_v32 = vrot.slane %v391_v17, 5  ;;  %v2208_v44 = vsel %vm6941_vm2, %v2203_v31, %v2207_v2  ;;  %v2218_v45 = vsel %vm6941_vm2, %v2213_v33, %v2217_v16  ;;  %v2225_v58 = vrot.slane %v2223_v48, 5  ;;  %v6585_v16 = vld [vmem:[%s8893_s1 + $0x170] sm:$0xff]   ;;  %v6593_v17 = vld [vmem:[%s8893_s1 + $0x38] sm:$0xff]  }
  0x3b   : > { %6076 = vmatprep.subr.bf16.mxu0 %v6580_v63  ;;  %5851 = vmatmul.mubr.bf16.gmra.mrb[4].mxu1 %v5142_v30  ;;  %v5350_v51 = vcombine.low %v2208_v44, %v2218_v45  ;;  %v389_v53 = vrot.slane %v388_v35, 4  ;;  %v2231_v59 = vrot.slane %v2229_v49, 5  ;;  %v2233_v60 = vshrl.u32 %v7068_v19, 16  ;;  %v236_v44 = vld [vmem:[%s6905_s16 + $0x48] sm:$0xf] }
  0x3c   : > { %5885 = vmatpush3.bf16.msra.mxu1 %v6584_v4  ;;  %v401_v4 = vshll.u32 %v232_v3, 16  ;;  %v398_v54 = vor.u32 %v397_v36, %v393_v32  ;;  %v2239_v0 = vshll.u32 %v7076_v34, 16  ;;  %v406_v2 = vshrl.u32 %v233_v39, 16 }
  0x3d   : > { %5886 = vmatprep.subr.bf16.mxu1 %v6587_v56  ;;  %6043 = vmatmul.mubr.bf16.gmra.mrb[4].mxu0 %v5350_v51  ;;  %v394_v61 = vsel %vm6941_vm2, %v389_v53, %v393_v32  ;;  %v2235_v6 = vrot.slane %v2233_v60, 4  ;;  %v409_v3 = vshll.u32 %v233_v39, 16  ;;  %v415_v7 = vshll.u32 %v234_v50, 16  ;;  %v7116_v32 = vld [vmem:[%s8893_s1 + $0x80] sm:$0xff]   ;;  %v6586_v51 = vld [vmem:[%s8893_s1 + $0x178] sm:$0xff]  }
  0x3e   : > { %6077 = vmatpush3.bf16.msra.mxu0 %v6580_v63  ;;  %v403_v55 = vrot.slane %v401_v4, 5  ;;  %v399_v63 = vrot.slane %v398_v54, 4  ;;  %v2241_v11 = vrot.slane %v2239_v0, 5  ;;  %v408_v14 = vrot.slane %v406_v2, 4 }
  0x3f   : > { %6078 = vmatprep.subr.bf16.mxu0 %v6582_v13  ;;  %v419_v15 = vshrl.u32 %v234_v50, 16  ;;  %v411_v25 = vrot.slane %v409_v3, 5  ;;  %v425_v31 = vshll.u32 %v235_v1, 16  ;;  %v2244_v33 = vshrl.u32 %v7099_v9, 16  ;;  %v237_v50 = vld [vmem:[%s6905_s16 + $0x4c] sm:$0xf] }
  0x40   : > { %5887 = vmatpush3.bf16.msra.mxu1 %v6587_v56  ;;  %v2222_v56 = vrot.slane %v2220_v38, 4  ;;  %v404_v10 = vsel %vm6941_vm2, %v399_v63, %v403_v55  ;;  %v7121_v38 = vld [vmem:[%s6905_s16 + $0x50] sm:$0x1]  ;;  %v2247_v39 = vshll.u32 %v7099_v9, 16  ;;  %v2253_v49 = vshll.u32 %v7110_v27, 16 }
  0x41   : > { %5888 = vmatprep.subr.bf16.mxu1 %v6589_v28  ;;  %v5143_v21 = vcombine.low %v394_v61, %v404_v10  ;;  %v421_v30 = vrot.slane %v419_v15, 4  ;;  %v412_v4 = vor.u32 %v411_v25, %v408_v14  ;;  %v427_v48 = vrot.slane %v425_v31, 5  ;;  %v238_v1 = vld [vmem:[%s6905_s16 + $0x50] sm:$0x1]  ;;  %v7149_v14 = vld [vmem:[%s8893_s1 + $0x180] sm:$0xff]  }
  0x42   : > { %v2226_v5 = vor.u32 %v2225_v58, %v2222_v56  ;;  %6079 = vmatpush3.bf16.msra.mxu0 %v6582_v13  ;;  %v2236_v13 = vor.u32 %v2235_v6, %v2231_v59  ;;  %v2257_v55 = vshrl.u32 %v7110_v27, 16  ;;  %v2263_v60 = vshll.u32 %v7121_v38, 16 }
  0x43   : > { %6080 = vmatprep.subr.bf16.mxu0 %v6583_v42  ;;  %5854 = vmatprep.mubr.bf16.mxu1 %v5143_v21  ;;  %v413_v54 = vrot.slane %v412_v4, 4  ;;  %v430_v2 = vshrl.u32 %v236_v44, 16  ;;  %v439_v10 = vshll.u32 %v237_v50, 16  ;;  %v443_v25 = vshrl.u32 %v237_v50, 16 }
  0x44   : > { %5889 = vmatpush3.bf16.msra.mxu1 %v6589_v28  ;;  %v2227_v22 = vrot.slane %v2226_v5, 4  ;;  %v417_v28 = vrot.slane %v415_v7, 5  ;;  %v2237_v36 = vrot.slane %v2236_v13, 4  ;;  %v2259_v0 = vrot.slane %v2257_v55, 4  ;;  %v7138_v5 = vld [vmem:[%s6905_s16 + $0x54] sm:$0xf] }
  0x45   : > { %5890 = vmatprep.subr.bf16.mxu1 %v6591_v43  ;;  %v2265_v3 = vrot.slane %v2263_v60, 5  ;;  %v433_v7 = vshll.u32 %v236_v44, 16  ;;  %v432_v21 = vrot.slane %v430_v2, 4  ;;  %v441_v13 = vrot.slane %v439_v10, 5 }
  0x46   : > { %v2232_v35 = vsel %vm6941_vm2, %v2227_v22, %v2231_v59  ;;  %6081 = vmatpush3.bf16.msra.mxu0 %v6583_v42  ;;  %v422_v45 = vor.u32 %v421_v30, %v417_v28  ;;  %v2242_v53 = vsel %vm6941_vm2, %v2237_v36, %v2241_v11  ;;  %v2249_v42 = vrot.slane %v2247_v39, 5  ;;  %v7144_v11 = vld [vmem:[%s6905_s16 + $0x58] sm:$0xf]  ;;  %v7152_v30 = vld [vmem:[%s6905_s16 + $0x5c] sm:$0x1] }
  0x47   : > { %6082 = vmatprep.subr.bf16.mxu0 %v6585_v16  ;;  %v5351_v56 = vcombine.low %v2232_v35, %v2242_v53  ;;  %v2255_v59 = vrot.slane %v2253_v49, 5  ;;  %v418_v61 = vsel %vm6941_vm2, %v413_v54, %v417_v28  ;;  %v435_v22 = vrot.slane %v433_v7, 5  ;;  %v7167_v54 = vld [vmem:[%s6905_s16 + $0x58] sm:$0xf]  ;;  %v7180_v7 = vld [vmem:[%s6905_s16 + $0x64] sm:$0xf] }
  0x48   : > { %5891 = vmatpush3.bf16.msra.mxu1 %v6591_v43  ;;  %v2246_v43 = vrot.slane %v2244_v33, 4  ;;  %v423_v58 = vrot.slane %v422_v45, 4  ;;  %v449_v28 = vshll.u32 %v238_v1, 16  ;;  %v2268_v35 = vshrl.u32 %v7138_v5, 16 }
  0x49   : > { %5892 = vmatprep.subr.bf16.mxu1 %v6593_v17  ;;  %6046 = vmatprep.mubr.bf16.mxu0 %v5351_v56  ;;  %v2271_v36 = vshll.u32 %v7138_v5, 16  ;;  %v436_v4 = vor.u32 %v435_v22, %v432_v21  ;;  %v445_v39 = vrot.slane %v443_v25, 4  ;;  %v2277_v45 = vshll.u32 %v7144_v11, 16 }
  0x4a   : > { %v2250_v63 = vor.u32 %v2249_v42, %v2246_v43  ;;  %6083 = vmatpush3.bf16.msra.mxu0 %v6585_v16  ;;  %v428_v6 = vsel %vm6941_vm2, %v423_v58, %v427_v48  ;;  %v451_v44 = vrot.slane %v449_v28, 5  ;;  %v7160_v48 = vld [vmem:[%s6905_s16 + $0x54] sm:$0xf]  ;;  %v2270_v49 = vrot.slane %v2268_v35, 4  ;;  %v241_v58 = vld [vmem:[%s6905_s16 + $0x5c] sm:$0x1] }
  0x4b   : > { %6084 = vmatprep.subr.bf16.mxu0 %v6586_v51  ;;  %v5144_v15 = vcombine.low %v418_v61, %v428_v6  ;;  %v2273_v50 = vrot.slane %v2271_v36, 5  ;;  %v2281_v53 = vshrl.u32 %v7144_v11, 16  ;;  %v437_v42 = vrot.slane %v436_v4, 4 }
  0x4c   : > { %5893 = vmatpush3.bf16.msra.mxu1 %v6593_v17  ;;  %v2251_v16 = vrot.slane %v2250_v63, 4  ;;  %v2260_v17 = vor.u32 %v2259_v0, %v2255_v59  ;;  %v446_v55 = vor.u32 %v445_v39, %v441_v13  ;;  %v2279_v56 = vrot.slane %v2277_v45, 5  ;;  %v7173_v0 = vld [vmem:[%s6905_s16 + $0x60] sm:$0xf]  ;;  %v7188_v39 = vld [vmem:[%s6905_s16 + $0x68] sm:$0x1] }
  0x4d   : > { %5926 = vmatprep.subr.bf16.mxu1 %v7116_v32  ;;  %5855 = vmatmul.mubr.bf16.gmra.mrb[8].mxu1 %v5144_v15  ;;  %v2283_v60 = vrot.slane %v2281_v53, 4  ;;  %v2287_v61 = vshll.u32 %v7152_v30, 16  ;;  %v454_v63 = vshrl.u32 %v7160_v48, 16  ;;  %v442_v1 = vsel %vm6941_vm2, %v437_v42, %v441_v13 }
  0x4e   : > { %v2256_v31 = vsel %vm6941_vm2, %v2251_v16, %v2255_v59  ;;  %v2261_v33 = vrot.slane %v2260_v17, 4  ;;  %6085 = vmatpush3.bf16.msra.mxu0 %v6586_v51  ;;  %v2274_v59 = vor.u32 %v2273_v50, %v2270_v49  ;;  %v447_v2 = vrot.slane %v446_v55, 4 }
  0x4f   : > { %6118 = vmatprep.subr.bf16.mxu0 %v7149_v14  ;;  %v457_v6 = vshll.u32 %v7160_v48, 16  ;;  %v2284_v15 = vor.u32 %v2283_v60, %v2279_v56  ;;  %v2289_v16 = vrot.slane %v2287_v61, 5  ;;  %v456_v17 = vrot.slane %v454_v63, 4 }
  0x50   : > { %v2266_v43 = vsel %vm6941_vm2, %v2261_v33, %v2265_v3  ;;  %v463_v3 = vshll.u32 %v7167_v54, 16  ;;  %v2275_v10 = vrot.slane %v2274_v59, 4  ;;  %v452_v21 = vsel %vm6941_vm2, %v447_v2, %v451_v44  ;;  %v7200_v59 = vld [vmem:[%s6905_s16 + $0x64] sm:$0xf]  ;;  %v244_v2 = vld [vmem:[%s6905_s16 + $0x68] sm:$0x1] }
  0x51   : > { %v5352_v51 = vcombine.low %v2256_v31, %v2266_v43  ;;  %v459_v22 = vrot.slane %v457_v6, 5  ;;  %v467_v13 = vshrl.u32 %v7167_v54, 16  ;;  %v5145_v28 = vcombine.low %v442_v1, %v452_v21 }
  0x52   : > { %v465_v25 = vrot.slane %v463_v3, 5  ;;  %v2280_v31 = vsel %vm6941_vm2, %v2275_v10, %v2279_v56  ;;  %v2285_v33 = vrot.slane %v2284_v15, 4  ;;  %v473_v35 = vshll.u32 %v241_v58, 16 }
  0x53   : > { %6047 = vmatmul.mubr.bf16.gmra.mrb[8].mxu0 %v5352_v51  ;;  %v460_v36 = vor.u32 %v459_v22, %v456_v17  ;;  %v469_v4 = vrot.slane %v467_v13, 4  ;;  %v2292_v45 = vshrl.u32 %v7173_v0, 16  ;;  %v2295_v44 = vshll.u32 %v7173_v0, 16  ;;  %5858 = vmatprep.mubr.bf16.mxu1 %v5145_v28  ;;  %v7197_v51 = vld [vmem:[%s6905_s16 + $0x60] sm:$0xf] }
  0x54   : > { %v2290_v43 = vsel %vm6941_vm2, %v2285_v33, %v2289_v16  ;;  %v475_v49 = vrot.slane %v473_v35, 5  ;;  %v2301_v50 = vshll.u32 %v7180_v7, 16  ;;  %v2305_v53 = vshrl.u32 %v7180_v7, 16  ;;  %v7209_v16 = vld [vmem:[%s6905_s16 + $0x6c] sm:$0xf] }
  0x55   : > { %v5353_v42 = vcombine.low %v2280_v31, %v2290_v43  ;;  %v461_v55 = vrot.slane %v460_v36, 4  ;;  %v470_v56 = vor.u32 %v469_v4, %v465_v25  ;;  %v2294_v58 = vrot.slane %v2292_v45, 4 }
  0x56   : > { %v2297_v60 = vrot.slane %v2295_v44, 5  ;;  %v2303_v61 = vrot.slane %v2301_v50, 5  ;;  %v2307_v63 = vrot.slane %v2305_v53, 4  ;;  %v2311_v1 = vshll.u32 %v7188_v39, 16 }
  0x57   : > { %6050 = vmatprep.mubr.bf16.mxu0 %v5353_v42  ;;  %v466_v6 = vsel %vm6941_vm2, %v461_v55, %v465_v25  ;;  %v471_v3 = vrot.slane %v470_v56, 4  ;;  %v478_v10 = vshrl.u32 %v7197_v51, 16  ;;  %v481_v15 = vshll.u32 %v7197_v51, 16 }
  0x58   : > { %v2298_v17 = vor.u32 %v2297_v60, %v2294_v58  ;;  %v2308_v21 = vor.u32 %v2307_v63, %v2303_v61  ;;  %v2313_v22 = vrot.slane %v2311_v1, 5  ;;  %v487_v13 = vshll.u32 %v7200_v59, 16  ;;  %v7228_v58 = vld [vmem:[%s6905_s16 + $0x70] sm:$0xf] }
  0x59   : > { %v476_v28 = vsel %vm6941_vm2, %v471_v3, %v475_v49  ;;  %v480_v31 = vrot.slane %v478_v10, 4  ;;  %v483_v33 = vrot.slane %v481_v15, 5  ;;  %v491_v25 = vshrl.u32 %v7200_v59, 16 }
  0x5a   : > { %v5146_v35 = vcombine.low %v466_v6, %v476_v28  ;;  %v2299_v36 = vrot.slane %v2298_v17, 4  ;;  %v2309_v4 = vrot.slane %v2308_v21, 4  ;;  %v489_v45 = vrot.slane %v487_v13, 5  ;;  %v7236_v17 = vld [vmem:[%s6905_s16 + $0x78] sm:$0xf] }
  0x5b   : > { %v484_v44 = vor.u32 %v483_v33, %v480_v31  ;;  %v493_v43 = vrot.slane %v491_v25, 4  ;;  %v497_v50 = vshll.u32 %v244_v2, 16  ;;  %v5371_v49 = vrot.slane %v6917_v20, 9  ;;  %v247_v20 = vld [vmem:[%s6905_s16 + $0x74] sm:$0x1] }
  0x5c   : > { %5859 = vmatmul.mubr.bf16.gmra.mrb[12].mxu1 %v5146_v35  ;;  %v2304_v42 = vsel %vm6941_vm2, %v2299_v36, %v2303_v61  ;;  %v2314_v55 = vsel %vm6941_vm2, %v2309_v4, %v2313_v22  ;;  %v2847_v56 = vrot.slane %v6920_v23, 5  ;;  %v502_v60 = vshrl.u32 %v7209_v16, 16  ;;  %v7239_v21 = vld [vmem:[%s6905_s16 + $0x7c] sm:$0xf] }
  0x5d   : > { %v5354_v63 = vcombine.low %v2304_v42, %v2314_v55  ;;  %v485_v1 = vrot.slane %v484_v44, 4  ;;  %v494_v2 = vor.u32 %v493_v43, %v489_v45  ;;  %v499_v6 = vrot.slane %v497_v50, 5  ;;  %v250_v55 = vld [vmem:[%s6905_s16 + $0x80] sm:$0x1] }
  0x5e   : > { %v2848_v3 = vsel %vm7217_vm5, %v5371_v49, %v2847_v56  ;;  %v2849_v10 = vrot.slane %v2847_v56, 4  ;;  %v504_v15 = vrot.slane %v502_v60, 4  ;;  %v505_v61 = vshll.u32 %v7209_v16, 16 }
  0x5f   : > { %6051 = vmatmul.mubr.bf16.gmra.mrb[12].mxu0 %v5354_v63  ;;  %v490_v23 = vsel %vm6941_vm2, %v485_v1, %v489_v45  ;;  %v495_v22 = vrot.slane %v494_v2, 4  ;;  %v511_v13 = vshll.u32 %v7228_v58, 16  ;;  %v515_v28 = vshrl.u32 %v7228_v58, 16 }
  0x60   : > { %v2851_v31 = vsel %vm7217_vm5, %v2849_v10, %v2850_v41  ;;  %v507_v33 = vrot.slane %v505_v61, 5  ;;  %v521_v25 = vshll.u32 %v247_v20, 16  ;;  %v5372_v35 = vrot.slane %v6955_v57, 9  ;;  %v7261_v10 = vld [vmem:[%s6905_s16 + $0x84] sm:$0xf] }
  0x61   : > { %v500_v36 = vsel %vm6941_vm2, %v495_v22, %v499_v6  ;;  %v5403_v4 = vcombine.low %v2848_v3, %v2851_v31  ;;  %v513_v45 = vrot.slane %v511_v13, 5  ;;  %v517_v44 = vrot.slane %v515_v28, 4  ;;  %v7270_v13 = vld [vmem:[%s6905_s16 + $0x88] sm:$0xf] }
  0x62   : > { %v5147_v43 = vcombine.low %v490_v23, %v500_v36  ;;  %v508_v50 = vor.u32 %v507_v33, %v504_v15  ;;  %v523_v49 = vrot.slane %v521_v25, 5  ;;  %v2854_v42 = vrot.slane %v6960_v62, 5 }
  0x63   : > { %6086 = vmatprep.mubr.bf16.mxu0 %v5403_v4  ;;  %v518_v24 = vor.u32 %v517_v44, %v513_v45  ;;  %v526_v41 = vshrl.u32 %v7236_v17, 16  ;;  %v529_v56 = vshll.u32 %v7236_v17, 16  ;;  %v535_v57 = vshll.u32 %v7239_v21, 16 }
  0x64   : > { %5862 = vmatprep.mubr.bf16.mxu1 %v5147_v43  ;;  %v509_v60 = vrot.slane %v508_v50, 4  ;;  %v2855_v63 = vsel %vm7217_vm5, %v5372_v35, %v2854_v42  ;;  %v2856_v1 = vrot.slane %v2854_v42, 4  ;;  %v539_v2 = vshrl.u32 %v7239_v21, 16  ;;  %v6590_v35 = vld [vmem:[%s8893_s1 + $0x188] sm:$0xff]  }
  0x65   : > { %v519_v62 = vrot.slane %v518_v24, 4  ;;  %v528_v6 = vrot.slane %v526_v41, 4  ;;  %v531_v20 = vrot.slane %v529_v56, 5  ;;  %v537_v3 = vrot.slane %v535_v57, 5  ;;  %v253_v43 = vld [vmem:[%s6905_s16 + $0x8c] sm:$0x1] }
  0x66   : > { %v514_v15 = vsel %vm6941_vm2, %v509_v60, %v513_v45  ;;  %v2858_v61 = vsel %vm7217_vm5, %v2856_v1, %v2857_v29  ;;  %v541_v23 = vrot.slane %v539_v2, 4  ;;  %v545_v22 = vshll.u32 %v250_v55, 16  ;;  %v7298_v2 = vld [vmem:[%s6905_s16 + $0x90] sm:$0xf] }
  0x67   : > { %v524_v28 = vsel %vm6941_vm2, %v519_v62, %v523_v49  ;;  %v5404_v31 = vcombine.low %v2855_v63, %v2858_v61  ;;  %v532_v33 = vor.u32 %v531_v20, %v528_v6  ;;  %v5373_v25 = vrot.slane %v6992_v40, 9  ;;  %v256_v61 = vld [vmem:[%s6905_s16 + $0x98] sm:$0x1] }
  0x68   : > { %v5148_v8 = vcombine.low %v514_v15, %v524_v28  ;;  %v542_v36 = vor.u32 %v541_v23, %v537_v3  ;;  %v547_v4 = vrot.slane %v545_v22, 5  ;;  %v2861_v29 = vrot.slane %v6995_v46, 5  ;;  %v7301_v15 = vld [vmem:[%s6905_s16 + $0x94] sm:$0xf] }
  0x69   : > { %6087 = vmatmul.mubr.bf16.vlgmr.msra.gmra.mrb[0].mxu0 %v5404_v31  ;;  %v533_v45 = vrot.slane %v532_v33, 4  ;;  %v2864_v44 = vrot.slane %v7001_v52, 5  ;;  %v550_v50 = vshrl.u32 %v7261_v10, 16  ;;  %v553_v49 = vshll.u32 %v7261_v10, 16 }
  0x6a   : > { %5863 = vmatmul.mubr.bf16.gmra.mrb[16].mxu1 %v5148_v8  ;;  %6119 = vmatpush3.bf16.msra.mxu0 %v7149_v14  ;;  %v543_v40 = vrot.slane %v542_v36, 4  ;;  %v2862_v42 = vsel %vm7217_vm5, %v5373_v25, %v2861_v29  ;;  %v2863_v24 = vrot.slane %v2861_v29, 4  ;;  %v559_v46 = vshll.u32 %v7270_v13, 16  ;;  %v6592_v14 = vld [vmem:[%s8893_s1 + $0x190] sm:$0xff]  }
  0x6b   : > { %v538_v52 = vsel %vm6941_vm2, %v533_v45, %v537_v3  ;;  %v552_v55 = vrot.slane %v550_v50, 4  ;;  %v555_v41 = vrot.slane %v553_v49, 5  ;;  %v563_v56 = vshrl.u32 %v7270_v13, 16  ;;  %6120 = vmatprep.subr.bf16.mxu0 %v6590_v35  ;;  %v7319_v50 = vld [vmem:[%s6905_s16 + $0x9c] sm:$0xf] }
  0x6c   : > { %v548_v57 = vsel %vm6941_vm2, %v543_v40, %v547_v4  ;;  %v2865_v60 = vsel %vm7217_vm5, %v2863_v24, %v2864_v44  ;;  %v561_v63 = vrot.slane %v559_v46, 5  ;;  %v569_v1 = vshll.u32 %v253_v43, 16  ;;  %v6594_v4 = vld [vmem:[%s8893_s1 + $0x198] sm:$0xff]   ;;  %v7324_v46 = vld [vmem:[%s6905_s16 + $0xa0] sm:$0xf] }
  0x6d   : > { %v5149_v62 = vcombine.low %v538_v52, %v548_v57  ;;  %v5405_v6 = vcombine.low %v2862_v42, %v2865_v60  ;;  %v556_v20 = vor.u32 %v555_v41, %v552_v55  ;;  %v565_v3 = vrot.slane %v563_v56, 4  ;;  %v6598_v57 = vld [vmem:[%s8893_s1 + $0x1a0] sm:$0xff]  }
  0x6e   : > { %v571_v23 = vrot.slane %v569_v1, 5  ;;  %v5374_v22 = vrot.slane %v7022_v18, 9  ;;  %v2868_v28 = vrot.slane %v7027_v26, 5  ;;  %v2871_v31 = vrot.slane %v7041_v47, 5  ;;  %6121 = vmatpush3.bf16.msra.mxu0 %v6590_v35 }
  0x6f   : > { %5866 = vmatprep.mubr.bf16.mxu1 %v5149_v62  ;;  %6090 = vmatprep.mubr.bf16.mxu0 %v5405_v6  ;;  %v557_v33 = vrot.slane %v556_v20, 4  ;;  %v566_v25 = vor.u32 %v565_v3, %v561_v63  ;;  %v574_v8 = vshrl.u32 %v7298_v2, 16  ;;  %v577_v36 = vshll.u32 %v7298_v2, 16  ;;  %v259_v20 = vld [vmem:[%s6905_s16 + $0xa4] sm:$0x1] }
  0x70   : > { %v2869_v18 = vsel %vm7217_vm5, %v5374_v22, %v2868_v28  ;;  %v2870_v26 = vrot.slane %v2868_v28, 4  ;;  %v583_v47 = vshll.u32 %v7301_v15, 16  ;;  %v587_v35 = vshrl.u32 %v7301_v15, 16  ;;  %6122 = vmatprep.subr.bf16.mxu0 %v6592_v14 }
  0x71   : > { %v562_v29 = vsel %vm6941_vm2, %v557_v33, %v561_v63  ;;  %v567_v45 = vrot.slane %v566_v25, 4  ;;  %v576_v44 = vrot.slane %v574_v8, 4  ;;  %v579_v43 = vrot.slane %v577_v36, 5 }
  0x72   : > { %v2872_v49 = vsel %vm7217_vm5, %v2870_v26, %v2871_v31  ;;  %v585_v40 = vrot.slane %v583_v47, 5  ;;  %v589_v42 = vrot.slane %v587_v35, 4  ;;  %v593_v24 = vshll.u32 %v256_v61, 16  ;;  %6123 = vmatpush3.bf16.msra.mxu0 %v6592_v14  ;;  %v7348_v26 = vld [vmem:[%s6905_s16 + $0xa8] sm:$0xf] }
  0x73   : > { %v572_v52 = vsel %vm6941_vm2, %v567_v45, %v571_v23  ;;  %v5406_v55 = vcombine.low %v2869_v18, %v2872_v49  ;;  %v580_v41 = vor.u32 %v579_v43, %v576_v44  ;;  %v5375_v56 = vrot.slane %v7062_v12, 9  ;;  %6124 = vmatprep.subr.bf16.mxu0 %v6594_v4  ;;  %v7354_v44 = vld [vmem:[%s6905_s16 + $0xac] sm:$0xf] }
  0x74   : > { %v5150_v60 = vcombine.low %v562_v29, %v572_v52  ;;  %v590_v63 = vor.u32 %v589_v42, %v585_v40  ;;  %v595_v1 = vrot.slane %v593_v24, 5  ;;  %v2875_v62 = vrot.slane %v7068_v19, 5 }
  0x75   : > { %6091 = vmatmul.mubr.bf16.gmra.mrb[4].mxu0 %v5406_v55  ;;  %v581_v6 = vrot.slane %v580_v41, 4  ;;  %v2878_v14 = vrot.slane %v7076_v34, 5  ;;  %v598_v3 = vshrl.u32 %v7319_v50, 16  ;;  %v601_v61 = vshll.u32 %v7319_v50, 16  ;;  %v262_v55 = vld [vmem:[%s6905_s16 + $0xb0] sm:$0x1] }
  0x76   : > { %5867 = vmatmul.mubr.bf16.gmra.mrb[20].mxu1 %v5150_v60  ;;  %v591_v12 = vrot.slane %v590_v63, 4  ;;  %v2876_v23 = vsel %vm7217_vm5, %v5375_v56, %v2875_v62  ;;  %v2877_v22 = vrot.slane %v2875_v62, 4  ;;  %v607_v28 = vshll.u32 %v7324_v46, 16  ;;  %6125 = vmatpush3.bf16.msra.mxu0 %v6594_v4  ;;  %v6602_v4 = vld [vmem:[%s8893_s1 + $0x1a8] sm:$0xff]   ;;  %v6606_v60 = vld [vmem:[%s8893_s1 + $0x1b0] sm:$0xff]  }
  0x77   : > { %v586_v19 = vsel %vm6941_vm2, %v581_v6, %v585_v40  ;;  %v600_v34 = vrot.slane %v598_v3, 4  ;;  %v603_v31 = vrot.slane %v601_v61, 5  ;;  %v611_v33 = vshrl.u32 %v7324_v46, 16  ;;  %6126 = vmatprep.subr.bf16.mxu0 %v6598_v57 }
  0x78   : > { %v596_v25 = vsel %vm6941_vm2, %v591_v12, %v595_v1  ;;  %v2879_v8 = vsel %vm7217_vm5, %v2877_v22, %v2878_v14  ;;  %v609_v36 = vrot.slane %v607_v28, 5  ;;  %v617_v18 = vshll.u32 %v259_v20, 16  ;;  %v7372_v14 = vld [vmem:[%s6905_s16 + $0xb4] sm:$0xf] }
  0x79   : > { %v5151_v47 = vcombine.low %v586_v19, %v596_v25  ;;  %v5407_v35 = vcombine.low %v2876_v23, %v2879_v8  ;;  %v604_v29 = vor.u32 %v603_v31, %v600_v34  ;;  %v613_v45 = vrot.slane %v611_v33, 4  ;;  %v7380_v34 = vld [vmem:[%s6905_s16 + $0xb8] sm:$0xf] }
  0x7a   : > { %v619_v43 = vrot.slane %v617_v18, 5  ;;  %v5376_v49 = vrot.slane %v7099_v9, 9  ;;  %v2882_v40 = vrot.slane %v7110_v27, 5  ;;  %v2885_v42 = vrot.slane %v7121_v38, 5  ;;  %6127 = vmatpush3.bf16.msra.mxu0 %v6598_v57  ;;  %v6610_v31 = vld [vmem:[%s8893_s1 + $0x1b8] sm:$0xff]  }
  0x7b   : > { %5870 = vmatprep.mubr.bf16.mxu1 %v5151_v47  ;;  %6094 = vmatprep.mubr.bf16.mxu0 %v5407_v35  ;;  %v605_v24 = vrot.slane %v604_v29, 4  ;;  %v614_v52 = vor.u32 %v613_v45, %v609_v36  ;;  %v622_v41 = vshrl.u32 %v7348_v26, 16  ;;  %v625_v56 = vshll.u32 %v7348_v26, 16  ;;  %v265_v18 = vld [vmem:[%s6905_s16 + $0xbc] sm:$0x1] }
  0x7c   : > { %v2883_v9 = vsel %vm7217_vm5, %v5376_v49, %v2882_v40  ;;  %v2884_v27 = vrot.slane %v2882_v40, 4  ;;  %v631_v38 = vshll.u32 %v7354_v44, 16  ;;  %v635_v57 = vshrl.u32 %v7354_v44, 16  ;;  %6128 = vmatprep.subr.bf16.mxu0 %v6602_v4 }
  0x7d   : > { %v610_v63 = vsel %vm6941_vm2, %v605_v24, %v609_v36  ;;  %v615_v1 = vrot.slane %v614_v52, 4  ;;  %v624_v62 = vrot.slane %v622_v41, 4  ;;  %v627_v6 = vrot.slane %v625_v56, 5  ;;  %v5267_v24 = vld [vmem:[%s6905_s16 + $0x6c] sm:$0xf]  ;;  %v7400_v52 = vld [vmem:[%s8893_s1 + $0x1c0] sm:$0xff]  }
  0x7e   : > { %v2886_v20 = vsel %vm7217_vm5, %v2884_v27, %v2885_v42  ;;  %v633_v3 = vrot.slane %v631_v38, 5  ;;  %v637_v61 = vrot.slane %v635_v57, 4  ;;  %v641_v12 = vshll.u32 %v262_v55, 16  ;;  %6129 = vmatpush3.bf16.msra.mxu0 %v6602_v4  ;;  %v5269_v27 = vld [vmem:[%s6905_s16 + $0x74] sm:$0x1] }
  0x7f   : > { %v620_v23 = vsel %vm6941_vm2, %v615_v1, %v619_v43  ;;  %v5408_v22 = vcombine.low %v2883_v9, %v2886_v20  ;;  %v628_v28 = vor.u32 %v627_v6, %v624_v62  ;;  %v5377_v19 = vrot.slane %v7138_v5, 9  ;;  %6130 = vmatprep.subr.bf16.mxu0 %v6606_v60  ;;  %v5268_v9 = vld [vmem:[%s6905_s16 + $0x70] sm:$0xf] }
  0x80   : > { %v5152_v33 = vcombine.low %v610_v63, %v620_v23  ;;  %v638_v25 = vor.u32 %v637_v61, %v633_v3  ;;  %v643_v8 = vrot.slane %v641_v12, 5  ;;  %v2889_v36 = vrot.slane %v7144_v11, 5 }
  0x81   : > { %6095 = vmatmul.mubr.bf16.gmra.mrb[8].mxu0 %v5408_v22  ;;  %v629_v4 = vrot.slane %v628_v28, 4  ;;  %v2892_v47 = vrot.slane %v7152_v30, 5  ;;  %v646_v5 = vshrl.u32 %v7372_v14, 16  ;;  %v649_v35 = vshll.u32 %v7372_v14, 16 }
  0x82   : > { %5871 = vmatmul.mubr.bf16.gmra.mrb[24].mxu1 %v5152_v33  ;;  %v639_v29 = vrot.slane %v638_v25, 4  ;;  %v2890_v45 = vsel %vm7217_vm5, %v5377_v19, %v2889_v36  ;;  %v2891_v43 = vrot.slane %v2889_v36, 4  ;;  %v655_v11 = vshll.u32 %v7380_v34, 16  ;;  %6131 = vmatpush3.bf16.msra.mxu0 %v6606_v60  ;;  %v5270_v25 = vld [vmem:[%s6905_s16 + $0x78] sm:$0xf] }
  0x83   : > { %v634_v49 = vsel %vm6941_vm2, %v629_v4, %v633_v3  ;;  %v648_v40 = vrot.slane %v646_v5, 4  ;;  %v651_v30 = vrot.slane %v649_v35, 5  ;;  %v659_v42 = vshrl.u32 %v7380_v34, 16  ;;  %6132 = vmatprep.subr.bf16.mxu0 %v6610_v31  ;;  %v5273_v4 = vld [vmem:[%s6905_s16 + $0x84] sm:$0xf] }
  0x84   : > { %v644_v55 = vsel %vm6941_vm2, %v639_v29, %v643_v8  ;;  %v2893_v41 = vsel %vm7217_vm5, %v2891_v43, %v2892_v47  ;;  %v657_v56 = vrot.slane %v655_v11, 5  ;;  %v665_v60 = vshll.u32 %v265_v18, 16  ;;  %v5271_v8 = vld [vmem:[%s6905_s16 + $0x7c] sm:$0xf]  ;;  %v5272_v18 = vld [vmem:[%s6905_s16 + $0x80] sm:$0x1] }
  0x85   : > { %v5153_v38 = vcombine.low %v634_v49, %v644_v55  ;;  %v5409_v57 = vcombine.low %v2890_v45, %v2893_v41  ;;  %v652_v63 = vor.u32 %v651_v30, %v648_v40  ;;  %v661_v1 = vrot.slane %v659_v42, 4  ;;  %v7427_v35 = vld [vmem:[%s6905_s16] sm:$0xf]  ;;  %v7430_v29 = vld [vmem:[%s6905_s16 + $0x4] sm:$0xf] }
  0x86   : > { %v667_v62 = vrot.slane %v665_v60, 5  ;;  %v5378_v6 = vrot.slane %v7173_v0, 9  ;;  %v2896_v20 = vrot.slane %v7180_v7, 5  ;;  %v2899_v3 = vrot.slane %v7188_v39, 5  ;;  %6133 = vmatpush3.bf16.msra.mxu0 %v6610_v31  ;;  %v5274_v11 = vld [vmem:[%s6905_s16 + $0x88] sm:$0xf] }
  0x87   : > { %5874 = vmatprep.mubr.bf16.mxu1 %v5153_v38  ;;  %6098 = vmatprep.mubr.bf16.mxu0 %v5409_v57  ;;  %v653_v61 = vrot.slane %v652_v63, 4  ;;  %v662_v12 = vor.u32 %v661_v1, %v657_v56  ;;  %v5379_v23 = vrot.slane %v5267_v24, 9  ;;  %v2903_v22 = vrot.slane %v5268_v9, 5  ;;  %v5275_v49 = vld [vmem:[%s6905_s16 + $0x8c] sm:$0x1] }
  0x88   : > { %v2897_v28 = vsel %vm7217_vm5, %v5378_v6, %v2896_v20  ;;  %v2898_v0 = vrot.slane %v2896_v20, 4  ;;  %v2906_v7 = vrot.slane %v5269_v27, 5  ;;  %6166 = vmatprep.subr.bf16.mxu0 %v7400_v52  ;;  %v5163_v45 = vcombine.low %v7427_v35, %v7430_v29  ;;  %v5276_v42 = vld [vmem:[%s6905_s16 + $0x90] sm:$0xf]  ;;  %v5277_v24 = vld [vmem:[%s6905_s16 + $0x94] sm:$0xf] }
  0x89   : > { %v658_v39 = vsel %vm6941_vm2, %v653_v61, %v657_v56  ;;  %v663_v19 = vrot.slane %v662_v12, 4  ;;  %v2904_v31 = vsel %vm7217_vm5, %v5379_v23, %v2903_v22  ;;  %v2905_v33 = vrot.slane %v2903_v22, 4  ;;  %v5278_v56 = vld [vmem:[%s6905_s16 + $0x98] sm:$0x1]  ;;  %v5279_v38 = vld [vmem:[%s6905_s16 + $0x9c] sm:$0xf] }
  0x8a   : > { %v2900_v36 = vsel %vm7217_vm5, %v2898_v0, %v2899_v3  ;;  %v5380_v55 = vrot.slane %v5270_v25, 9  ;;  %v2910_v41 = vrot.slane %v5271_v8, 5  ;;  %v2913_v60 = vrot.slane %v5272_v18, 5  ;;  %v5281_v6 = vld [vmem:[%s6905_s16 + $0xa4] sm:$0x1] }
  0x8b   : > { %v668_v47 = vsel %vm6941_vm2, %v663_v19, %v667_v62  ;;  %v5410_v5 = vcombine.low %v2897_v28, %v2900_v36  ;;  %v2907_v43 = vsel %vm7217_vm5, %v2905_v33, %v2906_v7  ;;  %v5381_v9 = vrot.slane %v5273_v4, 9  ;;  %v5280_v62 = vld [vmem:[%s6905_s16 + $0xa0] sm:$0xf]  ;;  %v7447_v20 = vld [vmem:[%s6905_s16 + $0xc] sm:$0xf] }
  0x8c   : > { %v5154_v40 = vcombine.low %v658_v39, %v668_v47  ;;  %v5411_v30 = vcombine.low %v2904_v31, %v2907_v43  ;;  %v2917_v27 = vrot.slane %v5274_v11, 5  ;;  %v2911_v57 = vsel %vm7217_vm5, %v5380_v55, %v2910_v41  ;;  %v7450_v3 = vld [vmem:[%s6905_s16 + $0x10] sm:$0xf]  ;;  %v7459_v28 = vld [vmem:[%s6905_s16 + $0x18] sm:$0xf]  ;;  %v6601_v43 = vld [vmem:[%s8893_s1 + $0x88] sm:$0xff]  }
  0x8d   : > { %6099 = vmatmul.mubr.bf16.gmra.mrb[12].mxu0 %v5410_v5  ;;  %v2912_v63 = vrot.slane %v2910_v41, 4  ;;  %v2920_v1 = vrot.slane %v5275_v49, 5  ;;  %v5164_v61 = vcombine.low %v7447_v20, %v7450_v3  ;;  %v7462_v0 = vld [vmem:[%s6905_s16 + $0x1c] sm:$0xf]  ;;  %v5382_v39 = vrot.slane %v5276_v42, 9  ;;  %v6605_v41 = vld [vmem:[%s8893_s1 + $0x90] sm:$0xff]  }
  0x8e   : > { %5875 = vmatmul.mubr.bf16.gmra.mrb[28].mxu1 %v5154_v40  ;;  %6102 = vmatprep.mubr.bf16.mxu0 %v5411_v30  ;;  %v2918_v12 = vsel %vm7217_vm5, %v5381_v9, %v2917_v27  ;;  %v2919_v23 = vrot.slane %v2917_v27, 4  ;;  %v5165_v7 = vcombine.low %v7459_v28, %v7462_v0  ;;  %v2924_v19 = vrot.slane %v5277_v24, 5  ;;  %v5283_v31 = vld [vmem:[%s6905_s16 + $0xac] sm:$0xf]  ;;  %v5282_v49 = vld [vmem:[%s6905_s16 + $0xa8] sm:$0xf] }
  0x8f   : > { %5894 = vmatprep.mubr.bf16.mxu1 %v5163_v45  ;;  %v2914_v22 = vsel %vm7217_vm5, %v2912_v63, %v2913_v60  ;;  %v2927_v8 = vrot.slane %v5278_v56, 5  ;;  %v2931_v36 = vrot.slane %v5280_v62, 5  ;;  %v5383_v47 = vrot.slane %v5279_v38, 9  ;;  %v5286_v45 = vld [vmem:[%s6905_s16 + $0xb8] sm:$0xf] }
  0x90   : > { %v5412_v33 = vcombine.low %v2911_v57, %v2914_v22  ;;  %v2921_v25 = vsel %vm7217_vm5, %v2919_v23, %v2920_v1  ;;  %v2926_v4 = vrot.slane %v2924_v19, 4  ;;  %v2934_v5 = vrot.slane %v5281_v6, 5  ;;  %v5284_v56 = vld [vmem:[%s6905_s16 + $0xb0] sm:$0x1]  ;;  %v5285_v60 = vld [vmem:[%s6905_s16 + $0xb4] sm:$0xf] }
  0x91   : > { %v5413_v18 = vcombine.low %v2918_v12, %v2921_v25  ;;  %v2933_v11 = vrot.slane %v2931_v36, 4  ;;  %v2925_v40 = vsel %vm7217_vm5, %v5382_v39, %v2924_v19  ;;  %v2938_v42 = vrot.slane %v5283_v31, 5  ;;  %v5287_v27 = vld [vmem:[%s6905_s16 + $0xbc] sm:$0x1]  ;;  %v7490_v57 = vld [vmem:[%s6905_s16 + $0x24] sm:$0xf] }
  0x92   : > { %v2928_v30 = vsel %vm7217_vm5, %v2926_v4, %v2927_v8  ;;  %v2932_v24 = vsel %vm7217_vm5, %v5383_v47, %v2931_v36  ;;  %v2945_v9 = vrot.slane %v5286_v45, 5  ;;  %v5384_v38 = vrot.slane %v5282_v49, 9  ;;  %v7493_v63 = vld [vmem:[%s6905_s16 + $0x28] sm:$0xf]  ;;  %v7498_v12 = vld [vmem:[%s6905_s16 + $0x30] sm:$0xf] }
  0x93   : > { %v2935_v55 = vsel %vm7217_vm5, %v2933_v11, %v2934_v5  ;;  %v5166_v1 = vcombine.low %v7490_v57, %v7493_v63  ;;  %v2940_v6 = vrot.slane %v2938_v42, 4  ;;  %v7501_v23 = vld [vmem:[%s6905_s16 + $0x34] sm:$0xf]  ;;  %v2948_v19 = vrot.slane %v5287_v27, 5  ;;  %v5289_v31 = vld [vmem:[%s6905_s16 + $0xc4] sm:$0xf] }
  0x94   : > { %v5415_v62 = vcombine.low %v2932_v24, %v2935_v55  ;;  %v5167_v22 = vcombine.low %v7498_v12, %v7501_v23  ;;  %v2947_v39 = vrot.slane %v2945_v9, 4  ;;  %v2939_v25 = vsel %vm7217_vm5, %v5384_v38, %v2938_v42  ;;  %v5288_v47 = vld [vmem:[%s6905_s16 + $0xc0] sm:$0xf]  ;;  %v5290_v5 = vld [vmem:[%s6905_s16 + $0xc8] sm:$0x1] }
  0x95   : > { %6103 = vmatmul.mubr.bf16.gmra.mrb[16].mxu0 %v5412_v33  ;;  %v6609_v33 = vld [vmem:[%s8893_s1 + $0x98] sm:$0xff]   ;;  %v2952_v36 = vrot.slane %v5289_v31, 5  ;;  %v6614_v45 = vld [vmem:[%s8893_s1 + $0xa0] sm:$0xff]   ;;  %v5386_v42 = vrot.slane %v5288_v47, 9  ;;  %v2955_v55 = vrot.slane %v5290_v5, 5 }
  0x96   : > { %5895 = vmatmul.mubr.bf16.vlgmr.msra.gmra.mrb[0].mxu1 %v5164_v61  ;;  %6106 = vmatprep.mubr.bf16.mxu0 %v5413_v18  ;;  %v2941_v61 = vrot.slane %v5284_v56, 5  ;;  %v2949_v4 = vsel %vm7217_vm5, %v2947_v39, %v2948_v19  ;;  %v7526_v11 = vld [vmem:[%s6905_s16 + $0x40] sm:$0xf]  ;;  %v7534_v56 = vld [vmem:[%s6905_s16 + $0x4c] sm:$0xf]  ;;  %v6632_v39 = vld [vmem:[%s8893_s1 + $0xb8] sm:$0xff]  }
  0x97   : > { %5927 = vmatpush3.bf16.msra.mxu1 %v7116_v32  ;;  %5898 = vmatprep.mubr.bf16.mxu1 %v5165_v7  ;;  %v5414_v32 = vcombine.low %v2925_v40, %v2928_v30  ;;  %v5385_v7 = vrot.slane %v5285_v60, 9  ;;  %v2954_v24 = vrot.slane %v2952_v36, 4  ;;  %v2953_v27 = vsel %vm7217_vm5, %v5386_v42, %v2952_v36  ;;  %v7546_v38 = vld [vmem:[%s6905_s16 + $0x18] sm:$0xf]  ;;  %v7564_v19 = vld [vmem:[%s6905_s16 + $0x24] sm:$0xf] }
  0x98   : > { %5928 = vmatprep.subr.bf16.mxu1 %v6601_v43  ;;  %v2942_v8 = vsel %vm7217_vm5, %v2940_v6, %v2941_v61  ;;  %v5170_v61 = vcombine.low %v7160_v48, %v7167_v54  ;;  %v7567_v31 = vld [vmem:[%s6905_s16 + $0x28] sm:$0xf]  ;;  %v7572_v48 = vld [vmem:[%s8893_s1 + $0xc0] sm:$0xff]   ;;  %v7575_v54 = vld [vmem:[%s6905_s16 + $0x30] sm:$0xf] }
  0x99   : > { %v2946_v18 = vsel %vm7217_vm5, %v5385_v7, %v2945_v9  ;;  %v5416_v40 = vcombine.low %v2939_v25, %v2942_v8  ;;  %v6620_v9 = vld [vmem:[%s8893_s1 + $0xa8] sm:$0xff]   ;;  %v5171_v7 = vcombine.low %v7197_v51, %v7200_v59  ;;  %v7578_v51 = vld [vmem:[%s6905_s16 + $0x34] sm:$0xf]  ;;  %v5492_v59 = vcombine.low %v7564_v19, %v7567_v31 }
  0x9a   : > { %v5417_v30 = vcombine.low %v2946_v18, %v2949_v4  ;;  %v5173_v25 = vcombine.low %v7236_v17, %v7239_v21  ;;  %v5493_v8 = vcombine.low %v7575_v54, %v7578_v51  ;;  %v6622_v36 = vld [vmem:[%s8893_s1 + $0x1c8] sm:$0xff]   ;;  %v7600_v17 = vld [vmem:[%s6905_s16 + $0x40] sm:$0xf]  ;;  %v7613_v5 = vld [vmem:[%s6905_s16 + $0x14] sm:$0x1] }
  0x9b   : > { %5929 = vmatpush3.bf16.msra.mxu1 %v6601_v43  ;;  %v7523_v43 = vld [vmem:[%s6905_s16 + $0x3c] sm:$0xf]  ;;  %v7603_v21 = vld [vmem:[%s6905_s16 + $0x48] sm:$0xf]  ;;  %v7606_v18 = vld [vmem:[%s6905_s16 + $0x4c] sm:$0xf] }
  0x9c   : > { %5930 = vmatprep.subr.bf16.mxu1 %v6605_v41  ;;  %v5168_v49 = vcombine.low %v7523_v43, %v7526_v11  ;;  %v7609_v4 = vld [vmem:[%s6905_s16 + $0x8] sm:$0x1]  ;;  %v7622_v42 = vld [vmem:[%s6905_s16 + $0x54] sm:$0xf] }
  0x9d   : > { %6107 = vmatmul.mubr.bf16.gmra.mrb[20].mxu0 %v5414_v32  ;;  %v2956_v32 = vsel %vm7217_vm5, %v2954_v24, %v2955_v55  ;;  %v1288_v47 = vrot.slane %v7609_v4, 5  ;;  %v7625_v24 = vld [vmem:[%s6905_s16 + $0x58] sm:$0xf]  ;;  %v7726_v4 = vld [vmem:[%s6905_s16 + $0x94] sm:$0xf] }
  0x9e   : > { %5899 = vmatmul.mubr.bf16.gmra.mrb[4].mxu1 %v5166_v1  ;;  %6110 = vmatprep.mubr.bf16.mxu0 %v5415_v62  ;;  %v7549_v1 = vld [vmem:[%s6905_s16 + $0x1c] sm:$0xf]  ;;  %v6626_v62 = vld [vmem:[%s8893_s1 + $0xb0] sm:$0xff]   ;;  %v5418_v6 = vcombine.low %v2953_v27, %v2956_v32  ;;  %v5495_v27 = vcombine.low %v7603_v21, %v7606_v18  ;;  %8920 = vst [vmem:[#allocation7_spill] sm:$0xff] %v7726_v4 }
  0x9f   : > { %5902 = vmatprep.mubr.bf16.mxu1 %v5167_v22  ;;  %5931 = vmatpush3.bf16.msra.mxu1 %v6605_v41  ;;  %v7531_v41 = vld [vmem:[%s6905_s16 + $0x48] sm:$0xf]  ;;  %v5491_v22 = vcombine.low %v7546_v38, %v7549_v1 }
  0xa0   : > { %5932 = vmatprep.subr.bf16.mxu1 %v6609_v33  ;;  %v5169_v60 = vcombine.low %v7531_v41, %v7534_v56 }
  0xa3   : > { %5933 = vmatpush3.bf16.msra.mxu1 %v6609_v33  ;;  %v5172_v33 = vcombine.low %v7209_v16, %v7228_v58  ;;  %v6628_v16 = vld [vmem:[%s8893_s1 + $0x1d0] sm:$0xff]   ;;  %v7597_v58 = vld [vmem:[%s6905_s16 + $0x3c] sm:$0xf] }
  0xa4   : > { %5934 = vmatprep.subr.bf16.mxu1 %v6614_v45 }
  0xa5   : > { %6111 = vmatmul.mubr.bf16.gmra.mrb[24].mxu0 %v5416_v40  ;;  %v3699_v40 = vshrl.u32 %v7549_v1, 16 }
  0xa6   : > { %5903 = vmatmul.mubr.bf16.gmra.mrb[8].mxu1 %v5168_v49  ;;  %6114 = vmatprep.mubr.bf16.mxu0 %v5417_v30  ;;  %v3689_v49 = vshll.u32 %v7546_v38, 16  ;;  %v5494_v30 = vcombine.low %v7597_v58, %v7600_v17 }
  0xa7   : > { %5906 = vmatprep.mubr.bf16.mxu1 %v5169_v60  ;;  %5935 = vmatpush3.bf16.msra.mxu1 %v6614_v45  ;;  %v3686_v45 = vshrl.u32 %v7546_v38, 16  ;;  %v6642_v60 = vld [vmem:[%s8893_s1 + $0x1e8] sm:$0xff]   ;;  %v3701_v38 = vrot.slane %v3699_v40, 4  ;;  %v6704_v40 = vld [vmem:[%s6905_s16 + $0x60] sm:$0xf] }
  0xa8   : > { %5936 = vmatprep.subr.bf16.mxu1 %v6620_v9 }
  0xab   : > { %5937 = vmatpush3.bf16.msra.mxu1 %v6620_v9  ;;  %v5174_v9 = vcombine.low %v7261_v10, %v7270_v13  ;;  %v6634_v10 = vld [vmem:[%s8893_s1 + $0x1d8] sm:$0xff]   ;;  %v5177_v13 = vcombine.low %v7348_v26, %v7354_v44  ;;  %v7719_v26 = vld [vmem:[%s6905_s16 + $0x90] sm:$0xf] }
  0xac   : > { %5938 = vmatprep.subr.bf16.mxu1 %v6626_v62  ;;  %8919 = vst [vmem:[#allocation6_spill] sm:$0xff] %v7719_v26 }
  0xad   : > { %6115 = vmatmul.mubr.bf16.gmra.mrb[28].mxu0 %v5418_v6 }
  0xae   : > { %5907 = vmatmul.mubr.bf16.gmra.mrb[12].mxu1 %v5170_v61  ;;  %6134 = vmatprep.mubr.bf16.mxu0 %v5491_v22  ;;  %v5175_v61 = vcombine.low %v7298_v2, %v7301_v15  ;;  %v7639_v22 = vld [vmem:[%s6905_s16 + $0x60] sm:$0xf]  ;;  %v7666_v15 = vld [vmem:[%s6905_s16 + $0x78] sm:$0xf] }
  0xaf   : > { %5910 = vmatprep.mubr.bf16.mxu1 %v5171_v7  ;;  %5939 = vmatpush3.bf16.msra.mxu1 %v6626_v62  ;;  %v7642_v7 = vld [vmem:[%s6905_s16 + $0x64] sm:$0xf]  ;;  %8916 = vst [vmem:[#allocation3_spill] sm:$0xff] %v7666_v15  ;;  %v5188_v62 = vrot.slane %v7447_v20, 9 }
  0xb0   : > { %5940 = vmatprep.subr.bf16.mxu1 %v6632_v39 }
  0xb3   : > { %5941 = vmatpush3.bf16.msra.mxu1 %v6632_v39  ;;  %v1285_v39 = vrot.slane %v7430_v29, 5  ;;  %v5176_v29 = vcombine.low %v7319_v50, %v7324_v46  ;;  %v5497_v50 = vcombine.low %v7639_v22, %v7642_v7  ;;  %v5187_v46 = vrot.slane %v7427_v35, 9 }
  0xb4   : > { %5974 = vmatprep.subr.bf16.mxu1 %v7572_v48  ;;  %v5178_v35 = vcombine.low %v7372_v14, %v7380_v34  ;;  %v5193_v14 = vrot.slane %v7531_v41, 9 }
  0xb5   : > { %6135 = vmatmul.mubr.bf16.vlgmr.msra.gmra.mrb[0].mxu0 %v5492_v59  ;;  %v1287_v2 = vrot.slane %v1285_v39, 4  ;;  %v1292_v59 = vrot.slane %v7450_v3, 5  ;;  %v7709_v6 = vsel %vm7217_vm5, %v5187_v46, %v1285_v39 }
  0xb6   : > { %5911 = vmatmul.mubr.bf16.gmra.mrb[16].mxu1 %v5172_v33  ;;  %6167 = vmatpush3.bf16.msra.mxu0 %v7400_v52  ;;  %v1295_v52 = vrot.slane %v7613_v5, 5  ;;  %v7669_v33 = vld [vmem:[%s6905_s16 + $0x7c] sm:$0xf] }
  0xb7   : > { %5914 = vmatprep.mubr.bf16.mxu1 %v5173_v25  ;;  %6138 = vmatprep.mubr.bf16.mxu0 %v5493_v8  ;;  %v7654_v25 = vld [vmem:[%s6905_s16 + $0x6c] sm:$0xf]  ;;  %v7657_v8 = vld [vmem:[%s6905_s16 + $0x70] sm:$0xf]  ;;  %v5499_v44 = vcombine.low %v7666_v15, %v7669_v33  ;;  %v7715_v20 = vsel %vm7217_vm5, %v1287_v2, %v1288_v47  ;;  %v1294_v32 = vrot.slane %v1292_v59, 4  ;;  %v1306_v47 = vrot.slane %v7493_v63, 5 }
  0xb8   : > { %6168 = vmatprep.subr.bf16.mxu0 %v6622_v36  ;;  %8915 = vst [vmem:[#allocation2_spill] sm:$0xff] %v7654_v25  ;;  %v5498_v3 = vcombine.low %v7654_v25, %v7657_v8  ;;  %v7731_v2 = vsel %vm7217_vm5, %v5188_v62, %v1292_v59  ;;  %v5219_v46 = vcombine.low %v7709_v6, %v7715_v20  ;;  %v5189_v63 = vrot.slane %v7459_v28, 9  ;;  %v7751_v59 = vld [vmem:[%s6905_s16 + $0x9c] sm:$0xf]  ;;  %v6646_v28 = vld [vmem:[%s8893_s1 + $0x1f0] sm:$0xff]  }
  0xb9   : > { %v7744_v62 = vsel %vm7217_vm5, %v1294_v32, %v1295_v52  ;;  %v5190_v6 = vrot.slane %v7490_v57, 9  ;;  %v1308_v52 = vrot.slane %v1306_v47, 4  ;;  %v6696_v32 = vld [vmem:[%s6905_s16 + $0x2c] sm:$0x1]  ;;  %v7759_v20 = vld [vmem:[%s6905_s16 + $0xa0] sm:$0xf] }
  0xba   : > { %6169 = vmatpush3.bf16.msra.mxu0 %v6622_v36  ;;  %v1299_v36 = vrot.slane %v7462_v0, 5  ;;  %v5191_v57 = vrot.slane %v7498_v12, 9  ;;  %v1327_v12 = vrot.slane %v7534_v56, 5  ;;  %v6705_v15 = vld [vmem:[%s6905_s16 + $0x68] sm:$0x1] }
  0xbb   : > { %6170 = vmatprep.subr.bf16.mxu0 %v6628_v16  ;;  %v1344_v25 = vrot.slane %v6705_v15, 5 }
  0xbc   : > { %v7769_v5 = vsel %vm7217_vm5, %v5189_v63, %v1299_v36  ;;  %v7791_v63 = vld [vmem:[%s6905_s16 + $0xac] sm:$0xf]  ;;  %v1329_v34 = vrot.slane %v1327_v12, 4 }
  0xbd   : > { %6139 = vmatmul.mubr.bf16.gmra.mrb[4].mxu0 %v5494_v30  ;;  %v5496_v30 = vcombine.low %v7622_v42, %v7625_v24 }
  0xbe   : > { %5915 = vmatmul.mubr.bf16.gmra.mrb[20].mxu1 %v5174_v9  ;;  %6142 = vmatprep.mubr.bf16.mxu0 %v5495_v27  ;;  %v7684_v9 = vld [vmem:[%s6905_s16 + $0x88] sm:$0xf] }
  0xbf   : > { %5918 = vmatprep.mubr.bf16.mxu1 %v5175_v61  ;;  %6171 = vmatpush3.bf16.msra.mxu0 %v6628_v16  ;;  %v7681_v61 = vld [vmem:[%s6905_s16 + $0x84] sm:$0xf]  ;;  %8918 = vst [vmem:[#allocation5_spill] sm:$0xff] %v7684_v9 }
  0xc0   : > { %6172 = vmatprep.subr.bf16.mxu0 %v6634_v10  ;;  %8917 = vst [vmem:[#allocation4_spill] sm:$0xff] %v7681_v61  ;;  %v6638_v16 = vld [vmem:[%s8893_s1 + $0x1e0] sm:$0xff]   ;;  %v5500_v39 = vcombine.low %v7681_v61, %v7684_v9 }
  0xc3   : > { %6173 = vmatpush3.bf16.msra.mxu0 %v6634_v10  ;;  %v1313_v10 = vrot.slane %v7501_v23, 5  ;;  %v7861_v23 = vld [vmem:[%s6905_s16 + $0xcc] sm:$0xf] }
  0xc4   : > { %6174 = vmatprep.subr.bf16.mxu0 %v6638_v16 }
  0xc5   : > { %6143 = vmatmul.mubr.bf16.gmra.mrb[8].mxu0 %v5496_v30  ;;  %v1315_v0 = vrot.slane %v1313_v10, 4  ;;  %v6697_v30 = vld [vmem:[%s6905_s16 + $0x38] sm:$0x1] }
  0xc6   : > { %5919 = vmatmul.mubr.bf16.gmra.mrb[24].mxu1 %v5176_v29  ;;  %6146 = vmatprep.mubr.bf16.mxu0 %v5497_v50  ;;  %v1301_v29 = vrot.slane %v1299_v36, 4  ;;  %v6695_v50 = vld [vmem:[%s6905_s16 + $0x20] sm:$0x1]  ;;  %v1316_v55 = vrot.slane %v6697_v30, 5  ;;  %v6650_v30 = vld [vmem:[%s8893_s1 + $0x1f8] sm:$0xff]  }
  0xc7   : > { %5922 = vmatprep.mubr.bf16.mxu1 %v5177_v13  ;;  %6175 = vmatpush3.bf16.msra.mxu0 %v6638_v16  ;;  %v1302_v27 = vrot.slane %v6695_v50, 5  ;;  %v1309_v16 = vrot.slane %v6696_v32, 5  ;;  %v1320_v50 = vrot.slane %v7526_v11, 5  ;;  %v7776_v11 = vld [vmem:[%s6905_s16 + $0xa8] sm:$0xf]  ;;  %v7784_v13 = vsel %vm7217_vm5, %v5190_v6, %v1306_v47 }
  0xc8   : > { %6176 = vmatprep.subr.bf16.mxu0 %v6642_v60  ;;  %v5192_v47 = vrot.slane %v7523_v43, 9  ;;  %v7806_v36 = vld [vmem:[%s6905_s16 + $0xb8] sm:$0xf]  ;;  %v6701_v43 = vld [vmem:[%s6905_s16 + $0x64] sm:$0xf] }
  0xc9   : > { %v7773_v32 = vsel %vm7217_vm5, %v1301_v29, %v1302_v27  ;;  %v7794_v29 = vld [vmem:[%s6905_s16 + $0xb4] sm:$0xf]  ;;  %v7801_v56 = vsel %vm7217_vm5, %v1308_v52, %v1309_v16  ;;  %v1322_v6 = vrot.slane %v1320_v50, 4  ;;  %v6698_v27 = vld [vmem:[%s6905_s16 + $0x44] sm:$0x1]  ;;  %v7819_v52 = vsel %vm7217_vm5, %v5191_v57, %v1313_v10 }
  0xca   : > { %v7823_v16 = vsel %vm7217_vm5, %v1315_v0, %v1316_v55  ;;  %v3695_v10 = vshll.u32 %v7549_v1, 16  ;;  %v7848_v57 = vsel %vm7217_vm5, %v5192_v47, %v1320_v50  ;;  %v1341_v41 = vrot.slane %v6701_v43, 5  ;;  %v7876_v43 = vld [vmem:[%s6905_s16 + $0xd0] sm:$0xf] }
  0xcb   : > { %6177 = vmatpush3.bf16.msra.mxu0 %v6642_v60  ;;  %v1323_v60 = vrot.slane %v6698_v27, 5  ;;  %v7826_v27 = vld [vmem:[%s6905_s16 + $0xc0] sm:$0xf]  ;;  %v3688_v50 = vrot.slane %v3686_v45, 4  ;;  %v7869_v47 = vsel %vm7217_vm5, %v5193_v14, %v1327_v12  ;;  %v6640_v45 = vld [vmem:[%s8893_s1 + $0xc8] sm:$0xff]  }
  0xcc   : > { %6178 = vmatprep.subr.bf16.mxu0 %v6646_v28  ;;  %v7881_v55 = vrot.slane %v3695_v10, 5  ;;  %v6702_v12 = vld [vmem:[%s6905_s16 + $0x54] sm:$0xf]  ;;  %v5195_v10 = vrot.slane %v6704_v40, 9  ;;  %v1343_v0 = vrot.slane %v1341_v41, 4 }
  0xcd   : > { %6147 = vmatmul.mubr.bf16.gmra.mrb[12].mxu0 %v5498_v3  ;;  %v5221_v3 = vcombine.low %v7769_v5, %v7773_v32  ;;  %v7831_v5 = vld [vmem:[%s6905_s16 + $0xc4] sm:$0xf]  ;;  %v7852_v32 = vsel %vm7217_vm5, %v1322_v6, %v1323_v60  ;;  %v3691_v60 = vrot.slane %v3689_v49, 5  ;;  %v5194_v14 = vrot.slane %v6702_v12, 9 }
  0xce   : > { %5923 = vmatmul.mubr.bf16.gmra.mrb[28].mxu1 %v5178_v35  ;;  %6150 = vmatprep.mubr.bf16.mxu0 %v5499_v44  ;;  %v6699_v44 = vld [vmem:[%s6905_s16 + $0x50] sm:$0x1]  ;;  %v8923_v12 = vcombine.low %v7731_v2, %v7744_v62  ;;  %v3702_v15 = vor.u32 %v3701_v38, %v7881_v55  ;;  %v8926_v49 = vshll.u32 %v7564_v19, 16  ;;  %v8928_v38 = vshrl.u32 %v7567_v31, 16 }
  0xcf   : > { %5942 = vmatprep.mubr.bf16.mxu1 %v5219_v46  ;;  %6179 = vmatpush3.bf16.msra.mxu0 %v6646_v28  ;;  %v1330_v35 = vrot.slane %v6699_v44, 5  ;;  %v7844_v28 = vld [vmem:[%s8893_s1 + $0x200] sm:$0xff]   ;;  %v6700_v44 = vld [vmem:[%s6905_s16 + $0x58] sm:$0xf]  ;;  %v3692_v40 = vor.u32 %v3691_v60, %v3688_v50  ;;  %v6706_v2 = vld [vmem:[%s6905_s16 + $0x70] sm:$0xf] }
  0xd0   : > { %6180 = vmatprep.subr.bf16.mxu0 %v6650_v30  ;;  %8921 = vst [vmem:[#allocation8_spill] sm:$0xff] %v7844_v28  ;;  %v1334_v46 = vrot.slane %v6700_v44, 5  ;;  %v7879_v44 = vld [vmem:[%s6905_s16 + $0x20] sm:$0x1]  ;;  %v1348_v62 = vrot.slane %v6706_v2, 5  ;;  %v6644_v50 = vld [vmem:[%s8893_s1 + $0xd0] sm:$0xff]  }
  0xd1   : > { %v7873_v6 = vsel %vm7217_vm5, %v1329_v34, %v1330_v35  ;;  %8922 = vst [vmem:[#allocation9_spill] sm:$0xff] %v7879_v44  ;;  %v6703_v34 = vld [vmem:[%s6905_s16 + $0x5c] sm:$0x1]  ;;  %v3705_v61 = vshll.u32 %v7879_v44, 16  ;;  %v3725_v2 = vrot.slane %v8928_v38, 4  ;;  %v3693_v44 = vrot.slane %v3692_v40, 4 }
  0xd2   : > { %v1337_v35 = vrot.slane %v6703_v34, 5  ;;  %v1336_v1 = vrot.slane %v1334_v46, 4  ;;  %v8924_v34 = vcombine.low %v7719_v26, %v7726_v4  ;;  %v3715_v26 = vrot.slane %v8926_v49, 5  ;;  %v6709_v38 = vld [vmem:[%s6905_s16 + $0x74] sm:$0x1] }
  0xd3   : > { %6181 = vmatpush3.bf16.msra.mxu0 %v6650_v30  ;;  %v3719_v30 = vshll.u32 %v7567_v31, 16  ;;  %v3707_v31 = vrot.slane %v3705_v61, 5  ;;  %v3743_v4 = vshll.u32 %v7578_v51, 16 }
  0xd4   : > { %6214 = vmatprep.subr.bf16.mxu0 %v7844_v28  ;;  %v7934_v49 = vsel %vm7217_vm5, %v1336_v1, %v1337_v35  ;;  %v3703_v35 = vrot.slane %v3702_v15, 4  ;;  %v1350_v1 = vrot.slane %v1348_v62, 4 }
  0xd5   : > { %6151 = vmatmul.mubr.bf16.gmra.mrb[16].mxu0 %v5500_v39  ;;  %v7927_v60 = vrot.slane %v3719_v30, 5  ;;  %v7938_v39 = vsel %vm7217_vm5, %v5195_v10, %v1341_v41  ;;  %v6710_v10 = vld [vmem:[%s6905_s16 + $0x78] sm:$0xf]  ;;  %v7978_v15 = vrot.slane %v3743_v4, 5 }
  0xd6   : > { %5943 = vmatmul.mubr.bf16.vlgmr.msra.gmra.mrb[0].mxu1 %v8923_v12  ;;  %6154 = vmatprep.mubr.bf16.mxu0 %v8924_v34  ;;  %v8925_v12 = vshrl.u32 %v7564_v19, 16  ;;  %v5197_v61 = vrot.slane %v6710_v10, 9  ;;  %v8932_v10 = vcombine.low %v7784_v13, %v7801_v56  ;;  %v8935_v13 = vcombine.low %v7819_v52, %v7823_v16 }
  0xd7   : > { %5975 = vmatpush3.bf16.msra.mxu1 %v7572_v48  ;;  %5946 = vmatprep.mubr.bf16.mxu1 %v5221_v3  ;;  %v7922_v48 = vsel %vm7217_vm5, %v5194_v14, %v1334_v46  ;;  %v7925_v3 = vld [vmem:[%s6905_s16 + $0x2c] sm:$0x1]  ;;  %v7942_v46 = vsel %vm7217_vm5, %v1343_v0, %v1344_v25  ;;  %v6648_v25 = vld [vmem:[%s8893_s1 + $0xd8] sm:$0xff]   ;;  %v3726_v0 = vor.u32 %v3725_v2, %v7927_v60  ;;  %v8931_v2 = vshll.u32 %v7575_v54, 16 }
  0xd8   : > { %v3712_v34 = vrot.slane %v8925_v12, 4  ;;  %5976 = vmatprep.subr.bf16.mxu1 %v6640_v45  ;;  %8927 = vst [vmem:[#allocation10_spill] sm:$0xff] %v7925_v3  ;;  %v6707_v12 = vld [vmem:[%s6905_s16 + $0x7c] sm:$0xf]  ;;  %v6708_v14 = vld [vmem:[%s6905_s16 + $0x6c] sm:$0xf]  ;;  %v3698_v56 = vsel %vm6941_vm2, %v3693_v44, %v7881_v55 }
  0xd9   : > { %v1355_v19 = vrot.slane %v6707_v12, 5  ;;  %v5196_v30 = vrot.slane %v6708_v14, 9  ;;  %v1351_v12 = vrot.slane %v6709_v38, 5  ;;  %v3729_v41 = vshll.u32 %v7925_v3, 16  ;;  %v6711_v14 = vld [vmem:[%s6905_s16 + $0x80] sm:$0x1] }
  0xda   : > { %v3716_v9 = vor.u32 %v3715_v26, %v3712_v34  ;;  %v1358_v38 = vrot.slane %v6711_v14, 5  ;;  %v8930_v34 = vshrl.u32 %v7575_v54, 16  ;;  %v3739_v28 = vrot.slane %v8931_v2, 5  ;;  %v7976_v26 = vld [vmem:[%s6905_s16 + $0x38] sm:$0x1] }
  0xdb   : > { %5977 = vmatpush3.bf16.msra.mxu1 %v6640_v45  ;;  %v1357_v40 = vrot.slane %v1355_v19, 4  ;;  %v8929_v45 = vcombine.low %v7751_v59, %v7759_v20  ;;  %v8933_v14 = vcombine.low %v7776_v11, %v7791_v63  ;;  %v3767_v2 = vshll.u32 %v7600_v17, 16 }
  0xdc   : > { %5978 = vmatprep.subr.bf16.mxu1 %v6644_v50  ;;  %v3736_v3 = vrot.slane %v8930_v34, 4  ;;  %v8934_v34 = vshrl.u32 %v7578_v51, 16  ;;  %v7993_v4 = vsel %vm7217_vm5, %v1350_v1, %v1351_v12  ;;  %v3717_v51 = vrot.slane %v3716_v9, 4 }
  0xdd   : > { %6155 = vmatmul.mubr.bf16.gmra.mrb[20].mxu0 %v8929_v45  ;;  %v7973_v45 = vsel %vm7217_vm5, %v5196_v30, %v1348_v62  ;;  %v3708_v62 = vsel %vm6941_vm2, %v3703_v35, %v3707_v31  ;;  %v6651_v30 = vld [vmem:[%s8893_s1 + $0xe0] sm:$0xff]   ;;  %v3727_v52 = vrot.slane %v3726_v0, 4  ;;  %v3731_v16 = vrot.slane %v3729_v41, 5  ;;  %v6712_v31 = vld [vmem:[%s6905_s16 + $0x88] sm:$0xf] }
  0xde   : > { %5947 = vmatmul.mubr.bf16.gmra.mrb[4].mxu1 %v8932_v10  ;;  %6158 = vmatprep.mubr.bf16.mxu0 %v8933_v14  ;;  %v3749_v54 = vrot.slane %v8934_v34, 4  ;;  %v8004_v55 = vsel %vm7217_vm5, %v1357_v40, %v1358_v38  ;;  %v3740_v44 = vor.u32 %v3739_v28, %v3736_v3  ;;  %v3753_v9 = vshll.u32 %v7976_v26, 16  ;;  %v6713_v14 = vld [vmem:[%s6905_s16 + $0x84] sm:$0xf] }
  0xdf   : > { %5950 = vmatprep.mubr.bf16.mxu1 %v8935_v13  ;;  %5979 = vmatpush3.bf16.msra.mxu1 %v6644_v50  ;;  %v8000_v50 = vsel %vm7217_vm5, %v5197_v61, %v1355_v19  ;;  %v1362_v12 = vrot.slane %v6712_v31, 5  ;;  %v8936_v35 = vshrl.u32 %v7597_v58, 16  ;;  %v8937_v0 = vshll.u32 %v7597_v58, 16  ;;  %v8026_v58 = vld [vmem:[%s6905_s16 + $0x44] sm:$0x1] }
  0xe0   : > { %5980 = vmatprep.subr.bf16.mxu1 %v6648_v25  ;;  %v3750_v41 = vor.u32 %v3749_v54, %v7978_v15  ;;  %v8013_v61 = vrot.slane %v3767_v2, 5  ;;  %v8938_v40 = vshrl.u32 %v7600_v17, 16  ;;  %v8017_v28 = vcombine.low %v3698_v56, %v3708_v62  ;;  %v6653_v54 = vld [vmem:[%s8893_s1 + $0xe8] sm:$0xff]   ;;  %v6714_v2 = vld [vmem:[%s6905_s16 + $0x94] sm:$0xf] }
  0xe1   : > { %v3760_v1 = vrot.slane %v8936_v35, 4  ;;  %v3763_v19 = vrot.slane %v8937_v0, 5  ;;  %v5228_v3 = vcombine.low %v7973_v45, %v7993_v4  ;;  %v3722_v10 = vsel %vm6941_vm2, %v3717_v51, %v7927_v60  ;;  %v8191_v45 = vld [vmem:[%s6905_s16 + $0x74] sm:$0x1] }
  0xe2   : > { %v3773_v38 = vrot.slane %v8938_v40, 4  ;;  %v5198_v34 = vrot.slane %v6713_v14, 9  ;;  %v3732_v17 = vsel %vm6941_vm2, %v3727_v52, %v3731_v16  ;;  %v1369_v13 = vrot.slane %v6714_v2, 5  ;;  %v6715_v52 = vld [vmem:[%s6905_s16 + $0x8c] sm:$0x1] }
  0xe3   : > { %5981 = vmatpush3.bf16.msra.mxu1 %v6648_v25  ;;  %v5229_v25 = vcombine.low %v8000_v50, %v8004_v55  ;;  %v3791_v56 = vshll.u32 %v7606_v18, 16  ;;  %v8939_v60 = vcombine.low %v7794_v29, %v7806_v36  ;;  %v3741_v62 = vrot.slane %v3740_v44, 4 }
  0xe4   : > { %5982 = vmatprep.subr.bf16.mxu1 %v6651_v30  ;;  %v3755_v51 = vrot.slane %v3753_v9, 5  ;;  %v1364_v31 = vrot.slane %v1362_v12, 4  ;;  %v1365_v16 = vrot.slane %v6715_v52, 5  ;;  %v8940_v35 = vcombine.low %v7848_v57, %v7852_v32  ;;  %v6716_v57 = vld [vmem:[%s6905_s16 + $0x90] sm:$0xf] }
  0xe5   : > { %6159 = vmatmul.mubr.bf16.gmra.mrb[24].mxu0 %v8939_v60  ;;  %v8941_v0 = vcombine.low %v7826_v27, %v7831_v5  ;;  %v3751_v40 = vrot.slane %v3750_v41, 4  ;;  %v3764_v14 = vor.u32 %v3763_v19, %v3760_v1  ;;  %v3774_v2 = vor.u32 %v3773_v38, %v8013_v61  ;;  %v6655_v1 = vld [vmem:[%s8893_s1 + $0xf0] sm:$0xff]   ;;  %v6717_v38 = vld [vmem:[%s6905_s16 + $0x98] sm:$0x1] }
  0xe6   : > { %5951 = vmatmul.mubr.bf16.gmra.mrb[8].mxu1 %v8940_v35  ;;  %v3777_v44 = vshll.u32 %v8026_v58, 16  ;;  %v8942_v9 = vcombine.low %v7869_v47, %v7873_v6  ;;  %v8052_v60 = vcombine.low %v3722_v10, %v3732_v17  ;;  %v5199_v32 = vrot.slane %v6716_v57, 9  ;;  %v8064_v6 = vld [vmem:[%s6905_s16 + $0x50] sm:$0x1] }
  0xe7   : > { %6162 = vmatprep.mubr.bf16.mxu0 %v8941_v0  ;;  %5983 = vmatpush3.bf16.msra.mxu1 %v6651_v30  ;;  %v8943_v52 = vshrl.u32 %v7603_v21, 16  ;;  %v8944_v41 = vshll.u32 %v7603_v21, 16  ;;  %v1371_v19 = vrot.slane %v1369_v13, 4  ;;  %v1372_v47 = vrot.slane %v6717_v38, 5 }
  0xe8   : > { %5954 = vmatprep.mubr.bf16.mxu1 %v8942_v9  ;;  %5984 = vmatprep.subr.bf16.mxu1 %v6653_v54  ;;  %v8066_v30 = vrot.slane %v3791_v56, 5  ;;  %v8945_v10 = vshrl.u32 %v7606_v18, 16  ;;  %v3746_v21 = vsel %vm6941_vm2, %v3741_v62, %v7978_v15  ;;  %v8075_v9 = vsel %vm7217_vm5, %v5198_v34, %v1362_v12  ;;  %v6718_v62 = vld [vmem:[%s6905_s16 + $0xa0] sm:$0xf] }
  0xe9   : > { %v3784_v35 = vrot.slane %v8943_v52, 4  ;;  %v3787_v0 = vrot.slane %v8944_v41, 5  ;;  %v8079_v57 = vsel %vm7217_vm5, %v1364_v31, %v1365_v16  ;;  %v3815_v52 = vshll.u32 %v7625_v24, 16 }
  0xea   : > { %v3797_v17 = vrot.slane %v8945_v10, 4  ;;  %v3756_v56 = vsel %vm6941_vm2, %v3751_v40, %v3755_v51  ;;  %v3765_v41 = vrot.slane %v3764_v14, 4  ;;  %v3775_v18 = vrot.slane %v3774_v2, 4 }
  0xeb   : > { %v3779_v38 = vrot.slane %v3777_v44, 5  ;;  %5985 = vmatpush3.bf16.msra.mxu1 %v6653_v54  ;;  %v8086_v15 = vsel %vm7217_vm5, %v5199_v32, %v1369_v13  ;;  %v3788_v12 = vor.u32 %v3787_v0, %v3784_v35  ;;  %v3801_v34 = vshll.u32 %v8064_v6, 16  ;;  %v6657_v13 = vld [vmem:[%s8893_s1 + $0xf8] sm:$0xff]  }
  0xec   : > { %v1376_v31 = vrot.slane %v6718_v62, 5  ;;  %v8092_v16 = vsel %vm7217_vm5, %v1371_v19, %v1372_v47  ;;  %v3798_v51 = vor.u32 %v3797_v17, %v8066_v30  ;;  %5986 = vmatprep.subr.bf16.mxu1 %v6655_v1  ;;  %v8946_v40 = vshrl.u32 %v7622_v42, 16  ;;  %v6719_v35 = vld [vmem:[%s6905_s16 + $0x9c] sm:$0xf] }
  0xed   : > { %v8947_v14 = vshll.u32 %v7622_v42, 16  ;;  %v8948_v44 = vcombine.low %v7861_v23, %v7876_v43  ;;  %v5230_v32 = vcombine.low %v8075_v9, %v8079_v57  ;;  %v5200_v0 = vrot.slane %v6719_v35, 9  ;;  %v8109_v19 = vld [vmem:[%s6905_s16 + $0x5c] sm:$0x1]  ;;  %v8966_v57 = vld [vmem:[#allocation4_spill] sm:$0xff] }
  0xee   : > { %v3808_v54 = vrot.slane %v8946_v40, 4  ;;  %v8111_v47 = vrot.slane %v3815_v52, 5  ;;  %v8949_v42 = vshrl.u32 %v7625_v24, 16  ;;  %v8950_v17 = vcombine.low %v7922_v48, %v7934_v49 }
  0xef   : > { %v3811_v2 = vrot.slane %v8947_v14, 5  ;;  %6163 = vmatmul.mubr.bf16.gmra.mrb[28].mxu0 %v8948_v44  ;;  %v5533_v62 = vcombine.low %v3746_v21, %v3756_v56  ;;  %v3770_v40 = vsel %vm6941_vm2, %v3765_v41, %v8013_v61  ;;  %v3780_v14 = vsel %vm6941_vm2, %v3775_v18, %v3779_v38  ;;  %v6720_v21 = vld [vmem:[%s6905_s16 + $0xa4] sm:$0x1]  ;;  %5987 = vmatpush3.bf16.msra.mxu1 %v6655_v1 }
  0xf0   : > { %v3821_v10 = vrot.slane %v8949_v42, 4  ;;  %5955 = vmatmul.mubr.bf16.gmra.mrb[12].mxu1 %v8950_v17  ;;  %6182 = vmatprep.mubr.bf16.mxu0 %v8017_v28  ;;  %v3839_v52 = vshll.u32 %v7642_v7, 16  ;;  %v8951_v24 = vcombine.low %v7938_v39, %v7942_v46  ;;  %v5231_v48 = vcombine.low %v8086_v15, %v8092_v16  ;;  %v8141_v42 = vld [vmem:[%s6905_s16 + $0x68] sm:$0x1] }
  0xf1   : > { %v3789_v49 = vrot.slane %v3788_v12, 4  ;;  %v1378_v28 = vrot.slane %v1376_v31, 4  ;;  %v1379_v56 = vrot.slane %v6720_v21, 5  ;;  %v3799_v61 = vrot.slane %v3798_v51, 4  ;;  %5988 = vmatprep.subr.bf16.mxu1 %v6657_v13  ;;  %v6721_v12 = vld [vmem:[%s6905_s16 + $0xac] sm:$0xf] }
  0xf2   : > { %5958 = vmatprep.mubr.bf16.mxu1 %v8951_v24  ;;  %v3803_v41 = vrot.slane %v3801_v34, 5  ;;  %v3812_v18 = vor.u32 %v3811_v2, %v3808_v54  ;;  %v3825_v38 = vshll.u32 %v8109_v19, 16  ;;  %v8132_v44 = vcombine.low %v3770_v40, %v3780_v14 }
  0xf3   : > { %v8136_v39 = vsel %vm7217_vm5, %v5200_v0, %v1376_v31  ;;  %v3822_v46 = vor.u32 %v3821_v10, %v8111_v47  ;;  %v1383_v35 = vrot.slane %v6721_v12, 5  ;;  %v8952_v1 = vshrl.u32 %v7639_v22, 16  ;;  %v6722_v10 = vld [vmem:[%s6905_s16 + $0xa8] sm:$0xf]  ;;  %5989 = vmatpush3.bf16.msra.mxu1 %v6657_v13 }
  0xf4   : > { %v8953_v51 = vshll.u32 %v7639_v22, 16  ;;  %v8147_v2 = vrot.slane %v3839_v52, 5  ;;  %v8954_v17 = vshrl.u32 %v7642_v7, 16  ;;  %v3794_v31 = vsel %vm6941_vm2, %v3789_v49, %v8066_v30  ;;  %v6654_v22 = vld [vmem:[%s8893_s1 + $0x208] sm:$0xff]   ;;  %v8169_v49 = vld [vmem:[%s8893_s1 + $0x100] sm:$0xff]  }
  0xf5   : > { %v3832_v34 = vrot.slane %v8952_v1, 4  ;;  %v8156_v0 = vsel %vm7217_vm5, %v1378_v28, %v1379_v56  ;;  %v5201_v14 = vrot.slane %v6722_v10, 9  ;;  %v3863_v24 = vshll.u32 %v7657_v8, 16  ;;  %6262 = vmatprep.subr.bf16.mxu1 %v8169_v49  ;;  %v6724_v56 = vld [vmem:[%s6905_s16 + $0xb0] sm:$0x1] }
  0xf6   : > { %v3835_v54 = vrot.slane %v8953_v51, 5  ;;  %v3845_v40 = vrot.slane %v8954_v17, 4  ;;  %v3804_v7 = vsel %vm6941_vm2, %v3799_v61, %v3803_v41  ;;  %v3813_v52 = vrot.slane %v3812_v18, 4  ;;  %v8955_v41 = vld [vmem:[#allocation8_spill] sm:$0xff] }
  0xf7   : > { %v3827_v21 = vrot.slane %v3825_v38, 5  ;;  %v3887_v30 = vshll.u32 %v7669_v33, 16  ;;  %6183 = vmatmul.mubr.bf16.vlgmr.msra.gmra.mrb[0].mxu0 %v8052_v60  ;;  %v3823_v13 = vrot.slane %v3822_v46, 4  ;;  %v1385_v28 = vrot.slane %v1383_v35, 4  ;;  %v6656_v18 = vld [vmem:[%s8893_s1 + $0x210] sm:$0xff]   ;;  %v8956_v60 = vld [vmem:[#allocation2_spill] sm:$0xff] }
  0xf8   : > { %v1386_v12 = vrot.slane %v6724_v56, 5  ;;  %v3849_v61 = vshll.u32 %v8141_v42, 16  ;;  %5959 = vmatmul.mubr.bf16.gmra.mrb[16].mxu1 %v5228_v3  ;;  %6215 = vmatpush3.bf16.msra.mxu0 %v8955_v41  ;;  %v3836_v38 = vor.u32 %v3835_v54, %v3832_v34  ;;  %v3846_v1 = vor.u32 %v3845_v40, %v8147_v2  ;;  %v8960_v54 = vld [vmem:[#allocation3_spill] sm:$0xff] }
  0xf9   : > { %v8957_v46 = vshrl.u32 %v8956_v60, 16  ;;  %v8958_v17 = vshll.u32 %v8956_v60, 16  ;;  %5962 = vmatprep.mubr.bf16.mxu1 %v5229_v25  ;;  %6186 = vmatprep.mubr.bf16.mxu0 %v5533_v62  ;;  %v8193_v4 = vrot.slane %v3863_v24, 5  ;;  %v8959_v3 = vshrl.u32 %v7657_v8, 16 }
  0xfa   : > { %v8961_v40 = vshrl.u32 %v8960_v54, 16  ;;  %v8962_v41 = vshll.u32 %v8960_v54, 16  ;;  %6216 = vmatprep.subr.bf16.mxu0 %v6654_v22  ;;  %v5232_v50 = vcombine.low %v8136_v39, %v8156_v0  ;;  %v8203_v55 = vrot.slane %v3887_v30, 5 }
  0xfb   : > { %v3856_v51 = vrot.slane %v8957_v46, 4  ;;  %v3859_v10 = vrot.slane %v8958_v17, 5  ;;  %v3869_v34 = vrot.slane %v8959_v3, 4  ;;  %v5535_v46 = vcombine.low %v3794_v31, %v3804_v7  ;;  %v6725_v3 = vld [vmem:[%s6905_s16 + $0xb8] sm:$0xf] }
  0xfc   : > { %v3880_v56 = vrot.slane %v8961_v40, 4  ;;  %v3883_v60 = vrot.slane %v8962_v41, 5  ;;  %v8963_v25 = vshrl.u32 %v7669_v33, 16  ;;  %v3818_v8 = vsel %vm6941_vm2, %v3813_v52, %v8111_v47  ;;  %v8214_v31 = vld [vmem:[%s6905_s16 + $0x80] sm:$0x1]  ;;  %6217 = vmatpush3.bf16.msra.mxu0 %v6654_v22 }
  0xfd   : > { %v3828_v24 = vsel %vm6941_vm2, %v3823_v13, %v3827_v21  ;;  %v3851_v17 = vrot.slane %v3849_v61, 5  ;;  %v1390_v54 = vrot.slane %v6725_v3, 5  ;;  %v3837_v7 = vrot.slane %v3836_v38, 4  ;;  %6218 = vmatprep.subr.bf16.mxu0 %v6656_v18  ;;  %v6726_v61 = vld [vmem:[%s6905_s16 + $0xb4] sm:$0xf]  ;;  %v6658_v38 = vld [vmem:[%s8893_s1 + $0x218] sm:$0xff]  }
  0xfe   : > { %v3893_v62 = vrot.slane %v8963_v25, 4  ;;  %v3847_v30 = vrot.slane %v3846_v1, 4  ;;  %v3860_v40 = vor.u32 %v3859_v10, %v3856_v51  ;;  %v3873_v33 = vshll.u32 %v8191_v45, 16  ;;  %v8964_v10 = vld [vmem:[#allocation5_spill] sm:$0xff] }
  0xff   : > { %v8219_v47 = vsel %vm7217_vm5, %v5201_v14, %v1383_v35  ;;  %v8223_v52 = vsel %vm7217_vm5, %v1385_v28, %v1386_v12  ;;  %v3870_v21 = vor.u32 %v3869_v34, %v8193_v4  ;;  %v3884_v13 = vor.u32 %v3883_v60, %v3880_v56  ;;  %6187 = vmatmul.mubr.bf16.gmra.mrb[4].mxu0 %v8132_v44  ;;  %v6727_v12 = vld [vmem:[%s6905_s16 + $0xbc] sm:$0x1]  ;;  %v8965_v34 = vld [vmem:[#allocation7_spill] sm:$0xff] }
 0x100   : > { %v5202_v22 = vrot.slane %v6726_v61, 9  ;;  %v3894_v1 = vor.u32 %v3893_v62, %v8203_v55  ;;  %v3897_v51 = vshll.u32 %v8214_v31, 16  ;;  %v3911_v35 = vshll.u32 %v8964_v10, 16  ;;  %5963 = vmatmul.mubr.bf16.gmra.mrb[20].mxu1 %v5230_v32  ;;  %6190 = vmatprep.mubr.bf16.mxu0 %v5535_v46 }
 0x101   : > { %v5536_v14 = vcombine.low %v3818_v8, %v3828_v24  ;;  %v1392_v28 = vrot.slane %v1390_v54, 4  ;;  %v1393_v41 = vrot.slane %v6727_v12, 5  ;;  %v3935_v56 = vshll.u32 %v8965_v34, 16  ;;  %5966 = vmatprep.mubr.bf16.mxu1 %v5231_v48  ;;  %6219 = vmatpush3.bf16.msra.mxu0 %v6656_v18  ;;  %v8262_v18 = vld [vmem:[%s6905_s16 + $0x98] sm:$0x1] }
 0x102   : > { %v3842_v60 = vsel %vm6941_vm2, %v3837_v7, %v8147_v2  ;;  %v3852_v25 = vsel %vm6941_vm2, %v3847_v30, %v3851_v17  ;;  %v3861_v44 = vrot.slane %v3860_v40, 4  ;;  %v3875_v62 = vrot.slane %v3873_v33, 5  ;;  %v6661_v2 = vld [vmem:[%s8893_s1 + $0x220] sm:$0xff]   ;;  %6220 = vmatprep.subr.bf16.mxu0 %v6658_v38  ;;  %v8255_v30 = vld [vmem:[%s6905_s16 + $0x8c] sm:$0x1] }
 0x103   : > { %v3871_v8 = vrot.slane %v3870_v21, 4  ;;  %v3885_v9 = vrot.slane %v3884_v13, 4  ;;  %v8967_v32 = vshrl.u32 %v8966_v57, 16  ;;  %v8968_v24 = vshll.u32 %v8966_v57, 16  ;;  %v8970_v40 = vld [vmem:[#allocation6_spill] sm:$0xff] }
 0x104   : > { %v3895_v17 = vrot.slane %v3894_v1, 4  ;;  %v3899_v7 = vrot.slane %v3897_v51, 5  ;;  %v8257_v15 = vrot.slane %v3911_v35, 5  ;;  %v8969_v16 = vshrl.u32 %v8964_v10, 16 }
 0x105   : > { %v3904_v46 = vrot.slane %v8967_v32, 4  ;;  %v3907_v3 = vrot.slane %v8968_v24, 5  ;;  %v8971_v33 = vshrl.u32 %v8970_v40, 16  ;;  %v8972_v13 = vshll.u32 %v8970_v40, 16  ;;  %6221 = vmatpush3.bf16.msra.mxu0 %v6658_v38 }
 0x106   : > { %v3917_v48 = vrot.slane %v8969_v16, 4  ;;  %v8268_v12 = vrot.slane %v3935_v56, 5  ;;  %v8973_v1 = vshrl.u32 %v8965_v34, 16  ;;  %v5233_v35 = vcombine.low %v8219_v47, %v8223_v52  ;;  %6222 = vmatprep.subr.bf16.mxu0 %v6661_v2 }
 0x107   : > { %v3928_v21 = vrot.slane %v8971_v33, 4  ;;  %v3931_v61 = vrot.slane %v8972_v13, 5  ;;  %v5537_v57 = vcombine.low %v3842_v60, %v3852_v25  ;;  %v8276_v10 = vsel %vm7217_vm5, %v5202_v22, %v1390_v54  ;;  %6191 = vmatmul.mubr.bf16.gmra.mrb[8].mxu0 %v5536_v14  ;;  %v8317_v33 = vld [vmem:[%s6905_s16 + $0xa4] sm:$0x1] }
 0x108   : > { %v3941_v51 = vrot.slane %v8973_v1, 4  ;;  %v8280_v32 = vsel %vm7217_vm5, %v1392_v28, %v1393_v41  ;;  %v3866_v56 = vsel %vm6941_vm2, %v3861_v44, %v8193_v4  ;;  %v3876_v34 = vsel %vm6941_vm2, %v3871_v8, %v3875_v62  ;;  %v6664_v4 = vld [vmem:[%s8893_s1 + $0x228] sm:$0xff]   ;;  %5967 = vmatmul.mubr.bf16.gmra.mrb[24].mxu1 %v5232_v50 }
 0x109   : > { %v3908_v24 = vor.u32 %v3907_v3, %v3904_v46  ;;  %v3921_v47 = vshll.u32 %v8255_v30, 16  ;;  %v3890_v54 = vsel %vm6941_vm2, %v3885_v9, %v8203_v55  ;;  %v3900_v52 = vsel %vm6941_vm2, %v3895_v17, %v3899_v7  ;;  %6194 = vmatprep.mubr.bf16.mxu0 %v5537_v57  ;;  %5970 = vmatprep.mubr.bf16.mxu1 %v5233_v35 }
 0x10a   : > { %v3918_v22 = vor.u32 %v3917_v48, %v8257_v15  ;;  %v3945_v28 = vshll.u32 %v8262_v18, 16  ;;  %v3977_v38 = vshll.u32 %v7776_v11, 16  ;;  %v3932_v41 = vor.u32 %v3931_v61, %v3928_v21  ;;  %6223 = vmatpush3.bf16.msra.mxu0 %v6661_v2 }
 0x10b   : > { %v3942_v60 = vor.u32 %v3941_v51, %v8268_v12  ;;  %v3959_v55 = vshll.u32 %v7759_v20, 16  ;;  %v3987_v25 = vshrl.u32 %v7791_v63, 16  ;;  %v3998_v44 = vshrl.u32 %v7794_v29, 16  ;;  %6224 = vmatprep.subr.bf16.mxu0 %v6664_v4 }
 0x10c   : > { %v5234_v62 = vcombine.low %v8276_v10, %v8280_v32  ;;  %v3983_v14 = vshll.u32 %v7791_v63, 16  ;;  %v5538_v8 = vcombine.low %v3866_v56, %v3876_v34  ;;  %v5539_v9 = vcombine.low %v3890_v54, %v3900_v52  ;;  %v6667_v63 = vld [vmem:[%s8893_s1 + $0x230] sm:$0xff]   ;;  %v6728_v56 = vld [vmem:[%s6905_s16 + $0xc] sm:$0xf] }
 0x10d   : > { %v3909_v46 = vrot.slane %v3908_v24, 4  ;;  %v3923_v3 = vrot.slane %v3921_v47, 5  ;;  %v3919_v17 = vrot.slane %v3918_v22, 4  ;;  %v3947_v7 = vrot.slane %v3945_v28, 5  ;;  %v6729_v34 = vld [vmem:[%s6905_s16 + $0x10] sm:$0xf] }
 0x10e   : > { %v8974_v16 = vshrl.u32 %v7751_v59, 16  ;;  %v8975_v39 = vshll.u32 %v7751_v59, 16  ;;  %v3933_v50 = vrot.slane %v3932_v41, 4  ;;  %v3943_v40 = vrot.slane %v3942_v60, 4  ;;  %6225 = vmatpush3.bf16.msra.mxu0 %v6664_v4  ;;  %v8333_v47 = vld [vmem:[%s6905_s16 + $0xb0] sm:$0x1] }
 0x10f   : > { %v8319_v2 = vrot.slane %v3959_v55, 5  ;;  %v8976_v21 = vshrl.u32 %v7759_v20, 16  ;;  %v8977_v59 = vshrl.u32 %v7776_v11, 16  ;;  %v3979_v1 = vrot.slane %v3977_v38, 5  ;;  %6226 = vmatprep.subr.bf16.mxu0 %v6667_v63  ;;  %v6670_v22 = vld [vmem:[%s8893_s1 + $0x238] sm:$0xff]   ;;  %6195 = vmatmul.mubr.bf16.gmra.mrb[12].mxu0 %v5538_v8 }
 0x110   : > { %v3952_v48 = vrot.slane %v8974_v16, 4  ;;  %v3955_v0 = vrot.slane %v8975_v39, 5  ;;  %v8325_v51 = vrot.slane %v3983_v14, 5  ;;  %v3989_v35 = vrot.slane %v3987_v25, 4  ;;  %5971 = vmatmul.mubr.bf16.gmra.mrb[28].mxu1 %v5234_v62  ;;  %6198 = vmatprep.mubr.bf16.mxu0 %v5539_v9  ;;  %v6730_v14 = vld [vmem:[%s6905_s16 + $0x18] sm:$0xf] }
 0x111   : > { %v3965_v13 = vrot.slane %v8976_v21, 4  ;;  %v3976_v61 = vrot.slane %v8977_v59, 4  ;;  %v4001_v57 = vshll.u32 %v7794_v29, 16  ;;  %v4011_v10 = vshrl.u32 %v7806_v36, 16  ;;  %v6731_v8 = vld [vmem:[%s6905_s16 + $0x1c] sm:$0xf] }
 0x112   : > { %v4022_v32 = vshrl.u32 %v7826_v27, 16  ;;  %v5307_v24 = vcombine.low %v6728_v56, %v6729_v34  ;;  %v4025_v20 = vshll.u32 %v7826_v27, 16  ;;  %v3914_v11 = vsel %vm6941_vm2, %v3909_v46, %v8257_v15  ;;  %v6732_v46 = vld [vmem:[%s6905_s16 + $0x24] sm:$0xf]  ;;  %6227 = vmatpush3.bf16.msra.mxu0 %v6667_v63  ;;  %v8365_v63 = vld [vmem:[%s6905_s16 + $0xbc] sm:$0x1] }
 0x113   : > { %v3956_v54 = vor.u32 %v3955_v0, %v3952_v48  ;;  %v3969_v52 = vshll.u32 %v8317_v33, 16  ;;  %v3924_v28 = vsel %vm6941_vm2, %v3919_v17, %v3923_v3  ;;  %v3938_v27 = vsel %vm6941_vm2, %v3933_v50, %v8268_v12  ;;  %v6733_v3 = vld [vmem:[%s6905_s16 + $0x28] sm:$0xf]  ;;  %6228 = vmatprep.subr.bf16.mxu0 %v6670_v22 }
 0x114   : > { %v3948_v15 = vsel %vm6941_vm2, %v3943_v40, %v3947_v7  ;;  %v4007_v4 = vshll.u32 %v7806_v36, 16  ;;  %v3966_v38 = vor.u32 %v3965_v13, %v8319_v2  ;;  %v3980_v41 = vor.u32 %v3979_v1, %v3976_v61  ;;  %5990 = vmatprep.mubr.bf16.mxu1 %v5307_v24 }
 0x115   : > { %v3990_v60 = vor.u32 %v3989_v35, %v8325_v51  ;;  %v3993_v55 = vshll.u32 %v8333_v47, 16  ;;  %v4035_v25 = vshrl.u32 %v7831_v5, 16  ;;  %v5308_v12 = vcombine.low %v6730_v14, %v6731_v8  ;;  %v6737_v8 = vld [vmem:[%s6905_s16 + $0x3c] sm:$0xf] }
 0x116   : > { %v5309_v17 = vcombine.low %v6732_v46, %v6733_v3  ;;  %v4031_v36 = vshll.u32 %v7831_v5, 16  ;;  %v5540_v62 = vcombine.low %v3914_v11, %v3924_v28  ;;  %v5541_v9 = vcombine.low %v3938_v27, %v3948_v15  ;;  %6229 = vmatpush3.bf16.msra.mxu0 %v6670_v22 }
 0x117   : > { %v3957_v7 = vrot.slane %v3956_v54, 4  ;;  %v3971_v16 = vrot.slane %v3969_v52, 5  ;;  %v4000_v48 = vrot.slane %v3998_v44, 4  ;;  %v4003_v39 = vrot.slane %v4001_v57, 5  ;;  %v8372_v57 = vld [vmem:[%s6905_s16 + $0xc8] sm:$0x1] }
 0x118   : > { %v8362_v0 = vrot.slane %v4007_v4, 5  ;;  %v4013_v50 = vrot.slane %v4011_v10, 4  ;;  %v3967_v40 = vrot.slane %v3966_v38, 4  ;;  %v3981_v21 = vrot.slane %v3980_v41, 4  ;;  %6199 = vmatmul.mubr.bf16.gmra.mrb[16].mxu0 %v5540_v62  ;;  %5991 = vmatmul.mubr.bf16.vlgmr.msra.gmra.mrb[0].mxu1 %v5308_v12  ;;  %v6735_v38 = vld [vmem:[%s6905_s16 + $0x30] sm:$0xf] }
 0x119   : > { %v3991_v13 = vrot.slane %v3990_v60, 4  ;;  %v3995_v59 = vrot.slane %v3993_v55, 5  ;;  %v4024_v5 = vrot.slane %v4022_v32, 4  ;;  %v4027_v61 = vrot.slane %v4025_v20, 5  ;;  %6202 = vmatprep.mubr.bf16.mxu0 %v5541_v9  ;;  %6270 = vmatpush3.bf16.msra.mxu1 %v8169_v49  ;;  %v6736_v41 = vld [vmem:[%s6905_s16 + $0x34] sm:$0xf] }
 0x11a   : > { %v8367_v1 = vrot.slane %v4031_v36, 5  ;;  %v4037_v35 = vrot.slane %v4035_v25, 4  ;;  %v4046_v29 = vshrl.u32 %v7861_v23, 16  ;;  %v4049_v44 = vshll.u32 %v7861_v23, 16  ;;  %5994 = vmatprep.mubr.bf16.mxu1 %v5309_v17  ;;  %v6738_v12 = vld [vmem:[%s6905_s16 + $0x40] sm:$0xf] }
 0x11b   : > { %v4059_v10 = vshrl.u32 %v7876_v43, 16  ;;  %v4004_v56 = vor.u32 %v4003_v39, %v4000_v48  ;;  %v4014_v34 = vor.u32 %v4013_v50, %v8362_v0  ;;  %v4017_v24 = vshll.u32 %v8365_v63, 16  ;;  %v8401_v62 = vld [vmem:[%s6905_s16 + $0xd4] sm:$0x1]  ;;  %v6740_v39 = vld [vmem:[%s6905_s16 + $0x1c] sm:$0xf] }
 0x11c   : > { %v3962_v32 = vsel %vm6941_vm2, %v3957_v7, %v8319_v2  ;;  %v3972_v20 = vsel %vm6941_vm2, %v3967_v40, %v3971_v16  ;;  %v3986_v23 = vsel %vm6941_vm2, %v3981_v21, %v8325_v51  ;;  %v4055_v11 = vshll.u32 %v7876_v43, 16  ;;  %v6734_v51 = vld [vmem:[%s8893_s1 + $0x108] sm:$0xff]   ;;  %v6739_v9 = vld [vmem:[%s8893_s1 + $0x110] sm:$0xff]  }
 0x11d   : > { %v3996_v54 = vsel %vm6941_vm2, %v3991_v13, %v3995_v59  ;;  %v4028_v52 = vor.u32 %v4027_v61, %v4024_v5  ;;  %v4038_v2 = vor.u32 %v4037_v35, %v8367_v1  ;;  %v4041_v22 = vshll.u32 %v8372_v57, 16  ;;  %6263 = vmatprep.subr.bf16.mxu1 %v6734_v51  ;;  %v6741_v59 = vld [vmem:[%s6905_s16 + $0x48] sm:$0xf]  ;;  %v6742_v5 = vld [vmem:[%s6905_s16 + $0x4c] sm:$0xf] }
 0x11e   : > { %v4048_v43 = vrot.slane %v4046_v29, 4  ;;  %v4051_v28 = vrot.slane %v4049_v44, 5  ;;  %v5542_v27 = vcombine.low %v3962_v32, %v3972_v20  ;;  %v4005_v49 = vrot.slane %v4004_v56, 4  ;;  %6271 = vmatpush3.bf16.msra.mxu1 %v6734_v51  ;;  %v6743_v29 = vld [vmem:[%s8893_s1 + $0x118] sm:$0xff]   ;;  %v6745_v32 = vld [vmem:[%s6905_s16 + $0x28] sm:$0xf] }
 0x11f   : > { %v4015_v15 = vrot.slane %v4014_v34, 4  ;;  %v4019_v4 = vrot.slane %v4017_v24, 5  ;;  %v5310_v60 = vcombine.low %v6735_v38, %v6736_v41  ;;  %v5543_v55 = vcombine.low %v3986_v23, %v3996_v54  ;;  %6264 = vmatprep.subr.bf16.mxu1 %v6739_v9  ;;  %v8978_v34 = vld [vmem:[#allocation9_spill] sm:$0xff]  ;;  %v6751_v38 = vld [vmem:[%s6905_s16 + $0x24] sm:$0xf] }
 0x120   : > { %v8396_v25 = vrot.slane %v4055_v11, 5  ;;  %v4061_v14 = vrot.slane %v4059_v10, 4  ;;  %v5311_v46 = vcombine.low %v6737_v8, %v6738_v12  ;;  %v4029_v3 = vrot.slane %v4028_v52, 4  ;;  %6203 = vmatmul.mubr.bf16.gmra.mrb[20].mxu0 %v5542_v27  ;;  %v6744_v10 = vld [vmem:[%s6905_s16 + $0x18] sm:$0xf]  ;;  %v8979_v8 = vld [vmem:[#allocation10_spill] sm:$0xff] }
 0x121   : > { %v4039_v17 = vrot.slane %v4038_v2, 4  ;;  %v4043_v36 = vrot.slane %v4041_v22, 5  ;;  %v4052_v7 = vor.u32 %v4051_v28, %v4048_v43  ;;  %v4010_v16 = vsel %vm6941_vm2, %v4005_v49, %v8362_v0  ;;  %5995 = vmatmul.mubr.bf16.gmra.mrb[4].mxu1 %v5310_v60  ;;  %6206 = vmatprep.mubr.bf16.mxu0 %v5543_v55  ;;  %v6746_v52 = vld [vmem:[%s6905_s16 + $0x34] sm:$0xf]  ;;  %v6748_v51 = vld [vmem:[%s6905_s16 + $0x58] sm:$0xf] }
 0x122   : > { %v4020_v48 = vsel %vm6941_vm2, %v4015_v15, %v4019_v4  ;;  %v4409_v50 = vrot.slane %v6740_v39, 5  ;;  %v4062_v40 = vor.u32 %v4061_v14, %v8396_v25  ;;  %v4065_v21 = vshll.u32 %v8401_v62, 16  ;;  %5998 = vmatprep.mubr.bf16.mxu1 %v5311_v46  ;;  %6272 = vmatpush3.bf16.msra.mxu1 %v6739_v9  ;;  %v6747_v22 = vld [vmem:[%s6905_s16 + $0x54] sm:$0xf]  ;;  %v8431_v28 = vld [vmem:[%s6905_s16 + $0x78] sm:$0xf] }
 0x123   : > { %v4034_v13 = vsel %vm6941_vm2, %v4029_v3, %v8367_v1  ;;  %v4044_v0 = vsel %vm6941_vm2, %v4039_v17, %v4043_v36  ;;  %v5312_v61 = vcombine.low %v6741_v59, %v6742_v5  ;;  %v5544_v35 = vcombine.low %v4010_v16, %v4020_v48  ;;  %6265 = vmatprep.subr.bf16.mxu1 %v6743_v29  ;;  %v6750_v4 = vld [vmem:[%s8893_s1 + $0x120] sm:$0xff]   ;;  %v6752_v46 = vld [vmem:[%s6905_s16 + $0x30] sm:$0xf]  ;;  %v8454_v9 = vld [vmem:[%s6905_s16 + $0x7c] sm:$0xf] }
 0x124   : > { %v4053_v44 = vrot.slane %v4052_v7, 4  ;;  %v5555_v56 = vrot.slane %v6744_v10, 9  ;;  %v4411_v1 = vrot.slane %v4409_v50, 4  ;;  %v4412_v24 = vrot.slane %v8978_v34, 5  ;;  %v6754_v48 = vld [vmem:[%s6905_s16 + $0x80] sm:$0x1] }
 0x125   : > { %v4416_v20 = vrot.slane %v6745_v32, 5  ;;  %v5545_v23 = vcombine.low %v4034_v13, %v4044_v0  ;;  %v4063_v11 = vrot.slane %v4062_v40, 4  ;;  %v4067_v54 = vrot.slane %v4065_v21, 5  ;;  %v6755_v21 = vld [vmem:[%s6905_s16 + $0x60] sm:$0xf]  ;;  %v6757_v59 = vld [vmem:[%s8893_s1 + $0x128] sm:$0xff]  }
 0x126   : > { %v4423_v2 = vrot.slane %v6746_v52, 5  ;;  %v5313_v43 = vcombine.low %v6747_v22, %v6748_v51  ;;  %6273 = vmatpush3.bf16.msra.mxu1 %v6743_v29  ;;  %v2340_v27 = vshrl.u32 %v8431_v28, 16  ;;  %v2343_v49 = vshll.u32 %v8431_v28, 16  ;;  %v6756_v13 = vld [vmem:[%s6905_s16 + $0x64] sm:$0xf] }
 0x127   : > { %v4058_v15 = vsel %vm6941_vm2, %v4053_v44, %v8396_v25  ;;  %6266 = vmatprep.subr.bf16.mxu1 %v6750_v4  ;;  %v5556_v41 = vrot.slane %v6751_v38, 9  ;;  %v8444_v60 = vsel %vm7217_vm5, %v5555_v56, %v4409_v50  ;;  %v4413_v55 = vsel %vm7217_vm5, %v4411_v1, %v4412_v24  ;;  %v6758_v29 = vld [vmem:[%s6905_s16 + $0x40] sm:$0xf]  ;;  %v6759_v1 = vld [vmem:[%s6905_s16 + $0x3c] sm:$0xf] }
 0x128   : > { %6207 = vmatmul.mubr.bf16.gmra.mrb[24].mxu0 %v5544_v35  ;;  %v4418_v14 = vrot.slane %v4416_v20, 4  ;;  %v4419_v25 = vrot.slane %v8979_v8, 5  ;;  %v4068_v12 = vsel %vm6941_vm2, %v4063_v11, %v4067_v54  ;;  %v5557_v3 = vrot.slane %v6752_v46, 9  ;;  %v6760_v24 = vld [vmem:[%s6905_s16 + $0x4c] sm:$0xf] }
 0x129   : > { %5999 = vmatmul.mubr.bf16.gmra.mrb[8].mxu1 %v5312_v61  ;;  %6210 = vmatprep.mubr.bf16.mxu0 %v5545_v23  ;;  %v4425_v17 = vrot.slane %v4423_v2, 4  ;;  %v4426_v36 = vrot.slane %v7976_v26, 5  ;;  %v2349_v7 = vshll.u32 %v8454_v9, 16  ;;  %v2353_v16 = vshrl.u32 %v8454_v9, 16  ;;  %v6761_v11 = vld [vmem:[%s6905_s16 + $0x6c] sm:$0xf] }
 0x12a   : > { %v2359_v39 = vshll.u32 %v6754_v48, 16  ;;  %6002 = vmatprep.mubr.bf16.mxu1 %v5313_v43  ;;  %6274 = vmatpush3.bf16.msra.mxu1 %v6750_v4  ;;  %v8459_v50 = vrot.slane %v2340_v27, 4  ;;  %v8461_v40 = vrot.slane %v2343_v49, 5  ;;  %v5314_v26 = vcombine.low %v6755_v21, %v6756_v13  ;;  %v6762_v54 = vld [vmem:[%s6905_s16 + $0x70] sm:$0xf] }
 0x12b   : > { %v5587_v0 = vcombine.low %v8444_v60, %v4413_v55  ;;  %6267 = vmatprep.subr.bf16.mxu1 %v6757_v59  ;;  %v5546_v5 = vcombine.low %v4058_v15, %v4068_v12  ;;  %v8471_v61 = vsel %vm7217_vm5, %v5556_v41, %v4416_v20  ;;  %v8475_v35 = vsel %vm7217_vm5, %v4418_v14, %v4419_v25  ;;  %v8499_v51 = vld [vmem:[%s6905_s16 + $0x84] sm:$0xf]  ;;  %v8502_v43 = vld [vmem:[%s6905_s16 + $0x88] sm:$0xf]  ;;  %v8507_v49 = vld [vmem:[%s6905_s16 + $0x90] sm:$0xf] }
 0x12c   : > { %v4430_v44 = vrot.slane %v6758_v29, 5  ;;  %v8480_v10 = vsel %vm7217_vm5, %v5557_v3, %v4423_v2  ;;  %v8484_v56 = vsel %vm7217_vm5, %v4425_v17, %v4426_v36  ;;  %v5558_v34 = vrot.slane %v6759_v1, 9  ;;  %v8510_v15 = vld [vmem:[%s6905_s16 + $0x94] sm:$0xf]  ;;  %v8521_v14 = vld [vmem:[%s6905_s16 + $0x9c] sm:$0xf] }
 0x12d   : > { %v4437_v32 = vrot.slane %v6760_v24, 5  ;;  %v8488_v20 = vrot.slane %v2353_v16, 4  ;;  %v8490_v23 = vrot.slane %v2359_v39, 5  ;;  %v5315_v52 = vcombine.low %v6761_v11, %v6762_v54  ;;  %v6767_v41 = vld [vmem:[%s8893_s1 + $0x130] sm:$0xff]   ;;  %v8524_v8 = vld [vmem:[%s6905_s16 + $0xa0] sm:$0xf] }
 0x12e   : > { %v5316_v2 = vcombine.low %v8431_v28, %v8454_v9  ;;  %6275 = vmatpush3.bf16.msra.mxu1 %v6757_v59  ;;  %v5588_v22 = vcombine.low %v8471_v61, %v8475_v35  ;;  %v5317_v27 = vcombine.low %v8499_v51, %v8502_v43  ;;  %v5318_v4 = vcombine.low %v8507_v49, %v8510_v15  ;;  %v6771_v36 = vld [vmem:[%s6905_s16 + $0x58] sm:$0xf]  ;;  %v6775_v61 = vld [vmem:[%s6905_s16 + $0x64] sm:$0xf] }
 0x12f   : > { %v4433_v38 = vrot.slane %v8026_v58, 5  ;;  %6268 = vmatprep.subr.bf16.mxu1 %v6767_v41  ;;  %v5589_v60 = vcombine.low %v8480_v10, %v8484_v56  ;;  %v4432_v55 = vrot.slane %v4430_v44, 4  ;;  %v5319_v25 = vcombine.low %v8521_v14, %v8524_v8  ;;  %v6770_v58 = vld [vmem:[%s6905_s16 + $0x48] sm:$0xf]  ;;  %v6776_v29 = vld [vmem:[%s8893_s1 + $0x138] sm:$0xff]  }
 0x130   : > { %6211 = vmatmul.mubr.bf16.gmra.mrb[28].mxu0 %v5546_v5  ;;  %v5559_v12 = vrot.slane %v6770_v58, 9  ;;  %v8531_v46 = vsel %vm7217_vm5, %v5558_v34, %v4430_v44  ;;  %v4439_v3 = vrot.slane %v4437_v32, 4  ;;  %v4440_v17 = vrot.slane %v8064_v6, 5  ;;  %v6774_v5 = vld [vmem:[%s6905_s16 + $0x54] sm:$0xf] }
 0x131   : > { %6003 = vmatmul.mubr.bf16.gmra.mrb[12].mxu1 %v5314_v26  ;;  %6230 = vmatprep.mubr.bf16.mxu0 %v5587_v0  ;;  %v4444_v16 = vrot.slane %v6771_v36, 5  ;;  %v2316_v48 = vshrl.u32 %v6761_v11, 16  ;;  %v2319_v39 = vshll.u32 %v6761_v11, 16  ;;  %v2325_v21 = vshll.u32 %v6762_v54, 16  ;;  %v8536_v26 = vld [vmem:[%s6905_s16 + $0xac] sm:$0xf] }
 0x132   : > { %6006 = vmatprep.mubr.bf16.mxu1 %v5315_v52  ;;  %6276 = vmatpush3.bf16.msra.mxu1 %v6767_v41  ;;  %v2329_v13 = vshrl.u32 %v6762_v54, 16  ;;  %v8539_v0 = vld [vmem:[%s6905_s16 + $0xa8] sm:$0xf]  ;;  %v5560_v6 = vrot.slane %v6774_v5, 9  ;;  %v4451_v35 = vrot.slane %v6775_v61, 5  ;;  %v8551_v56 = vsel %vm7217_vm5, %v4432_v55, %v4433_v38 }
 0x133   : > { %v5320_v59 = vcombine.low %v8539_v0, %v8536_v26  ;;  %6269 = vmatprep.subr.bf16.mxu1 %v6776_v29  ;;  %v6777_v44 = vld [vmem:[%s6905_s16 + $0x70] sm:$0xf]  ;;  %v8555_v1 = vsel %vm7217_vm5, %v5559_v12, %v4437_v32  ;;  %v4447_v34 = vrot.slane %v8109_v19, 5  ;;  %v8559_v24 = vld [vmem:[%s6905_s16 + $0xb8] sm:$0xf]  ;;  %v8568_v52 = vsel %vm7217_vm5, %v4439_v3, %v4440_v17 }
 0x134   : > { %v4458_v10 = vrot.slane %v6777_v44, 5  ;;  %v8562_v11 = vld [vmem:[%s6905_s16 + $0xb4] sm:$0xf]  ;;  %v4446_v38 = vrot.slane %v4444_v16, 4  ;;  %v6780_v41 = vld [vmem:[%s6905_s16 + $0x60] sm:$0xf] }
 0x135   : > { %v5321_v54 = vcombine.low %v8562_v11, %v8559_v24  ;;  %v5561_v55 = vrot.slane %v6780_v41, 9  ;;  %v4454_v32 = vrot.slane %v8141_v42, 5  ;;  %v2318_v19 = vrot.slane %v2316_v48, 4  ;;  %v6781_v61 = vld [vmem:[%s6905_s16 + $0x6c] sm:$0xf] }
 0x136   : > { %6277 = vmatpush3.bf16.msra.mxu1 %v6776_v29  ;;  %v2321_v58 = vrot.slane %v2319_v39, 5  ;;  %v8572_v12 = vrot.slane %v2325_v21, 5  ;;  %v2331_v36 = vrot.slane %v2329_v13, 4  ;;  %v4453_v5 = vrot.slane %v4451_v35, 4  ;;  %v8585_v39 = vld [vmem:[%s6905_s16 + $0xc4] sm:$0xf] }
 0x137   : > { %v5562_v44 = vrot.slane %v6781_v61, 9  ;;  %v4460_v3 = vrot.slane %v4458_v10, 4  ;;  %v4461_v17 = vrot.slane %v8191_v45, 5  ;;  %v5590_v41 = vcombine.low %v8531_v46, %v8551_v56  ;;  %v8588_v21 = vld [vmem:[%s6905_s16 + $0xc0] sm:$0xf] }
 0x138   : > { %6231 = vmatmul.mubr.bf16.vlgmr.msra.gmra.mrb[0].mxu0 %v5588_v22  ;;  %v5591_v42 = vcombine.low %v8555_v1, %v8568_v52  ;;  %v8582_v48 = vsel %vm7217_vm5, %v5560_v6, %v4444_v16  ;;  %v5322_v13 = vcombine.low %v8588_v21, %v8585_v39  ;;  %v8597_v45 = vsel %vm7217_vm5, %v4446_v38, %v4447_v34  ;;  %v6784_v46 = vld [vmem:[%s6905_s16 + $0x74] sm:$0x1]  ;;  %v6785_v6 = vld [vmem:[%s6905_s16 + $0x7c] sm:$0xf]  ;;  %v6786_v34 = vld [vmem:[%s6905_s16 + $0x78] sm:$0xf] }
 0x139   : > { %6007 = vmatmul.mubr.bf16.gmra.mrb[16].mxu1 %v5316_v2  ;;  %6234 = vmatprep.mubr.bf16.mxu0 %v5589_v60  ;;  %v8601_v22 = vsel %vm7217_vm5, %v5561_v55, %v4451_v35  ;;  %v2335_v16 = vshll.u32 %v6784_v46, 16  ;;  %v4465_v29 = vrot.slane %v6785_v6, 5  ;;  %v2322_v28 = vor.u32 %v2321_v58, %v2318_v19  ;;  %v6787_v61 = vld [vmem:[%s6905_s16 + $0x84] sm:$0xf] }
 0x13a   : > { %6010 = vmatprep.mubr.bf16.mxu1 %v5317_v27  ;;  %v2332_v2 = vor.u32 %v2331_v36, %v8572_v12  ;;  %v2346_v60 = vor.u32 %v8461_v40, %v8459_v50  ;;  %v8613_v56 = vrot.slane %v2349_v7, 5  ;;  %v8617_v35 = vsel %vm7217_vm5, %v4453_v5, %v4454_v32 }
 0x13b   : > { %v8621_v1 = vsel %vm7217_vm5, %v5562_v44, %v4458_v10  ;;  %v8625_v27 = vsel %vm7217_vm5, %v4460_v3, %v4461_v17  ;;  %v5563_v52 = vrot.slane %v6786_v34, 9  ;;  %v2364_v50 = vshrl.u32 %v8499_v51, 16 }
 0x13c   : > { %v2367_v9 = vshll.u32 %v8499_v51, 16  ;;  %v2373_v7 = vshll.u32 %v8502_v43, 16  ;;  %v2377_v40 = vshrl.u32 %v8502_v43, 16  ;;  %v5592_v38 = vcombine.low %v8582_v48, %v8597_v45 }
 0x13d   : > { %v8634_v10 = vrot.slane %v2335_v16, 5  ;;  %v4467_v55 = vrot.slane %v4465_v29, 4  ;;  %v4468_v32 = vrot.slane %v8214_v31, 5  ;;  %v8637_v19 = vrot.slane %v2322_v28, 4 }
 0x13e   : > { %v8639_v58 = vrot.slane %v2332_v2, 4  ;;  %v8641_v36 = vrot.slane %v2346_v60, 4  ;;  %v2356_v51 = vor.u32 %v8488_v20, %v8613_v56  ;;  %v5593_v43 = vcombine.low %v8601_v22, %v8617_v35  ;;  %v6788_v22 = vld [vmem:[%s6905_s16 + $0x88] sm:$0xf] }
 0x13f   : > { %v5594_v5 = vcombine.low %v8621_v1, %v8625_v27  ;;  %v8651_v31 = vsel %vm7217_vm5, %v5563_v52, %v4465_v29  ;;  %v5564_v44 = vrot.slane %v6787_v61, 9  ;;  %v2366_v3 = vrot.slane %v2364_v50, 4  ;;  %v6790_v52 = vld [vmem:[%s6905_s16 + $0x8c] sm:$0x1] }
 0x140   : > { %6235 = vmatmul.mubr.bf16.gmra.mrb[4].mxu0 %v5590_v41  ;;  %v2369_v17 = vrot.slane %v2367_v9, 5  ;;  %v8654_v48 = vrot.slane %v2373_v7, 5  ;;  %v2379_v45 = vrot.slane %v2377_v40, 4  ;;  %v8661_v20 = vsel %vm7217_vm5, %v4467_v55, %v4468_v32  ;;  %v6789_v41 = vld [vmem:[%s6905_s16 + $0x94] sm:$0xf] }
 0x141   : > { %6011 = vmatmul.mubr.bf16.gmra.mrb[20].mxu1 %v5318_v4  ;;  %6238 = vmatprep.mubr.bf16.mxu0 %v5591_v42  ;;  %v4472_v46 = vrot.slane %v6788_v22, 5  ;;  %v4475_v16 = vrot.slane %v8255_v30, 5  ;;  %v4479_v6 = vrot.slane %v6789_v41, 5  ;;  %v2328_v4 = vsel %vm6941_vm2, %v8637_v19, %v8572_v12 }
 0x142   : > { %6014 = vmatprep.mubr.bf16.mxu1 %v5319_v25  ;;  %v2338_v42 = vsel %vm6941_vm2, %v8639_v58, %v8634_v10  ;;  %v2352_v30 = vsel %vm6941_vm2, %v8641_v36, %v8613_v56  ;;  %v2357_v29 = vrot.slane %v2356_v51, 4  ;;  %v2388_v28 = vshrl.u32 %v8507_v49, 16  ;;  %v6791_v56 = vld [vmem:[%s6905_s16 + $0x90] sm:$0xf] }
 0x143   : > { %v2391_v25 = vshll.u32 %v8507_v49, 16  ;;  %v2397_v2 = vshll.u32 %v8510_v15, 16  ;;  %v2401_v60 = vshrl.u32 %v8510_v15, 16  ;;  %v8687_v12 = vsel %vm7217_vm5, %v5564_v44, %v4472_v46 }
 0x144   : > { %v2370_v35 = vor.u32 %v2369_v17, %v2366_v3  ;;  %v2380_v34 = vor.u32 %v2379_v45, %v8654_v48  ;;  %v2383_v50 = vshll.u32 %v6790_v52, 16  ;;  %v4474_v9 = vrot.slane %v4472_v46, 4 }
 0x145   : > { %v5565_v7 = vrot.slane %v6791_v56, 9  ;;  %v4481_v40 = vrot.slane %v4479_v6, 4  ;;  %v4482_v10 = vrot.slane %v8262_v18, 5  ;;  %v2412_v49 = vshrl.u32 %v8521_v14, 16 }
 0x146   : > { %v2415_v55 = vshll.u32 %v8521_v14, 16  ;;  %v2421_v15 = vshll.u32 %v8524_v8, 16  ;;  %v2425_v32 = vshrl.u32 %v8524_v8, 16  ;;  %v2390_v19 = vrot.slane %v2388_v28, 4  ;;  %v6793_v28 = vld [vmem:[%s6905_s16 + $0x9c] sm:$0xf] }
 0x147   : > { %v2393_v58 = vrot.slane %v2391_v25, 5  ;;  %v8697_v36 = vrot.slane %v2397_v2, 5  ;;  %v2403_v51 = vrot.slane %v2401_v60, 4  ;;  %v2362_v61 = vsel %vm6941_vm2, %v2357_v29, %v8490_v23  ;;  %v6794_v2 = vld [vmem:[%s6905_s16 + $0xa0] sm:$0xf] }
 0x148   : > { %6239 = vmatmul.mubr.bf16.gmra.mrb[8].mxu0 %v5592_v38  ;;  %v2371_v18 = vrot.slane %v2370_v35, 4  ;;  %v2381_v44 = vrot.slane %v2380_v34, 4  ;;  %v2385_v3 = vrot.slane %v2383_v50, 5  ;;  %v8707_v14 = vsel %vm7217_vm5, %v4474_v9, %v4475_v16  ;;  %v6792_v38 = vld [vmem:[%s6905_s16 + $0x98] sm:$0x1] }
 0x149   : > { %6015 = vmatmul.mubr.bf16.gmra.mrb[24].mxu1 %v5320_v59  ;;  %6242 = vmatprep.mubr.bf16.mxu0 %v5593_v43  ;;  %v8711_v8 = vsel %vm7217_vm5, %v5565_v7, %v4479_v6  ;;  %v8715_v23 = vsel %vm7217_vm5, %v4481_v40, %v4482_v10  ;;  %v2407_v17 = vshll.u32 %v6792_v38, 16  ;;  %v2414_v59 = vrot.slane %v2412_v49, 4  ;;  %v6796_v50 = vld [vmem:[%s6905_s16 + $0xac] sm:$0xf] }
 0x14a   : > { %6018 = vmatprep.mubr.bf16.mxu1 %v5321_v54  ;;  %v2417_v43 = vrot.slane %v2415_v55, 5  ;;  %v8721_v45 = vrot.slane %v2421_v15, 5  ;;  %v2427_v22 = vrot.slane %v2425_v32, 4  ;;  %v5355_v46 = vcombine.low %v2328_v4, %v2338_v42 }
 0x14b   : > { %v5595_v16 = vcombine.low %v8651_v31, %v8661_v20  ;;  %v2394_v41 = vor.u32 %v2393_v58, %v2390_v19  ;;  %v2404_v6 = vor.u32 %v2403_v51, %v8697_v36  ;;  %v2376_v29 = vsel %vm6941_vm2, %v2371_v18, %v8654_v48  ;;  %v6795_v20 = vld [vmem:[%s6905_s16 + $0xa4] sm:$0x1] }
 0x14c   : > { %v2386_v54 = vsel %vm6941_vm2, %v2381_v44, %v2385_v3  ;;  %v5566_v25 = vrot.slane %v6793_v28, 9  ;;  %v4486_v60 = vrot.slane %v6794_v2, 5  ;;  %v5356_v35 = vcombine.low %v2352_v30, %v2362_v61 }
 0x14d   : > { %v5596_v4 = vcombine.low %v8687_v12, %v8707_v14  ;;  %v5597_v31 = vcombine.low %v8711_v8, %v8715_v23  ;;  %v2431_v42 = vshll.u32 %v6795_v20, 16  ;;  %v2409_v34 = vrot.slane %v2407_v17, 5  ;;  %v6798_v17 = vld [vmem:[%s6905_s16 + $0xb0] sm:$0x1] }
 0x14e   : > { %v2418_v52 = vor.u32 %v2417_v43, %v2414_v59  ;;  %v2428_v48 = vor.u32 %v2427_v22, %v8721_v45  ;;  %v4493_v9 = vrot.slane %v6796_v50, 5  ;;  %v5357_v56 = vcombine.low %v2376_v29, %v2386_v54  ;;  %v6801_v50 = vld [vmem:[%s6905_s16 + $0xbc] sm:$0x1] }
 0x14f   : > { %v2395_v7 = vrot.slane %v2394_v41, 4  ;;  %v2405_v40 = vrot.slane %v2404_v6, 4  ;;  %v4489_v30 = vrot.slane %v8317_v33, 5  ;;  %v8746_v12 = vsel %vm7217_vm5, %v5566_v25, %v4486_v60  ;;  %v6797_v33 = vld [vmem:[%s6905_s16 + $0xa8] sm:$0xf] }
 0x150   : > { %6243 = vmatmul.mubr.bf16.gmra.mrb[12].mxu0 %v5594_v5  ;;  %v4488_v10 = vrot.slane %v4486_v60, 4  ;;  %v2436_v49 = vshrl.u32 %v8539_v0, 16  ;;  %v2439_v55 = vshll.u32 %v8539_v0, 16  ;;  %v2433_v15 = vrot.slane %v2431_v42, 5  ;;  %v6800_v60 = vld [vmem:[%s6905_s16 + $0xc4] sm:$0xf] }
 0x151   : > { %6019 = vmatmul.mubr.bf16.gmra.mrb[28].mxu1 %v5322_v13  ;;  %6246 = vmatprep.mubr.bf16.mxu0 %v5595_v16  ;;  %v5567_v32 = vrot.slane %v6797_v33, 9  ;;  %v2445_v1 = vshll.u32 %v8536_v26, 16  ;;  %v2449_v27 = vshrl.u32 %v8536_v26, 16  ;;  %v2419_v5 = vrot.slane %v2418_v52, 4 }
 0x152   : > { %6054 = vmatprep.mubr.bf16.mxu1 %v5355_v46  ;;  %v2429_v19 = vrot.slane %v2428_v48, 4  ;;  %v4495_v58 = vrot.slane %v4493_v9, 4  ;;  %v4496_v51 = vrot.slane %v8333_v47, 5  ;;  %v2460_v0 = vshrl.u32 %v8562_v11, 16 }
 0x153   : > { %v2463_v61 = vshll.u32 %v8562_v11, 16  ;;  %v2469_v13 = vshll.u32 %v8559_v24, 16  ;;  %v2473_v18 = vshrl.u32 %v8559_v24, 16  ;;  %v2400_v44 = vsel %vm6941_vm2, %v2395_v7, %v8697_v36 }
 0x154   : > { %v2410_v26 = vsel %vm6941_vm2, %v2405_v40, %v2409_v34  ;;  %v2438_v3 = vrot.slane %v2436_v49, 4  ;;  %v2441_v14 = vrot.slane %v2439_v55, 5  ;;  %v4490_v47 = vsel %vm7217_vm5, %v4488_v10, %v4489_v30  ;;  %v6802_v40 = vld [vmem:[%s6905_s16 + $0xb4] sm:$0xf]  ;;  %v6803_v49 = vld [vmem:[%s6905_s16 + $0xc0] sm:$0xf] }
 0x155   : > { %v4494_v8 = vsel %vm7217_vm5, %v5567_v32, %v4493_v9  ;;  %v8770_v11 = vrot.slane %v2445_v1, 5  ;;  %v2451_v23 = vrot.slane %v2449_v27, 4  ;;  %v2424_v24 = vsel %vm6941_vm2, %v2419_v5, %v8721_v45  ;;  %v6799_v45 = vld [vmem:[%s6905_s16 + $0xb8] sm:$0xf] }
 0x156   : > { %v2434_v36 = vsel %vm6941_vm2, %v2429_v19, %v2433_v15  ;;  %v4497_v38 = vsel %vm7217_vm5, %v4495_v58, %v4496_v51  ;;  %v2455_v59 = vshll.u32 %v6798_v17, 16  ;;  %v2462_v43 = vrot.slane %v2460_v0, 4 }
 0x157   : > { %v2465_v22 = vrot.slane %v2463_v61, 5  ;;  %v8780_v46 = vrot.slane %v2469_v13, 5  ;;  %v2475_v16 = vrot.slane %v2473_v18, 4  ;;  %v5358_v41 = vcombine.low %v2400_v44, %v2410_v26  ;;  %v6804_v61 = vld [vmem:[%s6905_s16 + $0xd0] sm:$0xf] }
 0x158   : > { %6247 = vmatmul.mubr.bf16.gmra.mrb[16].mxu0 %v5596_v4  ;;  %v5598_v6 = vcombine.low %v8746_v12, %v4490_v47  ;;  %v2442_v29 = vor.u32 %v2441_v14, %v2438_v3  ;;  %v4500_v54 = vrot.slane %v6799_v45, 5  ;;  %v5359_v28 = vcombine.low %v2424_v24, %v2434_v36  ;;  %v6805_v3 = vld [vmem:[%s6905_s16 + $0xc8] sm:$0x1]  ;;  %v6806_v36 = vld [vmem:[%s6905_s16 + $0xcc] sm:$0xf]  ;;  %s5613_s16 = sshll.u32 %s8985_s12, 8 }
 0x159   : > { %6055 = vmatmul.mubr.bf16.vlgmr.msra.gmra.mrb[16].mxu1 %v5356_v35  ;;  %6250 = vmatprep.mubr.bf16.mxu0 %v5597_v31  ;;  %v5599_v25 = vcombine.low %v4494_v8, %v4497_v38  ;;  %v2452_v2 = vor.u32 %v2451_v23, %v8770_v11  ;;  %v4507_v20 = vrot.slane %v6800_v60, 5  ;;  %v2484_v4 = vshrl.u32 %v8588_v21, 16  ;;  %s8840_s27 = scalar_lea.vmem %s8894_s2, %s5613_s16 }
 0x15a   : > { %6058 = vmatprep.mubr.bf16.mxu1 %v5357_v56  ;;  %v2487_v42 = vshll.u32 %v8588_v21, 16  ;;  %v2493_v34 = vshll.u32 %v8585_v39, 16  ;;  %v2497_v52 = vshrl.u32 %v8585_v39, 16  ;;  %v2457_v48 = vrot.slane %v2455_v59, 5 }
 0x15b   : > { %v2466_v35 = vor.u32 %v2465_v22, %v2462_v43  ;;  %v2476_v31 = vor.u32 %v2475_v16, %v8780_v46  ;;  %v2479_v9 = vshll.u32 %v6801_v50, 16  ;;  %v2443_v7 = vrot.slane %v2442_v29, 4 }
 0x15c   : > { %v5568_v30 = vrot.slane %v6802_v40, 9  ;;  %v4502_v12 = vrot.slane %v4500_v54, 4  ;;  %v4503_v56 = vrot.slane %v8365_v63, 5  ;;  %v2453_v10 = vrot.slane %v2452_v2, 4 }
 0x15d   : > { %v5569_v55 = vrot.slane %v6803_v49, 9  ;;  %v4509_v21 = vrot.slane %v4507_v20, 4  ;;  %v4510_v15 = vrot.slane %v8372_v57, 5  ;;  %v2486_v39 = vrot.slane %v2484_v4, 4 }
 0x15e   : > { %v2489_v33 = vrot.slane %v2487_v42, 5  ;;  %v2495_v32 = vrot.slane %v2493_v34, 5  ;;  %v2499_v1 = vrot.slane %v2497_v52, 4  ;;  %v2467_v27 = vrot.slane %v2466_v35, 4 }
 0x15f   : > { %v2477_v5 = vrot.slane %v2476_v31, 4  ;;  %v2481_v19 = vrot.slane %v2479_v9, 5  ;;  %v2448_v63 = vsel %vm6941_vm2, %v2443_v7, %v8770_v11  ;;  %v4501_v58 = vsel %vm7217_vm5, %v5568_v30, %v4500_v54 }
 0x160   : > { %6251 = vmatmul.mubr.bf16.gmra.mrb[20].mxu0 %v5598_v6  ;;  %v2458_v57 = vsel %vm6941_vm2, %v2453_v10, %v2457_v48  ;;  %v4504_v51 = vsel %vm7217_vm5, %v4502_v12, %v4503_v56  ;;  %v4508_v0 = vsel %vm7217_vm5, %v5569_v55, %v4507_v20  ;;  %v4514_v13 = vrot.slane %v6804_v61, 5 }
 0x161   : > { %6059 = vmatmul.mubr.bf16.gmra.mrb[20].mxu1 %v5358_v41  ;;  %6254 = vmatprep.mubr.bf16.mxu0 %v5599_v25  ;;  %v4511_v18 = vsel %vm7217_vm5, %v4509_v21, %v4510_v15  ;;  %v2490_v44 = vor.u32 %v2489_v33, %v2486_v39  ;;  %v2500_v26 = vor.u32 %v2499_v1, %v2495_v32  ;;  %v2503_v14 = vshll.u32 %v6805_v3, 16 }
 0x162   : > { %6062 = vmatprep.mubr.bf16.mxu1 %v5359_v28  ;;  %v2472_v47 = vsel %vm6941_vm2, %v2467_v27, %v8780_v46  ;;  %v2482_v8 = vsel %vm6941_vm2, %v2477_v5, %v2481_v19  ;;  %v5360_v11 = vcombine.low %v2448_v63, %v2458_v57  ;;  %v5600_v23 = vcombine.low %v4501_v58, %v4504_v51 }
 0x163   : > { %v5601_v24 = vcombine.low %v4508_v0, %v4511_v18  ;;  %v5570_v38 = vrot.slane %v6806_v36, 9  ;;  %v4516_v17 = vrot.slane %v4514_v13, 4  ;;  %v4517_v59 = vrot.slane %v8401_v62, 5 }
 0x164   : > { %v5361_v43 = vcombine.low %v2472_v47, %v2482_v8  ;;  %v2491_v22 = vrot.slane %v2490_v44, 4  ;;  %v2501_v16 = vrot.slane %v2500_v26, 4  ;;  %v2505_v41 = vrot.slane %v2503_v14, 5 }
 0x165   : > { %v4515_v46 = vsel %vm7217_vm5, %v5570_v38, %v4514_v13  ;;  %v4518_v6 = vsel %vm7217_vm5, %v4516_v17, %v4517_v59 }
 0x166   : > { %v2496_v29 = vsel %vm6941_vm2, %v2491_v22, %v2495_v32  ;;  %v2506_v62 = vsel %vm6941_vm2, %v2501_v16, %v2505_v41  ;;  %v5602_v45 = vcombine.low %v4515_v46, %v4518_v6 }
 0x167   : > { %v5362_v54 = vcombine.low %v2496_v29, %v2506_v62 }
 0x168   : > { %6255 = vmatmul.mubr.bf16.gmra.mrb[24].mxu0 %v5600_v23 }
 0x169   : > { %6063 = vmatmul.mubr.bf16.gmra.mrb[24].mxu1 %v5360_v11  ;;  %6258 = vmatprep.mubr.bf16.mxu0 %v5601_v24 }
 0x16a   : > { %6066 = vmatprep.mubr.bf16.mxu1 %v5361_v43 }
 0x170   : > { %6259 = vmatmul.mubr.bf16.gmra.mrb[28].mxu0 %v5602_v45 }
 0x171   : > { %6067 = vmatmul.mubr.bf16.gmra.mrb[28].mxu1 %v5362_v54 }
 0x1eb   : > { %v5992_v28 = vpop.f32.mrb[0].mxu1 }
 0x1ec   : > { %v1964_v25 = vpop.f32.mrb[1].mxu1 }
 0x1ed   : > { %v5993_v2 = vpop.f32.mrb[2].mxu1 }
 0x1ee   : > { %v1967_v60 = vpop.f32.mrb[3].mxu1 }
 0x1f4   : > { %v5996_v20 = vpop.f32.mrb[4].mxu1 }
 0x1f5   : > { %v1980_v4 = vpop.f32.mrb[5].mxu1 }
 0x1f6   : > { %v5997_v53 = vpop.f32.mrb[6].mxu1 }
 0x1f7   : > { %v1983_v42 = vpop.f32.mrb[7].mxu1 }
 0x1fc   : > { %v6000_v34 = vpop.f32.mrb[8].mxu1 }
 0x1fd   : > { %v1996_v52 = vpop.f32.mrb[9].mxu1 }
 0x1fe   : > { %v6001_v48 = vpop.f32.mrb[10].mxu1 }
 0x1ff   : > { %v8826_v35 = vpop.f32.mrb[11].mxu1 }
 0x204   : > { %v8828_v37 = vpop.f32.mrb[12].mxu1 }
 0x205   : > { %v8830_v31 = vpop.f32.mrb[13].mxu1 }
 0x206   : > { %v8832_v50 = vpop.f32.mrb[14].mxu1 }
 0x207   : > { %v8834_v9 = vpop.f32.mrb[15].mxu1 }
 0x20b   : > { %v6232_v7 = vpop.f32.mrb[0].mxu0 }
 0x20c   : > { %v6278_v40 = vadd.f32 %v6232_v7, %v5992_v28  ;;  %v4682_v30 = vpop.f32.mrb[1].mxu0 }
 0x20d   : > { %v6279_v12 = vadd.f32 %v4682_v30, %v1964_v25  ;;  %v6233_v56 = vpop.f32.mrb[2].mxu0 }
 0x20e   : > { %4843 = vst [vmem:[%s8840_s27 + $0x10] sm:$0xff] %v6278_v40  ;;  %v6280_v10 = vadd.f32 %v6233_v56, %v5993_v2  ;;  %v4685_v49 = vpop.f32.mrb[3].mxu0  ;;  %v4912_v33 = vmul.f32 %v6278_v40, %v6278_v40 }
 0x20f   : > { %4841 = vst [vmem:[%s8840_s27] sm:$0xff] %v6279_v12  ;;  %v6281_v55 = vadd.f32 %v4685_v49, %v1967_v60  ;;  %v4910_v21 = vmul.f32 %v6279_v12, %v6279_v12 }
 0x210   : > { %4844 = vst [vmem:[%s8840_s27 + $0x18] sm:$0xff] %v6280_v10  ;;  %v4913_v63 = vmul.f32 %v6280_v10, %v6280_v10 }
 0x211   : > { %4842 = vst [vmem:[%s8840_s27 + $0x8] sm:$0xff] %v6281_v55  ;;  %v4873_v15 = vadd.f32 %v6281_v55, %v6279_v12  ;;  %v4911_v39 = vmul.f32 %v6281_v55, %v6281_v55 }
 0x213   : > { %v4874_v32 = vadd.f32 %v6278_v40, %v4873_v15  ;;  %v4942_v1 = vadd.f32 %v4911_v39, %v4910_v21  ;;  %v6236_v27 = vpop.f32.mrb[4].mxu0 }
 0x214   : > { %v6282_v5 = vadd.f32 %v6236_v27, %v5996_v20  ;;  %v4698_v19 = vpop.f32.mrb[5].mxu0 }
 0x215   : > { %v4943_v58 = vadd.f32 %v4942_v1, %v4912_v33  ;;  %v6283_v57 = vadd.f32 %v4698_v19, %v1980_v4  ;;  %v4875_v51 = vadd.f32 %v6280_v10, %v4874_v32  ;;  %v6237_v0 = vpop.f32.mrb[6].mxu0 }
 0x216   : > { %4847 = vst [vmem:[%s8840_s27 + $0x30] sm:$0xff] %v6282_v5  ;;  %v6284_v61 = vadd.f32 %v6237_v0, %v5997_v53  ;;  %v4701_v13 = vpop.f32.mrb[7].mxu0  ;;  %v4916_v11 = vmul.f32 %v6282_v5, %v6282_v5 }
 0x217   : > { %4845 = vst [vmem:[%s8840_s27 + $0x20] sm:$0xff] %v6283_v57  ;;  %v4876_v18 = vadd.f32 %v6283_v57, %v4875_v51  ;;  %v4914_v44 = vmul.f32 %v6283_v57, %v6283_v57  ;;  %v4944_v26 = vadd.f32 %v4943_v58, %v4913_v63  ;;  %v6285_v3 = vadd.f32 %v4701_v13, %v1983_v42 }
 0x218   : > { %4848 = vst [vmem:[%s8840_s27 + $0x38] sm:$0xff] %v6284_v61  ;;  %v4917_v59 = vmul.f32 %v6284_v61, %v6284_v61 }
 0x219   : > { %v4945_v14 = vadd.f32 %v4944_v26, %v4914_v44  ;;  %4846 = vst [vmem:[%s8840_s27 + $0x28] sm:$0xff] %v6285_v3  ;;  %v4877_v47 = vadd.f32 %v6285_v3, %v4876_v18  ;;  %v4915_v8 = vmul.f32 %v6285_v3, %v6285_v3 }
 0x21b   : > { %v4878_v23 = vadd.f32 %v6282_v5, %v4877_v47  ;;  %v4946_v24 = vadd.f32 %v4945_v14, %v4915_v8  ;;  %v6240_v36 = vpop.f32.mrb[8].mxu0 }
 0x21c   : > { %v6286_v38 = vadd.f32 %v6240_v36, %v6000_v34  ;;  %v4714_v17 = vpop.f32.mrb[9].mxu0 }
 0x21d   : > { %v4947_v43 = vadd.f32 %v4946_v24, %v4916_v11  ;;  %v6287_v22 = vadd.f32 %v4714_v17, %v1996_v52  ;;  %v4879_v16 = vadd.f32 %v6284_v61, %v4878_v23  ;;  %v6241_v41 = vpop.f32.mrb[10].mxu0 }
 0x21e   : > { %4851 = vst [vmem:[%s8840_s27 + $0x50] sm:$0xff] %v6286_v38  ;;  %v6288_v46 = vadd.f32 %v6241_v41, %v6001_v48  ;;  %v4717_v6 = vpop.f32.mrb[11].mxu0  ;;  %v4920_v60 = vmul.f32 %v6286_v38, %v6286_v38 }
 0x21f   : > { %4849 = vst [vmem:[%s8840_s27 + $0x40] sm:$0xff] %v6287_v22  ;;  %v4880_v29 = vadd.f32 %v6287_v22, %v4879_v16  ;;  %v4918_v62 = vmul.f32 %v6287_v22, %v6287_v22  ;;  %v4948_v45 = vadd.f32 %v4947_v43, %v4917_v59  ;;  %v6289_v54 = vadd.f32 %v4717_v6, %v8826_v35 }
 0x220   : > { %4852 = vst [vmem:[%s8840_s27 + $0x58] sm:$0xff] %v6288_v46  ;;  %v4921_v52 = vmul.f32 %v6288_v46, %v6288_v46 }
 0x221   : > { %v4949_v28 = vadd.f32 %v4948_v45, %v4918_v62  ;;  %4850 = vst [vmem:[%s8840_s27 + $0x48] sm:$0xff] %v6289_v54  ;;  %v4881_v25 = vadd.f32 %v6289_v54, %v4880_v29  ;;  %v4919_v2 = vmul.f32 %v6289_v54, %v6289_v54 }
 0x223   : > { %v4882_v20 = vadd.f32 %v6286_v38, %v4881_v25  ;;  %v4950_v4 = vadd.f32 %v4949_v28, %v4919_v2  ;;  %v6244_v53 = vpop.f32.mrb[12].mxu0 }
 0x224   : > { %v6290_v42 = vadd.f32 %v6244_v53, %v8828_v37  ;;  %v4730_v34 = vpop.f32.mrb[13].mxu0 }
 0x225   : > { %v4951_v48 = vadd.f32 %v4950_v4, %v4920_v60  ;;  %v6291_v35 = vadd.f32 %v4730_v34, %v8830_v31  ;;  %v4883_v7 = vadd.f32 %v6288_v46, %v4882_v20  ;;  %v6245_v40 = vpop.f32.mrb[14].mxu0 }
 0x226   : > { %4855 = vst [vmem:[%s8840_s27 + $0x70] sm:$0xff] %v6290_v42  ;;  %v6292_v30 = vadd.f32 %v6245_v40, %v8832_v50  ;;  %v4733_v12 = vpop.f32.mrb[15].mxu0  ;;  %v4924_v39 = vmul.f32 %v6290_v42, %v6290_v42 }
 0x227   : > { %4853 = vst [vmem:[%s8840_s27 + $0x60] sm:$0xff] %v6291_v35  ;;  %v4884_v56 = vadd.f32 %v6291_v35, %v4883_v7  ;;  %v4922_v10 = vmul.f32 %v6291_v35, %v6291_v35  ;;  %v4952_v49 = vadd.f32 %v4951_v48, %v4921_v52  ;;  %v6293_v55 = vadd.f32 %v4733_v12, %v8834_v9 }
 0x228   : > { %4856 = vst [vmem:[%s8840_s27 + $0x78] sm:$0xff] %v6292_v30  ;;  %v4925_v27 = vmul.f32 %v6292_v30, %v6292_v30 }
 0x229   : > { %v4953_v37 = vadd.f32 %v4952_v49, %v4922_v10  ;;  %4854 = vst [vmem:[%s8840_s27 + $0x68] sm:$0xff] %v6293_v55  ;;  %v4885_v21 = vadd.f32 %v6293_v55, %v4884_v56  ;;  %v4923_v15 = vmul.f32 %v6293_v55, %v6293_v55 }
 0x22b   : > { %v4886_v31 = vadd.f32 %v6290_v42, %v4885_v21  ;;  %v4954_v33 = vadd.f32 %v4953_v37, %v4923_v15  ;;  %v6248_v32 = vpop.f32.mrb[16].mxu0 }
 0x22c   : > { %v6056_v1 = vpop.f32.mrb[16].mxu1  ;;  %v4746_v50 = vpop.f32.mrb[17].mxu0 }
 0x22d   : > { %v4955_v5 = vadd.f32 %v4954_v33, %v4924_v39  ;;  %v6294_v19 = vadd.f32 %v6248_v32, %v6056_v1  ;;  %v2734_v63 = vpop.f32.mrb[17].mxu1  ;;  %v4887_v9 = vadd.f32 %v6292_v30, %v4886_v31  ;;  %v6249_v58 = vpop.f32.mrb[18].mxu0 }
 0x22e   : > { %v6295_v57 = vadd.f32 %v4746_v50, %v2734_v63  ;;  %v6057_v51 = vpop.f32.mrb[18].mxu1  ;;  %v4749_v0 = vpop.f32.mrb[19].mxu0 }
 0x22f   : > { %4859 = vst [vmem:[%s8840_s27 + $0x90] sm:$0xff] %v6294_v19  ;;  %v4956_v61 = vadd.f32 %v4955_v5, %v4925_v27  ;;  %v6296_v13 = vadd.f32 %v6249_v58, %v6057_v51  ;;  %v2737_v18 = vpop.f32.mrb[19].mxu1  ;;  %v4928_v23 = vmul.f32 %v6294_v19, %v6294_v19 }
 0x230   : > { %4857 = vst [vmem:[%s8840_s27 + $0x80] sm:$0xff] %v6295_v57  ;;  %v4888_v44 = vadd.f32 %v6295_v57, %v4887_v9  ;;  %v4926_v26 = vmul.f32 %v6295_v57, %v6295_v57  ;;  %v6297_v3 = vadd.f32 %v4749_v0, %v2737_v18 }
 0x231   : > { %4860 = vst [vmem:[%s8840_s27 + $0x98] sm:$0xff] %v6296_v13  ;;  %v4929_v16 = vmul.f32 %v6296_v13, %v6296_v13 }
 0x232   : > { %v4957_v14 = vadd.f32 %v4956_v61, %v4926_v26  ;;  %4858 = vst [vmem:[%s8840_s27 + $0x88] sm:$0xff] %v6297_v3  ;;  %v4889_v47 = vadd.f32 %v6297_v3, %v4888_v44  ;;  %v4927_v8 = vmul.f32 %v6297_v3, %v6297_v3 }
 0x233   : > { %v6252_v11 = vpop.f32.mrb[20].mxu0 }
 0x234   : > { %v4890_v24 = vadd.f32 %v6294_v19, %v4889_v47  ;;  %v4958_v36 = vadd.f32 %v4957_v14, %v4927_v8  ;;  %v6060_v38 = vpop.f32.mrb[20].mxu1  ;;  %v4762_v17 = vpop.f32.mrb[21].mxu0 }
 0x235   : > { %v6298_v59 = vadd.f32 %v6252_v11, %v6060_v38  ;;  %v2750_v43 = vpop.f32.mrb[21].mxu1  ;;  %v6253_v22 = vpop.f32.mrb[22].mxu0 }
 0x236   : > { %v4959_v41 = vadd.f32 %v4958_v36, %v4928_v23  ;;  %v6299_v46 = vadd.f32 %v4762_v17, %v2750_v43  ;;  %v4891_v6 = vadd.f32 %v6296_v13, %v4890_v24  ;;  %v6061_v29 = vpop.f32.mrb[22].mxu1  ;;  %v4765_v62 = vpop.f32.mrb[23].mxu0 }
 0x237   : > { %4863 = vst [vmem:[%s8840_s27 + $0xb0] sm:$0xff] %v6298_v59  ;;  %v6300_v45 = vadd.f32 %v6253_v22, %v6061_v29  ;;  %v2753_v54 = vpop.f32.mrb[23].mxu1  ;;  %v4932_v34 = vmul.f32 %v6298_v59, %v6298_v59 }
 0x238   : > { %4861 = vst [vmem:[%s8840_s27 + $0xa0] sm:$0xff] %v6299_v46  ;;  %v4892_v28 = vadd.f32 %v6299_v46, %v4891_v6  ;;  %v4930_v25 = vmul.f32 %v6299_v46, %v6299_v46  ;;  %v4960_v2 = vadd.f32 %v4959_v41, %v4929_v16  ;;  %v6301_v60 = vadd.f32 %v4765_v62, %v2753_v54 }
 0x239   : > { %4864 = vst [vmem:[%s8840_s27 + $0xb8] sm:$0xff] %v6300_v45  ;;  %v4933_v56 = vmul.f32 %v6300_v45, %v6300_v45 }
 0x23a   : > { %v4961_v20 = vadd.f32 %v4960_v2, %v4930_v25  ;;  %4862 = vst [vmem:[%s8840_s27 + $0xa8] sm:$0xff] %v6301_v60  ;;  %v4893_v4 = vadd.f32 %v6301_v60, %v4892_v28  ;;  %v4931_v53 = vmul.f32 %v6301_v60, %v6301_v60 }
 0x23b   : > { %v6256_v42 = vpop.f32.mrb[24].mxu0 }
 0x23c   : > { %v4894_v52 = vadd.f32 %v6298_v59, %v4893_v4  ;;  %v4962_v48 = vadd.f32 %v4961_v20, %v4931_v53  ;;  %v6064_v35 = vpop.f32.mrb[24].mxu1  ;;  %v4778_v7 = vpop.f32.mrb[25].mxu0 }
 0x23d   : > { %v6302_v40 = vadd.f32 %v6256_v42, %v6064_v35  ;;  %v2766_v30 = vpop.f32.mrb[25].mxu1  ;;  %v6257_v12 = vpop.f32.mrb[26].mxu0 }
 0x23e   : > { %v4963_v10 = vadd.f32 %v4962_v48, %v4932_v34  ;;  %v6303_v49 = vadd.f32 %v4778_v7, %v2766_v30  ;;  %v4895_v55 = vadd.f32 %v6300_v45, %v4894_v52  ;;  %v6065_v37 = vpop.f32.mrb[26].mxu1  ;;  %v4781_v21 = vpop.f32.mrb[27].mxu0 }
 0x23f   : > { %4867 = vst [vmem:[%s8840_s27 + $0xd0] sm:$0xff] %v6302_v40  ;;  %v6304_v15 = vadd.f32 %v6257_v12, %v6065_v37  ;;  %v2769_v39 = vpop.f32.mrb[27].mxu1  ;;  %v4936_v63 = vmul.f32 %v6302_v40, %v6302_v40 }
 0x240   : > { %4865 = vst [vmem:[%s8840_s27 + $0xc0] sm:$0xff] %v6303_v49  ;;  %v4896_v31 = vadd.f32 %v6303_v49, %v4895_v55  ;;  %v4934_v33 = vmul.f32 %v6303_v49, %v6303_v49  ;;  %v4964_v32 = vadd.f32 %v4963_v10, %v4933_v56  ;;  %v6305_v1 = vadd.f32 %v4781_v21, %v2769_v39 }
 0x241   : > { %4868 = vst [vmem:[%s8840_s27 + $0xd8] sm:$0xff] %v6304_v15  ;;  %v4937_v18 = vmul.f32 %v6304_v15, %v6304_v15 }
 0x242   : > { %v4965_v50 = vadd.f32 %v4964_v32, %v4934_v33  ;;  %4866 = vst [vmem:[%s8840_s27 + $0xc8] sm:$0xff] %v6305_v1  ;;  %v4897_v27 = vadd.f32 %v6305_v1, %v4896_v31  ;;  %v4935_v5 = vmul.f32 %v6305_v1, %v6305_v1 }
 0x243   : > { %v6260_v19 = vpop.f32.mrb[28].mxu0 }
 0x244   : > { %v4898_v9 = vadd.f32 %v6302_v40, %v4897_v27  ;;  %v4966_v58 = vadd.f32 %v4965_v50, %v4935_v5  ;;  %v6068_v57 = vpop.f32.mrb[28].mxu1  ;;  %v4794_v51 = vpop.f32.mrb[29].mxu0 }
 0x245   : > { %v6306_v0 = vadd.f32 %v6260_v19, %v6068_v57  ;;  %v2782_v61 = vpop.f32.mrb[29].mxu1  ;;  %v6261_v13 = vpop.f32.mrb[30].mxu0 }
 0x246   : > { %v4967_v44 = vadd.f32 %v4966_v58, %v4936_v63  ;;  %v6307_v26 = vadd.f32 %v4794_v51, %v2782_v61  ;;  %v4899_v3 = vadd.f32 %v6304_v15, %v4898_v9  ;;  %v6069_v14 = vpop.f32.mrb[30].mxu1  ;;  %v4797_v47 = vpop.f32.mrb[31].mxu0 }
 0x247   : > { %4871 = vst [vmem:[%s8840_s27 + $0xf0] sm:$0xff] %v6306_v0  ;;  %v6308_v8 = vadd.f32 %v6261_v13, %v6069_v14  ;;  %v2785_v11 = vpop.f32.mrb[31].mxu1  ;;  %v4940_v22 = vmul.f32 %v6306_v0, %v6306_v0 }
 0x248   : > { %4869 = vst [vmem:[%s8840_s27 + $0xe0] sm:$0xff] %v6307_v26  ;;  %v4900_v23 = vadd.f32 %v6307_v26, %v4899_v3  ;;  %v4938_v24 = vmul.f32 %v6307_v26, %v6307_v26  ;;  %v4968_v36 = vadd.f32 %v4967_v44, %v4937_v18  ;;  %v6309_v38 = vadd.f32 %v4797_v47, %v2785_v11 }
 0x249   : > { %4872 = vst [vmem:[%s8840_s27 + $0xf8] sm:$0xff] %v6308_v8  ;;  %v4941_v46 = vmul.f32 %v6308_v8, %v6308_v8 }
 0x24a   : > { %v4969_v17 = vadd.f32 %v4968_v36, %v4938_v24  ;;  %4870 = vst [vmem:[%s8840_s27 + $0xe8] sm:$0xff] %v6309_v38  ;;  %v4901_v59 = vadd.f32 %v6309_v38, %v4900_v23  ;;  %v4939_v43 = vmul.f32 %v6309_v38, %v6309_v38 }
 0x24c   : > { %v4902_v16 = vadd.f32 %v6306_v0, %v4901_v59  ;;  %v4970_v41 = vadd.f32 %v4969_v17, %v4939_v43 }
 0x24e   : > { %v4903_v6 = vadd.f32 %v6308_v8, %v4902_v16  ;;  %v4971_v29 = vadd.f32 %v4970_v41, %v4940_v22 }
 0x250   : > { %v4904_v62 = vrot.slane %v4903_v6, 4  ;;  %v4972_v45 = vadd.f32 %v4971_v29, %v4941_v46 }
 0x252   : > { %v4905_v54 = vadd.f32 %v4904_v62, %v4903_v6  ;;  %v4973_v28 = vrot.slane %v4972_v45, 4 }
 0x254   : > { %v4906_v25 = vrot.slane %v4905_v54, 2  ;;  %v4974_v2 = vadd.f32 %v4973_v28, %v4972_v45 }
 0x256   : > { %v4907_v60 = vadd.f32 %v4906_v25, %v4905_v54  ;;  %v4975_v20 = vrot.slane %v4974_v2, 2 }
 0x258   : > { %v4908_v4 = vrot.slane %v4907_v60, 1  ;;  %v4976_v53 = vadd.f32 %v4975_v20, %v4974_v2 }
 0x25a   : > { %v4977_v42 = vrot.slane %v4976_v53, 1  ;;  %v4909_v34 = vadd.f32 %v4908_v4, %v4907_v60 }
 0x25c   : > { %v4978_v52 = vadd.f32 %v4977_v42, %v4976_v53 }
 0x25e   : > { %v4980_v48 = vsel %vm4979_vm6, %v4909_v34, %v4978_v52 }
 0x25f   : > { %4981 = vst [vmem:[%s212_s4] sm:$0x3] %v4980_v48 }
 0x260 PF: > { %s14_s14 = sadd.s32 1, %s6829_s14   ;;  %s8980_s12 = smov %s6825_s13 }
 0x261   : > { %p11_p5 = scmp.ge.s32.totalorder %s14_s14, 4   ;;  %s8981_s13 = smov %s8983_s15 }
 0x263   :  { %13 = sbr.rel (!%p11_p5) target bundleno = 2 (0x2), region = 81 }

</bundles_post_ra>
